<compile_context>
chip_gen: v7x
topology: tpu7x:2x2x1
jax: 0.10.0
libtpu: 0.0.40
codegen_flags: <defaults>
</compile_context>

<pallas_src>
import functools

import jax
import jax.numpy as jnp
from jax import lax
from jax.experimental import pallas as pl
from jax.experimental.pallas import tpu as pltpu


# ------------------------------------------------------------------------- #
# In-kernel helpers (pure jnp, traced inside the Pallas kernel)
# ------------------------------------------------------------------------- #
def _row_norm(g):
    deg = jnp.sum(g, axis=1, keepdims=True)
    inv = jnp.where(deg > 0.0, pl.reciprocal(deg, approx=True), 0.0)
    return g * inv


def _layer_norm(x, gamma, beta):
    mu = jnp.mean(x, axis=-1, keepdims=True)
    var = jnp.mean((x - mu) ** 2, axis=-1, keepdims=True)
    return (x - mu) * lax.rsqrt(var + 1e-5) * gamma + beta


def _gcn(g, h, w, b):
    gh = jnp.dot(g, h, preferred_element_type=jnp.float32)
    z = jnp.dot(gh, w, preferred_element_type=jnp.float32) + b
    return jnp.maximum(z, 0.0)


def _pool(g, h, w, b, k_nodes):
    """Top-k pooling entirely in VMEM: packed-key argmax + selection matmuls."""
    n = g.shape[0]
    scores = jax.nn.sigmoid(
        jnp.dot(h, w, preferred_element_type=jnp.float32) + b)          # [n, 1]

    # Pack (score, n-1-index) into one monotone positive f32 key so each pick is
    # a single max-reduce (ties -> lowest index).  sigmoid > 0, so the bit
    # pattern of the f32 score is monotone as an int32.
    idx_mod = pl.next_power_of_2(n)
    iota_col = lax.broadcasted_iota(jnp.int32, (n, 1), 0)
    key_i = pltpu.bitcast(jnp.maximum(scores, 1e-30), jnp.int32)
    key_i = (key_i & jnp.int32(~(idx_mod - 1))) | (jnp.int32(n - 1) - iota_col)
    key0 = pltpu.bitcast(key_i, jnp.float32)
    iota_k = lax.broadcasted_iota(jnp.int32, (k_nodes, 1), 0)

    def pick(i, carry):
        keys, sel = carry
        m = jnp.max(keys, keepdims=True)                                 # [1, 1]
        idx = jnp.int32(n - 1) - (pltpu.bitcast(m, jnp.int32)
                                  & jnp.int32(idx_mod - 1))              # [1, 1]
        sel = jnp.where(iota_k == i, idx, sel)                           # [k, 1]
        keys = jnp.where(iota_col == idx, -jnp.inf, keys)                # [n, 1]
        return keys, sel

    _, sel = lax.fori_loop(0, k_nodes, pick,
                           (key0, jnp.zeros((k_nodes, 1), jnp.int32)),
                           unroll=True)

    # One-hot selection matrix from the index vector: a single broadcast compare.
    p_sel = (lax.broadcasted_iota(jnp.int32, (k_nodes, n), 1) == sel
             ).astype(jnp.float32)                                       # [k, n]

    vals = jnp.dot(p_sel, scores, preferred_element_type=jnp.float32)    # [k, 1]
    new_h = jnp.dot(p_sel, h, preferred_element_type=jnp.float32) * vals

    # un_g[idx][:, idx] = ((a@a)!=0)[idx][:, idx] == ((P a)(a P^T)) != 0
    # (threshold applied AFTER the product; exact because P is a 0/1 selection).
    a = (g != 0.0).astype(jnp.float32)
    pa = jnp.dot(p_sel, a, preferred_element_type=jnp.float32)           # [k, n]
    apt = lax.dot_general(a, p_sel,
                          dimension_numbers=(((1,), (1,)), ((), ())),
                          preferred_element_type=jnp.float32)             # [n, k]
    sel_g = (jnp.dot(pa, apt, preferred_element_type=jnp.float32) != 0.0
             ).astype(jnp.float32)                                        # [k, k]
    return _row_norm(sel_g), new_h


# ------------------------------------------------------------------------- #
# Fused GraphCLS kernel: one grid step == BG graphs, encoder + classifier
# ------------------------------------------------------------------------- #
def graph_cls_kernel(g_ref, h_ref,
                     s_gcn_w, s_gcn_b, s_ln_g, s_ln_b,
                     down_w, down_b, pool_w, pool_b,
                     bot_gcn_w, bot_gcn_b, bot_ln_g, bot_ln_b,
                     fc_w3, fc_b, ln_g, ln_b,
                     fc2_w, fc2_b, ln2_g, ln2_b, fc3_w, fc3_b,
                     out_ref, *, ks):
    bg = g_ref.shape[0]

    # Load shared weights once per grid step; reused by all BG graphs.
    sw, sb, slg, slb = s_gcn_w[...], s_gcn_b[...], s_ln_g[...], s_ln_b[...]
    dw, db, pw, pb = down_w[...], down_b[...], pool_w[...], pool_b[...]
    bw, bb, blg, blb = bot_gcn_w[...], bot_gcn_b[...], bot_ln_g[...], bot_ln_b[...]
    w1, b1, g1, be1 = fc_w3[...], fc_b[...], ln_g[...], ln_b[...]
    w2, b2, g2, be2 = fc2_w[...], fc2_b[...], ln2_g[...], ln2_b[...]
    w3, b3 = fc3_w[...], fc3_b[...]

    rows = []
    for gi in range(bg):                       # static loop: independent graphs
        g = g_ref[gi]                          # [N, N]
        h = h_ref[gi]                          # [N, feat]

        g = _row_norm(g)
        h = _layer_norm(_gcn(g, h, sw, sb), slg, slb)

        n_cur = g.shape[0]
        for li, kf in enumerate(ks):           # static pooling levels
            h = _gcn(g, h, dw[li], db[li])
            k_nodes = max(2, int(kf * n_cur))
            g, h = _pool(g, h, pw[li], pb[li], k_nodes)
            n_cur = k_nodes

        g = _row_norm(g)
        h = _layer_norm(_gcn(g, h, bw, bb), blg, blb)      # [enc_node, dim]

        # --- fused Classifier epilogue: x.view(-1) @ fc_w folded per node ----
        z = b1                                             # [1, hidden]
        for node in range(h.shape[0]):
            z = z + jnp.dot(h[node:node + 1, :], w1[node],
                            preferred_element_type=jnp.float32)
        z = _layer_norm(jnp.maximum(z, 0.0), g1, be1)
        z = jnp.maximum(
            jnp.dot(z, w2, preferred_element_type=jnp.float32) + b2, 0.0)
        z = _layer_norm(z, g2, be2)
        rows.append(jnp.dot(z, w3, preferred_element_type=jnp.float32) + b3)

    out_ref[0] = jnp.concatenate(rows, axis=0)             # [BG, num_class]


def graph_cls_forward(params, gs, hs, ks, graphs_per_step=None):
    B, N, _ = gs.shape
    feat = hs.shape[-1]
    dim = params["s_gcn_w"].shape[1]
    hidden = params["fc_w"].shape[1]
    num_class = params["fc3_w"].shape[1]

    enc_node = N
    for k in ks:
        enc_node = max(2, int(k * enc_node))
    assert params["fc_w"].shape[0] == enc_node * dim

    if graphs_per_step is None:
        graphs_per_step = B // 2 if (B % 2 == 0 and B > 1) else B
    bg = graphs_per_step
    assert B % bg == 0
    grid = (B // bg,)

    down_w = jnp.stack(params["down_gcn_w"])               # [L, dim, dim]
    down_b = jnp.stack(params["down_gcn_b"])               # [L, 1, dim]
    pool_w = jnp.stack(params["pool_w"])                   # [L, dim, 1]
    pool_b = jnp.stack(params["pool_b"])                   # [L, 1, 1]
    fc_w3 = params["fc_w"].reshape(enc_node, dim, hidden)  # host-side, one-time

    def rep(a):                                            # grid-invariant weights
        return pl.BlockSpec(a.shape, lambda i, nd=a.ndim: (0,) * nd)

    weights = (params["s_gcn_w"], params["s_gcn_b"],
               params["s_ln_g"], params["s_ln_b"],
               down_w, down_b, pool_w, pool_b,
               params["bot_gcn_w"], params["bot_gcn_b"],
               params["bot_ln_g"], params["bot_ln_b"],
               fc_w3, params["fc_b"], params["ln_g"], params["ln_b"],
               params["fc2_w"], params["fc2_b"], params["ln2_g"], params["ln2_b"],
               params["fc3_w"], params["fc3_b"])

    in_specs = ([pl.BlockSpec((bg, N, N), lambda i: (i, 0, 0)),
                 pl.BlockSpec((bg, N, feat), lambda i: (i, 0, 0))]
                + [rep(w) for w in weights])
    out_spec = pl.BlockSpec((1, bg, num_class), lambda i: (i, 0, 0))

    logits = pl.pallas_call(
        functools.partial(graph_cls_kernel, ks=tuple(ks)),
        out_shape=jax.ShapeDtypeStruct((B // bg, bg, num_class), jnp.float32),
        grid=grid,
        in_specs=in_specs,
        out_specs=out_spec,
        compiler_params=pltpu.CompilerParams(
            dimension_semantics=("parallel",)),
    )(gs, hs, *weights)
    return logits.reshape(B, num_class)


# ------------------------------------------------------------------------- #
# Deterministic parameter init (PyTorch nn.Linear style uniform(+-1/sqrt(in)))
# Weights stored as [in, out] so kernels compute x @ W + b directly.
# ------------------------------------------------------------------------- #
def _linear(key, fan_in, fan_out):
    kw, kb = jax.random.split(key)
    bound = 1.0 / jnp.sqrt(fan_in)
    w = jax.random.uniform(kw, (fan_in, fan_out), jnp.float32, -bound, bound)
    b = jax.random.uniform(kb, (1, fan_out), jnp.float32, -bound, bound)
    return w, b


def init_params(key, feat_dim, dim, hidden_dim, num_class, enc_node, ks):
    keys = jax.random.split(key, 8 + 2 * len(ks))
    p = {}
    p["s_gcn_w"], p["s_gcn_b"] = _linear(keys[0], feat_dim, dim)
    p["s_ln_g"] = jnp.ones((1, dim), jnp.float32)
    p["s_ln_b"] = jnp.zeros((1, dim), jnp.float32)
    p["down_gcn_w"], p["down_gcn_b"], p["pool_w"], p["pool_b"] = [], [], [], []
    for i in range(len(ks)):
        dw, db = _linear(keys[1 + 2 * i], dim, dim)
        pw, pb = _linear(keys[2 + 2 * i], dim, 1)
        p["down_gcn_w"].append(dw)
        p["down_gcn_b"].append(db)
        p["pool_w"].append(pw)
        p["pool_b"].append(pb)
    base = 1 + 2 * len(ks)
    p["bot_gcn_w"], p["bot_gcn_b"] = _linear(keys[base], dim, dim)
    p["bot_ln_g"] = jnp.ones((1, dim), jnp.float32)
    p["bot_ln_b"] = jnp.zeros((1, dim), jnp.float32)
    # Classifier
    p["fc_w"], p["fc_b"] = _linear(keys[base + 1], enc_node * dim, hidden_dim)
    p["ln_g"] = jnp.ones((1, hidden_dim), jnp.float32)
    p["ln_b"] = jnp.zeros((1, hidden_dim), jnp.float32)
    p["fc2_w"], p["fc2_b"] = _linear(keys[base + 2], hidden_dim, hidden_dim // 2)
    p["ln2_g"] = jnp.ones((1, hidden_dim // 2), jnp.float32)
    p["ln2_b"] = jnp.zeros((1, hidden_dim // 2), jnp.float32)
    p["fc3_w"], p["fc3_b"] = _linear(keys[base + 3], hidden_dim // 2, num_class)
    return p


# ------------------------------------------------------------------------- #
if __name__ == "__main__":
    # Hyperparameters implied by the module: feature_dim = 0 -> FEAT_DIM = 1;
    # args.act = ReLU; drop_p = dp = 0 (identity); args.ks drives pooling.
    FEAT_DIM = 1
    DIM = 32
    HIDDEN = 32
    NUM_CLASS = 2
    KS = (0.5,)
    B, N = 8, 16
    GRAPHS_PER_STEP = 4          # grid = (2,): even length keeps both v7x TCs busy

    enc_node = N
    for k in KS:
        enc_node = max(2, int(k * enc_node))
    ENC_NODE = enc_node          # nodes surviving the pooling encoder

    key = jax.random.PRNGKey(0)
    kp, kg, kh = jax.random.split(key, 3)

    params = init_params(kp, FEAT_DIM, DIM, HIDDEN, NUM_CLASS, ENC_NODE, KS)

    # Random symmetric binary adjacencies with self-loops (nonzero degrees).
    a = (jax.random.uniform(kg, (B, N, N)) > 0.7).astype(jnp.float32)
    gs = jnp.maximum(a, jnp.transpose(a, (0, 2, 1)))
    gs = jnp.maximum(gs, jnp.eye(N, dtype=jnp.float32)[None])
    hs = jax.random.normal(kh, (B, N, FEAT_DIM), dtype=jnp.float32)

    fwd = jax.jit(lambda p, g, h: graph_cls_forward(p, g, h, KS,
                                                    graphs_per_step=GRAPHS_PER_STEP))
    logits = jax.block_until_ready(fwd(params, gs, hs))

    assert logits.shape == (B, NUM_CLASS), logits.shape
    assert bool(jnp.all(jnp.isfinite(logits)))
    print("KERNEL_OK")
</pallas_src>

<mosaic_0001>
module attributes {stable_mosaic.version = 11 : i64} {
  func.func @graph_cls_kernel(%arg0: i32, %arg1: memref<4x16x16xf32, #tpu.memory_space<vmem>>, %arg2: memref<4x16x1xf32, #tpu.memory_space<vmem>>, %arg3: memref<1x32xf32, #tpu.memory_space<vmem>>, %arg4: memref<1x32xf32, #tpu.memory_space<vmem>>, %arg5: memref<1x32xf32, #tpu.memory_space<vmem>>, %arg6: memref<1x32xf32, #tpu.memory_space<vmem>>, %arg7: memref<1x32x32xf32, #tpu.memory_space<vmem>>, %arg8: memref<1x1x32xf32, #tpu.memory_space<vmem>>, %arg9: memref<1x32x1xf32, #tpu.memory_space<vmem>>, %arg10: memref<1x1x1xf32, #tpu.memory_space<vmem>>, %arg11: memref<32x32xf32, #tpu.memory_space<vmem>>, %arg12: memref<1x32xf32, #tpu.memory_space<vmem>>, %arg13: memref<1x32xf32, #tpu.memory_space<vmem>>, %arg14: memref<1x32xf32, #tpu.memory_space<vmem>>, %arg15: memref<8x32x32xf32, #tpu.memory_space<vmem>>, %arg16: memref<1x32xf32, #tpu.memory_space<vmem>>, %arg17: memref<1x32xf32, #tpu.memory_space<vmem>>, %arg18: memref<1x32xf32, #tpu.memory_space<vmem>>, %arg19: memref<32x16xf32, #tpu.memory_space<vmem>>, %arg20: memref<1x16xf32, #tpu.memory_space<vmem>>, %arg21: memref<1x16xf32, #tpu.memory_space<vmem>>, %arg22: memref<1x16xf32, #tpu.memory_space<vmem>>, %arg23: memref<16x2xf32, #tpu.memory_space<vmem>>, %arg24: memref<1x2xf32, #tpu.memory_space<vmem>>, %arg25: memref<1x4x2xf32, #tpu.memory_space<vmem>>) attributes {dimension_semantics = [#tpu.dimension_semantics<parallel>], iteration_bounds = array<i64: 2>, scalar_prefetch = 0 : i64, scratch_operands = 0 : i64, tpu.core_type = #tpu.core_type<tc>, window_params = [{transform_indices = @transform_0, window_bounds = array<i64: 4, 16, 16>}, {transform_indices = @transform_1, window_bounds = array<i64: 4, 16, 1>}, {pipeline_mode = #tpu.pipeline_mode<synchronous>, transform_indices = @transform_2, window_bounds = array<i64: 1, 32>}, {pipeline_mode = #tpu.pipeline_mode<synchronous>, transform_indices = @transform_3, window_bounds = array<i64: 1, 32>}, {pipeline_mode = #tpu.pipeline_mode<synchronous>, transform_indices = @transform_4, window_bounds = array<i64: 1, 32>}, {pipeline_mode = #tpu.pipeline_mode<synchronous>, transform_indices = @transform_5, window_bounds = array<i64: 1, 32>}, {pipeline_mode = #tpu.pipeline_mode<synchronous>, transform_indices = @transform_6, window_bounds = array<i64: 1, 32, 32>}, {pipeline_mode = #tpu.pipeline_mode<synchronous>, transform_indices = @transform_7, window_bounds = array<i64: 1, 1, 32>}, {pipeline_mode = #tpu.pipeline_mode<synchronous>, transform_indices = @transform_8, window_bounds = array<i64: 1, 32, 1>}, {pipeline_mode = #tpu.pipeline_mode<synchronous>, transform_indices = @transform_9, window_bounds = array<i64: 1, 1, 1>}, {pipeline_mode = #tpu.pipeline_mode<synchronous>, transform_indices = @transform_10, window_bounds = array<i64: 32, 32>}, {pipeline_mode = #tpu.pipeline_mode<synchronous>, transform_indices = @transform_11, window_bounds = array<i64: 1, 32>}, {pipeline_mode = #tpu.pipeline_mode<synchronous>, transform_indices = @transform_12, window_bounds = array<i64: 1, 32>}, {pipeline_mode = #tpu.pipeline_mode<synchronous>, transform_indices = @transform_13, window_bounds = array<i64: 1, 32>}, {pipeline_mode = #tpu.pipeline_mode<synchronous>, transform_indices = @transform_14, window_bounds = array<i64: 8, 32, 32>}, {pipeline_mode = #tpu.pipeline_mode<synchronous>, transform_indices = @transform_15, window_bounds = array<i64: 1, 32>}, {pipeline_mode = #tpu.pipeline_mode<synchronous>, transform_indices = @transform_16, window_bounds = array<i64: 1, 32>}, {pipeline_mode = #tpu.pipeline_mode<synchronous>, transform_indices = @transform_17, window_bounds = array<i64: 1, 32>}, {pipeline_mode = #tpu.pipeline_mode<synchronous>, transform_indices = @transform_18, window_bounds = array<i64: 32, 16>}, {pipeline_mode = #tpu.pipeline_mode<synchronous>, transform_indices = @transform_19, window_bounds = array<i64: 1, 16>}, {pipeline_mode = #tpu.pipeline_mode<synchronous>, transform_indices = @transform_20, window_bounds = array<i64: 1, 16>}, {pipeline_mode = #tpu.pipeline_mode<synchronous>, transform_indices = @transform_21, window_bounds = array<i64: 1, 16>}, {pipeline_mode = #tpu.pipeline_mode<synchronous>, transform_indices = @transform_22, window_bounds = array<i64: 16, 2>}, {pipeline_mode = #tpu.pipeline_mode<synchronous>, transform_indices = @transform_23, window_bounds = array<i64: 1, 2>}, {transform_indices = @transform_24, window_bounds = array<i64: 1, 4, 2>}]} {
    %c0 = arith.constant 0 : index
    %c0_0 = arith.constant 0 : index
    %0 = vector.load %arg3[%c0, %c0_0] : memref<1x32xf32, #tpu.memory_space<vmem>>, vector<1x32xf32>
    %c0_1 = arith.constant 0 : index
    %c0_2 = arith.constant 0 : index
    %1 = vector.load %arg4[%c0_1, %c0_2] : memref<1x32xf32, #tpu.memory_space<vmem>>, vector<1x32xf32>
    %c0_3 = arith.constant 0 : index
    %c0_4 = arith.constant 0 : index
    %2 = vector.load %arg5[%c0_3, %c0_4] : memref<1x32xf32, #tpu.memory_space<vmem>>, vector<1x32xf32>
    %c0_5 = arith.constant 0 : index
    %c0_6 = arith.constant 0 : index
    %3 = vector.load %arg6[%c0_5, %c0_6] : memref<1x32xf32, #tpu.memory_space<vmem>>, vector<1x32xf32>
    %c0_7 = arith.constant 0 : index
    %c0_8 = arith.constant 0 : index
    %c0_9 = arith.constant 0 : index
    %4 = vector.load %arg7[%c0_7, %c0_8, %c0_9] : memref<1x32x32xf32, #tpu.memory_space<vmem>>, vector<1x32x32xf32>
    %c0_10 = arith.constant 0 : index
    %c0_11 = arith.constant 0 : index
    %c0_12 = arith.constant 0 : index
    %5 = vector.load %arg8[%c0_10, %c0_11, %c0_12] : memref<1x1x32xf32, #tpu.memory_space<vmem>>, vector<1x1x32xf32>
    %c0_13 = arith.constant 0 : index
    %c0_14 = arith.constant 0 : index
    %c0_15 = arith.constant 0 : index
    %6 = vector.load %arg9[%c0_13, %c0_14, %c0_15] : memref<1x32x1xf32, #tpu.memory_space<vmem>>, vector<1x32x1xf32>
    %c0_16 = arith.constant 0 : index
    %c0_17 = arith.constant 0 : index
    %c0_18 = arith.constant 0 : index
    %7 = vector.load %arg10[%c0_16, %c0_17, %c0_18] : memref<1x1x1xf32, #tpu.memory_space<vmem>>, vector<1x1x1xf32>
    %c0_19 = arith.constant 0 : index
    %c0_20 = arith.constant 0 : index
    %8 = vector.load %arg11[%c0_19, %c0_20] : memref<32x32xf32, #tpu.memory_space<vmem>>, vector<32x32xf32>
    %c0_21 = arith.constant 0 : index
    %c0_22 = arith.constant 0 : index
    %9 = vector.load %arg12[%c0_21, %c0_22] : memref<1x32xf32, #tpu.memory_space<vmem>>, vector<1x32xf32>
    %c0_23 = arith.constant 0 : index
    %c0_24 = arith.constant 0 : index
    %10 = vector.load %arg13[%c0_23, %c0_24] : memref<1x32xf32, #tpu.memory_space<vmem>>, vector<1x32xf32>
    %c0_25 = arith.constant 0 : index
    %c0_26 = arith.constant 0 : index
    %11 = vector.load %arg14[%c0_25, %c0_26] : memref<1x32xf32, #tpu.memory_space<vmem>>, vector<1x32xf32>
    %c0_27 = arith.constant 0 : index
    %c0_28 = arith.constant 0 : index
    %c0_29 = arith.constant 0 : index
    %12 = vector.load %arg15[%c0_27, %c0_28, %c0_29] : memref<8x32x32xf32, #tpu.memory_space<vmem>>, vector<8x32x32xf32>
    %c0_30 = arith.constant 0 : index
    %c0_31 = arith.constant 0 : index
    %13 = vector.load %arg16[%c0_30, %c0_31] : memref<1x32xf32, #tpu.memory_space<vmem>>, vector<1x32xf32>
    %c0_32 = arith.constant 0 : index
    %c0_33 = arith.constant 0 : index
    %14 = vector.load %arg17[%c0_32, %c0_33] : memref<1x32xf32, #tpu.memory_space<vmem>>, vector<1x32xf32>
    %c0_34 = arith.constant 0 : index
    %c0_35 = arith.constant 0 : index
    %15 = vector.load %arg18[%c0_34, %c0_35] : memref<1x32xf32, #tpu.memory_space<vmem>>, vector<1x32xf32>
    %c0_36 = arith.constant 0 : index
    %c0_37 = arith.constant 0 : index
    %16 = vector.load %arg19[%c0_36, %c0_37] : memref<32x16xf32, #tpu.memory_space<vmem>>, vector<32x16xf32>
    %c0_38 = arith.constant 0 : index
    %c0_39 = arith.constant 0 : index
    %17 = vector.load %arg20[%c0_38, %c0_39] : memref<1x16xf32, #tpu.memory_space<vmem>>, vector<1x16xf32>
    %c0_40 = arith.constant 0 : index
    %c0_41 = arith.constant 0 : index
    %18 = vector.load %arg21[%c0_40, %c0_41] : memref<1x16xf32, #tpu.memory_space<vmem>>, vector<1x16xf32>
    %c0_42 = arith.constant 0 : index
    %c0_43 = arith.constant 0 : index
    %19 = vector.load %arg22[%c0_42, %c0_43] : memref<1x16xf32, #tpu.memory_space<vmem>>, vector<1x16xf32>
    %c0_44 = arith.constant 0 : index
    %c0_45 = arith.constant 0 : index
    %20 = vector.load %arg23[%c0_44, %c0_45] : memref<16x2xf32, #tpu.memory_space<vmem>>, vector<16x2xf32>
    %c0_46 = arith.constant 0 : index
    %c0_47 = arith.constant 0 : index
    %21 = vector.load %arg24[%c0_46, %c0_47] : memref<1x2xf32, #tpu.memory_space<vmem>>, vector<1x2xf32>
    %c0_48 = arith.constant 0 : index
    %c0_49 = arith.constant 0 : index
    %c0_50 = arith.constant 0 : index
    %22 = vector.load %arg1[%c0_48, %c0_49, %c0_50] : memref<4x16x16xf32, #tpu.memory_space<vmem>>, vector<1x16x16xf32>
    %23 = vector.shape_cast %22 : vector<1x16x16xf32> to vector<16x16xf32>
    %c0_51 = arith.constant 0 : index
    %c0_52 = arith.constant 0 : index
    %c0_53 = arith.constant 0 : index
    %24 = vector.load %arg2[%c0_51, %c0_52, %c0_53] : memref<4x16x1xf32, #tpu.memory_space<vmem>>, vector<1x16x1xf32>
    %25 = vector.shape_cast %24 : vector<1x16x1xf32> to vector<16x1xf32>
    %cst = arith.constant dense<0.000000e+00> : vector<16xf32>
    %26 = vector.multi_reduction <add>, %23, %cst [1] : vector<16x16xf32> to vector<16xf32>
    %27 = vector.shape_cast %26 : vector<16xf32> to vector<16x1xf32>
    %cst_54 = arith.constant 0.000000e+00 : f32
    %28 = vector.broadcast %cst_54 : f32 to vector<16x1xf32>
    %29 = arith.cmpf ogt, %27, %28 : vector<16x1xf32>
    %30 = tpu.reciprocal %27 {approx = true} : vector<16x1xf32> -> vector<16x1xf32>
    %cst_55 = arith.constant 0.000000e+00 : f32
    %31 = vector.broadcast %cst_55 : f32 to vector<16x1xf32>
    %32 = arith.select %29, %30, %31 : vector<16x1xi1>, vector<16x1xf32>
    %33 = vector.broadcast %32 : vector<16x1xf32> to vector<16x16xf32>
    %34 = arith.mulf %23, %33 : vector<16x16xf32>
    %cst_56 = arith.constant dense<0.000000e+00> : vector<16x1xf32>
    %35 = tpu.matmul %34, %25, %cst_56 {dimension_numbers = #tpu.dot_dimension_numbers<[1], [0], [0], [1], [0, 0, 1, 1], [], []>} : vector<16x16xf32>, vector<16x1xf32>, vector<16x1xf32> -> vector<16x1xf32>
    %cst_57 = arith.constant dense<0.000000e+00> : vector<16x32xf32>
    %36 = tpu.matmul %35, %0, %cst_57 {dimension_numbers = #tpu.dot_dimension_numbers<[1], [0], [0], [1], [0, 0, 1, 1], [], []>} : vector<16x1xf32>, vector<1x32xf32>, vector<16x32xf32> -> vector<16x32xf32>
    %37 = vector.broadcast %1 : vector<1x32xf32> to vector<16x32xf32>
    %38 = arith.addf %36, %37 : vector<16x32xf32>
    %cst_58 = arith.constant 0.000000e+00 : f32
    %39 = vector.broadcast %cst_58 : f32 to vector<16x32xf32>
    %40 = arith.maximumf %38, %39 : vector<16x32xf32>
    %cst_59 = arith.constant dense<0.000000e+00> : vector<16xf32>
    %41 = vector.multi_reduction <add>, %40, %cst_59 [1] : vector<16x32xf32> to vector<16xf32>
    %42 = vector.shape_cast %41 : vector<16xf32> to vector<16x1xf32>
    %cst_60 = arith.constant 3.200000e+01 : f32
    %43 = vector.broadcast %cst_60 : f32 to vector<16x1xf32>
    %44 = arith.divf %42, %43 : vector<16x1xf32>
    %45 = vector.broadcast %44 : vector<16x1xf32> to vector<16x32xf32>
    %46 = arith.subf %40, %45 : vector<16x32xf32>
    %47 = arith.mulf %46, %46 : vector<16x32xf32>
    %cst_61 = arith.constant dense<0.000000e+00> : vector<16xf32>
    %48 = vector.multi_reduction <add>, %47, %cst_61 [1] : vector<16x32xf32> to vector<16xf32>
    %49 = vector.shape_cast %48 : vector<16xf32> to vector<16x1xf32>
    %cst_62 = arith.constant 3.200000e+01 : f32
    %50 = vector.broadcast %cst_62 : f32 to vector<16x1xf32>
    %51 = arith.divf %49, %50 : vector<16x1xf32>
    %52 = vector.broadcast %44 : vector<16x1xf32> to vector<16x32xf32>
    %53 = arith.subf %40, %52 : vector<16x32xf32>
    %cst_63 = arith.constant 9.99999974E-6 : f32
    %54 = vector.broadcast %cst_63 : f32 to vector<16x1xf32>
    %55 = arith.addf %51, %54 : vector<16x1xf32>
    %56 = math.rsqrt %55 : vector<16x1xf32>
    %57 = vector.broadcast %56 : vector<16x1xf32> to vector<16x32xf32>
    %58 = arith.mulf %53, %57 : vector<16x32xf32>
    %59 = vector.broadcast %2 : vector<1x32xf32> to vector<16x32xf32>
    %60 = arith.mulf %58, %59 : vector<16x32xf32>
    %61 = vector.broadcast %3 : vector<1x32xf32> to vector<16x32xf32>
    %62 = arith.addf %60, %61 : vector<16x32xf32>
    %63 = vector.shape_cast %4 : vector<1x32x32xf32> to vector<32x32xf32>
    %64 = vector.shape_cast %5 : vector<1x1x32xf32> to vector<1x32xf32>
    %cst_64 = arith.constant dense<0.000000e+00> : vector<16x32xf32>
    %65 = tpu.matmul %34, %62, %cst_64 {dimension_numbers = #tpu.dot_dimension_numbers<[1], [0], [0], [1], [0, 0, 1, 1], [], []>} : vector<16x16xf32>, vector<16x32xf32>, vector<16x32xf32> -> vector<16x32xf32>
    %cst_65 = arith.constant dense<0.000000e+00> : vector<16x32xf32>
    %66 = tpu.matmul %65, %63, %cst_65 {dimension_numbers = #tpu.dot_dimension_numbers<[1], [0], [0], [1], [0, 0, 1, 1], [], []>} : vector<16x32xf32>, vector<32x32xf32>, vector<16x32xf32> -> vector<16x32xf32>
    %67 = vector.broadcast %64 : vector<1x32xf32> to vector<16x32xf32>
    %68 = arith.addf %66, %67 : vector<16x32xf32>
    %cst_66 = arith.constant 0.000000e+00 : f32
    %69 = vector.broadcast %cst_66 : f32 to vector<16x32xf32>
    %70 = arith.maximumf %68, %69 : vector<16x32xf32>
    %71 = vector.shape_cast %6 : vector<1x32x1xf32> to vector<32x1xf32>
    %72 = vector.shape_cast %7 : vector<1x1x1xf32> to vector<1x1xf32>
    %cst_67 = arith.constant dense<0.000000e+00> : vector<16x1xf32>
    %73 = tpu.matmul %70, %71, %cst_67 {dimension_numbers = #tpu.dot_dimension_numbers<[1], [0], [0], [1], [0, 0, 1, 1], [], []>} : vector<16x32xf32>, vector<32x1xf32>, vector<16x1xf32> -> vector<16x1xf32>
    %74 = vector.broadcast %72 : vector<1x1xf32> to vector<16x1xf32>
    %75 = arith.addf %73, %74 : vector<16x1xf32>
    %76 = arith.negf %75 : vector<16x1xf32>
    %77 = math.exp %76 : vector<16x1xf32>
    %cst_68 = arith.constant 1.000000e+00 : f32
    %78 = vector.broadcast %cst_68 : f32 to vector<16x1xf32>
    %79 = arith.addf %78, %77 : vector<16x1xf32>
    %80 = arith.divf %78, %79 : vector<16x1xf32>
    %81 = tpu.iota {dimensions = array<i32: 0>} : vector<16x1xi32>
    %cst_69 = arith.constant 1.000000e-30 : f32
    %82 = vector.broadcast %cst_69 : f32 to vector<16x1xf32>
    %83 = arith.maximumf %80, %82 : vector<16x1xf32>
    %84 = tpu.bitcast %83 : vector<16x1xf32> -> vector<16x1xi32>
    %c-16_i32 = arith.constant -16 : i32
    %85 = vector.broadcast %c-16_i32 : i32 to vector<16x1xi32>
    %86 = arith.andi %84, %85 : vector<16x1xi32>
    %c15_i32 = arith.constant 15 : i32
    %87 = vector.broadcast %c15_i32 : i32 to vector<16x1xi32>
    %88 = arith.subi %87, %81 : vector<16x1xi32>
    %89 = arith.ori %86, %88 : vector<16x1xi32>
    %90 = tpu.bitcast %89 : vector<16x1xi32> -> vector<16x1xf32>
    %91 = tpu.iota {dimensions = array<i32: 0>} : vector<8x1xi32>
    %c0_i32 = arith.constant 0 : i32
    %92 = vector.broadcast %c0_i32 : i32 to vector<8x1xi32>
    %c0_i32_70 = arith.constant 0 : i32
    %93 = vector.shape_cast %90 : vector<16x1xf32> to vector<1x16x1xf32>
    %cst_71 = arith.constant dense<0xFF800000> : vector<1xf32>
    %94 = vector.multi_reduction <maximumf>, %93, %cst_71 [1, 2] : vector<1x16x1xf32> to vector<1xf32>
    %95 = vector.shape_cast %94 : vector<1xf32> to vector<1x1x1xf32>
    %96 = vector.extract %95[0, 0, 0] : f32 from vector<1x1x1xf32>
    %97 = vector.broadcast %96 : f32 to vector<1x1xf32>
    %98 = tpu.bitcast %97 : vector<1x1xf32> -> vector<1x1xi32>
    %c15_i32_72 = arith.constant 15 : i32
    %99 = vector.broadcast %c15_i32_72 : i32 to vector<1x1xi32>
    %100 = arith.andi %98, %99 : vector<1x1xi32>
    %c15_i32_73 = arith.constant 15 : i32
    %101 = vector.broadcast %c15_i32_73 : i32 to vector<1x1xi32>
    %102 = arith.subi %101, %100 : vector<1x1xi32>
    %103 = vector.broadcast %c0_i32_70 : i32 to vector<8x1xi32>
    %104 = arith.cmpi eq, %91, %103 : vector<8x1xi32>
    %105 = vector.shape_cast %102 : vector<1x1xi32> to vector<1x1xi32>
    %106 = vector.broadcast %105 : vector<1x1xi32> to vector<8x1xi32>
    %107 = arith.select %104, %106, %92 : vector<8x1xi1>, vector<8x1xi32>
    %108 = vector.broadcast %102 : vector<1x1xi32> to vector<16x1xi32>
    %109 = arith.cmpi eq, %81, %108 : vector<16x1xi32>
    %cst_74 = arith.constant 0xFF800000 : f32
    %110 = vector.broadcast %cst_74 : f32 to vector<16x1xf32>
    %111 = arith.select %109, %110, %90 : vector<16x1xi1>, vector<16x1xf32>
    %c1_i32 = arith.constant 1 : i32
    %112 = vector.shape_cast %111 : vector<16x1xf32> to vector<1x16x1xf32>
    %cst_75 = arith.constant dense<0xFF800000> : vector<1xf32>
    %113 = vector.multi_reduction <maximumf>, %112, %cst_75 [1, 2] : vector<1x16x1xf32> to vector<1xf32>
    %114 = vector.shape_cast %113 : vector<1xf32> to vector<1x1x1xf32>
    %115 = vector.extract %114[0, 0, 0] : f32 from vector<1x1x1xf32>
    %116 = vector.broadcast %115 : f32 to vector<1x1xf32>
    %117 = tpu.bitcast %116 : vector<1x1xf32> -> vector<1x1xi32>
    %c15_i32_76 = arith.constant 15 : i32
    %118 = vector.broadcast %c15_i32_76 : i32 to vector<1x1xi32>
    %119 = arith.andi %117, %118 : vector<1x1xi32>
    %c15_i32_77 = arith.constant 15 : i32
    %120 = vector.broadcast %c15_i32_77 : i32 to vector<1x1xi32>
    %121 = arith.subi %120, %119 : vector<1x1xi32>
    %122 = vector.broadcast %c1_i32 : i32 to vector<8x1xi32>
    %123 = arith.cmpi eq, %91, %122 : vector<8x1xi32>
    %124 = vector.shape_cast %121 : vector<1x1xi32> to vector<1x1xi32>
    %125 = vector.broadcast %124 : vector<1x1xi32> to vector<8x1xi32>
    %126 = arith.select %123, %125, %107 : vector<8x1xi1>, vector<8x1xi32>
    %127 = vector.broadcast %121 : vector<1x1xi32> to vector<16x1xi32>
    %128 = arith.cmpi eq, %81, %127 : vector<16x1xi32>
    %cst_78 = arith.constant 0xFF800000 : f32
    %129 = vector.broadcast %cst_78 : f32 to vector<16x1xf32>
    %130 = arith.select %128, %129, %111 : vector<16x1xi1>, vector<16x1xf32>
    %c2_i32 = arith.constant 2 : i32
    %131 = vector.shape_cast %130 : vector<16x1xf32> to vector<1x16x1xf32>
    %cst_79 = arith.constant dense<0xFF800000> : vector<1xf32>
    %132 = vector.multi_reduction <maximumf>, %131, %cst_79 [1, 2] : vector<1x16x1xf32> to vector<1xf32>
    %133 = vector.shape_cast %132 : vector<1xf32> to vector<1x1x1xf32>
    %134 = vector.extract %133[0, 0, 0] : f32 from vector<1x1x1xf32>
    %135 = vector.broadcast %134 : f32 to vector<1x1xf32>
    %136 = tpu.bitcast %135 : vector<1x1xf32> -> vector<1x1xi32>
    %c15_i32_80 = arith.constant 15 : i32
    %137 = vector.broadcast %c15_i32_80 : i32 to vector<1x1xi32>
    %138 = arith.andi %136, %137 : vector<1x1xi32>
    %c15_i32_81 = arith.constant 15 : i32
    %139 = vector.broadcast %c15_i32_81 : i32 to vector<1x1xi32>
    %140 = arith.subi %139, %138 : vector<1x1xi32>
    %141 = vector.broadcast %c2_i32 : i32 to vector<8x1xi32>
    %142 = arith.cmpi eq, %91, %141 : vector<8x1xi32>
    %143 = vector.shape_cast %140 : vector<1x1xi32> to vector<1x1xi32>
    %144 = vector.broadcast %143 : vector<1x1xi32> to vector<8x1xi32>
    %145 = arith.select %142, %144, %126 : vector<8x1xi1>, vector<8x1xi32>
    %146 = vector.broadcast %140 : vector<1x1xi32> to vector<16x1xi32>
    %147 = arith.cmpi eq, %81, %146 : vector<16x1xi32>
    %cst_82 = arith.constant 0xFF800000 : f32
    %148 = vector.broadcast %cst_82 : f32 to vector<16x1xf32>
    %149 = arith.select %147, %148, %130 : vector<16x1xi1>, vector<16x1xf32>
    %c3_i32 = arith.constant 3 : i32
    %150 = vector.shape_cast %149 : vector<16x1xf32> to vector<1x16x1xf32>
    %cst_83 = arith.constant dense<0xFF800000> : vector<1xf32>
    %151 = vector.multi_reduction <maximumf>, %150, %cst_83 [1, 2] : vector<1x16x1xf32> to vector<1xf32>
    %152 = vector.shape_cast %151 : vector<1xf32> to vector<1x1x1xf32>
    %153 = vector.extract %152[0, 0, 0] : f32 from vector<1x1x1xf32>
    %154 = vector.broadcast %153 : f32 to vector<1x1xf32>
    %155 = tpu.bitcast %154 : vector<1x1xf32> -> vector<1x1xi32>
    %c15_i32_84 = arith.constant 15 : i32
    %156 = vector.broadcast %c15_i32_84 : i32 to vector<1x1xi32>
    %157 = arith.andi %155, %156 : vector<1x1xi32>
    %c15_i32_85 = arith.constant 15 : i32
    %158 = vector.broadcast %c15_i32_85 : i32 to vector<1x1xi32>
    %159 = arith.subi %158, %157 : vector<1x1xi32>
    %160 = vector.broadcast %c3_i32 : i32 to vector<8x1xi32>
    %161 = arith.cmpi eq, %91, %160 : vector<8x1xi32>
    %162 = vector.shape_cast %159 : vector<1x1xi32> to vector<1x1xi32>
    %163 = vector.broadcast %162 : vector<1x1xi32> to vector<8x1xi32>
    %164 = arith.select %161, %163, %145 : vector<8x1xi1>, vector<8x1xi32>
    %165 = vector.broadcast %159 : vector<1x1xi32> to vector<16x1xi32>
    %166 = arith.cmpi eq, %81, %165 : vector<16x1xi32>
    %cst_86 = arith.constant 0xFF800000 : f32
    %167 = vector.broadcast %cst_86 : f32 to vector<16x1xf32>
    %168 = arith.select %166, %167, %149 : vector<16x1xi1>, vector<16x1xf32>
    %c4_i32 = arith.constant 4 : i32
    %169 = vector.shape_cast %168 : vector<16x1xf32> to vector<1x16x1xf32>
    %cst_87 = arith.constant dense<0xFF800000> : vector<1xf32>
    %170 = vector.multi_reduction <maximumf>, %169, %cst_87 [1, 2] : vector<1x16x1xf32> to vector<1xf32>
    %171 = vector.shape_cast %170 : vector<1xf32> to vector<1x1x1xf32>
    %172 = vector.extract %171[0, 0, 0] : f32 from vector<1x1x1xf32>
    %173 = vector.broadcast %172 : f32 to vector<1x1xf32>
    %174 = tpu.bitcast %173 : vector<1x1xf32> -> vector<1x1xi32>
    %c15_i32_88 = arith.constant 15 : i32
    %175 = vector.broadcast %c15_i32_88 : i32 to vector<1x1xi32>
    %176 = arith.andi %174, %175 : vector<1x1xi32>
    %c15_i32_89 = arith.constant 15 : i32
    %177 = vector.broadcast %c15_i32_89 : i32 to vector<1x1xi32>
    %178 = arith.subi %177, %176 : vector<1x1xi32>
    %179 = vector.broadcast %c4_i32 : i32 to vector<8x1xi32>
    %180 = arith.cmpi eq, %91, %179 : vector<8x1xi32>
    %181 = vector.shape_cast %178 : vector<1x1xi32> to vector<1x1xi32>
    %182 = vector.broadcast %181 : vector<1x1xi32> to vector<8x1xi32>
    %183 = arith.select %180, %182, %164 : vector<8x1xi1>, vector<8x1xi32>
    %184 = vector.broadcast %178 : vector<1x1xi32> to vector<16x1xi32>
    %185 = arith.cmpi eq, %81, %184 : vector<16x1xi32>
    %cst_90 = arith.constant 0xFF800000 : f32
    %186 = vector.broadcast %cst_90 : f32 to vector<16x1xf32>
    %187 = arith.select %185, %186, %168 : vector<16x1xi1>, vector<16x1xf32>
    %c5_i32 = arith.constant 5 : i32
    %188 = vector.shape_cast %187 : vector<16x1xf32> to vector<1x16x1xf32>
    %cst_91 = arith.constant dense<0xFF800000> : vector<1xf32>
    %189 = vector.multi_reduction <maximumf>, %188, %cst_91 [1, 2] : vector<1x16x1xf32> to vector<1xf32>
    %190 = vector.shape_cast %189 : vector<1xf32> to vector<1x1x1xf32>
    %191 = vector.extract %190[0, 0, 0] : f32 from vector<1x1x1xf32>
    %192 = vector.broadcast %191 : f32 to vector<1x1xf32>
    %193 = tpu.bitcast %192 : vector<1x1xf32> -> vector<1x1xi32>
    %c15_i32_92 = arith.constant 15 : i32
    %194 = vector.broadcast %c15_i32_92 : i32 to vector<1x1xi32>
    %195 = arith.andi %193, %194 : vector<1x1xi32>
    %c15_i32_93 = arith.constant 15 : i32
    %196 = vector.broadcast %c15_i32_93 : i32 to vector<1x1xi32>
    %197 = arith.subi %196, %195 : vector<1x1xi32>
    %198 = vector.broadcast %c5_i32 : i32 to vector<8x1xi32>
    %199 = arith.cmpi eq, %91, %198 : vector<8x1xi32>
    %200 = vector.shape_cast %197 : vector<1x1xi32> to vector<1x1xi32>
    %201 = vector.broadcast %200 : vector<1x1xi32> to vector<8x1xi32>
    %202 = arith.select %199, %201, %183 : vector<8x1xi1>, vector<8x1xi32>
    %203 = vector.broadcast %197 : vector<1x1xi32> to vector<16x1xi32>
    %204 = arith.cmpi eq, %81, %203 : vector<16x1xi32>
    %cst_94 = arith.constant 0xFF800000 : f32
    %205 = vector.broadcast %cst_94 : f32 to vector<16x1xf32>
    %206 = arith.select %204, %205, %187 : vector<16x1xi1>, vector<16x1xf32>
    %c6_i32 = arith.constant 6 : i32
    %207 = vector.shape_cast %206 : vector<16x1xf32> to vector<1x16x1xf32>
    %cst_95 = arith.constant dense<0xFF800000> : vector<1xf32>
    %208 = vector.multi_reduction <maximumf>, %207, %cst_95 [1, 2] : vector<1x16x1xf32> to vector<1xf32>
    %209 = vector.shape_cast %208 : vector<1xf32> to vector<1x1x1xf32>
    %210 = vector.extract %209[0, 0, 0] : f32 from vector<1x1x1xf32>
    %211 = vector.broadcast %210 : f32 to vector<1x1xf32>
    %212 = tpu.bitcast %211 : vector<1x1xf32> -> vector<1x1xi32>
    %c15_i32_96 = arith.constant 15 : i32
    %213 = vector.broadcast %c15_i32_96 : i32 to vector<1x1xi32>
    %214 = arith.andi %212, %213 : vector<1x1xi32>
    %c15_i32_97 = arith.constant 15 : i32
    %215 = vector.broadcast %c15_i32_97 : i32 to vector<1x1xi32>
    %216 = arith.subi %215, %214 : vector<1x1xi32>
    %217 = vector.broadcast %c6_i32 : i32 to vector<8x1xi32>
    %218 = arith.cmpi eq, %91, %217 : vector<8x1xi32>
    %219 = vector.shape_cast %216 : vector<1x1xi32> to vector<1x1xi32>
    %220 = vector.broadcast %219 : vector<1x1xi32> to vector<8x1xi32>
    %221 = arith.select %218, %220, %202 : vector<8x1xi1>, vector<8x1xi32>
    %222 = vector.broadcast %216 : vector<1x1xi32> to vector<16x1xi32>
    %223 = arith.cmpi eq, %81, %222 : vector<16x1xi32>
    %cst_98 = arith.constant 0xFF800000 : f32
    %224 = vector.broadcast %cst_98 : f32 to vector<16x1xf32>
    %225 = arith.select %223, %224, %206 : vector<16x1xi1>, vector<16x1xf32>
    %c7_i32 = arith.constant 7 : i32
    %226 = vector.shape_cast %225 : vector<16x1xf32> to vector<1x16x1xf32>
    %cst_99 = arith.constant dense<0xFF800000> : vector<1xf32>
    %227 = vector.multi_reduction <maximumf>, %226, %cst_99 [1, 2] : vector<1x16x1xf32> to vector<1xf32>
    %228 = vector.shape_cast %227 : vector<1xf32> to vector<1x1x1xf32>
    %229 = vector.extract %228[0, 0, 0] : f32 from vector<1x1x1xf32>
    %230 = vector.broadcast %229 : f32 to vector<1x1xf32>
    %231 = tpu.bitcast %230 : vector<1x1xf32> -> vector<1x1xi32>
    %c15_i32_100 = arith.constant 15 : i32
    %232 = vector.broadcast %c15_i32_100 : i32 to vector<1x1xi32>
    %233 = arith.andi %231, %232 : vector<1x1xi32>
    %c15_i32_101 = arith.constant 15 : i32
    %234 = vector.broadcast %c15_i32_101 : i32 to vector<1x1xi32>
    %235 = arith.subi %234, %233 : vector<1x1xi32>
    %236 = vector.broadcast %c7_i32 : i32 to vector<8x1xi32>
    %237 = arith.cmpi eq, %91, %236 : vector<8x1xi32>
    %238 = vector.shape_cast %235 : vector<1x1xi32> to vector<1x1xi32>
    %239 = vector.broadcast %238 : vector<1x1xi32> to vector<8x1xi32>
    %240 = arith.select %237, %239, %221 : vector<8x1xi1>, vector<8x1xi32>
    %241 = vector.broadcast %235 : vector<1x1xi32> to vector<16x1xi32>
    %242 = arith.cmpi eq, %81, %241 : vector<16x1xi32>
    %cst_102 = arith.constant 0xFF800000 : f32
    %243 = vector.broadcast %cst_102 : f32 to vector<16x1xf32>
    %244 = arith.select %242, %243, %225 : vector<16x1xi1>, vector<16x1xf32>
    %c8_i32 = arith.constant 8 : i32
    %245 = tpu.iota {dimensions = array<i32: 1>} : vector<8x16xi32>
    %246 = vector.broadcast %240 : vector<8x1xi32> to vector<8x16xi32>
    %247 = arith.cmpi eq, %245, %246 : vector<8x16xi32>
    %248 = arith.extui %247 : vector<8x16xi1> to vector<8x16xi32>
    %249 = arith.sitofp %248 : vector<8x16xi32> to vector<8x16xf32>
    %cst_103 = arith.constant dense<0.000000e+00> : vector<8x1xf32>
    %250 = tpu.matmul %249, %80, %cst_103 {dimension_numbers = #tpu.dot_dimension_numbers<[1], [0], [0], [1], [0, 0, 1, 1], [], []>} : vector<8x16xf32>, vector<16x1xf32>, vector<8x1xf32> -> vector<8x1xf32>
    %cst_104 = arith.constant dense<0.000000e+00> : vector<8x32xf32>
    %251 = tpu.matmul %249, %70, %cst_104 {dimension_numbers = #tpu.dot_dimension_numbers<[1], [0], [0], [1], [0, 0, 1, 1], [], []>} : vector<8x16xf32>, vector<16x32xf32>, vector<8x32xf32> -> vector<8x32xf32>
    %252 = vector.broadcast %250 : vector<8x1xf32> to vector<8x32xf32>
    %253 = arith.mulf %251, %252 : vector<8x32xf32>
    %cst_105 = arith.constant 0.000000e+00 : f32
    %254 = vector.broadcast %cst_105 : f32 to vector<16x16xf32>
    %255 = arith.cmpf one, %34, %254 : vector<16x16xf32>
    %256 = arith.extui %255 : vector<16x16xi1> to vector<16x16xi32>
    %257 = arith.sitofp %256 : vector<16x16xi32> to vector<16x16xf32>
    %cst_106 = arith.constant dense<0.000000e+00> : vector<8x16xf32>
    %258 = tpu.matmul %249, %257, %cst_106 {dimension_numbers = #tpu.dot_dimension_numbers<[1], [0], [0], [1], [0, 0, 1, 1], [], []>} : vector<8x16xf32>, vector<16x16xf32>, vector<8x16xf32> -> vector<8x16xf32>
    %cst_107 = arith.constant dense<0.000000e+00> : vector<16x8xf32>
    %259 = tpu.matmul %257, %249, %cst_107 {dimension_numbers = #tpu.dot_dimension_numbers<[1], [1], [0], [0], [0, 0, 1, 0], [], []>} : vector<16x16xf32>, vector<8x16xf32>, vector<16x8xf32> -> vector<16x8xf32>
    %cst_108 = arith.constant dense<0.000000e+00> : vector<8x8xf32>
    %260 = tpu.matmul %258, %259, %cst_108 {dimension_numbers = #tpu.dot_dimension_numbers<[1], [0], [0], [1], [0, 0, 1, 1], [], []>} : vector<8x16xf32>, vector<16x8xf32>, vector<8x8xf32> -> vector<8x8xf32>
    %cst_109 = arith.constant 0.000000e+00 : f32
    %261 = vector.broadcast %cst_109 : f32 to vector<8x8xf32>
    %262 = arith.cmpf one, %260, %261 : vector<8x8xf32>
    %263 = arith.extui %262 : vector<8x8xi1> to vector<8x8xi32>
    %264 = arith.sitofp %263 : vector<8x8xi32> to vector<8x8xf32>
    %cst_110 = arith.constant dense<0.000000e+00> : vector<8xf32>
    %265 = vector.multi_reduction <add>, %264, %cst_110 [1] : vector<8x8xf32> to vector<8xf32>
    %266 = vector.shape_cast %265 : vector<8xf32> to vector<8x1xf32>
    %cst_111 = arith.constant 0.000000e+00 : f32
    %267 = vector.broadcast %cst_111 : f32 to vector<8x1xf32>
    %268 = arith.cmpf ogt, %266, %267 : vector<8x1xf32>
    %269 = tpu.reciprocal %266 {approx = true} : vector<8x1xf32> -> vector<8x1xf32>
    %cst_112 = arith.constant 0.000000e+00 : f32
    %270 = vector.broadcast %cst_112 : f32 to vector<8x1xf32>
    %271 = arith.select %268, %269, %270 : vector<8x1xi1>, vector<8x1xf32>
    %272 = vector.broadcast %271 : vector<8x1xf32> to vector<8x8xf32>
    %273 = arith.mulf %264, %272 : vector<8x8xf32>
    %cst_113 = arith.constant dense<0.000000e+00> : vector<8xf32>
    %274 = vector.multi_reduction <add>, %273, %cst_113 [1] : vector<8x8xf32> to vector<8xf32>
    %275 = vector.shape_cast %274 : vector<8xf32> to vector<8x1xf32>
    %cst_114 = arith.constant 0.000000e+00 : f32
    %276 = vector.broadcast %cst_114 : f32 to vector<8x1xf32>
    %277 = arith.cmpf ogt, %275, %276 : vector<8x1xf32>
    %278 = tpu.reciprocal %275 {approx = true} : vector<8x1xf32> -> vector<8x1xf32>
    %cst_115 = arith.constant 0.000000e+00 : f32
    %279 = vector.broadcast %cst_115 : f32 to vector<8x1xf32>
    %280 = arith.select %277, %278, %279 : vector<8x1xi1>, vector<8x1xf32>
    %281 = vector.broadcast %280 : vector<8x1xf32> to vector<8x8xf32>
    %282 = arith.mulf %273, %281 : vector<8x8xf32>
    %cst_116 = arith.constant dense<0.000000e+00> : vector<8x32xf32>
    %283 = tpu.matmul %282, %253, %cst_116 {dimension_numbers = #tpu.dot_dimension_numbers<[1], [0], [0], [1], [0, 0, 1, 1], [], []>} : vector<8x8xf32>, vector<8x32xf32>, vector<8x32xf32> -> vector<8x32xf32>
    %cst_117 = arith.constant dense<0.000000e+00> : vector<8x32xf32>
    %284 = tpu.matmul %283, %8, %cst_117 {dimension_numbers = #tpu.dot_dimension_numbers<[1], [0], [0], [1], [0, 0, 1, 1], [], []>} : vector<8x32xf32>, vector<32x32xf32>, vector<8x32xf32> -> vector<8x32xf32>
    %285 = vector.broadcast %9 : vector<1x32xf32> to vector<8x32xf32>
    %286 = arith.addf %284, %285 : vector<8x32xf32>
    %cst_118 = arith.constant 0.000000e+00 : f32
    %287 = vector.broadcast %cst_118 : f32 to vector<8x32xf32>
    %288 = arith.maximumf %286, %287 : vector<8x32xf32>
    %cst_119 = arith.constant dense<0.000000e+00> : vector<8xf32>
    %289 = vector.multi_reduction <add>, %288, %cst_119 [1] : vector<8x32xf32> to vector<8xf32>
    %290 = vector.shape_cast %289 : vector<8xf32> to vector<8x1xf32>
    %cst_120 = arith.constant 3.200000e+01 : f32
    %291 = vector.broadcast %cst_120 : f32 to vector<8x1xf32>
    %292 = arith.divf %290, %291 : vector<8x1xf32>
    %293 = vector.broadcast %292 : vector<8x1xf32> to vector<8x32xf32>
    %294 = arith.subf %288, %293 : vector<8x32xf32>
    %295 = arith.mulf %294, %294 : vector<8x32xf32>
    %cst_121 = arith.constant dense<0.000000e+00> : vector<8xf32>
    %296 = vector.multi_reduction <add>, %295, %cst_121 [1] : vector<8x32xf32> to vector<8xf32>
    %297 = vector.shape_cast %296 : vector<8xf32> to vector<8x1xf32>
    %cst_122 = arith.constant 3.200000e+01 : f32
    %298 = vector.broadcast %cst_122 : f32 to vector<8x1xf32>
    %299 = arith.divf %297, %298 : vector<8x1xf32>
    %300 = vector.broadcast %292 : vector<8x1xf32> to vector<8x32xf32>
    %301 = arith.subf %288, %300 : vector<8x32xf32>
    %cst_123 = arith.constant 9.99999974E-6 : f32
    %302 = vector.broadcast %cst_123 : f32 to vector<8x1xf32>
    %303 = arith.addf %299, %302 : vector<8x1xf32>
    %304 = math.rsqrt %303 : vector<8x1xf32>
    %305 = vector.broadcast %304 : vector<8x1xf32> to vector<8x32xf32>
    %306 = arith.mulf %301, %305 : vector<8x32xf32>
    %307 = vector.broadcast %10 : vector<1x32xf32> to vector<8x32xf32>
    %308 = arith.mulf %306, %307 : vector<8x32xf32>
    %309 = vector.broadcast %11 : vector<1x32xf32> to vector<8x32xf32>
    %310 = arith.addf %308, %309 : vector<8x32xf32>
    %311 = vector.extract_strided_slice %310 {offsets = [0, 0], sizes = [1, 32], strides = [1, 1]} : vector<8x32xf32> to vector<1x32xf32>
    %312 = vector.extract_strided_slice %12 {offsets = [0, 0, 0], sizes = [1, 32, 32], strides = [1, 1, 1]} : vector<8x32x32xf32> to vector<1x32x32xf32>
    %313 = vector.shape_cast %312 : vector<1x32x32xf32> to vector<32x32xf32>
    %cst_124 = arith.constant dense<0.000000e+00> : vector<1x32xf32>
    %314 = tpu.matmul %311, %313, %cst_124 {dimension_numbers = #tpu.dot_dimension_numbers<[1], [0], [0], [1], [0, 0, 1, 1], [], []>} : vector<1x32xf32>, vector<32x32xf32>, vector<1x32xf32> -> vector<1x32xf32>
    %315 = arith.addf %13, %314 : vector<1x32xf32>
    %316 = vector.extract_strided_slice %310 {offsets = [1, 0], sizes = [1, 32], strides = [1, 1]} : vector<8x32xf32> to vector<1x32xf32>
    %317 = vector.extract_strided_slice %12 {offsets = [1, 0, 0], sizes = [1, 32, 32], strides = [1, 1, 1]} : vector<8x32x32xf32> to vector<1x32x32xf32>
    %318 = vector.shape_cast %317 : vector<1x32x32xf32> to vector<32x32xf32>
    %cst_125 = arith.constant dense<0.000000e+00> : vector<1x32xf32>
    %319 = tpu.matmul %316, %318, %cst_125 {dimension_numbers = #tpu.dot_dimension_numbers<[1], [0], [0], [1], [0, 0, 1, 1], [], []>} : vector<1x32xf32>, vector<32x32xf32>, vector<1x32xf32> -> vector<1x32xf32>
    %320 = arith.addf %315, %319 : vector<1x32xf32>
    %321 = vector.extract_strided_slice %310 {offsets = [2, 0], sizes = [1, 32], strides = [1, 1]} : vector<8x32xf32> to vector<1x32xf32>
    %322 = vector.extract_strided_slice %12 {offsets = [2, 0, 0], sizes = [1, 32, 32], strides = [1, 1, 1]} : vector<8x32x32xf32> to vector<1x32x32xf32>
    %323 = vector.shape_cast %322 : vector<1x32x32xf32> to vector<32x32xf32>
    %cst_126 = arith.constant dense<0.000000e+00> : vector<1x32xf32>
    %324 = tpu.matmul %321, %323, %cst_126 {dimension_numbers = #tpu.dot_dimension_numbers<[1], [0], [0], [1], [0, 0, 1, 1], [], []>} : vector<1x32xf32>, vector<32x32xf32>, vector<1x32xf32> -> vector<1x32xf32>
    %325 = arith.addf %320, %324 : vector<1x32xf32>
    %326 = vector.extract_strided_slice %310 {offsets = [3, 0], sizes = [1, 32], strides = [1, 1]} : vector<8x32xf32> to vector<1x32xf32>
    %327 = vector.extract_strided_slice %12 {offsets = [3, 0, 0], sizes = [1, 32, 32], strides = [1, 1, 1]} : vector<8x32x32xf32> to vector<1x32x32xf32>
    %328 = vector.shape_cast %327 : vector<1x32x32xf32> to vector<32x32xf32>
    %cst_127 = arith.constant dense<0.000000e+00> : vector<1x32xf32>
    %329 = tpu.matmul %326, %328, %cst_127 {dimension_numbers = #tpu.dot_dimension_numbers<[1], [0], [0], [1], [0, 0, 1, 1], [], []>} : vector<1x32xf32>, vector<32x32xf32>, vector<1x32xf32> -> vector<1x32xf32>
    %330 = arith.addf %325, %329 : vector<1x32xf32>
    %331 = vector.extract_strided_slice %310 {offsets = [4, 0], sizes = [1, 32], strides = [1, 1]} : vector<8x32xf32> to vector<1x32xf32>
    %332 = vector.extract_strided_slice %12 {offsets = [4, 0, 0], sizes = [1, 32, 32], strides = [1, 1, 1]} : vector<8x32x32xf32> to vector<1x32x32xf32>
    %333 = vector.shape_cast %332 : vector<1x32x32xf32> to vector<32x32xf32>
    %cst_128 = arith.constant dense<0.000000e+00> : vector<1x32xf32>
    %334 = tpu.matmul %331, %333, %cst_128 {dimension_numbers = #tpu.dot_dimension_numbers<[1], [0], [0], [1], [0, 0, 1, 1], [], []>} : vector<1x32xf32>, vector<32x32xf32>, vector<1x32xf32> -> vector<1x32xf32>
    %335 = arith.addf %330, %334 : vector<1x32xf32>
    %336 = vector.extract_strided_slice %310 {offsets = [5, 0], sizes = [1, 32], strides = [1, 1]} : vector<8x32xf32> to vector<1x32xf32>
    %337 = vector.extract_strided_slice %12 {offsets = [5, 0, 0], sizes = [1, 32, 32], strides = [1, 1, 1]} : vector<8x32x32xf32> to vector<1x32x32xf32>
    %338 = vector.shape_cast %337 : vector<1x32x32xf32> to vector<32x32xf32>
    %cst_129 = arith.constant dense<0.000000e+00> : vector<1x32xf32>
    %339 = tpu.matmul %336, %338, %cst_129 {dimension_numbers = #tpu.dot_dimension_numbers<[1], [0], [0], [1], [0, 0, 1, 1], [], []>} : vector<1x32xf32>, vector<32x32xf32>, vector<1x32xf32> -> vector<1x32xf32>
    %340 = arith.addf %335, %339 : vector<1x32xf32>
    %341 = vector.extract_strided_slice %310 {offsets = [6, 0], sizes = [1, 32], strides = [1, 1]} : vector<8x32xf32> to vector<1x32xf32>
    %342 = vector.extract_strided_slice %12 {offsets = [6, 0, 0], sizes = [1, 32, 32], strides = [1, 1, 1]} : vector<8x32x32xf32> to vector<1x32x32xf32>
    %343 = vector.shape_cast %342 : vector<1x32x32xf32> to vector<32x32xf32>
    %cst_130 = arith.constant dense<0.000000e+00> : vector<1x32xf32>
    %344 = tpu.matmul %341, %343, %cst_130 {dimension_numbers = #tpu.dot_dimension_numbers<[1], [0], [0], [1], [0, 0, 1, 1], [], []>} : vector<1x32xf32>, vector<32x32xf32>, vector<1x32xf32> -> vector<1x32xf32>
    %345 = arith.addf %340, %344 : vector<1x32xf32>
    %346 = vector.extract_strided_slice %310 {offsets = [7, 0], sizes = [1, 32], strides = [1, 1]} : vector<8x32xf32> to vector<1x32xf32>
    %347 = vector.extract_strided_slice %12 {offsets = [7, 0, 0], sizes = [1, 32, 32], strides = [1, 1, 1]} : vector<8x32x32xf32> to vector<1x32x32xf32>
    %348 = vector.shape_cast %347 : vector<1x32x32xf32> to vector<32x32xf32>
    %cst_131 = arith.constant dense<0.000000e+00> : vector<1x32xf32>
    %349 = tpu.matmul %346, %348, %cst_131 {dimension_numbers = #tpu.dot_dimension_numbers<[1], [0], [0], [1], [0, 0, 1, 1], [], []>} : vector<1x32xf32>, vector<32x32xf32>, vector<1x32xf32> -> vector<1x32xf32>
    %350 = arith.addf %345, %349 : vector<1x32xf32>
    %cst_132 = arith.constant 0.000000e+00 : f32
    %351 = vector.broadcast %cst_132 : f32 to vector<1x32xf32>
    %352 = arith.maximumf %350, %351 : vector<1x32xf32>
    %cst_133 = arith.constant dense<0.000000e+00> : vector<1xf32>
    %353 = vector.multi_reduction <add>, %352, %cst_133 [1] : vector<1x32xf32> to vector<1xf32>
    %354 = vector.shape_cast %353 : vector<1xf32> to vector<1x1xf32>
    %cst_134 = arith.constant 3.200000e+01 : f32
    %355 = vector.broadcast %cst_134 : f32 to vector<1x1xf32>
    %356 = arith.divf %354, %355 : vector<1x1xf32>
    %357 = vector.broadcast %356 : vector<1x1xf32> to vector<1x32xf32>
    %358 = arith.subf %352, %357 : vector<1x32xf32>
    %359 = arith.mulf %358, %358 : vector<1x32xf32>
    %cst_135 = arith.constant dense<0.000000e+00> : vector<1xf32>
    %360 = vector.multi_reduction <add>, %359, %cst_135 [1] : vector<1x32xf32> to vector<1xf32>
    %361 = vector.shape_cast %360 : vector<1xf32> to vector<1x1xf32>
    %cst_136 = arith.constant 3.200000e+01 : f32
    %362 = vector.broadcast %cst_136 : f32 to vector<1x1xf32>
    %363 = arith.divf %361, %362 : vector<1x1xf32>
    %364 = vector.broadcast %356 : vector<1x1xf32> to vector<1x32xf32>
    %365 = arith.subf %352, %364 : vector<1x32xf32>
    %cst_137 = arith.constant 9.99999974E-6 : f32
    %366 = vector.broadcast %cst_137 : f32 to vector<1x1xf32>
    %367 = arith.addf %363, %366 : vector<1x1xf32>
    %368 = math.rsqrt %367 : vector<1x1xf32>
    %369 = vector.broadcast %368 : vector<1x1xf32> to vector<1x32xf32>
    %370 = arith.mulf %365, %369 : vector<1x32xf32>
    %371 = arith.mulf %370, %14 : vector<1x32xf32>
    %372 = arith.addf %371, %15 : vector<1x32xf32>
    %cst_138 = arith.constant dense<0.000000e+00> : vector<1x16xf32>
    %373 = tpu.matmul %372, %16, %cst_138 {dimension_numbers = #tpu.dot_dimension_numbers<[1], [0], [0], [1], [0, 0, 1, 1], [], []>} : vector<1x32xf32>, vector<32x16xf32>, vector<1x16xf32> -> vector<1x16xf32>
    %374 = arith.addf %373, %17 : vector<1x16xf32>
    %cst_139 = arith.constant 0.000000e+00 : f32
    %375 = vector.broadcast %cst_139 : f32 to vector<1x16xf32>
    %376 = arith.maximumf %374, %375 : vector<1x16xf32>
    %cst_140 = arith.constant dense<0.000000e+00> : vector<1xf32>
    %377 = vector.multi_reduction <add>, %376, %cst_140 [1] : vector<1x16xf32> to vector<1xf32>
    %378 = vector.shape_cast %377 : vector<1xf32> to vector<1x1xf32>
    %cst_141 = arith.constant 1.600000e+01 : f32
    %379 = vector.broadcast %cst_141 : f32 to vector<1x1xf32>
    %380 = arith.divf %378, %379 : vector<1x1xf32>
    %381 = vector.broadcast %380 : vector<1x1xf32> to vector<1x16xf32>
    %382 = arith.subf %376, %381 : vector<1x16xf32>
    %383 = arith.mulf %382, %382 : vector<1x16xf32>
    %cst_142 = arith.constant dense<0.000000e+00> : vector<1xf32>
    %384 = vector.multi_reduction <add>, %383, %cst_142 [1] : vector<1x16xf32> to vector<1xf32>
    %385 = vector.shape_cast %384 : vector<1xf32> to vector<1x1xf32>
    %cst_143 = arith.constant 1.600000e+01 : f32
    %386 = vector.broadcast %cst_143 : f32 to vector<1x1xf32>
    %387 = arith.divf %385, %386 : vector<1x1xf32>
    %388 = vector.broadcast %380 : vector<1x1xf32> to vector<1x16xf32>
    %389 = arith.subf %376, %388 : vector<1x16xf32>
    %cst_144 = arith.constant 9.99999974E-6 : f32
    %390 = vector.broadcast %cst_144 : f32 to vector<1x1xf32>
    %391 = arith.addf %387, %390 : vector<1x1xf32>
    %392 = math.rsqrt %391 : vector<1x1xf32>
    %393 = vector.broadcast %392 : vector<1x1xf32> to vector<1x16xf32>
    %394 = arith.mulf %389, %393 : vector<1x16xf32>
    %395 = arith.mulf %394, %18 : vector<1x16xf32>
    %396 = arith.addf %395, %19 : vector<1x16xf32>
    %cst_145 = arith.constant dense<0.000000e+00> : vector<1x2xf32>
    %397 = tpu.matmul %396, %20, %cst_145 {dimension_numbers = #tpu.dot_dimension_numbers<[1], [0], [0], [1], [0, 0, 1, 1], [], []>} : vector<1x16xf32>, vector<16x2xf32>, vector<1x2xf32> -> vector<1x2xf32>
    %398 = arith.addf %397, %21 : vector<1x2xf32>
    %c1 = arith.constant 1 : index
    %c0_146 = arith.constant 0 : index
    %c0_147 = arith.constant 0 : index
    %399 = vector.load %arg1[%c1, %c0_146, %c0_147] : memref<4x16x16xf32, #tpu.memory_space<vmem>>, vector<1x16x16xf32>
    %400 = vector.shape_cast %399 : vector<1x16x16xf32> to vector<16x16xf32>
    %c1_148 = arith.constant 1 : index
    %c0_149 = arith.constant 0 : index
    %c0_150 = arith.constant 0 : index
    %401 = vector.load %arg2[%c1_148, %c0_149, %c0_150] : memref<4x16x1xf32, #tpu.memory_space<vmem>>, vector<1x16x1xf32>
    %402 = vector.shape_cast %401 : vector<1x16x1xf32> to vector<16x1xf32>
    %cst_151 = arith.constant dense<0.000000e+00> : vector<16xf32>
    %403 = vector.multi_reduction <add>, %400, %cst_151 [1] : vector<16x16xf32> to vector<16xf32>
    %404 = vector.shape_cast %403 : vector<16xf32> to vector<16x1xf32>
    %cst_152 = arith.constant 0.000000e+00 : f32
    %405 = vector.broadcast %cst_152 : f32 to vector<16x1xf32>
    %406 = arith.cmpf ogt, %404, %405 : vector<16x1xf32>
    %407 = tpu.reciprocal %404 {approx = true} : vector<16x1xf32> -> vector<16x1xf32>
    %cst_153 = arith.constant 0.000000e+00 : f32
    %408 = vector.broadcast %cst_153 : f32 to vector<16x1xf32>
    %409 = arith.select %406, %407, %408 : vector<16x1xi1>, vector<16x1xf32>
    %410 = vector.broadcast %409 : vector<16x1xf32> to vector<16x16xf32>
    %411 = arith.mulf %400, %410 : vector<16x16xf32>
    %cst_154 = arith.constant dense<0.000000e+00> : vector<16x1xf32>
    %412 = tpu.matmul %411, %402, %cst_154 {dimension_numbers = #tpu.dot_dimension_numbers<[1], [0], [0], [1], [0, 0, 1, 1], [], []>} : vector<16x16xf32>, vector<16x1xf32>, vector<16x1xf32> -> vector<16x1xf32>
    %cst_155 = arith.constant dense<0.000000e+00> : vector<16x32xf32>
    %413 = tpu.matmul %412, %0, %cst_155 {dimension_numbers = #tpu.dot_dimension_numbers<[1], [0], [0], [1], [0, 0, 1, 1], [], []>} : vector<16x1xf32>, vector<1x32xf32>, vector<16x32xf32> -> vector<16x32xf32>
    %414 = vector.broadcast %1 : vector<1x32xf32> to vector<16x32xf32>
    %415 = arith.addf %413, %414 : vector<16x32xf32>
    %cst_156 = arith.constant 0.000000e+00 : f32
    %416 = vector.broadcast %cst_156 : f32 to vector<16x32xf32>
    %417 = arith.maximumf %415, %416 : vector<16x32xf32>
    %cst_157 = arith.constant dense<0.000000e+00> : vector<16xf32>
    %418 = vector.multi_reduction <add>, %417, %cst_157 [1] : vector<16x32xf32> to vector<16xf32>
    %419 = vector.shape_cast %418 : vector<16xf32> to vector<16x1xf32>
    %cst_158 = arith.constant 3.200000e+01 : f32
    %420 = vector.broadcast %cst_158 : f32 to vector<16x1xf32>
    %421 = arith.divf %419, %420 : vector<16x1xf32>
    %422 = vector.broadcast %421 : vector<16x1xf32> to vector<16x32xf32>
    %423 = arith.subf %417, %422 : vector<16x32xf32>
    %424 = arith.mulf %423, %423 : vector<16x32xf32>
    %cst_159 = arith.constant dense<0.000000e+00> : vector<16xf32>
    %425 = vector.multi_reduction <add>, %424, %cst_159 [1] : vector<16x32xf32> to vector<16xf32>
    %426 = vector.shape_cast %425 : vector<16xf32> to vector<16x1xf32>
    %cst_160 = arith.constant 3.200000e+01 : f32
    %427 = vector.broadcast %cst_160 : f32 to vector<16x1xf32>
    %428 = arith.divf %426, %427 : vector<16x1xf32>
    %429 = vector.broadcast %421 : vector<16x1xf32> to vector<16x32xf32>
    %430 = arith.subf %417, %429 : vector<16x32xf32>
    %cst_161 = arith.constant 9.99999974E-6 : f32
    %431 = vector.broadcast %cst_161 : f32 to vector<16x1xf32>
    %432 = arith.addf %428, %431 : vector<16x1xf32>
    %433 = math.rsqrt %432 : vector<16x1xf32>
    %434 = vector.broadcast %433 : vector<16x1xf32> to vector<16x32xf32>
    %435 = arith.mulf %430, %434 : vector<16x32xf32>
    %436 = vector.broadcast %2 : vector<1x32xf32> to vector<16x32xf32>
    %437 = arith.mulf %435, %436 : vector<16x32xf32>
    %438 = vector.broadcast %3 : vector<1x32xf32> to vector<16x32xf32>
    %439 = arith.addf %437, %438 : vector<16x32xf32>
    %440 = vector.shape_cast %4 : vector<1x32x32xf32> to vector<32x32xf32>
    %441 = vector.shape_cast %5 : vector<1x1x32xf32> to vector<1x32xf32>
    %cst_162 = arith.constant dense<0.000000e+00> : vector<16x32xf32>
    %442 = tpu.matmul %411, %439, %cst_162 {dimension_numbers = #tpu.dot_dimension_numbers<[1], [0], [0], [1], [0, 0, 1, 1], [], []>} : vector<16x16xf32>, vector<16x32xf32>, vector<16x32xf32> -> vector<16x32xf32>
    %cst_163 = arith.constant dense<0.000000e+00> : vector<16x32xf32>
    %443 = tpu.matmul %442, %440, %cst_163 {dimension_numbers = #tpu.dot_dimension_numbers<[1], [0], [0], [1], [0, 0, 1, 1], [], []>} : vector<16x32xf32>, vector<32x32xf32>, vector<16x32xf32> -> vector<16x32xf32>
    %444 = vector.broadcast %441 : vector<1x32xf32> to vector<16x32xf32>
    %445 = arith.addf %443, %444 : vector<16x32xf32>
    %cst_164 = arith.constant 0.000000e+00 : f32
    %446 = vector.broadcast %cst_164 : f32 to vector<16x32xf32>
    %447 = arith.maximumf %445, %446 : vector<16x32xf32>
    %448 = vector.shape_cast %6 : vector<1x32x1xf32> to vector<32x1xf32>
    %449 = vector.shape_cast %7 : vector<1x1x1xf32> to vector<1x1xf32>
    %cst_165 = arith.constant dense<0.000000e+00> : vector<16x1xf32>
    %450 = tpu.matmul %447, %448, %cst_165 {dimension_numbers = #tpu.dot_dimension_numbers<[1], [0], [0], [1], [0, 0, 1, 1], [], []>} : vector<16x32xf32>, vector<32x1xf32>, vector<16x1xf32> -> vector<16x1xf32>
    %451 = vector.broadcast %449 : vector<1x1xf32> to vector<16x1xf32>
    %452 = arith.addf %450, %451 : vector<16x1xf32>
    %453 = arith.negf %452 : vector<16x1xf32>
    %454 = math.exp %453 : vector<16x1xf32>
    %cst_166 = arith.constant 1.000000e+00 : f32
    %455 = vector.broadcast %cst_166 : f32 to vector<16x1xf32>
    %456 = arith.addf %455, %454 : vector<16x1xf32>
    %457 = arith.divf %455, %456 : vector<16x1xf32>
    %458 = tpu.iota {dimensions = array<i32: 0>} : vector<16x1xi32>
    %cst_167 = arith.constant 1.000000e-30 : f32
    %459 = vector.broadcast %cst_167 : f32 to vector<16x1xf32>
    %460 = arith.maximumf %457, %459 : vector<16x1xf32>
    %461 = tpu.bitcast %460 : vector<16x1xf32> -> vector<16x1xi32>
    %c-16_i32_168 = arith.constant -16 : i32
    %462 = vector.broadcast %c-16_i32_168 : i32 to vector<16x1xi32>
    %463 = arith.andi %461, %462 : vector<16x1xi32>
    %c15_i32_169 = arith.constant 15 : i32
    %464 = vector.broadcast %c15_i32_169 : i32 to vector<16x1xi32>
    %465 = arith.subi %464, %458 : vector<16x1xi32>
    %466 = arith.ori %463, %465 : vector<16x1xi32>
    %467 = tpu.bitcast %466 : vector<16x1xi32> -> vector<16x1xf32>
    %468 = tpu.iota {dimensions = array<i32: 0>} : vector<8x1xi32>
    %c0_i32_170 = arith.constant 0 : i32
    %469 = vector.broadcast %c0_i32_170 : i32 to vector<8x1xi32>
    %c0_i32_171 = arith.constant 0 : i32
    %470 = vector.shape_cast %467 : vector<16x1xf32> to vector<1x16x1xf32>
    %cst_172 = arith.constant dense<0xFF800000> : vector<1xf32>
    %471 = vector.multi_reduction <maximumf>, %470, %cst_172 [1, 2] : vector<1x16x1xf32> to vector<1xf32>
    %472 = vector.shape_cast %471 : vector<1xf32> to vector<1x1x1xf32>
    %473 = vector.extract %472[0, 0, 0] : f32 from vector<1x1x1xf32>
    %474 = vector.broadcast %473 : f32 to vector<1x1xf32>
    %475 = tpu.bitcast %474 : vector<1x1xf32> -> vector<1x1xi32>
    %c15_i32_173 = arith.constant 15 : i32
    %476 = vector.broadcast %c15_i32_173 : i32 to vector<1x1xi32>
    %477 = arith.andi %475, %476 : vector<1x1xi32>
    %c15_i32_174 = arith.constant 15 : i32
    %478 = vector.broadcast %c15_i32_174 : i32 to vector<1x1xi32>
    %479 = arith.subi %478, %477 : vector<1x1xi32>
    %480 = vector.broadcast %c0_i32_171 : i32 to vector<8x1xi32>
    %481 = arith.cmpi eq, %468, %480 : vector<8x1xi32>
    %482 = vector.shape_cast %479 : vector<1x1xi32> to vector<1x1xi32>
    %483 = vector.broadcast %482 : vector<1x1xi32> to vector<8x1xi32>
    %484 = arith.select %481, %483, %469 : vector<8x1xi1>, vector<8x1xi32>
    %485 = vector.broadcast %479 : vector<1x1xi32> to vector<16x1xi32>
    %486 = arith.cmpi eq, %458, %485 : vector<16x1xi32>
    %cst_175 = arith.constant 0xFF800000 : f32
    %487 = vector.broadcast %cst_175 : f32 to vector<16x1xf32>
    %488 = arith.select %486, %487, %467 : vector<16x1xi1>, vector<16x1xf32>
    %c1_i32_176 = arith.constant 1 : i32
    %489 = vector.shape_cast %488 : vector<16x1xf32> to vector<1x16x1xf32>
    %cst_177 = arith.constant dense<0xFF800000> : vector<1xf32>
    %490 = vector.multi_reduction <maximumf>, %489, %cst_177 [1, 2] : vector<1x16x1xf32> to vector<1xf32>
    %491 = vector.shape_cast %490 : vector<1xf32> to vector<1x1x1xf32>
    %492 = vector.extract %491[0, 0, 0] : f32 from vector<1x1x1xf32>
    %493 = vector.broadcast %492 : f32 to vector<1x1xf32>
    %494 = tpu.bitcast %493 : vector<1x1xf32> -> vector<1x1xi32>
    %c15_i32_178 = arith.constant 15 : i32
    %495 = vector.broadcast %c15_i32_178 : i32 to vector<1x1xi32>
    %496 = arith.andi %494, %495 : vector<1x1xi32>
    %c15_i32_179 = arith.constant 15 : i32
    %497 = vector.broadcast %c15_i32_179 : i32 to vector<1x1xi32>
    %498 = arith.subi %497, %496 : vector<1x1xi32>
    %499 = vector.broadcast %c1_i32_176 : i32 to vector<8x1xi32>
    %500 = arith.cmpi eq, %468, %499 : vector<8x1xi32>
    %501 = vector.shape_cast %498 : vector<1x1xi32> to vector<1x1xi32>
    %502 = vector.broadcast %501 : vector<1x1xi32> to vector<8x1xi32>
    %503 = arith.select %500, %502, %484 : vector<8x1xi1>, vector<8x1xi32>
    %504 = vector.broadcast %498 : vector<1x1xi32> to vector<16x1xi32>
    %505 = arith.cmpi eq, %458, %504 : vector<16x1xi32>
    %cst_180 = arith.constant 0xFF800000 : f32
    %506 = vector.broadcast %cst_180 : f32 to vector<16x1xf32>
    %507 = arith.select %505, %506, %488 : vector<16x1xi1>, vector<16x1xf32>
    %c2_i32_181 = arith.constant 2 : i32
    %508 = vector.shape_cast %507 : vector<16x1xf32> to vector<1x16x1xf32>
    %cst_182 = arith.constant dense<0xFF800000> : vector<1xf32>
    %509 = vector.multi_reduction <maximumf>, %508, %cst_182 [1, 2] : vector<1x16x1xf32> to vector<1xf32>
    %510 = vector.shape_cast %509 : vector<1xf32> to vector<1x1x1xf32>
    %511 = vector.extract %510[0, 0, 0] : f32 from vector<1x1x1xf32>
    %512 = vector.broadcast %511 : f32 to vector<1x1xf32>
    %513 = tpu.bitcast %512 : vector<1x1xf32> -> vector<1x1xi32>
    %c15_i32_183 = arith.constant 15 : i32
    %514 = vector.broadcast %c15_i32_183 : i32 to vector<1x1xi32>
    %515 = arith.andi %513, %514 : vector<1x1xi32>
    %c15_i32_184 = arith.constant 15 : i32
    %516 = vector.broadcast %c15_i32_184 : i32 to vector<1x1xi32>
    %517 = arith.subi %516, %515 : vector<1x1xi32>
    %518 = vector.broadcast %c2_i32_181 : i32 to vector<8x1xi32>
    %519 = arith.cmpi eq, %468, %518 : vector<8x1xi32>
    %520 = vector.shape_cast %517 : vector<1x1xi32> to vector<1x1xi32>
    %521 = vector.broadcast %520 : vector<1x1xi32> to vector<8x1xi32>
    %522 = arith.select %519, %521, %503 : vector<8x1xi1>, vector<8x1xi32>
    %523 = vector.broadcast %517 : vector<1x1xi32> to vector<16x1xi32>
    %524 = arith.cmpi eq, %458, %523 : vector<16x1xi32>
    %cst_185 = arith.constant 0xFF800000 : f32
    %525 = vector.broadcast %cst_185 : f32 to vector<16x1xf32>
    %526 = arith.select %524, %525, %507 : vector<16x1xi1>, vector<16x1xf32>
    %c3_i32_186 = arith.constant 3 : i32
    %527 = vector.shape_cast %526 : vector<16x1xf32> to vector<1x16x1xf32>
    %cst_187 = arith.constant dense<0xFF800000> : vector<1xf32>
    %528 = vector.multi_reduction <maximumf>, %527, %cst_187 [1, 2] : vector<1x16x1xf32> to vector<1xf32>
    %529 = vector.shape_cast %528 : vector<1xf32> to vector<1x1x1xf32>
    %530 = vector.extract %529[0, 0, 0] : f32 from vector<1x1x1xf32>
    %531 = vector.broadcast %530 : f32 to vector<1x1xf32>
    %532 = tpu.bitcast %531 : vector<1x1xf32> -> vector<1x1xi32>
    %c15_i32_188 = arith.constant 15 : i32
    %533 = vector.broadcast %c15_i32_188 : i32 to vector<1x1xi32>
    %534 = arith.andi %532, %533 : vector<1x1xi32>
    %c15_i32_189 = arith.constant 15 : i32
    %535 = vector.broadcast %c15_i32_189 : i32 to vector<1x1xi32>
    %536 = arith.subi %535, %534 : vector<1x1xi32>
    %537 = vector.broadcast %c3_i32_186 : i32 to vector<8x1xi32>
    %538 = arith.cmpi eq, %468, %537 : vector<8x1xi32>
    %539 = vector.shape_cast %536 : vector<1x1xi32> to vector<1x1xi32>
    %540 = vector.broadcast %539 : vector<1x1xi32> to vector<8x1xi32>
    %541 = arith.select %538, %540, %522 : vector<8x1xi1>, vector<8x1xi32>
    %542 = vector.broadcast %536 : vector<1x1xi32> to vector<16x1xi32>
    %543 = arith.cmpi eq, %458, %542 : vector<16x1xi32>
    %cst_190 = arith.constant 0xFF800000 : f32
    %544 = vector.broadcast %cst_190 : f32 to vector<16x1xf32>
    %545 = arith.select %543, %544, %526 : vector<16x1xi1>, vector<16x1xf32>
    %c4_i32_191 = arith.constant 4 : i32
    %546 = vector.shape_cast %545 : vector<16x1xf32> to vector<1x16x1xf32>
    %cst_192 = arith.constant dense<0xFF800000> : vector<1xf32>
    %547 = vector.multi_reduction <maximumf>, %546, %cst_192 [1, 2] : vector<1x16x1xf32> to vector<1xf32>
    %548 = vector.shape_cast %547 : vector<1xf32> to vector<1x1x1xf32>
    %549 = vector.extract %548[0, 0, 0] : f32 from vector<1x1x1xf32>
    %550 = vector.broadcast %549 : f32 to vector<1x1xf32>
    %551 = tpu.bitcast %550 : vector<1x1xf32> -> vector<1x1xi32>
    %c15_i32_193 = arith.constant 15 : i32
    %552 = vector.broadcast %c15_i32_193 : i32 to vector<1x1xi32>
    %553 = arith.andi %551, %552 : vector<1x1xi32>
    %c15_i32_194 = arith.constant 15 : i32
    %554 = vector.broadcast %c15_i32_194 : i32 to vector<1x1xi32>
    %555 = arith.subi %554, %553 : vector<1x1xi32>
    %556 = vector.broadcast %c4_i32_191 : i32 to vector<8x1xi32>
    %557 = arith.cmpi eq, %468, %556 : vector<8x1xi32>
    %558 = vector.shape_cast %555 : vector<1x1xi32> to vector<1x1xi32>
    %559 = vector.broadcast %558 : vector<1x1xi32> to vector<8x1xi32>
    %560 = arith.select %557, %559, %541 : vector<8x1xi1>, vector<8x1xi32>
    %561 = vector.broadcast %555 : vector<1x1xi32> to vector<16x1xi32>
    %562 = arith.cmpi eq, %458, %561 : vector<16x1xi32>
    %cst_195 = arith.constant 0xFF800000 : f32
    %563 = vector.broadcast %cst_195 : f32 to vector<16x1xf32>
    %564 = arith.select %562, %563, %545 : vector<16x1xi1>, vector<16x1xf32>
    %c5_i32_196 = arith.constant 5 : i32
    %565 = vector.shape_cast %564 : vector<16x1xf32> to vector<1x16x1xf32>
    %cst_197 = arith.constant dense<0xFF800000> : vector<1xf32>
    %566 = vector.multi_reduction <maximumf>, %565, %cst_197 [1, 2] : vector<1x16x1xf32> to vector<1xf32>
    %567 = vector.shape_cast %566 : vector<1xf32> to vector<1x1x1xf32>
    %568 = vector.extract %567[0, 0, 0] : f32 from vector<1x1x1xf32>
    %569 = vector.broadcast %568 : f32 to vector<1x1xf32>
    %570 = tpu.bitcast %569 : vector<1x1xf32> -> vector<1x1xi32>
    %c15_i32_198 = arith.constant 15 : i32
    %571 = vector.broadcast %c15_i32_198 : i32 to vector<1x1xi32>
    %572 = arith.andi %570, %571 : vector<1x1xi32>
    %c15_i32_199 = arith.constant 15 : i32
    %573 = vector.broadcast %c15_i32_199 : i32 to vector<1x1xi32>
    %574 = arith.subi %573, %572 : vector<1x1xi32>
    %575 = vector.broadcast %c5_i32_196 : i32 to vector<8x1xi32>
    %576 = arith.cmpi eq, %468, %575 : vector<8x1xi32>
    %577 = vector.shape_cast %574 : vector<1x1xi32> to vector<1x1xi32>
    %578 = vector.broadcast %577 : vector<1x1xi32> to vector<8x1xi32>
    %579 = arith.select %576, %578, %560 : vector<8x1xi1>, vector<8x1xi32>
    %580 = vector.broadcast %574 : vector<1x1xi32> to vector<16x1xi32>
    %581 = arith.cmpi eq, %458, %580 : vector<16x1xi32>
    %cst_200 = arith.constant 0xFF800000 : f32
    %582 = vector.broadcast %cst_200 : f32 to vector<16x1xf32>
    %583 = arith.select %581, %582, %564 : vector<16x1xi1>, vector<16x1xf32>
    %c6_i32_201 = arith.constant 6 : i32
    %584 = vector.shape_cast %583 : vector<16x1xf32> to vector<1x16x1xf32>
    %cst_202 = arith.constant dense<0xFF800000> : vector<1xf32>
    %585 = vector.multi_reduction <maximumf>, %584, %cst_202 [1, 2] : vector<1x16x1xf32> to vector<1xf32>
    %586 = vector.shape_cast %585 : vector<1xf32> to vector<1x1x1xf32>
    %587 = vector.extract %586[0, 0, 0] : f32 from vector<1x1x1xf32>
    %588 = vector.broadcast %587 : f32 to vector<1x1xf32>
    %589 = tpu.bitcast %588 : vector<1x1xf32> -> vector<1x1xi32>
    %c15_i32_203 = arith.constant 15 : i32
    %590 = vector.broadcast %c15_i32_203 : i32 to vector<1x1xi32>
    %591 = arith.andi %589, %590 : vector<1x1xi32>
    %c15_i32_204 = arith.constant 15 : i32
    %592 = vector.broadcast %c15_i32_204 : i32 to vector<1x1xi32>
    %593 = arith.subi %592, %591 : vector<1x1xi32>
    %594 = vector.broadcast %c6_i32_201 : i32 to vector<8x1xi32>
    %595 = arith.cmpi eq, %468, %594 : vector<8x1xi32>
    %596 = vector.shape_cast %593 : vector<1x1xi32> to vector<1x1xi32>
    %597 = vector.broadcast %596 : vector<1x1xi32> to vector<8x1xi32>
    %598 = arith.select %595, %597, %579 : vector<8x1xi1>, vector<8x1xi32>
    %599 = vector.broadcast %593 : vector<1x1xi32> to vector<16x1xi32>
    %600 = arith.cmpi eq, %458, %599 : vector<16x1xi32>
    %cst_205 = arith.constant 0xFF800000 : f32
    %601 = vector.broadcast %cst_205 : f32 to vector<16x1xf32>
    %602 = arith.select %600, %601, %583 : vector<16x1xi1>, vector<16x1xf32>
    %c7_i32_206 = arith.constant 7 : i32
    %603 = vector.shape_cast %602 : vector<16x1xf32> to vector<1x16x1xf32>
    %cst_207 = arith.constant dense<0xFF800000> : vector<1xf32>
    %604 = vector.multi_reduction <maximumf>, %603, %cst_207 [1, 2] : vector<1x16x1xf32> to vector<1xf32>
    %605 = vector.shape_cast %604 : vector<1xf32> to vector<1x1x1xf32>
    %606 = vector.extract %605[0, 0, 0] : f32 from vector<1x1x1xf32>
    %607 = vector.broadcast %606 : f32 to vector<1x1xf32>
    %608 = tpu.bitcast %607 : vector<1x1xf32> -> vector<1x1xi32>
    %c15_i32_208 = arith.constant 15 : i32
    %609 = vector.broadcast %c15_i32_208 : i32 to vector<1x1xi32>
    %610 = arith.andi %608, %609 : vector<1x1xi32>
    %c15_i32_209 = arith.constant 15 : i32
    %611 = vector.broadcast %c15_i32_209 : i32 to vector<1x1xi32>
    %612 = arith.subi %611, %610 : vector<1x1xi32>
    %613 = vector.broadcast %c7_i32_206 : i32 to vector<8x1xi32>
    %614 = arith.cmpi eq, %468, %613 : vector<8x1xi32>
    %615 = vector.shape_cast %612 : vector<1x1xi32> to vector<1x1xi32>
    %616 = vector.broadcast %615 : vector<1x1xi32> to vector<8x1xi32>
    %617 = arith.select %614, %616, %598 : vector<8x1xi1>, vector<8x1xi32>
    %618 = vector.broadcast %612 : vector<1x1xi32> to vector<16x1xi32>
    %619 = arith.cmpi eq, %458, %618 : vector<16x1xi32>
    %cst_210 = arith.constant 0xFF800000 : f32
    %620 = vector.broadcast %cst_210 : f32 to vector<16x1xf32>
    %621 = arith.select %619, %620, %602 : vector<16x1xi1>, vector<16x1xf32>
    %c8_i32_211 = arith.constant 8 : i32
    %622 = tpu.iota {dimensions = array<i32: 1>} : vector<8x16xi32>
    %623 = vector.broadcast %617 : vector<8x1xi32> to vector<8x16xi32>
    %624 = arith.cmpi eq, %622, %623 : vector<8x16xi32>
    %625 = arith.extui %624 : vector<8x16xi1> to vector<8x16xi32>
    %626 = arith.sitofp %625 : vector<8x16xi32> to vector<8x16xf32>
    %cst_212 = arith.constant dense<0.000000e+00> : vector<8x1xf32>
    %627 = tpu.matmul %626, %457, %cst_212 {dimension_numbers = #tpu.dot_dimension_numbers<[1], [0], [0], [1], [0, 0, 1, 1], [], []>} : vector<8x16xf32>, vector<16x1xf32>, vector<8x1xf32> -> vector<8x1xf32>
    %cst_213 = arith.constant dense<0.000000e+00> : vector<8x32xf32>
    %628 = tpu.matmul %626, %447, %cst_213 {dimension_numbers = #tpu.dot_dimension_numbers<[1], [0], [0], [1], [0, 0, 1, 1], [], []>} : vector<8x16xf32>, vector<16x32xf32>, vector<8x32xf32> -> vector<8x32xf32>
    %629 = vector.broadcast %627 : vector<8x1xf32> to vector<8x32xf32>
    %630 = arith.mulf %628, %629 : vector<8x32xf32>
    %cst_214 = arith.constant 0.000000e+00 : f32
    %631 = vector.broadcast %cst_214 : f32 to vector<16x16xf32>
    %632 = arith.cmpf one, %411, %631 : vector<16x16xf32>
    %633 = arith.extui %632 : vector<16x16xi1> to vector<16x16xi32>
    %634 = arith.sitofp %633 : vector<16x16xi32> to vector<16x16xf32>
    %cst_215 = arith.constant dense<0.000000e+00> : vector<8x16xf32>
    %635 = tpu.matmul %626, %634, %cst_215 {dimension_numbers = #tpu.dot_dimension_numbers<[1], [0], [0], [1], [0, 0, 1, 1], [], []>} : vector<8x16xf32>, vector<16x16xf32>, vector<8x16xf32> -> vector<8x16xf32>
    %cst_216 = arith.constant dense<0.000000e+00> : vector<16x8xf32>
    %636 = tpu.matmul %634, %626, %cst_216 {dimension_numbers = #tpu.dot_dimension_numbers<[1], [1], [0], [0], [0, 0, 1, 0], [], []>} : vector<16x16xf32>, vector<8x16xf32>, vector<16x8xf32> -> vector<16x8xf32>
    %cst_217 = arith.constant dense<0.000000e+00> : vector<8x8xf32>
    %637 = tpu.matmul %635, %636, %cst_217 {dimension_numbers = #tpu.dot_dimension_numbers<[1], [0], [0], [1], [0, 0, 1, 1], [], []>} : vector<8x16xf32>, vector<16x8xf32>, vector<8x8xf32> -> vector<8x8xf32>
    %cst_218 = arith.constant 0.000000e+00 : f32
    %638 = vector.broadcast %cst_218 : f32 to vector<8x8xf32>
    %639 = arith.cmpf one, %637, %638 : vector<8x8xf32>
    %640 = arith.extui %639 : vector<8x8xi1> to vector<8x8xi32>
    %641 = arith.sitofp %640 : vector<8x8xi32> to vector<8x8xf32>
    %cst_219 = arith.constant dense<0.000000e+00> : vector<8xf32>
    %642 = vector.multi_reduction <add>, %641, %cst_219 [1] : vector<8x8xf32> to vector<8xf32>
    %643 = vector.shape_cast %642 : vector<8xf32> to vector<8x1xf32>
    %cst_220 = arith.constant 0.000000e+00 : f32
    %644 = vector.broadcast %cst_220 : f32 to vector<8x1xf32>
    %645 = arith.cmpf ogt, %643, %644 : vector<8x1xf32>
    %646 = tpu.reciprocal %643 {approx = true} : vector<8x1xf32> -> vector<8x1xf32>
    %cst_221 = arith.constant 0.000000e+00 : f32
    %647 = vector.broadcast %cst_221 : f32 to vector<8x1xf32>
    %648 = arith.select %645, %646, %647 : vector<8x1xi1>, vector<8x1xf32>
    %649 = vector.broadcast %648 : vector<8x1xf32> to vector<8x8xf32>
    %650 = arith.mulf %641, %649 : vector<8x8xf32>
    %cst_222 = arith.constant dense<0.000000e+00> : vector<8xf32>
    %651 = vector.multi_reduction <add>, %650, %cst_222 [1] : vector<8x8xf32> to vector<8xf32>
    %652 = vector.shape_cast %651 : vector<8xf32> to vector<8x1xf32>
    %cst_223 = arith.constant 0.000000e+00 : f32
    %653 = vector.broadcast %cst_223 : f32 to vector<8x1xf32>
    %654 = arith.cmpf ogt, %652, %653 : vector<8x1xf32>
    %655 = tpu.reciprocal %652 {approx = true} : vector<8x1xf32> -> vector<8x1xf32>
    %cst_224 = arith.constant 0.000000e+00 : f32
    %656 = vector.broadcast %cst_224 : f32 to vector<8x1xf32>
    %657 = arith.select %654, %655, %656 : vector<8x1xi1>, vector<8x1xf32>
    %658 = vector.broadcast %657 : vector<8x1xf32> to vector<8x8xf32>
    %659 = arith.mulf %650, %658 : vector<8x8xf32>
    %cst_225 = arith.constant dense<0.000000e+00> : vector<8x32xf32>
    %660 = tpu.matmul %659, %630, %cst_225 {dimension_numbers = #tpu.dot_dimension_numbers<[1], [0], [0], [1], [0, 0, 1, 1], [], []>} : vector<8x8xf32>, vector<8x32xf32>, vector<8x32xf32> -> vector<8x32xf32>
    %cst_226 = arith.constant dense<0.000000e+00> : vector<8x32xf32>
    %661 = tpu.matmul %660, %8, %cst_226 {dimension_numbers = #tpu.dot_dimension_numbers<[1], [0], [0], [1], [0, 0, 1, 1], [], []>} : vector<8x32xf32>, vector<32x32xf32>, vector<8x32xf32> -> vector<8x32xf32>
    %662 = vector.broadcast %9 : vector<1x32xf32> to vector<8x32xf32>
    %663 = arith.addf %661, %662 : vector<8x32xf32>
    %cst_227 = arith.constant 0.000000e+00 : f32
    %664 = vector.broadcast %cst_227 : f32 to vector<8x32xf32>
    %665 = arith.maximumf %663, %664 : vector<8x32xf32>
    %cst_228 = arith.constant dense<0.000000e+00> : vector<8xf32>
    %666 = vector.multi_reduction <add>, %665, %cst_228 [1] : vector<8x32xf32> to vector<8xf32>
    %667 = vector.shape_cast %666 : vector<8xf32> to vector<8x1xf32>
    %cst_229 = arith.constant 3.200000e+01 : f32
    %668 = vector.broadcast %cst_229 : f32 to vector<8x1xf32>
    %669 = arith.divf %667, %668 : vector<8x1xf32>
    %670 = vector.broadcast %669 : vector<8x1xf32> to vector<8x32xf32>
    %671 = arith.subf %665, %670 : vector<8x32xf32>
    %672 = arith.mulf %671, %671 : vector<8x32xf32>
    %cst_230 = arith.constant dense<0.000000e+00> : vector<8xf32>
    %673 = vector.multi_reduction <add>, %672, %cst_230 [1] : vector<8x32xf32> to vector<8xf32>
    %674 = vector.shape_cast %673 : vector<8xf32> to vector<8x1xf32>
    %cst_231 = arith.constant 3.200000e+01 : f32
    %675 = vector.broadcast %cst_231 : f32 to vector<8x1xf32>
    %676 = arith.divf %674, %675 : vector<8x1xf32>
    %677 = vector.broadcast %669 : vector<8x1xf32> to vector<8x32xf32>
    %678 = arith.subf %665, %677 : vector<8x32xf32>
    %cst_232 = arith.constant 9.99999974E-6 : f32
    %679 = vector.broadcast %cst_232 : f32 to vector<8x1xf32>
    %680 = arith.addf %676, %679 : vector<8x1xf32>
    %681 = math.rsqrt %680 : vector<8x1xf32>
    %682 = vector.broadcast %681 : vector<8x1xf32> to vector<8x32xf32>
    %683 = arith.mulf %678, %682 : vector<8x32xf32>
    %684 = vector.broadcast %10 : vector<1x32xf32> to vector<8x32xf32>
    %685 = arith.mulf %683, %684 : vector<8x32xf32>
    %686 = vector.broadcast %11 : vector<1x32xf32> to vector<8x32xf32>
    %687 = arith.addf %685, %686 : vector<8x32xf32>
    %688 = vector.extract_strided_slice %687 {offsets = [0, 0], sizes = [1, 32], strides = [1, 1]} : vector<8x32xf32> to vector<1x32xf32>
    %689 = vector.extract_strided_slice %12 {offsets = [0, 0, 0], sizes = [1, 32, 32], strides = [1, 1, 1]} : vector<8x32x32xf32> to vector<1x32x32xf32>
    %690 = vector.shape_cast %689 : vector<1x32x32xf32> to vector<32x32xf32>
    %cst_233 = arith.constant dense<0.000000e+00> : vector<1x32xf32>
    %691 = tpu.matmul %688, %690, %cst_233 {dimension_numbers = #tpu.dot_dimension_numbers<[1], [0], [0], [1], [0, 0, 1, 1], [], []>} : vector<1x32xf32>, vector<32x32xf32>, vector<1x32xf32> -> vector<1x32xf32>
    %692 = arith.addf %13, %691 : vector<1x32xf32>
    %693 = vector.extract_strided_slice %687 {offsets = [1, 0], sizes = [1, 32], strides = [1, 1]} : vector<8x32xf32> to vector<1x32xf32>
    %694 = vector.extract_strided_slice %12 {offsets = [1, 0, 0], sizes = [1, 32, 32], strides = [1, 1, 1]} : vector<8x32x32xf32> to vector<1x32x32xf32>
    %695 = vector.shape_cast %694 : vector<1x32x32xf32> to vector<32x32xf32>
    %cst_234 = arith.constant dense<0.000000e+00> : vector<1x32xf32>
    %696 = tpu.matmul %693, %695, %cst_234 {dimension_numbers = #tpu.dot_dimension_numbers<[1], [0], [0], [1], [0, 0, 1, 1], [], []>} : vector<1x32xf32>, vector<32x32xf32>, vector<1x32xf32> -> vector<1x32xf32>
    %697 = arith.addf %692, %696 : vector<1x32xf32>
    %698 = vector.extract_strided_slice %687 {offsets = [2, 0], sizes = [1, 32], strides = [1, 1]} : vector<8x32xf32> to vector<1x32xf32>
    %699 = vector.extract_strided_slice %12 {offsets = [2, 0, 0], sizes = [1, 32, 32], strides = [1, 1, 1]} : vector<8x32x32xf32> to vector<1x32x32xf32>
    %700 = vector.shape_cast %699 : vector<1x32x32xf32> to vector<32x32xf32>
    %cst_235 = arith.constant dense<0.000000e+00> : vector<1x32xf32>
    %701 = tpu.matmul %698, %700, %cst_235 {dimension_numbers = #tpu.dot_dimension_numbers<[1], [0], [0], [1], [0, 0, 1, 1], [], []>} : vector<1x32xf32>, vector<32x32xf32>, vector<1x32xf32> -> vector<1x32xf32>
    %702 = arith.addf %697, %701 : vector<1x32xf32>
    %703 = vector.extract_strided_slice %687 {offsets = [3, 0], sizes = [1, 32], strides = [1, 1]} : vector<8x32xf32> to vector<1x32xf32>
    %704 = vector.extract_strided_slice %12 {offsets = [3, 0, 0], sizes = [1, 32, 32], strides = [1, 1, 1]} : vector<8x32x32xf32> to vector<1x32x32xf32>
    %705 = vector.shape_cast %704 : vector<1x32x32xf32> to vector<32x32xf32>
    %cst_236 = arith.constant dense<0.000000e+00> : vector<1x32xf32>
    %706 = tpu.matmul %703, %705, %cst_236 {dimension_numbers = #tpu.dot_dimension_numbers<[1], [0], [0], [1], [0, 0, 1, 1], [], []>} : vector<1x32xf32>, vector<32x32xf32>, vector<1x32xf32> -> vector<1x32xf32>
    %707 = arith.addf %702, %706 : vector<1x32xf32>
    %708 = vector.extract_strided_slice %687 {offsets = [4, 0], sizes = [1, 32], strides = [1, 1]} : vector<8x32xf32> to vector<1x32xf32>
    %709 = vector.extract_strided_slice %12 {offsets = [4, 0, 0], sizes = [1, 32, 32], strides = [1, 1, 1]} : vector<8x32x32xf32> to vector<1x32x32xf32>
    %710 = vector.shape_cast %709 : vector<1x32x32xf32> to vector<32x32xf32>
    %cst_237 = arith.constant dense<0.000000e+00> : vector<1x32xf32>
    %711 = tpu.matmul %708, %710, %cst_237 {dimension_numbers = #tpu.dot_dimension_numbers<[1], [0], [0], [1], [0, 0, 1, 1], [], []>} : vector<1x32xf32>, vector<32x32xf32>, vector<1x32xf32> -> vector<1x32xf32>
    %712 = arith.addf %707, %711 : vector<1x32xf32>
    %713 = vector.extract_strided_slice %687 {offsets = [5, 0], sizes = [1, 32], strides = [1, 1]} : vector<8x32xf32> to vector<1x32xf32>
    %714 = vector.extract_strided_slice %12 {offsets = [5, 0, 0], sizes = [1, 32, 32], strides = [1, 1, 1]} : vector<8x32x32xf32> to vector<1x32x32xf32>
    %715 = vector.shape_cast %714 : vector<1x32x32xf32> to vector<32x32xf32>
    %cst_238 = arith.constant dense<0.000000e+00> : vector<1x32xf32>
    %716 = tpu.matmul %713, %715, %cst_238 {dimension_numbers = #tpu.dot_dimension_numbers<[1], [0], [0], [1], [0, 0, 1, 1], [], []>} : vector<1x32xf32>, vector<32x32xf32>, vector<1x32xf32> -> vector<1x32xf32>
    %717 = arith.addf %712, %716 : vector<1x32xf32>
    %718 = vector.extract_strided_slice %687 {offsets = [6, 0], sizes = [1, 32], strides = [1, 1]} : vector<8x32xf32> to vector<1x32xf32>
    %719 = vector.extract_strided_slice %12 {offsets = [6, 0, 0], sizes = [1, 32, 32], strides = [1, 1, 1]} : vector<8x32x32xf32> to vector<1x32x32xf32>
    %720 = vector.shape_cast %719 : vector<1x32x32xf32> to vector<32x32xf32>
    %cst_239 = arith.constant dense<0.000000e+00> : vector<1x32xf32>
    %721 = tpu.matmul %718, %720, %cst_239 {dimension_numbers = #tpu.dot_dimension_numbers<[1], [0], [0], [1], [0, 0, 1, 1], [], []>} : vector<1x32xf32>, vector<32x32xf32>, vector<1x32xf32> -> vector<1x32xf32>
    %722 = arith.addf %717, %721 : vector<1x32xf32>
    %723 = vector.extract_strided_slice %687 {offsets = [7, 0], sizes = [1, 32], strides = [1, 1]} : vector<8x32xf32> to vector<1x32xf32>
    %724 = vector.extract_strided_slice %12 {offsets = [7, 0, 0], sizes = [1, 32, 32], strides = [1, 1, 1]} : vector<8x32x32xf32> to vector<1x32x32xf32>
    %725 = vector.shape_cast %724 : vector<1x32x32xf32> to vector<32x32xf32>
    %cst_240 = arith.constant dense<0.000000e+00> : vector<1x32xf32>
    %726 = tpu.matmul %723, %725, %cst_240 {dimension_numbers = #tpu.dot_dimension_numbers<[1], [0], [0], [1], [0, 0, 1, 1], [], []>} : vector<1x32xf32>, vector<32x32xf32>, vector<1x32xf32> -> vector<1x32xf32>
    %727 = arith.addf %722, %726 : vector<1x32xf32>
    %cst_241 = arith.constant 0.000000e+00 : f32
    %728 = vector.broadcast %cst_241 : f32 to vector<1x32xf32>
    %729 = arith.maximumf %727, %728 : vector<1x32xf32>
    %cst_242 = arith.constant dense<0.000000e+00> : vector<1xf32>
    %730 = vector.multi_reduction <add>, %729, %cst_242 [1] : vector<1x32xf32> to vector<1xf32>
    %731 = vector.shape_cast %730 : vector<1xf32> to vector<1x1xf32>
    %cst_243 = arith.constant 3.200000e+01 : f32
    %732 = vector.broadcast %cst_243 : f32 to vector<1x1xf32>
    %733 = arith.divf %731, %732 : vector<1x1xf32>
    %734 = vector.broadcast %733 : vector<1x1xf32> to vector<1x32xf32>
    %735 = arith.subf %729, %734 : vector<1x32xf32>
    %736 = arith.mulf %735, %735 : vector<1x32xf32>
    %cst_244 = arith.constant dense<0.000000e+00> : vector<1xf32>
    %737 = vector.multi_reduction <add>, %736, %cst_244 [1] : vector<1x32xf32> to vector<1xf32>
    %738 = vector.shape_cast %737 : vector<1xf32> to vector<1x1xf32>
    %cst_245 = arith.constant 3.200000e+01 : f32
    %739 = vector.broadcast %cst_245 : f32 to vector<1x1xf32>
    %740 = arith.divf %738, %739 : vector<1x1xf32>
    %741 = vector.broadcast %733 : vector<1x1xf32> to vector<1x32xf32>
    %742 = arith.subf %729, %741 : vector<1x32xf32>
    %cst_246 = arith.constant 9.99999974E-6 : f32
    %743 = vector.broadcast %cst_246 : f32 to vector<1x1xf32>
    %744 = arith.addf %740, %743 : vector<1x1xf32>
    %745 = math.rsqrt %744 : vector<1x1xf32>
    %746 = vector.broadcast %745 : vector<1x1xf32> to vector<1x32xf32>
    %747 = arith.mulf %742, %746 : vector<1x32xf32>
    %748 = arith.mulf %747, %14 : vector<1x32xf32>
    %749 = arith.addf %748, %15 : vector<1x32xf32>
    %cst_247 = arith.constant dense<0.000000e+00> : vector<1x16xf32>
    %750 = tpu.matmul %749, %16, %cst_247 {dimension_numbers = #tpu.dot_dimension_numbers<[1], [0], [0], [1], [0, 0, 1, 1], [], []>} : vector<1x32xf32>, vector<32x16xf32>, vector<1x16xf32> -> vector<1x16xf32>
    %751 = arith.addf %750, %17 : vector<1x16xf32>
    %cst_248 = arith.constant 0.000000e+00 : f32
    %752 = vector.broadcast %cst_248 : f32 to vector<1x16xf32>
    %753 = arith.maximumf %751, %752 : vector<1x16xf32>
    %cst_249 = arith.constant dense<0.000000e+00> : vector<1xf32>
    %754 = vector.multi_reduction <add>, %753, %cst_249 [1] : vector<1x16xf32> to vector<1xf32>
    %755 = vector.shape_cast %754 : vector<1xf32> to vector<1x1xf32>
    %cst_250 = arith.constant 1.600000e+01 : f32
    %756 = vector.broadcast %cst_250 : f32 to vector<1x1xf32>
    %757 = arith.divf %755, %756 : vector<1x1xf32>
    %758 = vector.broadcast %757 : vector<1x1xf32> to vector<1x16xf32>
    %759 = arith.subf %753, %758 : vector<1x16xf32>
    %760 = arith.mulf %759, %759 : vector<1x16xf32>
    %cst_251 = arith.constant dense<0.000000e+00> : vector<1xf32>
    %761 = vector.multi_reduction <add>, %760, %cst_251 [1] : vector<1x16xf32> to vector<1xf32>
    %762 = vector.shape_cast %761 : vector<1xf32> to vector<1x1xf32>
    %cst_252 = arith.constant 1.600000e+01 : f32
    %763 = vector.broadcast %cst_252 : f32 to vector<1x1xf32>
    %764 = arith.divf %762, %763 : vector<1x1xf32>
    %765 = vector.broadcast %757 : vector<1x1xf32> to vector<1x16xf32>
    %766 = arith.subf %753, %765 : vector<1x16xf32>
    %cst_253 = arith.constant 9.99999974E-6 : f32
    %767 = vector.broadcast %cst_253 : f32 to vector<1x1xf32>
    %768 = arith.addf %764, %767 : vector<1x1xf32>
    %769 = math.rsqrt %768 : vector<1x1xf32>
    %770 = vector.broadcast %769 : vector<1x1xf32> to vector<1x16xf32>
    %771 = arith.mulf %766, %770 : vector<1x16xf32>
    %772 = arith.mulf %771, %18 : vector<1x16xf32>
    %773 = arith.addf %772, %19 : vector<1x16xf32>
    %cst_254 = arith.constant dense<0.000000e+00> : vector<1x2xf32>
    %774 = tpu.matmul %773, %20, %cst_254 {dimension_numbers = #tpu.dot_dimension_numbers<[1], [0], [0], [1], [0, 0, 1, 1], [], []>} : vector<1x16xf32>, vector<16x2xf32>, vector<1x2xf32> -> vector<1x2xf32>
    %775 = arith.addf %774, %21 : vector<1x2xf32>
    %c2 = arith.constant 2 : index
    %c0_255 = arith.constant 0 : index
    %c0_256 = arith.constant 0 : index
    %776 = vector.load %arg1[%c2, %c0_255, %c0_256] : memref<4x16x16xf32, #tpu.memory_space<vmem>>, vector<1x16x16xf32>
    %777 = vector.shape_cast %776 : vector<1x16x16xf32> to vector<16x16xf32>
    %c2_257 = arith.constant 2 : index
    %c0_258 = arith.constant 0 : index
    %c0_259 = arith.constant 0 : index
    %778 = vector.load %arg2[%c2_257, %c0_258, %c0_259] : memref<4x16x1xf32, #tpu.memory_space<vmem>>, vector<1x16x1xf32>
    %779 = vector.shape_cast %778 : vector<1x16x1xf32> to vector<16x1xf32>
    %cst_260 = arith.constant dense<0.000000e+00> : vector<16xf32>
    %780 = vector.multi_reduction <add>, %777, %cst_260 [1] : vector<16x16xf32> to vector<16xf32>
    %781 = vector.shape_cast %780 : vector<16xf32> to vector<16x1xf32>
    %cst_261 = arith.constant 0.000000e+00 : f32
    %782 = vector.broadcast %cst_261 : f32 to vector<16x1xf32>
    %783 = arith.cmpf ogt, %781, %782 : vector<16x1xf32>
    %784 = tpu.reciprocal %781 {approx = true} : vector<16x1xf32> -> vector<16x1xf32>
    %cst_262 = arith.constant 0.000000e+00 : f32
    %785 = vector.broadcast %cst_262 : f32 to vector<16x1xf32>
    %786 = arith.select %783, %784, %785 : vector<16x1xi1>, vector<16x1xf32>
    %787 = vector.broadcast %786 : vector<16x1xf32> to vector<16x16xf32>
    %788 = arith.mulf %777, %787 : vector<16x16xf32>
    %cst_263 = arith.constant dense<0.000000e+00> : vector<16x1xf32>
    %789 = tpu.matmul %788, %779, %cst_263 {dimension_numbers = #tpu.dot_dimension_numbers<[1], [0], [0], [1], [0, 0, 1, 1], [], []>} : vector<16x16xf32>, vector<16x1xf32>, vector<16x1xf32> -> vector<16x1xf32>
    %cst_264 = arith.constant dense<0.000000e+00> : vector<16x32xf32>
    %790 = tpu.matmul %789, %0, %cst_264 {dimension_numbers = #tpu.dot_dimension_numbers<[1], [0], [0], [1], [0, 0, 1, 1], [], []>} : vector<16x1xf32>, vector<1x32xf32>, vector<16x32xf32> -> vector<16x32xf32>
    %791 = vector.broadcast %1 : vector<1x32xf32> to vector<16x32xf32>
    %792 = arith.addf %790, %791 : vector<16x32xf32>
    %cst_265 = arith.constant 0.000000e+00 : f32
    %793 = vector.broadcast %cst_265 : f32 to vector<16x32xf32>
    %794 = arith.maximumf %792, %793 : vector<16x32xf32>
    %cst_266 = arith.constant dense<0.000000e+00> : vector<16xf32>
    %795 = vector.multi_reduction <add>, %794, %cst_266 [1] : vector<16x32xf32> to vector<16xf32>
    %796 = vector.shape_cast %795 : vector<16xf32> to vector<16x1xf32>
    %cst_267 = arith.constant 3.200000e+01 : f32
    %797 = vector.broadcast %cst_267 : f32 to vector<16x1xf32>
    %798 = arith.divf %796, %797 : vector<16x1xf32>
    %799 = vector.broadcast %798 : vector<16x1xf32> to vector<16x32xf32>
    %800 = arith.subf %794, %799 : vector<16x32xf32>
    %801 = arith.mulf %800, %800 : vector<16x32xf32>
    %cst_268 = arith.constant dense<0.000000e+00> : vector<16xf32>
    %802 = vector.multi_reduction <add>, %801, %cst_268 [1] : vector<16x32xf32> to vector<16xf32>
    %803 = vector.shape_cast %802 : vector<16xf32> to vector<16x1xf32>
    %cst_269 = arith.constant 3.200000e+01 : f32
    %804 = vector.broadcast %cst_269 : f32 to vector<16x1xf32>
    %805 = arith.divf %803, %804 : vector<16x1xf32>
    %806 = vector.broadcast %798 : vector<16x1xf32> to vector<16x32xf32>
    %807 = arith.subf %794, %806 : vector<16x32xf32>
    %cst_270 = arith.constant 9.99999974E-6 : f32
    %808 = vector.broadcast %cst_270 : f32 to vector<16x1xf32>
    %809 = arith.addf %805, %808 : vector<16x1xf32>
    %810 = math.rsqrt %809 : vector<16x1xf32>
    %811 = vector.broadcast %810 : vector<16x1xf32> to vector<16x32xf32>
    %812 = arith.mulf %807, %811 : vector<16x32xf32>
    %813 = vector.broadcast %2 : vector<1x32xf32> to vector<16x32xf32>
    %814 = arith.mulf %812, %813 : vector<16x32xf32>
    %815 = vector.broadcast %3 : vector<1x32xf32> to vector<16x32xf32>
    %816 = arith.addf %814, %815 : vector<16x32xf32>
    %817 = vector.shape_cast %4 : vector<1x32x32xf32> to vector<32x32xf32>
    %818 = vector.shape_cast %5 : vector<1x1x32xf32> to vector<1x32xf32>
    %cst_271 = arith.constant dense<0.000000e+00> : vector<16x32xf32>
    %819 = tpu.matmul %788, %816, %cst_271 {dimension_numbers = #tpu.dot_dimension_numbers<[1], [0], [0], [1], [0, 0, 1, 1], [], []>} : vector<16x16xf32>, vector<16x32xf32>, vector<16x32xf32> -> vector<16x32xf32>
    %cst_272 = arith.constant dense<0.000000e+00> : vector<16x32xf32>
    %820 = tpu.matmul %819, %817, %cst_272 {dimension_numbers = #tpu.dot_dimension_numbers<[1], [0], [0], [1], [0, 0, 1, 1], [], []>} : vector<16x32xf32>, vector<32x32xf32>, vector<16x32xf32> -> vector<16x32xf32>
    %821 = vector.broadcast %818 : vector<1x32xf32> to vector<16x32xf32>
    %822 = arith.addf %820, %821 : vector<16x32xf32>
    %cst_273 = arith.constant 0.000000e+00 : f32
    %823 = vector.broadcast %cst_273 : f32 to vector<16x32xf32>
    %824 = arith.maximumf %822, %823 : vector<16x32xf32>
    %825 = vector.shape_cast %6 : vector<1x32x1xf32> to vector<32x1xf32>
    %826 = vector.shape_cast %7 : vector<1x1x1xf32> to vector<1x1xf32>
    %cst_274 = arith.constant dense<0.000000e+00> : vector<16x1xf32>
    %827 = tpu.matmul %824, %825, %cst_274 {dimension_numbers = #tpu.dot_dimension_numbers<[1], [0], [0], [1], [0, 0, 1, 1], [], []>} : vector<16x32xf32>, vector<32x1xf32>, vector<16x1xf32> -> vector<16x1xf32>
    %828 = vector.broadcast %826 : vector<1x1xf32> to vector<16x1xf32>
    %829 = arith.addf %827, %828 : vector<16x1xf32>
    %830 = arith.negf %829 : vector<16x1xf32>
    %831 = math.exp %830 : vector<16x1xf32>
    %cst_275 = arith.constant 1.000000e+00 : f32
    %832 = vector.broadcast %cst_275 : f32 to vector<16x1xf32>
    %833 = arith.addf %832, %831 : vector<16x1xf32>
    %834 = arith.divf %832, %833 : vector<16x1xf32>
    %835 = tpu.iota {dimensions = array<i32: 0>} : vector<16x1xi32>
    %cst_276 = arith.constant 1.000000e-30 : f32
    %836 = vector.broadcast %cst_276 : f32 to vector<16x1xf32>
    %837 = arith.maximumf %834, %836 : vector<16x1xf32>
    %838 = tpu.bitcast %837 : vector<16x1xf32> -> vector<16x1xi32>
    %c-16_i32_277 = arith.constant -16 : i32
    %839 = vector.broadcast %c-16_i32_277 : i32 to vector<16x1xi32>
    %840 = arith.andi %838, %839 : vector<16x1xi32>
    %c15_i32_278 = arith.constant 15 : i32
    %841 = vector.broadcast %c15_i32_278 : i32 to vector<16x1xi32>
    %842 = arith.subi %841, %835 : vector<16x1xi32>
    %843 = arith.ori %840, %842 : vector<16x1xi32>
    %844 = tpu.bitcast %843 : vector<16x1xi32> -> vector<16x1xf32>
    %845 = tpu.iota {dimensions = array<i32: 0>} : vector<8x1xi32>
    %c0_i32_279 = arith.constant 0 : i32
    %846 = vector.broadcast %c0_i32_279 : i32 to vector<8x1xi32>
    %c0_i32_280 = arith.constant 0 : i32
    %847 = vector.shape_cast %844 : vector<16x1xf32> to vector<1x16x1xf32>
    %cst_281 = arith.constant dense<0xFF800000> : vector<1xf32>
    %848 = vector.multi_reduction <maximumf>, %847, %cst_281 [1, 2] : vector<1x16x1xf32> to vector<1xf32>
    %849 = vector.shape_cast %848 : vector<1xf32> to vector<1x1x1xf32>
    %850 = vector.extract %849[0, 0, 0] : f32 from vector<1x1x1xf32>
    %851 = vector.broadcast %850 : f32 to vector<1x1xf32>
    %852 = tpu.bitcast %851 : vector<1x1xf32> -> vector<1x1xi32>
    %c15_i32_282 = arith.constant 15 : i32
    %853 = vector.broadcast %c15_i32_282 : i32 to vector<1x1xi32>
    %854 = arith.andi %852, %853 : vector<1x1xi32>
    %c15_i32_283 = arith.constant 15 : i32
    %855 = vector.broadcast %c15_i32_283 : i32 to vector<1x1xi32>
    %856 = arith.subi %855, %854 : vector<1x1xi32>
    %857 = vector.broadcast %c0_i32_280 : i32 to vector<8x1xi32>
    %858 = arith.cmpi eq, %845, %857 : vector<8x1xi32>
    %859 = vector.shape_cast %856 : vector<1x1xi32> to vector<1x1xi32>
    %860 = vector.broadcast %859 : vector<1x1xi32> to vector<8x1xi32>
    %861 = arith.select %858, %860, %846 : vector<8x1xi1>, vector<8x1xi32>
    %862 = vector.broadcast %856 : vector<1x1xi32> to vector<16x1xi32>
    %863 = arith.cmpi eq, %835, %862 : vector<16x1xi32>
    %cst_284 = arith.constant 0xFF800000 : f32
    %864 = vector.broadcast %cst_284 : f32 to vector<16x1xf32>
    %865 = arith.select %863, %864, %844 : vector<16x1xi1>, vector<16x1xf32>
    %c1_i32_285 = arith.constant 1 : i32
    %866 = vector.shape_cast %865 : vector<16x1xf32> to vector<1x16x1xf32>
    %cst_286 = arith.constant dense<0xFF800000> : vector<1xf32>
    %867 = vector.multi_reduction <maximumf>, %866, %cst_286 [1, 2] : vector<1x16x1xf32> to vector<1xf32>
    %868 = vector.shape_cast %867 : vector<1xf32> to vector<1x1x1xf32>
    %869 = vector.extract %868[0, 0, 0] : f32 from vector<1x1x1xf32>
    %870 = vector.broadcast %869 : f32 to vector<1x1xf32>
    %871 = tpu.bitcast %870 : vector<1x1xf32> -> vector<1x1xi32>
    %c15_i32_287 = arith.constant 15 : i32
    %872 = vector.broadcast %c15_i32_287 : i32 to vector<1x1xi32>
    %873 = arith.andi %871, %872 : vector<1x1xi32>
    %c15_i32_288 = arith.constant 15 : i32
    %874 = vector.broadcast %c15_i32_288 : i32 to vector<1x1xi32>
    %875 = arith.subi %874, %873 : vector<1x1xi32>
    %876 = vector.broadcast %c1_i32_285 : i32 to vector<8x1xi32>
    %877 = arith.cmpi eq, %845, %876 : vector<8x1xi32>
    %878 = vector.shape_cast %875 : vector<1x1xi32> to vector<1x1xi32>
    %879 = vector.broadcast %878 : vector<1x1xi32> to vector<8x1xi32>
    %880 = arith.select %877, %879, %861 : vector<8x1xi1>, vector<8x1xi32>
    %881 = vector.broadcast %875 : vector<1x1xi32> to vector<16x1xi32>
    %882 = arith.cmpi eq, %835, %881 : vector<16x1xi32>
    %cst_289 = arith.constant 0xFF800000 : f32
    %883 = vector.broadcast %cst_289 : f32 to vector<16x1xf32>
    %884 = arith.select %882, %883, %865 : vector<16x1xi1>, vector<16x1xf32>
    %c2_i32_290 = arith.constant 2 : i32
    %885 = vector.shape_cast %884 : vector<16x1xf32> to vector<1x16x1xf32>
    %cst_291 = arith.constant dense<0xFF800000> : vector<1xf32>
    %886 = vector.multi_reduction <maximumf>, %885, %cst_291 [1, 2] : vector<1x16x1xf32> to vector<1xf32>
    %887 = vector.shape_cast %886 : vector<1xf32> to vector<1x1x1xf32>
    %888 = vector.extract %887[0, 0, 0] : f32 from vector<1x1x1xf32>
    %889 = vector.broadcast %888 : f32 to vector<1x1xf32>
    %890 = tpu.bitcast %889 : vector<1x1xf32> -> vector<1x1xi32>
    %c15_i32_292 = arith.constant 15 : i32
    %891 = vector.broadcast %c15_i32_292 : i32 to vector<1x1xi32>
    %892 = arith.andi %890, %891 : vector<1x1xi32>
    %c15_i32_293 = arith.constant 15 : i32
    %893 = vector.broadcast %c15_i32_293 : i32 to vector<1x1xi32>
    %894 = arith.subi %893, %892 : vector<1x1xi32>
    %895 = vector.broadcast %c2_i32_290 : i32 to vector<8x1xi32>
    %896 = arith.cmpi eq, %845, %895 : vector<8x1xi32>
    %897 = vector.shape_cast %894 : vector<1x1xi32> to vector<1x1xi32>
    %898 = vector.broadcast %897 : vector<1x1xi32> to vector<8x1xi32>
    %899 = arith.select %896, %898, %880 : vector<8x1xi1>, vector<8x1xi32>
    %900 = vector.broadcast %894 : vector<1x1xi32> to vector<16x1xi32>
    %901 = arith.cmpi eq, %835, %900 : vector<16x1xi32>
    %cst_294 = arith.constant 0xFF800000 : f32
    %902 = vector.broadcast %cst_294 : f32 to vector<16x1xf32>
    %903 = arith.select %901, %902, %884 : vector<16x1xi1>, vector<16x1xf32>
    %c3_i32_295 = arith.constant 3 : i32
    %904 = vector.shape_cast %903 : vector<16x1xf32> to vector<1x16x1xf32>
    %cst_296 = arith.constant dense<0xFF800000> : vector<1xf32>
    %905 = vector.multi_reduction <maximumf>, %904, %cst_296 [1, 2] : vector<1x16x1xf32> to vector<1xf32>
    %906 = vector.shape_cast %905 : vector<1xf32> to vector<1x1x1xf32>
    %907 = vector.extract %906[0, 0, 0] : f32 from vector<1x1x1xf32>
    %908 = vector.broadcast %907 : f32 to vector<1x1xf32>
    %909 = tpu.bitcast %908 : vector<1x1xf32> -> vector<1x1xi32>
    %c15_i32_297 = arith.constant 15 : i32
    %910 = vector.broadcast %c15_i32_297 : i32 to vector<1x1xi32>
    %911 = arith.andi %909, %910 : vector<1x1xi32>
    %c15_i32_298 = arith.constant 15 : i32
    %912 = vector.broadcast %c15_i32_298 : i32 to vector<1x1xi32>
    %913 = arith.subi %912, %911 : vector<1x1xi32>
    %914 = vector.broadcast %c3_i32_295 : i32 to vector<8x1xi32>
    %915 = arith.cmpi eq, %845, %914 : vector<8x1xi32>
    %916 = vector.shape_cast %913 : vector<1x1xi32> to vector<1x1xi32>
    %917 = vector.broadcast %916 : vector<1x1xi32> to vector<8x1xi32>
    %918 = arith.select %915, %917, %899 : vector<8x1xi1>, vector<8x1xi32>
    %919 = vector.broadcast %913 : vector<1x1xi32> to vector<16x1xi32>
    %920 = arith.cmpi eq, %835, %919 : vector<16x1xi32>
    %cst_299 = arith.constant 0xFF800000 : f32
    %921 = vector.broadcast %cst_299 : f32 to vector<16x1xf32>
    %922 = arith.select %920, %921, %903 : vector<16x1xi1>, vector<16x1xf32>
    %c4_i32_300 = arith.constant 4 : i32
    %923 = vector.shape_cast %922 : vector<16x1xf32> to vector<1x16x1xf32>
    %cst_301 = arith.constant dense<0xFF800000> : vector<1xf32>
    %924 = vector.multi_reduction <maximumf>, %923, %cst_301 [1, 2] : vector<1x16x1xf32> to vector<1xf32>
    %925 = vector.shape_cast %924 : vector<1xf32> to vector<1x1x1xf32>
    %926 = vector.extract %925[0, 0, 0] : f32 from vector<1x1x1xf32>
    %927 = vector.broadcast %926 : f32 to vector<1x1xf32>
    %928 = tpu.bitcast %927 : vector<1x1xf32> -> vector<1x1xi32>
    %c15_i32_302 = arith.constant 15 : i32
    %929 = vector.broadcast %c15_i32_302 : i32 to vector<1x1xi32>
    %930 = arith.andi %928, %929 : vector<1x1xi32>
    %c15_i32_303 = arith.constant 15 : i32
    %931 = vector.broadcast %c15_i32_303 : i32 to vector<1x1xi32>
    %932 = arith.subi %931, %930 : vector<1x1xi32>
    %933 = vector.broadcast %c4_i32_300 : i32 to vector<8x1xi32>
    %934 = arith.cmpi eq, %845, %933 : vector<8x1xi32>
    %935 = vector.shape_cast %932 : vector<1x1xi32> to vector<1x1xi32>
    %936 = vector.broadcast %935 : vector<1x1xi32> to vector<8x1xi32>
    %937 = arith.select %934, %936, %918 : vector<8x1xi1>, vector<8x1xi32>
    %938 = vector.broadcast %932 : vector<1x1xi32> to vector<16x1xi32>
    %939 = arith.cmpi eq, %835, %938 : vector<16x1xi32>
    %cst_304 = arith.constant 0xFF800000 : f32
    %940 = vector.broadcast %cst_304 : f32 to vector<16x1xf32>
    %941 = arith.select %939, %940, %922 : vector<16x1xi1>, vector<16x1xf32>
    %c5_i32_305 = arith.constant 5 : i32
    %942 = vector.shape_cast %941 : vector<16x1xf32> to vector<1x16x1xf32>
    %cst_306 = arith.constant dense<0xFF800000> : vector<1xf32>
    %943 = vector.multi_reduction <maximumf>, %942, %cst_306 [1, 2] : vector<1x16x1xf32> to vector<1xf32>
    %944 = vector.shape_cast %943 : vector<1xf32> to vector<1x1x1xf32>
    %945 = vector.extract %944[0, 0, 0] : f32 from vector<1x1x1xf32>
    %946 = vector.broadcast %945 : f32 to vector<1x1xf32>
    %947 = tpu.bitcast %946 : vector<1x1xf32> -> vector<1x1xi32>
    %c15_i32_307 = arith.constant 15 : i32
    %948 = vector.broadcast %c15_i32_307 : i32 to vector<1x1xi32>
    %949 = arith.andi %947, %948 : vector<1x1xi32>
    %c15_i32_308 = arith.constant 15 : i32
    %950 = vector.broadcast %c15_i32_308 : i32 to vector<1x1xi32>
    %951 = arith.subi %950, %949 : vector<1x1xi32>
    %952 = vector.broadcast %c5_i32_305 : i32 to vector<8x1xi32>
    %953 = arith.cmpi eq, %845, %952 : vector<8x1xi32>
    %954 = vector.shape_cast %951 : vector<1x1xi32> to vector<1x1xi32>
    %955 = vector.broadcast %954 : vector<1x1xi32> to vector<8x1xi32>
    %956 = arith.select %953, %955, %937 : vector<8x1xi1>, vector<8x1xi32>
    %957 = vector.broadcast %951 : vector<1x1xi32> to vector<16x1xi32>
    %958 = arith.cmpi eq, %835, %957 : vector<16x1xi32>
    %cst_309 = arith.constant 0xFF800000 : f32
    %959 = vector.broadcast %cst_309 : f32 to vector<16x1xf32>
    %960 = arith.select %958, %959, %941 : vector<16x1xi1>, vector<16x1xf32>
    %c6_i32_310 = arith.constant 6 : i32
    %961 = vector.shape_cast %960 : vector<16x1xf32> to vector<1x16x1xf32>
    %cst_311 = arith.constant dense<0xFF800000> : vector<1xf32>
    %962 = vector.multi_reduction <maximumf>, %961, %cst_311 [1, 2] : vector<1x16x1xf32> to vector<1xf32>
    %963 = vector.shape_cast %962 : vector<1xf32> to vector<1x1x1xf32>
    %964 = vector.extract %963[0, 0, 0] : f32 from vector<1x1x1xf32>
    %965 = vector.broadcast %964 : f32 to vector<1x1xf32>
    %966 = tpu.bitcast %965 : vector<1x1xf32> -> vector<1x1xi32>
    %c15_i32_312 = arith.constant 15 : i32
    %967 = vector.broadcast %c15_i32_312 : i32 to vector<1x1xi32>
    %968 = arith.andi %966, %967 : vector<1x1xi32>
    %c15_i32_313 = arith.constant 15 : i32
    %969 = vector.broadcast %c15_i32_313 : i32 to vector<1x1xi32>
    %970 = arith.subi %969, %968 : vector<1x1xi32>
    %971 = vector.broadcast %c6_i32_310 : i32 to vector<8x1xi32>
    %972 = arith.cmpi eq, %845, %971 : vector<8x1xi32>
    %973 = vector.shape_cast %970 : vector<1x1xi32> to vector<1x1xi32>
    %974 = vector.broadcast %973 : vector<1x1xi32> to vector<8x1xi32>
    %975 = arith.select %972, %974, %956 : vector<8x1xi1>, vector<8x1xi32>
    %976 = vector.broadcast %970 : vector<1x1xi32> to vector<16x1xi32>
    %977 = arith.cmpi eq, %835, %976 : vector<16x1xi32>
    %cst_314 = arith.constant 0xFF800000 : f32
    %978 = vector.broadcast %cst_314 : f32 to vector<16x1xf32>
    %979 = arith.select %977, %978, %960 : vector<16x1xi1>, vector<16x1xf32>
    %c7_i32_315 = arith.constant 7 : i32
    %980 = vector.shape_cast %979 : vector<16x1xf32> to vector<1x16x1xf32>
    %cst_316 = arith.constant dense<0xFF800000> : vector<1xf32>
    %981 = vector.multi_reduction <maximumf>, %980, %cst_316 [1, 2] : vector<1x16x1xf32> to vector<1xf32>
    %982 = vector.shape_cast %981 : vector<1xf32> to vector<1x1x1xf32>
    %983 = vector.extract %982[0, 0, 0] : f32 from vector<1x1x1xf32>
    %984 = vector.broadcast %983 : f32 to vector<1x1xf32>
    %985 = tpu.bitcast %984 : vector<1x1xf32> -> vector<1x1xi32>
    %c15_i32_317 = arith.constant 15 : i32
    %986 = vector.broadcast %c15_i32_317 : i32 to vector<1x1xi32>
    %987 = arith.andi %985, %986 : vector<1x1xi32>
    %c15_i32_318 = arith.constant 15 : i32
    %988 = vector.broadcast %c15_i32_318 : i32 to vector<1x1xi32>
    %989 = arith.subi %988, %987 : vector<1x1xi32>
    %990 = vector.broadcast %c7_i32_315 : i32 to vector<8x1xi32>
    %991 = arith.cmpi eq, %845, %990 : vector<8x1xi32>
    %992 = vector.shape_cast %989 : vector<1x1xi32> to vector<1x1xi32>
    %993 = vector.broadcast %992 : vector<1x1xi32> to vector<8x1xi32>
    %994 = arith.select %991, %993, %975 : vector<8x1xi1>, vector<8x1xi32>
    %995 = vector.broadcast %989 : vector<1x1xi32> to vector<16x1xi32>
    %996 = arith.cmpi eq, %835, %995 : vector<16x1xi32>
    %cst_319 = arith.constant 0xFF800000 : f32
    %997 = vector.broadcast %cst_319 : f32 to vector<16x1xf32>
    %998 = arith.select %996, %997, %979 : vector<16x1xi1>, vector<16x1xf32>
    %c8_i32_320 = arith.constant 8 : i32
    %999 = tpu.iota {dimensions = array<i32: 1>} : vector<8x16xi32>
    %1000 = vector.broadcast %994 : vector<8x1xi32> to vector<8x16xi32>
    %1001 = arith.cmpi eq, %999, %1000 : vector<8x16xi32>
    %1002 = arith.extui %1001 : vector<8x16xi1> to vector<8x16xi32>
    %1003 = arith.sitofp %1002 : vector<8x16xi32> to vector<8x16xf32>
    %cst_321 = arith.constant dense<0.000000e+00> : vector<8x1xf32>
    %1004 = tpu.matmul %1003, %834, %cst_321 {dimension_numbers = #tpu.dot_dimension_numbers<[1], [0], [0], [1], [0, 0, 1, 1], [], []>} : vector<8x16xf32>, vector<16x1xf32>, vector<8x1xf32> -> vector<8x1xf32>
    %cst_322 = arith.constant dense<0.000000e+00> : vector<8x32xf32>
    %1005 = tpu.matmul %1003, %824, %cst_322 {dimension_numbers = #tpu.dot_dimension_numbers<[1], [0], [0], [1], [0, 0, 1, 1], [], []>} : vector<8x16xf32>, vector<16x32xf32>, vector<8x32xf32> -> vector<8x32xf32>
    %1006 = vector.broadcast %1004 : vector<8x1xf32> to vector<8x32xf32>
    %1007 = arith.mulf %1005, %1006 : vector<8x32xf32>
    %cst_323 = arith.constant 0.000000e+00 : f32
    %1008 = vector.broadcast %cst_323 : f32 to vector<16x16xf32>
    %1009 = arith.cmpf one, %788, %1008 : vector<16x16xf32>
    %1010 = arith.extui %1009 : vector<16x16xi1> to vector<16x16xi32>
    %1011 = arith.sitofp %1010 : vector<16x16xi32> to vector<16x16xf32>
    %cst_324 = arith.constant dense<0.000000e+00> : vector<8x16xf32>
    %1012 = tpu.matmul %1003, %1011, %cst_324 {dimension_numbers = #tpu.dot_dimension_numbers<[1], [0], [0], [1], [0, 0, 1, 1], [], []>} : vector<8x16xf32>, vector<16x16xf32>, vector<8x16xf32> -> vector<8x16xf32>
    %cst_325 = arith.constant dense<0.000000e+00> : vector<16x8xf32>
    %1013 = tpu.matmul %1011, %1003, %cst_325 {dimension_numbers = #tpu.dot_dimension_numbers<[1], [1], [0], [0], [0, 0, 1, 0], [], []>} : vector<16x16xf32>, vector<8x16xf32>, vector<16x8xf32> -> vector<16x8xf32>
    %cst_326 = arith.constant dense<0.000000e+00> : vector<8x8xf32>
    %1014 = tpu.matmul %1012, %1013, %cst_326 {dimension_numbers = #tpu.dot_dimension_numbers<[1], [0], [0], [1], [0, 0, 1, 1], [], []>} : vector<8x16xf32>, vector<16x8xf32>, vector<8x8xf32> -> vector<8x8xf32>
    %cst_327 = arith.constant 0.000000e+00 : f32
    %1015 = vector.broadcast %cst_327 : f32 to vector<8x8xf32>
    %1016 = arith.cmpf one, %1014, %1015 : vector<8x8xf32>
    %1017 = arith.extui %1016 : vector<8x8xi1> to vector<8x8xi32>
    %1018 = arith.sitofp %1017 : vector<8x8xi32> to vector<8x8xf32>
    %cst_328 = arith.constant dense<0.000000e+00> : vector<8xf32>
    %1019 = vector.multi_reduction <add>, %1018, %cst_328 [1] : vector<8x8xf32> to vector<8xf32>
    %1020 = vector.shape_cast %1019 : vector<8xf32> to vector<8x1xf32>
    %cst_329 = arith.constant 0.000000e+00 : f32
    %1021 = vector.broadcast %cst_329 : f32 to vector<8x1xf32>
    %1022 = arith.cmpf ogt, %1020, %1021 : vector<8x1xf32>
    %1023 = tpu.reciprocal %1020 {approx = true} : vector<8x1xf32> -> vector<8x1xf32>
    %cst_330 = arith.constant 0.000000e+00 : f32
    %1024 = vector.broadcast %cst_330 : f32 to vector<8x1xf32>
    %1025 = arith.select %1022, %1023, %1024 : vector<8x1xi1>, vector<8x1xf32>
    %1026 = vector.broadcast %1025 : vector<8x1xf32> to vector<8x8xf32>
    %1027 = arith.mulf %1018, %1026 : vector<8x8xf32>
    %cst_331 = arith.constant dense<0.000000e+00> : vector<8xf32>
    %1028 = vector.multi_reduction <add>, %1027, %cst_331 [1] : vector<8x8xf32> to vector<8xf32>
    %1029 = vector.shape_cast %1028 : vector<8xf32> to vector<8x1xf32>
    %cst_332 = arith.constant 0.000000e+00 : f32
    %1030 = vector.broadcast %cst_332 : f32 to vector<8x1xf32>
    %1031 = arith.cmpf ogt, %1029, %1030 : vector<8x1xf32>
    %1032 = tpu.reciprocal %1029 {approx = true} : vector<8x1xf32> -> vector<8x1xf32>
    %cst_333 = arith.constant 0.000000e+00 : f32
    %1033 = vector.broadcast %cst_333 : f32 to vector<8x1xf32>
    %1034 = arith.select %1031, %1032, %1033 : vector<8x1xi1>, vector<8x1xf32>
    %1035 = vector.broadcast %1034 : vector<8x1xf32> to vector<8x8xf32>
    %1036 = arith.mulf %1027, %1035 : vector<8x8xf32>
    %cst_334 = arith.constant dense<0.000000e+00> : vector<8x32xf32>
    %1037 = tpu.matmul %1036, %1007, %cst_334 {dimension_numbers = #tpu.dot_dimension_numbers<[1], [0], [0], [1], [0, 0, 1, 1], [], []>} : vector<8x8xf32>, vector<8x32xf32>, vector<8x32xf32> -> vector<8x32xf32>
    %cst_335 = arith.constant dense<0.000000e+00> : vector<8x32xf32>
    %1038 = tpu.matmul %1037, %8, %cst_335 {dimension_numbers = #tpu.dot_dimension_numbers<[1], [0], [0], [1], [0, 0, 1, 1], [], []>} : vector<8x32xf32>, vector<32x32xf32>, vector<8x32xf32> -> vector<8x32xf32>
    %1039 = vector.broadcast %9 : vector<1x32xf32> to vector<8x32xf32>
    %1040 = arith.addf %1038, %1039 : vector<8x32xf32>
    %cst_336 = arith.constant 0.000000e+00 : f32
    %1041 = vector.broadcast %cst_336 : f32 to vector<8x32xf32>
    %1042 = arith.maximumf %1040, %1041 : vector<8x32xf32>
    %cst_337 = arith.constant dense<0.000000e+00> : vector<8xf32>
    %1043 = vector.multi_reduction <add>, %1042, %cst_337 [1] : vector<8x32xf32> to vector<8xf32>
    %1044 = vector.shape_cast %1043 : vector<8xf32> to vector<8x1xf32>
    %cst_338 = arith.constant 3.200000e+01 : f32
    %1045 = vector.broadcast %cst_338 : f32 to vector<8x1xf32>
    %1046 = arith.divf %1044, %1045 : vector<8x1xf32>
    %1047 = vector.broadcast %1046 : vector<8x1xf32> to vector<8x32xf32>
    %1048 = arith.subf %1042, %1047 : vector<8x32xf32>
    %1049 = arith.mulf %1048, %1048 : vector<8x32xf32>
    %cst_339 = arith.constant dense<0.000000e+00> : vector<8xf32>
    %1050 = vector.multi_reduction <add>, %1049, %cst_339 [1] : vector<8x32xf32> to vector<8xf32>
    %1051 = vector.shape_cast %1050 : vector<8xf32> to vector<8x1xf32>
    %cst_340 = arith.constant 3.200000e+01 : f32
    %1052 = vector.broadcast %cst_340 : f32 to vector<8x1xf32>
    %1053 = arith.divf %1051, %1052 : vector<8x1xf32>
    %1054 = vector.broadcast %1046 : vector<8x1xf32> to vector<8x32xf32>
    %1055 = arith.subf %1042, %1054 : vector<8x32xf32>
    %cst_341 = arith.constant 9.99999974E-6 : f32
    %1056 = vector.broadcast %cst_341 : f32 to vector<8x1xf32>
    %1057 = arith.addf %1053, %1056 : vector<8x1xf32>
    %1058 = math.rsqrt %1057 : vector<8x1xf32>
    %1059 = vector.broadcast %1058 : vector<8x1xf32> to vector<8x32xf32>
    %1060 = arith.mulf %1055, %1059 : vector<8x32xf32>
    %1061 = vector.broadcast %10 : vector<1x32xf32> to vector<8x32xf32>
    %1062 = arith.mulf %1060, %1061 : vector<8x32xf32>
    %1063 = vector.broadcast %11 : vector<1x32xf32> to vector<8x32xf32>
    %1064 = arith.addf %1062, %1063 : vector<8x32xf32>
    %1065 = vector.extract_strided_slice %1064 {offsets = [0, 0], sizes = [1, 32], strides = [1, 1]} : vector<8x32xf32> to vector<1x32xf32>
    %1066 = vector.extract_strided_slice %12 {offsets = [0, 0, 0], sizes = [1, 32, 32], strides = [1, 1, 1]} : vector<8x32x32xf32> to vector<1x32x32xf32>
    %1067 = vector.shape_cast %1066 : vector<1x32x32xf32> to vector<32x32xf32>
    %cst_342 = arith.constant dense<0.000000e+00> : vector<1x32xf32>
    %1068 = tpu.matmul %1065, %1067, %cst_342 {dimension_numbers = #tpu.dot_dimension_numbers<[1], [0], [0], [1], [0, 0, 1, 1], [], []>} : vector<1x32xf32>, vector<32x32xf32>, vector<1x32xf32> -> vector<1x32xf32>
    %1069 = arith.addf %13, %1068 : vector<1x32xf32>
    %1070 = vector.extract_strided_slice %1064 {offsets = [1, 0], sizes = [1, 32], strides = [1, 1]} : vector<8x32xf32> to vector<1x32xf32>
    %1071 = vector.extract_strided_slice %12 {offsets = [1, 0, 0], sizes = [1, 32, 32], strides = [1, 1, 1]} : vector<8x32x32xf32> to vector<1x32x32xf32>
    %1072 = vector.shape_cast %1071 : vector<1x32x32xf32> to vector<32x32xf32>
    %cst_343 = arith.constant dense<0.000000e+00> : vector<1x32xf32>
    %1073 = tpu.matmul %1070, %1072, %cst_343 {dimension_numbers = #tpu.dot_dimension_numbers<[1], [0], [0], [1], [0, 0, 1, 1], [], []>} : vector<1x32xf32>, vector<32x32xf32>, vector<1x32xf32> -> vector<1x32xf32>
    %1074 = arith.addf %1069, %1073 : vector<1x32xf32>
    %1075 = vector.extract_strided_slice %1064 {offsets = [2, 0], sizes = [1, 32], strides = [1, 1]} : vector<8x32xf32> to vector<1x32xf32>
    %1076 = vector.extract_strided_slice %12 {offsets = [2, 0, 0], sizes = [1, 32, 32], strides = [1, 1, 1]} : vector<8x32x32xf32> to vector<1x32x32xf32>
    %1077 = vector.shape_cast %1076 : vector<1x32x32xf32> to vector<32x32xf32>
    %cst_344 = arith.constant dense<0.000000e+00> : vector<1x32xf32>
    %1078 = tpu.matmul %1075, %1077, %cst_344 {dimension_numbers = #tpu.dot_dimension_numbers<[1], [0], [0], [1], [0, 0, 1, 1], [], []>} : vector<1x32xf32>, vector<32x32xf32>, vector<1x32xf32> -> vector<1x32xf32>
    %1079 = arith.addf %1074, %1078 : vector<1x32xf32>
    %1080 = vector.extract_strided_slice %1064 {offsets = [3, 0], sizes = [1, 32], strides = [1, 1]} : vector<8x32xf32> to vector<1x32xf32>
    %1081 = vector.extract_strided_slice %12 {offsets = [3, 0, 0], sizes = [1, 32, 32], strides = [1, 1, 1]} : vector<8x32x32xf32> to vector<1x32x32xf32>
    %1082 = vector.shape_cast %1081 : vector<1x32x32xf32> to vector<32x32xf32>
    %cst_345 = arith.constant dense<0.000000e+00> : vector<1x32xf32>
    %1083 = tpu.matmul %1080, %1082, %cst_345 {dimension_numbers = #tpu.dot_dimension_numbers<[1], [0], [0], [1], [0, 0, 1, 1], [], []>} : vector<1x32xf32>, vector<32x32xf32>, vector<1x32xf32> -> vector<1x32xf32>
    %1084 = arith.addf %1079, %1083 : vector<1x32xf32>
    %1085 = vector.extract_strided_slice %1064 {offsets = [4, 0], sizes = [1, 32], strides = [1, 1]} : vector<8x32xf32> to vector<1x32xf32>
    %1086 = vector.extract_strided_slice %12 {offsets = [4, 0, 0], sizes = [1, 32, 32], strides = [1, 1, 1]} : vector<8x32x32xf32> to vector<1x32x32xf32>
    %1087 = vector.shape_cast %1086 : vector<1x32x32xf32> to vector<32x32xf32>
    %cst_346 = arith.constant dense<0.000000e+00> : vector<1x32xf32>
    %1088 = tpu.matmul %1085, %1087, %cst_346 {dimension_numbers = #tpu.dot_dimension_numbers<[1], [0], [0], [1], [0, 0, 1, 1], [], []>} : vector<1x32xf32>, vector<32x32xf32>, vector<1x32xf32> -> vector<1x32xf32>
    %1089 = arith.addf %1084, %1088 : vector<1x32xf32>
    %1090 = vector.extract_strided_slice %1064 {offsets = [5, 0], sizes = [1, 32], strides = [1, 1]} : vector<8x32xf32> to vector<1x32xf32>
    %1091 = vector.extract_strided_slice %12 {offsets = [5, 0, 0], sizes = [1, 32, 32], strides = [1, 1, 1]} : vector<8x32x32xf32> to vector<1x32x32xf32>
    %1092 = vector.shape_cast %1091 : vector<1x32x32xf32> to vector<32x32xf32>
    %cst_347 = arith.constant dense<0.000000e+00> : vector<1x32xf32>
    %1093 = tpu.matmul %1090, %1092, %cst_347 {dimension_numbers = #tpu.dot_dimension_numbers<[1], [0], [0], [1], [0, 0, 1, 1], [], []>} : vector<1x32xf32>, vector<32x32xf32>, vector<1x32xf32> -> vector<1x32xf32>
    %1094 = arith.addf %1089, %1093 : vector<1x32xf32>
    %1095 = vector.extract_strided_slice %1064 {offsets = [6, 0], sizes = [1, 32], strides = [1, 1]} : vector<8x32xf32> to vector<1x32xf32>
    %1096 = vector.extract_strided_slice %12 {offsets = [6, 0, 0], sizes = [1, 32, 32], strides = [1, 1, 1]} : vector<8x32x32xf32> to vector<1x32x32xf32>
    %1097 = vector.shape_cast %1096 : vector<1x32x32xf32> to vector<32x32xf32>
    %cst_348 = arith.constant dense<0.000000e+00> : vector<1x32xf32>
    %1098 = tpu.matmul %1095, %1097, %cst_348 {dimension_numbers = #tpu.dot_dimension_numbers<[1], [0], [0], [1], [0, 0, 1, 1], [], []>} : vector<1x32xf32>, vector<32x32xf32>, vector<1x32xf32> -> vector<1x32xf32>
    %1099 = arith.addf %1094, %1098 : vector<1x32xf32>
    %1100 = vector.extract_strided_slice %1064 {offsets = [7, 0], sizes = [1, 32], strides = [1, 1]} : vector<8x32xf32> to vector<1x32xf32>
    %1101 = vector.extract_strided_slice %12 {offsets = [7, 0, 0], sizes = [1, 32, 32], strides = [1, 1, 1]} : vector<8x32x32xf32> to vector<1x32x32xf32>
    %1102 = vector.shape_cast %1101 : vector<1x32x32xf32> to vector<32x32xf32>
    %cst_349 = arith.constant dense<0.000000e+00> : vector<1x32xf32>
    %1103 = tpu.matmul %1100, %1102, %cst_349 {dimension_numbers = #tpu.dot_dimension_numbers<[1], [0], [0], [1], [0, 0, 1, 1], [], []>} : vector<1x32xf32>, vector<32x32xf32>, vector<1x32xf32> -> vector<1x32xf32>
    %1104 = arith.addf %1099, %1103 : vector<1x32xf32>
    %cst_350 = arith.constant 0.000000e+00 : f32
    %1105 = vector.broadcast %cst_350 : f32 to vector<1x32xf32>
    %1106 = arith.maximumf %1104, %1105 : vector<1x32xf32>
    %cst_351 = arith.constant dense<0.000000e+00> : vector<1xf32>
    %1107 = vector.multi_reduction <add>, %1106, %cst_351 [1] : vector<1x32xf32> to vector<1xf32>
    %1108 = vector.shape_cast %1107 : vector<1xf32> to vector<1x1xf32>
    %cst_352 = arith.constant 3.200000e+01 : f32
    %1109 = vector.broadcast %cst_352 : f32 to vector<1x1xf32>
    %1110 = arith.divf %1108, %1109 : vector<1x1xf32>
    %1111 = vector.broadcast %1110 : vector<1x1xf32> to vector<1x32xf32>
    %1112 = arith.subf %1106, %1111 : vector<1x32xf32>
    %1113 = arith.mulf %1112, %1112 : vector<1x32xf32>
    %cst_353 = arith.constant dense<0.000000e+00> : vector<1xf32>
    %1114 = vector.multi_reduction <add>, %1113, %cst_353 [1] : vector<1x32xf32> to vector<1xf32>
    %1115 = vector.shape_cast %1114 : vector<1xf32> to vector<1x1xf32>
    %cst_354 = arith.constant 3.200000e+01 : f32
    %1116 = vector.broadcast %cst_354 : f32 to vector<1x1xf32>
    %1117 = arith.divf %1115, %1116 : vector<1x1xf32>
    %1118 = vector.broadcast %1110 : vector<1x1xf32> to vector<1x32xf32>
    %1119 = arith.subf %1106, %1118 : vector<1x32xf32>
    %cst_355 = arith.constant 9.99999974E-6 : f32
    %1120 = vector.broadcast %cst_355 : f32 to vector<1x1xf32>
    %1121 = arith.addf %1117, %1120 : vector<1x1xf32>
    %1122 = math.rsqrt %1121 : vector<1x1xf32>
    %1123 = vector.broadcast %1122 : vector<1x1xf32> to vector<1x32xf32>
    %1124 = arith.mulf %1119, %1123 : vector<1x32xf32>
    %1125 = arith.mulf %1124, %14 : vector<1x32xf32>
    %1126 = arith.addf %1125, %15 : vector<1x32xf32>
    %cst_356 = arith.constant dense<0.000000e+00> : vector<1x16xf32>
    %1127 = tpu.matmul %1126, %16, %cst_356 {dimension_numbers = #tpu.dot_dimension_numbers<[1], [0], [0], [1], [0, 0, 1, 1], [], []>} : vector<1x32xf32>, vector<32x16xf32>, vector<1x16xf32> -> vector<1x16xf32>
    %1128 = arith.addf %1127, %17 : vector<1x16xf32>
    %cst_357 = arith.constant 0.000000e+00 : f32
    %1129 = vector.broadcast %cst_357 : f32 to vector<1x16xf32>
    %1130 = arith.maximumf %1128, %1129 : vector<1x16xf32>
    %cst_358 = arith.constant dense<0.000000e+00> : vector<1xf32>
    %1131 = vector.multi_reduction <add>, %1130, %cst_358 [1] : vector<1x16xf32> to vector<1xf32>
    %1132 = vector.shape_cast %1131 : vector<1xf32> to vector<1x1xf32>
    %cst_359 = arith.constant 1.600000e+01 : f32
    %1133 = vector.broadcast %cst_359 : f32 to vector<1x1xf32>
    %1134 = arith.divf %1132, %1133 : vector<1x1xf32>
    %1135 = vector.broadcast %1134 : vector<1x1xf32> to vector<1x16xf32>
    %1136 = arith.subf %1130, %1135 : vector<1x16xf32>
    %1137 = arith.mulf %1136, %1136 : vector<1x16xf32>
    %cst_360 = arith.constant dense<0.000000e+00> : vector<1xf32>
    %1138 = vector.multi_reduction <add>, %1137, %cst_360 [1] : vector<1x16xf32> to vector<1xf32>
    %1139 = vector.shape_cast %1138 : vector<1xf32> to vector<1x1xf32>
    %cst_361 = arith.constant 1.600000e+01 : f32
    %1140 = vector.broadcast %cst_361 : f32 to vector<1x1xf32>
    %1141 = arith.divf %1139, %1140 : vector<1x1xf32>
    %1142 = vector.broadcast %1134 : vector<1x1xf32> to vector<1x16xf32>
    %1143 = arith.subf %1130, %1142 : vector<1x16xf32>
    %cst_362 = arith.constant 9.99999974E-6 : f32
    %1144 = vector.broadcast %cst_362 : f32 to vector<1x1xf32>
    %1145 = arith.addf %1141, %1144 : vector<1x1xf32>
    %1146 = math.rsqrt %1145 : vector<1x1xf32>
    %1147 = vector.broadcast %1146 : vector<1x1xf32> to vector<1x16xf32>
    %1148 = arith.mulf %1143, %1147 : vector<1x16xf32>
    %1149 = arith.mulf %1148, %18 : vector<1x16xf32>
    %1150 = arith.addf %1149, %19 : vector<1x16xf32>
    %cst_363 = arith.constant dense<0.000000e+00> : vector<1x2xf32>
    %1151 = tpu.matmul %1150, %20, %cst_363 {dimension_numbers = #tpu.dot_dimension_numbers<[1], [0], [0], [1], [0, 0, 1, 1], [], []>} : vector<1x16xf32>, vector<16x2xf32>, vector<1x2xf32> -> vector<1x2xf32>
    %1152 = arith.addf %1151, %21 : vector<1x2xf32>
    %c3 = arith.constant 3 : index
    %c0_364 = arith.constant 0 : index
    %c0_365 = arith.constant 0 : index
    %1153 = vector.load %arg1[%c3, %c0_364, %c0_365] : memref<4x16x16xf32, #tpu.memory_space<vmem>>, vector<1x16x16xf32>
    %1154 = vector.shape_cast %1153 : vector<1x16x16xf32> to vector<16x16xf32>
    %c3_366 = arith.constant 3 : index
    %c0_367 = arith.constant 0 : index
    %c0_368 = arith.constant 0 : index
    %1155 = vector.load %arg2[%c3_366, %c0_367, %c0_368] : memref<4x16x1xf32, #tpu.memory_space<vmem>>, vector<1x16x1xf32>
    %1156 = vector.shape_cast %1155 : vector<1x16x1xf32> to vector<16x1xf32>
    %cst_369 = arith.constant dense<0.000000e+00> : vector<16xf32>
    %1157 = vector.multi_reduction <add>, %1154, %cst_369 [1] : vector<16x16xf32> to vector<16xf32>
    %1158 = vector.shape_cast %1157 : vector<16xf32> to vector<16x1xf32>
    %cst_370 = arith.constant 0.000000e+00 : f32
    %1159 = vector.broadcast %cst_370 : f32 to vector<16x1xf32>
    %1160 = arith.cmpf ogt, %1158, %1159 : vector<16x1xf32>
    %1161 = tpu.reciprocal %1158 {approx = true} : vector<16x1xf32> -> vector<16x1xf32>
    %cst_371 = arith.constant 0.000000e+00 : f32
    %1162 = vector.broadcast %cst_371 : f32 to vector<16x1xf32>
    %1163 = arith.select %1160, %1161, %1162 : vector<16x1xi1>, vector<16x1xf32>
    %1164 = vector.broadcast %1163 : vector<16x1xf32> to vector<16x16xf32>
    %1165 = arith.mulf %1154, %1164 : vector<16x16xf32>
    %cst_372 = arith.constant dense<0.000000e+00> : vector<16x1xf32>
    %1166 = tpu.matmul %1165, %1156, %cst_372 {dimension_numbers = #tpu.dot_dimension_numbers<[1], [0], [0], [1], [0, 0, 1, 1], [], []>} : vector<16x16xf32>, vector<16x1xf32>, vector<16x1xf32> -> vector<16x1xf32>
    %cst_373 = arith.constant dense<0.000000e+00> : vector<16x32xf32>
    %1167 = tpu.matmul %1166, %0, %cst_373 {dimension_numbers = #tpu.dot_dimension_numbers<[1], [0], [0], [1], [0, 0, 1, 1], [], []>} : vector<16x1xf32>, vector<1x32xf32>, vector<16x32xf32> -> vector<16x32xf32>
    %1168 = vector.broadcast %1 : vector<1x32xf32> to vector<16x32xf32>
    %1169 = arith.addf %1167, %1168 : vector<16x32xf32>
    %cst_374 = arith.constant 0.000000e+00 : f32
    %1170 = vector.broadcast %cst_374 : f32 to vector<16x32xf32>
    %1171 = arith.maximumf %1169, %1170 : vector<16x32xf32>
    %cst_375 = arith.constant dense<0.000000e+00> : vector<16xf32>
    %1172 = vector.multi_reduction <add>, %1171, %cst_375 [1] : vector<16x32xf32> to vector<16xf32>
    %1173 = vector.shape_cast %1172 : vector<16xf32> to vector<16x1xf32>
    %cst_376 = arith.constant 3.200000e+01 : f32
    %1174 = vector.broadcast %cst_376 : f32 to vector<16x1xf32>
    %1175 = arith.divf %1173, %1174 : vector<16x1xf32>
    %1176 = vector.broadcast %1175 : vector<16x1xf32> to vector<16x32xf32>
    %1177 = arith.subf %1171, %1176 : vector<16x32xf32>
    %1178 = arith.mulf %1177, %1177 : vector<16x32xf32>
    %cst_377 = arith.constant dense<0.000000e+00> : vector<16xf32>
    %1179 = vector.multi_reduction <add>, %1178, %cst_377 [1] : vector<16x32xf32> to vector<16xf32>
    %1180 = vector.shape_cast %1179 : vector<16xf32> to vector<16x1xf32>
    %cst_378 = arith.constant 3.200000e+01 : f32
    %1181 = vector.broadcast %cst_378 : f32 to vector<16x1xf32>
    %1182 = arith.divf %1180, %1181 : vector<16x1xf32>
    %1183 = vector.broadcast %1175 : vector<16x1xf32> to vector<16x32xf32>
    %1184 = arith.subf %1171, %1183 : vector<16x32xf32>
    %cst_379 = arith.constant 9.99999974E-6 : f32
    %1185 = vector.broadcast %cst_379 : f32 to vector<16x1xf32>
    %1186 = arith.addf %1182, %1185 : vector<16x1xf32>
    %1187 = math.rsqrt %1186 : vector<16x1xf32>
    %1188 = vector.broadcast %1187 : vector<16x1xf32> to vector<16x32xf32>
    %1189 = arith.mulf %1184, %1188 : vector<16x32xf32>
    %1190 = vector.broadcast %2 : vector<1x32xf32> to vector<16x32xf32>
    %1191 = arith.mulf %1189, %1190 : vector<16x32xf32>
    %1192 = vector.broadcast %3 : vector<1x32xf32> to vector<16x32xf32>
    %1193 = arith.addf %1191, %1192 : vector<16x32xf32>
    %1194 = vector.shape_cast %4 : vector<1x32x32xf32> to vector<32x32xf32>
    %1195 = vector.shape_cast %5 : vector<1x1x32xf32> to vector<1x32xf32>
    %cst_380 = arith.constant dense<0.000000e+00> : vector<16x32xf32>
    %1196 = tpu.matmul %1165, %1193, %cst_380 {dimension_numbers = #tpu.dot_dimension_numbers<[1], [0], [0], [1], [0, 0, 1, 1], [], []>} : vector<16x16xf32>, vector<16x32xf32>, vector<16x32xf32> -> vector<16x32xf32>
    %cst_381 = arith.constant dense<0.000000e+00> : vector<16x32xf32>
    %1197 = tpu.matmul %1196, %1194, %cst_381 {dimension_numbers = #tpu.dot_dimension_numbers<[1], [0], [0], [1], [0, 0, 1, 1], [], []>} : vector<16x32xf32>, vector<32x32xf32>, vector<16x32xf32> -> vector<16x32xf32>
    %1198 = vector.broadcast %1195 : vector<1x32xf32> to vector<16x32xf32>
    %1199 = arith.addf %1197, %1198 : vector<16x32xf32>
    %cst_382 = arith.constant 0.000000e+00 : f32
    %1200 = vector.broadcast %cst_382 : f32 to vector<16x32xf32>
    %1201 = arith.maximumf %1199, %1200 : vector<16x32xf32>
    %1202 = vector.shape_cast %6 : vector<1x32x1xf32> to vector<32x1xf32>
    %1203 = vector.shape_cast %7 : vector<1x1x1xf32> to vector<1x1xf32>
    %cst_383 = arith.constant dense<0.000000e+00> : vector<16x1xf32>
    %1204 = tpu.matmul %1201, %1202, %cst_383 {dimension_numbers = #tpu.dot_dimension_numbers<[1], [0], [0], [1], [0, 0, 1, 1], [], []>} : vector<16x32xf32>, vector<32x1xf32>, vector<16x1xf32> -> vector<16x1xf32>
    %1205 = vector.broadcast %1203 : vector<1x1xf32> to vector<16x1xf32>
    %1206 = arith.addf %1204, %1205 : vector<16x1xf32>
    %1207 = arith.negf %1206 : vector<16x1xf32>
    %1208 = math.exp %1207 : vector<16x1xf32>
    %cst_384 = arith.constant 1.000000e+00 : f32
    %1209 = vector.broadcast %cst_384 : f32 to vector<16x1xf32>
    %1210 = arith.addf %1209, %1208 : vector<16x1xf32>
    %1211 = arith.divf %1209, %1210 : vector<16x1xf32>
    %1212 = tpu.iota {dimensions = array<i32: 0>} : vector<16x1xi32>
    %cst_385 = arith.constant 1.000000e-30 : f32
    %1213 = vector.broadcast %cst_385 : f32 to vector<16x1xf32>
    %1214 = arith.maximumf %1211, %1213 : vector<16x1xf32>
    %1215 = tpu.bitcast %1214 : vector<16x1xf32> -> vector<16x1xi32>
    %c-16_i32_386 = arith.constant -16 : i32
    %1216 = vector.broadcast %c-16_i32_386 : i32 to vector<16x1xi32>
    %1217 = arith.andi %1215, %1216 : vector<16x1xi32>
    %c15_i32_387 = arith.constant 15 : i32
    %1218 = vector.broadcast %c15_i32_387 : i32 to vector<16x1xi32>
    %1219 = arith.subi %1218, %1212 : vector<16x1xi32>
    %1220 = arith.ori %1217, %1219 : vector<16x1xi32>
    %1221 = tpu.bitcast %1220 : vector<16x1xi32> -> vector<16x1xf32>
    %1222 = tpu.iota {dimensions = array<i32: 0>} : vector<8x1xi32>
    %c0_i32_388 = arith.constant 0 : i32
    %1223 = vector.broadcast %c0_i32_388 : i32 to vector<8x1xi32>
    %c0_i32_389 = arith.constant 0 : i32
    %1224 = vector.shape_cast %1221 : vector<16x1xf32> to vector<1x16x1xf32>
    %cst_390 = arith.constant dense<0xFF800000> : vector<1xf32>
    %1225 = vector.multi_reduction <maximumf>, %1224, %cst_390 [1, 2] : vector<1x16x1xf32> to vector<1xf32>
    %1226 = vector.shape_cast %1225 : vector<1xf32> to vector<1x1x1xf32>
    %1227 = vector.extract %1226[0, 0, 0] : f32 from vector<1x1x1xf32>
    %1228 = vector.broadcast %1227 : f32 to vector<1x1xf32>
    %1229 = tpu.bitcast %1228 : vector<1x1xf32> -> vector<1x1xi32>
    %c15_i32_391 = arith.constant 15 : i32
    %1230 = vector.broadcast %c15_i32_391 : i32 to vector<1x1xi32>
    %1231 = arith.andi %1229, %1230 : vector<1x1xi32>
    %c15_i32_392 = arith.constant 15 : i32
    %1232 = vector.broadcast %c15_i32_392 : i32 to vector<1x1xi32>
    %1233 = arith.subi %1232, %1231 : vector<1x1xi32>
    %1234 = vector.broadcast %c0_i32_389 : i32 to vector<8x1xi32>
    %1235 = arith.cmpi eq, %1222, %1234 : vector<8x1xi32>
    %1236 = vector.shape_cast %1233 : vector<1x1xi32> to vector<1x1xi32>
    %1237 = vector.broadcast %1236 : vector<1x1xi32> to vector<8x1xi32>
    %1238 = arith.select %1235, %1237, %1223 : vector<8x1xi1>, vector<8x1xi32>
    %1239 = vector.broadcast %1233 : vector<1x1xi32> to vector<16x1xi32>
    %1240 = arith.cmpi eq, %1212, %1239 : vector<16x1xi32>
    %cst_393 = arith.constant 0xFF800000 : f32
    %1241 = vector.broadcast %cst_393 : f32 to vector<16x1xf32>
    %1242 = arith.select %1240, %1241, %1221 : vector<16x1xi1>, vector<16x1xf32>
    %c1_i32_394 = arith.constant 1 : i32
    %1243 = vector.shape_cast %1242 : vector<16x1xf32> to vector<1x16x1xf32>
    %cst_395 = arith.constant dense<0xFF800000> : vector<1xf32>
    %1244 = vector.multi_reduction <maximumf>, %1243, %cst_395 [1, 2] : vector<1x16x1xf32> to vector<1xf32>
    %1245 = vector.shape_cast %1244 : vector<1xf32> to vector<1x1x1xf32>
    %1246 = vector.extract %1245[0, 0, 0] : f32 from vector<1x1x1xf32>
    %1247 = vector.broadcast %1246 : f32 to vector<1x1xf32>
    %1248 = tpu.bitcast %1247 : vector<1x1xf32> -> vector<1x1xi32>
    %c15_i32_396 = arith.constant 15 : i32
    %1249 = vector.broadcast %c15_i32_396 : i32 to vector<1x1xi32>
    %1250 = arith.andi %1248, %1249 : vector<1x1xi32>
    %c15_i32_397 = arith.constant 15 : i32
    %1251 = vector.broadcast %c15_i32_397 : i32 to vector<1x1xi32>
    %1252 = arith.subi %1251, %1250 : vector<1x1xi32>
    %1253 = vector.broadcast %c1_i32_394 : i32 to vector<8x1xi32>
    %1254 = arith.cmpi eq, %1222, %1253 : vector<8x1xi32>
    %1255 = vector.shape_cast %1252 : vector<1x1xi32> to vector<1x1xi32>
    %1256 = vector.broadcast %1255 : vector<1x1xi32> to vector<8x1xi32>
    %1257 = arith.select %1254, %1256, %1238 : vector<8x1xi1>, vector<8x1xi32>
    %1258 = vector.broadcast %1252 : vector<1x1xi32> to vector<16x1xi32>
    %1259 = arith.cmpi eq, %1212, %1258 : vector<16x1xi32>
    %cst_398 = arith.constant 0xFF800000 : f32
    %1260 = vector.broadcast %cst_398 : f32 to vector<16x1xf32>
    %1261 = arith.select %1259, %1260, %1242 : vector<16x1xi1>, vector<16x1xf32>
    %c2_i32_399 = arith.constant 2 : i32
    %1262 = vector.shape_cast %1261 : vector<16x1xf32> to vector<1x16x1xf32>
    %cst_400 = arith.constant dense<0xFF800000> : vector<1xf32>
    %1263 = vector.multi_reduction <maximumf>, %1262, %cst_400 [1, 2] : vector<1x16x1xf32> to vector<1xf32>
    %1264 = vector.shape_cast %1263 : vector<1xf32> to vector<1x1x1xf32>
    %1265 = vector.extract %1264[0, 0, 0] : f32 from vector<1x1x1xf32>
    %1266 = vector.broadcast %1265 : f32 to vector<1x1xf32>
    %1267 = tpu.bitcast %1266 : vector<1x1xf32> -> vector<1x1xi32>
    %c15_i32_401 = arith.constant 15 : i32
    %1268 = vector.broadcast %c15_i32_401 : i32 to vector<1x1xi32>
    %1269 = arith.andi %1267, %1268 : vector<1x1xi32>
    %c15_i32_402 = arith.constant 15 : i32
    %1270 = vector.broadcast %c15_i32_402 : i32 to vector<1x1xi32>
    %1271 = arith.subi %1270, %1269 : vector<1x1xi32>
    %1272 = vector.broadcast %c2_i32_399 : i32 to vector<8x1xi32>
    %1273 = arith.cmpi eq, %1222, %1272 : vector<8x1xi32>
    %1274 = vector.shape_cast %1271 : vector<1x1xi32> to vector<1x1xi32>
    %1275 = vector.broadcast %1274 : vector<1x1xi32> to vector<8x1xi32>
    %1276 = arith.select %1273, %1275, %1257 : vector<8x1xi1>, vector<8x1xi32>
    %1277 = vector.broadcast %1271 : vector<1x1xi32> to vector<16x1xi32>
    %1278 = arith.cmpi eq, %1212, %1277 : vector<16x1xi32>
    %cst_403 = arith.constant 0xFF800000 : f32
    %1279 = vector.broadcast %cst_403 : f32 to vector<16x1xf32>
    %1280 = arith.select %1278, %1279, %1261 : vector<16x1xi1>, vector<16x1xf32>
    %c3_i32_404 = arith.constant 3 : i32
    %1281 = vector.shape_cast %1280 : vector<16x1xf32> to vector<1x16x1xf32>
    %cst_405 = arith.constant dense<0xFF800000> : vector<1xf32>
    %1282 = vector.multi_reduction <maximumf>, %1281, %cst_405 [1, 2] : vector<1x16x1xf32> to vector<1xf32>
    %1283 = vector.shape_cast %1282 : vector<1xf32> to vector<1x1x1xf32>
    %1284 = vector.extract %1283[0, 0, 0] : f32 from vector<1x1x1xf32>
    %1285 = vector.broadcast %1284 : f32 to vector<1x1xf32>
    %1286 = tpu.bitcast %1285 : vector<1x1xf32> -> vector<1x1xi32>
    %c15_i32_406 = arith.constant 15 : i32
    %1287 = vector.broadcast %c15_i32_406 : i32 to vector<1x1xi32>
    %1288 = arith.andi %1286, %1287 : vector<1x1xi32>
    %c15_i32_407 = arith.constant 15 : i32
    %1289 = vector.broadcast %c15_i32_407 : i32 to vector<1x1xi32>
    %1290 = arith.subi %1289, %1288 : vector<1x1xi32>
    %1291 = vector.broadcast %c3_i32_404 : i32 to vector<8x1xi32>
    %1292 = arith.cmpi eq, %1222, %1291 : vector<8x1xi32>
    %1293 = vector.shape_cast %1290 : vector<1x1xi32> to vector<1x1xi32>
    %1294 = vector.broadcast %1293 : vector<1x1xi32> to vector<8x1xi32>
    %1295 = arith.select %1292, %1294, %1276 : vector<8x1xi1>, vector<8x1xi32>
    %1296 = vector.broadcast %1290 : vector<1x1xi32> to vector<16x1xi32>
    %1297 = arith.cmpi eq, %1212, %1296 : vector<16x1xi32>
    %cst_408 = arith.constant 0xFF800000 : f32
    %1298 = vector.broadcast %cst_408 : f32 to vector<16x1xf32>
    %1299 = arith.select %1297, %1298, %1280 : vector<16x1xi1>, vector<16x1xf32>
    %c4_i32_409 = arith.constant 4 : i32
    %1300 = vector.shape_cast %1299 : vector<16x1xf32> to vector<1x16x1xf32>
    %cst_410 = arith.constant dense<0xFF800000> : vector<1xf32>
    %1301 = vector.multi_reduction <maximumf>, %1300, %cst_410 [1, 2] : vector<1x16x1xf32> to vector<1xf32>
    %1302 = vector.shape_cast %1301 : vector<1xf32> to vector<1x1x1xf32>
    %1303 = vector.extract %1302[0, 0, 0] : f32 from vector<1x1x1xf32>
    %1304 = vector.broadcast %1303 : f32 to vector<1x1xf32>
    %1305 = tpu.bitcast %1304 : vector<1x1xf32> -> vector<1x1xi32>
    %c15_i32_411 = arith.constant 15 : i32
    %1306 = vector.broadcast %c15_i32_411 : i32 to vector<1x1xi32>
    %1307 = arith.andi %1305, %1306 : vector<1x1xi32>
    %c15_i32_412 = arith.constant 15 : i32
    %1308 = vector.broadcast %c15_i32_412 : i32 to vector<1x1xi32>
    %1309 = arith.subi %1308, %1307 : vector<1x1xi32>
    %1310 = vector.broadcast %c4_i32_409 : i32 to vector<8x1xi32>
    %1311 = arith.cmpi eq, %1222, %1310 : vector<8x1xi32>
    %1312 = vector.shape_cast %1309 : vector<1x1xi32> to vector<1x1xi32>
    %1313 = vector.broadcast %1312 : vector<1x1xi32> to vector<8x1xi32>
    %1314 = arith.select %1311, %1313, %1295 : vector<8x1xi1>, vector<8x1xi32>
    %1315 = vector.broadcast %1309 : vector<1x1xi32> to vector<16x1xi32>
    %1316 = arith.cmpi eq, %1212, %1315 : vector<16x1xi32>
    %cst_413 = arith.constant 0xFF800000 : f32
    %1317 = vector.broadcast %cst_413 : f32 to vector<16x1xf32>
    %1318 = arith.select %1316, %1317, %1299 : vector<16x1xi1>, vector<16x1xf32>
    %c5_i32_414 = arith.constant 5 : i32
    %1319 = vector.shape_cast %1318 : vector<16x1xf32> to vector<1x16x1xf32>
    %cst_415 = arith.constant dense<0xFF800000> : vector<1xf32>
    %1320 = vector.multi_reduction <maximumf>, %1319, %cst_415 [1, 2] : vector<1x16x1xf32> to vector<1xf32>
    %1321 = vector.shape_cast %1320 : vector<1xf32> to vector<1x1x1xf32>
    %1322 = vector.extract %1321[0, 0, 0] : f32 from vector<1x1x1xf32>
    %1323 = vector.broadcast %1322 : f32 to vector<1x1xf32>
    %1324 = tpu.bitcast %1323 : vector<1x1xf32> -> vector<1x1xi32>
    %c15_i32_416 = arith.constant 15 : i32
    %1325 = vector.broadcast %c15_i32_416 : i32 to vector<1x1xi32>
    %1326 = arith.andi %1324, %1325 : vector<1x1xi32>
    %c15_i32_417 = arith.constant 15 : i32
    %1327 = vector.broadcast %c15_i32_417 : i32 to vector<1x1xi32>
    %1328 = arith.subi %1327, %1326 : vector<1x1xi32>
    %1329 = vector.broadcast %c5_i32_414 : i32 to vector<8x1xi32>
    %1330 = arith.cmpi eq, %1222, %1329 : vector<8x1xi32>
    %1331 = vector.shape_cast %1328 : vector<1x1xi32> to vector<1x1xi32>
    %1332 = vector.broadcast %1331 : vector<1x1xi32> to vector<8x1xi32>
    %1333 = arith.select %1330, %1332, %1314 : vector<8x1xi1>, vector<8x1xi32>
    %1334 = vector.broadcast %1328 : vector<1x1xi32> to vector<16x1xi32>
    %1335 = arith.cmpi eq, %1212, %1334 : vector<16x1xi32>
    %cst_418 = arith.constant 0xFF800000 : f32
    %1336 = vector.broadcast %cst_418 : f32 to vector<16x1xf32>
    %1337 = arith.select %1335, %1336, %1318 : vector<16x1xi1>, vector<16x1xf32>
    %c6_i32_419 = arith.constant 6 : i32
    %1338 = vector.shape_cast %1337 : vector<16x1xf32> to vector<1x16x1xf32>
    %cst_420 = arith.constant dense<0xFF800000> : vector<1xf32>
    %1339 = vector.multi_reduction <maximumf>, %1338, %cst_420 [1, 2] : vector<1x16x1xf32> to vector<1xf32>
    %1340 = vector.shape_cast %1339 : vector<1xf32> to vector<1x1x1xf32>
    %1341 = vector.extract %1340[0, 0, 0] : f32 from vector<1x1x1xf32>
    %1342 = vector.broadcast %1341 : f32 to vector<1x1xf32>
    %1343 = tpu.bitcast %1342 : vector<1x1xf32> -> vector<1x1xi32>
    %c15_i32_421 = arith.constant 15 : i32
    %1344 = vector.broadcast %c15_i32_421 : i32 to vector<1x1xi32>
    %1345 = arith.andi %1343, %1344 : vector<1x1xi32>
    %c15_i32_422 = arith.constant 15 : i32
    %1346 = vector.broadcast %c15_i32_422 : i32 to vector<1x1xi32>
    %1347 = arith.subi %1346, %1345 : vector<1x1xi32>
    %1348 = vector.broadcast %c6_i32_419 : i32 to vector<8x1xi32>
    %1349 = arith.cmpi eq, %1222, %1348 : vector<8x1xi32>
    %1350 = vector.shape_cast %1347 : vector<1x1xi32> to vector<1x1xi32>
    %1351 = vector.broadcast %1350 : vector<1x1xi32> to vector<8x1xi32>
    %1352 = arith.select %1349, %1351, %1333 : vector<8x1xi1>, vector<8x1xi32>
    %1353 = vector.broadcast %1347 : vector<1x1xi32> to vector<16x1xi32>
    %1354 = arith.cmpi eq, %1212, %1353 : vector<16x1xi32>
    %cst_423 = arith.constant 0xFF800000 : f32
    %1355 = vector.broadcast %cst_423 : f32 to vector<16x1xf32>
    %1356 = arith.select %1354, %1355, %1337 : vector<16x1xi1>, vector<16x1xf32>
    %c7_i32_424 = arith.constant 7 : i32
    %1357 = vector.shape_cast %1356 : vector<16x1xf32> to vector<1x16x1xf32>
    %cst_425 = arith.constant dense<0xFF800000> : vector<1xf32>
    %1358 = vector.multi_reduction <maximumf>, %1357, %cst_425 [1, 2] : vector<1x16x1xf32> to vector<1xf32>
    %1359 = vector.shape_cast %1358 : vector<1xf32> to vector<1x1x1xf32>
    %1360 = vector.extract %1359[0, 0, 0] : f32 from vector<1x1x1xf32>
    %1361 = vector.broadcast %1360 : f32 to vector<1x1xf32>
    %1362 = tpu.bitcast %1361 : vector<1x1xf32> -> vector<1x1xi32>
    %c15_i32_426 = arith.constant 15 : i32
    %1363 = vector.broadcast %c15_i32_426 : i32 to vector<1x1xi32>
    %1364 = arith.andi %1362, %1363 : vector<1x1xi32>
    %c15_i32_427 = arith.constant 15 : i32
    %1365 = vector.broadcast %c15_i32_427 : i32 to vector<1x1xi32>
    %1366 = arith.subi %1365, %1364 : vector<1x1xi32>
    %1367 = vector.broadcast %c7_i32_424 : i32 to vector<8x1xi32>
    %1368 = arith.cmpi eq, %1222, %1367 : vector<8x1xi32>
    %1369 = vector.shape_cast %1366 : vector<1x1xi32> to vector<1x1xi32>
    %1370 = vector.broadcast %1369 : vector<1x1xi32> to vector<8x1xi32>
    %1371 = arith.select %1368, %1370, %1352 : vector<8x1xi1>, vector<8x1xi32>
    %1372 = vector.broadcast %1366 : vector<1x1xi32> to vector<16x1xi32>
    %1373 = arith.cmpi eq, %1212, %1372 : vector<16x1xi32>
    %cst_428 = arith.constant 0xFF800000 : f32
    %1374 = vector.broadcast %cst_428 : f32 to vector<16x1xf32>
    %1375 = arith.select %1373, %1374, %1356 : vector<16x1xi1>, vector<16x1xf32>
    %c8_i32_429 = arith.constant 8 : i32
    %1376 = tpu.iota {dimensions = array<i32: 1>} : vector<8x16xi32>
    %1377 = vector.broadcast %1371 : vector<8x1xi32> to vector<8x16xi32>
    %1378 = arith.cmpi eq, %1376, %1377 : vector<8x16xi32>
    %1379 = arith.extui %1378 : vector<8x16xi1> to vector<8x16xi32>
    %1380 = arith.sitofp %1379 : vector<8x16xi32> to vector<8x16xf32>
    %cst_430 = arith.constant dense<0.000000e+00> : vector<8x1xf32>
    %1381 = tpu.matmul %1380, %1211, %cst_430 {dimension_numbers = #tpu.dot_dimension_numbers<[1], [0], [0], [1], [0, 0, 1, 1], [], []>} : vector<8x16xf32>, vector<16x1xf32>, vector<8x1xf32> -> vector<8x1xf32>
    %cst_431 = arith.constant dense<0.000000e+00> : vector<8x32xf32>
    %1382 = tpu.matmul %1380, %1201, %cst_431 {dimension_numbers = #tpu.dot_dimension_numbers<[1], [0], [0], [1], [0, 0, 1, 1], [], []>} : vector<8x16xf32>, vector<16x32xf32>, vector<8x32xf32> -> vector<8x32xf32>
    %1383 = vector.broadcast %1381 : vector<8x1xf32> to vector<8x32xf32>
    %1384 = arith.mulf %1382, %1383 : vector<8x32xf32>
    %cst_432 = arith.constant 0.000000e+00 : f32
    %1385 = vector.broadcast %cst_432 : f32 to vector<16x16xf32>
    %1386 = arith.cmpf one, %1165, %1385 : vector<16x16xf32>
    %1387 = arith.extui %1386 : vector<16x16xi1> to vector<16x16xi32>
    %1388 = arith.sitofp %1387 : vector<16x16xi32> to vector<16x16xf32>
    %cst_433 = arith.constant dense<0.000000e+00> : vector<8x16xf32>
    %1389 = tpu.matmul %1380, %1388, %cst_433 {dimension_numbers = #tpu.dot_dimension_numbers<[1], [0], [0], [1], [0, 0, 1, 1], [], []>} : vector<8x16xf32>, vector<16x16xf32>, vector<8x16xf32> -> vector<8x16xf32>
    %cst_434 = arith.constant dense<0.000000e+00> : vector<16x8xf32>
    %1390 = tpu.matmul %1388, %1380, %cst_434 {dimension_numbers = #tpu.dot_dimension_numbers<[1], [1], [0], [0], [0, 0, 1, 0], [], []>} : vector<16x16xf32>, vector<8x16xf32>, vector<16x8xf32> -> vector<16x8xf32>
    %cst_435 = arith.constant dense<0.000000e+00> : vector<8x8xf32>
    %1391 = tpu.matmul %1389, %1390, %cst_435 {dimension_numbers = #tpu.dot_dimension_numbers<[1], [0], [0], [1], [0, 0, 1, 1], [], []>} : vector<8x16xf32>, vector<16x8xf32>, vector<8x8xf32> -> vector<8x8xf32>
    %cst_436 = arith.constant 0.000000e+00 : f32
    %1392 = vector.broadcast %cst_436 : f32 to vector<8x8xf32>
    %1393 = arith.cmpf one, %1391, %1392 : vector<8x8xf32>
    %1394 = arith.extui %1393 : vector<8x8xi1> to vector<8x8xi32>
    %1395 = arith.sitofp %1394 : vector<8x8xi32> to vector<8x8xf32>
    %cst_437 = arith.constant dense<0.000000e+00> : vector<8xf32>
    %1396 = vector.multi_reduction <add>, %1395, %cst_437 [1] : vector<8x8xf32> to vector<8xf32>
    %1397 = vector.shape_cast %1396 : vector<8xf32> to vector<8x1xf32>
    %cst_438 = arith.constant 0.000000e+00 : f32
    %1398 = vector.broadcast %cst_438 : f32 to vector<8x1xf32>
    %1399 = arith.cmpf ogt, %1397, %1398 : vector<8x1xf32>
    %1400 = tpu.reciprocal %1397 {approx = true} : vector<8x1xf32> -> vector<8x1xf32>
    %cst_439 = arith.constant 0.000000e+00 : f32
    %1401 = vector.broadcast %cst_439 : f32 to vector<8x1xf32>
    %1402 = arith.select %1399, %1400, %1401 : vector<8x1xi1>, vector<8x1xf32>
    %1403 = vector.broadcast %1402 : vector<8x1xf32> to vector<8x8xf32>
    %1404 = arith.mulf %1395, %1403 : vector<8x8xf32>
    %cst_440 = arith.constant dense<0.000000e+00> : vector<8xf32>
    %1405 = vector.multi_reduction <add>, %1404, %cst_440 [1] : vector<8x8xf32> to vector<8xf32>
    %1406 = vector.shape_cast %1405 : vector<8xf32> to vector<8x1xf32>
    %cst_441 = arith.constant 0.000000e+00 : f32
    %1407 = vector.broadcast %cst_441 : f32 to vector<8x1xf32>
    %1408 = arith.cmpf ogt, %1406, %1407 : vector<8x1xf32>
    %1409 = tpu.reciprocal %1406 {approx = true} : vector<8x1xf32> -> vector<8x1xf32>
    %cst_442 = arith.constant 0.000000e+00 : f32
    %1410 = vector.broadcast %cst_442 : f32 to vector<8x1xf32>
    %1411 = arith.select %1408, %1409, %1410 : vector<8x1xi1>, vector<8x1xf32>
    %1412 = vector.broadcast %1411 : vector<8x1xf32> to vector<8x8xf32>
    %1413 = arith.mulf %1404, %1412 : vector<8x8xf32>
    %cst_443 = arith.constant dense<0.000000e+00> : vector<8x32xf32>
    %1414 = tpu.matmul %1413, %1384, %cst_443 {dimension_numbers = #tpu.dot_dimension_numbers<[1], [0], [0], [1], [0, 0, 1, 1], [], []>} : vector<8x8xf32>, vector<8x32xf32>, vector<8x32xf32> -> vector<8x32xf32>
    %cst_444 = arith.constant dense<0.000000e+00> : vector<8x32xf32>
    %1415 = tpu.matmul %1414, %8, %cst_444 {dimension_numbers = #tpu.dot_dimension_numbers<[1], [0], [0], [1], [0, 0, 1, 1], [], []>} : vector<8x32xf32>, vector<32x32xf32>, vector<8x32xf32> -> vector<8x32xf32>
    %1416 = vector.broadcast %9 : vector<1x32xf32> to vector<8x32xf32>
    %1417 = arith.addf %1415, %1416 : vector<8x32xf32>
    %cst_445 = arith.constant 0.000000e+00 : f32
    %1418 = vector.broadcast %cst_445 : f32 to vector<8x32xf32>
    %1419 = arith.maximumf %1417, %1418 : vector<8x32xf32>
    %cst_446 = arith.constant dense<0.000000e+00> : vector<8xf32>
    %1420 = vector.multi_reduction <add>, %1419, %cst_446 [1] : vector<8x32xf32> to vector<8xf32>
    %1421 = vector.shape_cast %1420 : vector<8xf32> to vector<8x1xf32>
    %cst_447 = arith.constant 3.200000e+01 : f32
    %1422 = vector.broadcast %cst_447 : f32 to vector<8x1xf32>
    %1423 = arith.divf %1421, %1422 : vector<8x1xf32>
    %1424 = vector.broadcast %1423 : vector<8x1xf32> to vector<8x32xf32>
    %1425 = arith.subf %1419, %1424 : vector<8x32xf32>
    %1426 = arith.mulf %1425, %1425 : vector<8x32xf32>
    %cst_448 = arith.constant dense<0.000000e+00> : vector<8xf32>
    %1427 = vector.multi_reduction <add>, %1426, %cst_448 [1] : vector<8x32xf32> to vector<8xf32>
    %1428 = vector.shape_cast %1427 : vector<8xf32> to vector<8x1xf32>
    %cst_449 = arith.constant 3.200000e+01 : f32
    %1429 = vector.broadcast %cst_449 : f32 to vector<8x1xf32>
    %1430 = arith.divf %1428, %1429 : vector<8x1xf32>
    %1431 = vector.broadcast %1423 : vector<8x1xf32> to vector<8x32xf32>
    %1432 = arith.subf %1419, %1431 : vector<8x32xf32>
    %cst_450 = arith.constant 9.99999974E-6 : f32
    %1433 = vector.broadcast %cst_450 : f32 to vector<8x1xf32>
    %1434 = arith.addf %1430, %1433 : vector<8x1xf32>
    %1435 = math.rsqrt %1434 : vector<8x1xf32>
    %1436 = vector.broadcast %1435 : vector<8x1xf32> to vector<8x32xf32>
    %1437 = arith.mulf %1432, %1436 : vector<8x32xf32>
    %1438 = vector.broadcast %10 : vector<1x32xf32> to vector<8x32xf32>
    %1439 = arith.mulf %1437, %1438 : vector<8x32xf32>
    %1440 = vector.broadcast %11 : vector<1x32xf32> to vector<8x32xf32>
    %1441 = arith.addf %1439, %1440 : vector<8x32xf32>
    %1442 = vector.extract_strided_slice %1441 {offsets = [0, 0], sizes = [1, 32], strides = [1, 1]} : vector<8x32xf32> to vector<1x32xf32>
    %1443 = vector.extract_strided_slice %12 {offsets = [0, 0, 0], sizes = [1, 32, 32], strides = [1, 1, 1]} : vector<8x32x32xf32> to vector<1x32x32xf32>
    %1444 = vector.shape_cast %1443 : vector<1x32x32xf32> to vector<32x32xf32>
    %cst_451 = arith.constant dense<0.000000e+00> : vector<1x32xf32>
    %1445 = tpu.matmul %1442, %1444, %cst_451 {dimension_numbers = #tpu.dot_dimension_numbers<[1], [0], [0], [1], [0, 0, 1, 1], [], []>} : vector<1x32xf32>, vector<32x32xf32>, vector<1x32xf32> -> vector<1x32xf32>
    %1446 = arith.addf %13, %1445 : vector<1x32xf32>
    %1447 = vector.extract_strided_slice %1441 {offsets = [1, 0], sizes = [1, 32], strides = [1, 1]} : vector<8x32xf32> to vector<1x32xf32>
    %1448 = vector.extract_strided_slice %12 {offsets = [1, 0, 0], sizes = [1, 32, 32], strides = [1, 1, 1]} : vector<8x32x32xf32> to vector<1x32x32xf32>
    %1449 = vector.shape_cast %1448 : vector<1x32x32xf32> to vector<32x32xf32>
    %cst_452 = arith.constant dense<0.000000e+00> : vector<1x32xf32>
    %1450 = tpu.matmul %1447, %1449, %cst_452 {dimension_numbers = #tpu.dot_dimension_numbers<[1], [0], [0], [1], [0, 0, 1, 1], [], []>} : vector<1x32xf32>, vector<32x32xf32>, vector<1x32xf32> -> vector<1x32xf32>
    %1451 = arith.addf %1446, %1450 : vector<1x32xf32>
    %1452 = vector.extract_strided_slice %1441 {offsets = [2, 0], sizes = [1, 32], strides = [1, 1]} : vector<8x32xf32> to vector<1x32xf32>
    %1453 = vector.extract_strided_slice %12 {offsets = [2, 0, 0], sizes = [1, 32, 32], strides = [1, 1, 1]} : vector<8x32x32xf32> to vector<1x32x32xf32>
    %1454 = vector.shape_cast %1453 : vector<1x32x32xf32> to vector<32x32xf32>
    %cst_453 = arith.constant dense<0.000000e+00> : vector<1x32xf32>
    %1455 = tpu.matmul %1452, %1454, %cst_453 {dimension_numbers = #tpu.dot_dimension_numbers<[1], [0], [0], [1], [0, 0, 1, 1], [], []>} : vector<1x32xf32>, vector<32x32xf32>, vector<1x32xf32> -> vector<1x32xf32>
    %1456 = arith.addf %1451, %1455 : vector<1x32xf32>
    %1457 = vector.extract_strided_slice %1441 {offsets = [3, 0], sizes = [1, 32], strides = [1, 1]} : vector<8x32xf32> to vector<1x32xf32>
    %1458 = vector.extract_strided_slice %12 {offsets = [3, 0, 0], sizes = [1, 32, 32], strides = [1, 1, 1]} : vector<8x32x32xf32> to vector<1x32x32xf32>
    %1459 = vector.shape_cast %1458 : vector<1x32x32xf32> to vector<32x32xf32>
    %cst_454 = arith.constant dense<0.000000e+00> : vector<1x32xf32>
    %1460 = tpu.matmul %1457, %1459, %cst_454 {dimension_numbers = #tpu.dot_dimension_numbers<[1], [0], [0], [1], [0, 0, 1, 1], [], []>} : vector<1x32xf32>, vector<32x32xf32>, vector<1x32xf32> -> vector<1x32xf32>
    %1461 = arith.addf %1456, %1460 : vector<1x32xf32>
    %1462 = vector.extract_strided_slice %1441 {offsets = [4, 0], sizes = [1, 32], strides = [1, 1]} : vector<8x32xf32> to vector<1x32xf32>
    %1463 = vector.extract_strided_slice %12 {offsets = [4, 0, 0], sizes = [1, 32, 32], strides = [1, 1, 1]} : vector<8x32x32xf32> to vector<1x32x32xf32>
    %1464 = vector.shape_cast %1463 : vector<1x32x32xf32> to vector<32x32xf32>
    %cst_455 = arith.constant dense<0.000000e+00> : vector<1x32xf32>
    %1465 = tpu.matmul %1462, %1464, %cst_455 {dimension_numbers = #tpu.dot_dimension_numbers<[1], [0], [0], [1], [0, 0, 1, 1], [], []>} : vector<1x32xf32>, vector<32x32xf32>, vector<1x32xf32> -> vector<1x32xf32>
    %1466 = arith.addf %1461, %1465 : vector<1x32xf32>
    %1467 = vector.extract_strided_slice %1441 {offsets = [5, 0], sizes = [1, 32], strides = [1, 1]} : vector<8x32xf32> to vector<1x32xf32>
    %1468 = vector.extract_strided_slice %12 {offsets = [5, 0, 0], sizes = [1, 32, 32], strides = [1, 1, 1]} : vector<8x32x32xf32> to vector<1x32x32xf32>
    %1469 = vector.shape_cast %1468 : vector<1x32x32xf32> to vector<32x32xf32>
    %cst_456 = arith.constant dense<0.000000e+00> : vector<1x32xf32>
    %1470 = tpu.matmul %1467, %1469, %cst_456 {dimension_numbers = #tpu.dot_dimension_numbers<[1], [0], [0], [1], [0, 0, 1, 1], [], []>} : vector<1x32xf32>, vector<32x32xf32>, vector<1x32xf32> -> vector<1x32xf32>
    %1471 = arith.addf %1466, %1470 : vector<1x32xf32>
    %1472 = vector.extract_strided_slice %1441 {offsets = [6, 0], sizes = [1, 32], strides = [1, 1]} : vector<8x32xf32> to vector<1x32xf32>
    %1473 = vector.extract_strided_slice %12 {offsets = [6, 0, 0], sizes = [1, 32, 32], strides = [1, 1, 1]} : vector<8x32x32xf32> to vector<1x32x32xf32>
    %1474 = vector.shape_cast %1473 : vector<1x32x32xf32> to vector<32x32xf32>
    %cst_457 = arith.constant dense<0.000000e+00> : vector<1x32xf32>
    %1475 = tpu.matmul %1472, %1474, %cst_457 {dimension_numbers = #tpu.dot_dimension_numbers<[1], [0], [0], [1], [0, 0, 1, 1], [], []>} : vector<1x32xf32>, vector<32x32xf32>, vector<1x32xf32> -> vector<1x32xf32>
    %1476 = arith.addf %1471, %1475 : vector<1x32xf32>
    %1477 = vector.extract_strided_slice %1441 {offsets = [7, 0], sizes = [1, 32], strides = [1, 1]} : vector<8x32xf32> to vector<1x32xf32>
    %1478 = vector.extract_strided_slice %12 {offsets = [7, 0, 0], sizes = [1, 32, 32], strides = [1, 1, 1]} : vector<8x32x32xf32> to vector<1x32x32xf32>
    %1479 = vector.shape_cast %1478 : vector<1x32x32xf32> to vector<32x32xf32>
    %cst_458 = arith.constant dense<0.000000e+00> : vector<1x32xf32>
    %1480 = tpu.matmul %1477, %1479, %cst_458 {dimension_numbers = #tpu.dot_dimension_numbers<[1], [0], [0], [1], [0, 0, 1, 1], [], []>} : vector<1x32xf32>, vector<32x32xf32>, vector<1x32xf32> -> vector<1x32xf32>
    %1481 = arith.addf %1476, %1480 : vector<1x32xf32>
    %cst_459 = arith.constant 0.000000e+00 : f32
    %1482 = vector.broadcast %cst_459 : f32 to vector<1x32xf32>
    %1483 = arith.maximumf %1481, %1482 : vector<1x32xf32>
    %cst_460 = arith.constant dense<0.000000e+00> : vector<1xf32>
    %1484 = vector.multi_reduction <add>, %1483, %cst_460 [1] : vector<1x32xf32> to vector<1xf32>
    %1485 = vector.shape_cast %1484 : vector<1xf32> to vector<1x1xf32>
    %cst_461 = arith.constant 3.200000e+01 : f32
    %1486 = vector.broadcast %cst_461 : f32 to vector<1x1xf32>
    %1487 = arith.divf %1485, %1486 : vector<1x1xf32>
    %1488 = vector.broadcast %1487 : vector<1x1xf32> to vector<1x32xf32>
    %1489 = arith.subf %1483, %1488 : vector<1x32xf32>
    %1490 = arith.mulf %1489, %1489 : vector<1x32xf32>
    %cst_462 = arith.constant dense<0.000000e+00> : vector<1xf32>
    %1491 = vector.multi_reduction <add>, %1490, %cst_462 [1] : vector<1x32xf32> to vector<1xf32>
    %1492 = vector.shape_cast %1491 : vector<1xf32> to vector<1x1xf32>
    %cst_463 = arith.constant 3.200000e+01 : f32
    %1493 = vector.broadcast %cst_463 : f32 to vector<1x1xf32>
    %1494 = arith.divf %1492, %1493 : vector<1x1xf32>
    %1495 = vector.broadcast %1487 : vector<1x1xf32> to vector<1x32xf32>
    %1496 = arith.subf %1483, %1495 : vector<1x32xf32>
    %cst_464 = arith.constant 9.99999974E-6 : f32
    %1497 = vector.broadcast %cst_464 : f32 to vector<1x1xf32>
    %1498 = arith.addf %1494, %1497 : vector<1x1xf32>
    %1499 = math.rsqrt %1498 : vector<1x1xf32>
    %1500 = vector.broadcast %1499 : vector<1x1xf32> to vector<1x32xf32>
    %1501 = arith.mulf %1496, %1500 : vector<1x32xf32>
    %1502 = arith.mulf %1501, %14 : vector<1x32xf32>
    %1503 = arith.addf %1502, %15 : vector<1x32xf32>
    %cst_465 = arith.constant dense<0.000000e+00> : vector<1x16xf32>
    %1504 = tpu.matmul %1503, %16, %cst_465 {dimension_numbers = #tpu.dot_dimension_numbers<[1], [0], [0], [1], [0, 0, 1, 1], [], []>} : vector<1x32xf32>, vector<32x16xf32>, vector<1x16xf32> -> vector<1x16xf32>
    %1505 = arith.addf %1504, %17 : vector<1x16xf32>
    %cst_466 = arith.constant 0.000000e+00 : f32
    %1506 = vector.broadcast %cst_466 : f32 to vector<1x16xf32>
    %1507 = arith.maximumf %1505, %1506 : vector<1x16xf32>
    %cst_467 = arith.constant dense<0.000000e+00> : vector<1xf32>
    %1508 = vector.multi_reduction <add>, %1507, %cst_467 [1] : vector<1x16xf32> to vector<1xf32>
    %1509 = vector.shape_cast %1508 : vector<1xf32> to vector<1x1xf32>
    %cst_468 = arith.constant 1.600000e+01 : f32
    %1510 = vector.broadcast %cst_468 : f32 to vector<1x1xf32>
    %1511 = arith.divf %1509, %1510 : vector<1x1xf32>
    %1512 = vector.broadcast %1511 : vector<1x1xf32> to vector<1x16xf32>
    %1513 = arith.subf %1507, %1512 : vector<1x16xf32>
    %1514 = arith.mulf %1513, %1513 : vector<1x16xf32>
    %cst_469 = arith.constant dense<0.000000e+00> : vector<1xf32>
    %1515 = vector.multi_reduction <add>, %1514, %cst_469 [1] : vector<1x16xf32> to vector<1xf32>
    %1516 = vector.shape_cast %1515 : vector<1xf32> to vector<1x1xf32>
    %cst_470 = arith.constant 1.600000e+01 : f32
    %1517 = vector.broadcast %cst_470 : f32 to vector<1x1xf32>
    %1518 = arith.divf %1516, %1517 : vector<1x1xf32>
    %1519 = vector.broadcast %1511 : vector<1x1xf32> to vector<1x16xf32>
    %1520 = arith.subf %1507, %1519 : vector<1x16xf32>
    %cst_471 = arith.constant 9.99999974E-6 : f32
    %1521 = vector.broadcast %cst_471 : f32 to vector<1x1xf32>
    %1522 = arith.addf %1518, %1521 : vector<1x1xf32>
    %1523 = math.rsqrt %1522 : vector<1x1xf32>
    %1524 = vector.broadcast %1523 : vector<1x1xf32> to vector<1x16xf32>
    %1525 = arith.mulf %1520, %1524 : vector<1x16xf32>
    %1526 = arith.mulf %1525, %18 : vector<1x16xf32>
    %1527 = arith.addf %1526, %19 : vector<1x16xf32>
    %cst_472 = arith.constant dense<0.000000e+00> : vector<1x2xf32>
    %1528 = tpu.matmul %1527, %20, %cst_472 {dimension_numbers = #tpu.dot_dimension_numbers<[1], [0], [0], [1], [0, 0, 1, 1], [], []>} : vector<1x16xf32>, vector<16x2xf32>, vector<1x2xf32> -> vector<1x2xf32>
    %1529 = arith.addf %1528, %21 : vector<1x2xf32>
    %1530 = tpu.concatenate %398, %775, %1152, %1529 in 0 : vector<1x2xf32>, vector<1x2xf32>, vector<1x2xf32>, vector<1x2xf32> -> vector<4x2xf32>
    %c0_473 = arith.constant 0 : index
    %c0_474 = arith.constant 0 : index
    %c0_475 = arith.constant 0 : index
    %1531 = vector.load %arg25[%c0_473, %c0_474, %c0_475] : memref<1x4x2xf32, #tpu.memory_space<vmem>>, vector<1x4x2xf32>
    %1532 = vector.shape_cast %1531 : vector<1x4x2xf32> to vector<4x2xf32>
    %1533 = vector.shape_cast %1530 : vector<4x2xf32> to vector<1x4x2xf32>
    tpu.vector_store %arg25[%c0_473, %c0_474, %c0_475], %1533 {strides = array<i32>} : memref<1x4x2xf32, #tpu.memory_space<vmem>>, vector<1x4x2xf32>,
    return
  }
  func.func @transform_0(%arg0: i32) -> (i32, i32, i32) {
    %c0_i32 = arith.constant 0 : i32
    %c0_i32_0 = arith.constant 0 : i32
    %c0_i32_1 = arith.constant 0 : i32
    return %arg0, %c0_i32, %c0_i32_0 : i32, i32, i32
  }
  func.func @transform_1(%arg0: i32) -> (i32, i32, i32) {
    %c0_i32 = arith.constant 0 : i32
    %c0_i32_0 = arith.constant 0 : i32
    %c0_i32_1 = arith.constant 0 : i32
    return %arg0, %c0_i32, %c0_i32_0 : i32, i32, i32
  }
  func.func @transform_2(%arg0: i32) -> (i32, i32) {
    %c0_i32 = arith.constant 0 : i32
    %c0_i32_0 = arith.constant 0 : i32
    %c0_i32_1 = arith.constant 0 : i32
    return %c0_i32, %c0_i32_0 : i32, i32
  }
  func.func @transform_3(%arg0: i32) -> (i32, i32) {
    %c0_i32 = arith.constant 0 : i32
    %c0_i32_0 = arith.constant 0 : i32
    %c0_i32_1 = arith.constant 0 : i32
    return %c0_i32, %c0_i32_0 : i32, i32
  }
  func.func @transform_4(%arg0: i32) -> (i32, i32) {
    %c0_i32 = arith.constant 0 : i32
    %c0_i32_0 = arith.constant 0 : i32
    %c0_i32_1 = arith.constant 0 : i32
    return %c0_i32, %c0_i32_0 : i32, i32
  }
  func.func @transform_5(%arg0: i32) -> (i32, i32) {
    %c0_i32 = arith.constant 0 : i32
    %c0_i32_0 = arith.constant 0 : i32
    %c0_i32_1 = arith.constant 0 : i32
    return %c0_i32, %c0_i32_0 : i32, i32
  }
  func.func @transform_6(%arg0: i32) -> (i32, i32, i32) {
    %c0_i32 = arith.constant 0 : i32
    %c0_i32_0 = arith.constant 0 : i32
    %c0_i32_1 = arith.constant 0 : i32
    %c0_i32_2 = arith.constant 0 : i32
    return %c0_i32, %c0_i32_0, %c0_i32_1 : i32, i32, i32
  }
  func.func @transform_7(%arg0: i32) -> (i32, i32, i32) {
    %c0_i32 = arith.constant 0 : i32
    %c0_i32_0 = arith.constant 0 : i32
    %c0_i32_1 = arith.constant 0 : i32
    %c0_i32_2 = arith.constant 0 : i32
    return %c0_i32, %c0_i32_0, %c0_i32_1 : i32, i32, i32
  }
  func.func @transform_8(%arg0: i32) -> (i32, i32, i32) {
    %c0_i32 = arith.constant 0 : i32
    %c0_i32_0 = arith.constant 0 : i32
    %c0_i32_1 = arith.constant 0 : i32
    %c0_i32_2 = arith.constant 0 : i32
    return %c0_i32, %c0_i32_0, %c0_i32_1 : i32, i32, i32
  }
  func.func @transform_9(%arg0: i32) -> (i32, i32, i32) {
    %c0_i32 = arith.constant 0 : i32
    %c0_i32_0 = arith.constant 0 : i32
    %c0_i32_1 = arith.constant 0 : i32
    %c0_i32_2 = arith.constant 0 : i32
    return %c0_i32, %c0_i32_0, %c0_i32_1 : i32, i32, i32
  }
  func.func @transform_10(%arg0: i32) -> (i32, i32) {
    %c0_i32 = arith.constant 0 : i32
    %c0_i32_0 = arith.constant 0 : i32
    %c0_i32_1 = arith.constant 0 : i32
    return %c0_i32, %c0_i32_0 : i32, i32
  }
  func.func @transform_11(%arg0: i32) -> (i32, i32) {
    %c0_i32 = arith.constant 0 : i32
    %c0_i32_0 = arith.constant 0 : i32
    %c0_i32_1 = arith.constant 0 : i32
    return %c0_i32, %c0_i32_0 : i32, i32
  }
  func.func @transform_12(%arg0: i32) -> (i32, i32) {
    %c0_i32 = arith.constant 0 : i32
    %c0_i32_0 = arith.constant 0 : i32
    %c0_i32_1 = arith.constant 0 : i32
    return %c0_i32, %c0_i32_0 : i32, i32
  }
  func.func @transform_13(%arg0: i32) -> (i32, i32) {
    %c0_i32 = arith.constant 0 : i32
    %c0_i32_0 = arith.constant 0 : i32
    %c0_i32_1 = arith.constant 0 : i32
    return %c0_i32, %c0_i32_0 : i32, i32
  }
  func.func @transform_14(%arg0: i32) -> (i32, i32, i32) {
    %c0_i32 = arith.constant 0 : i32
    %c0_i32_0 = arith.constant 0 : i32
    %c0_i32_1 = arith.constant 0 : i32
    %c0_i32_2 = arith.constant 0 : i32
    return %c0_i32, %c0_i32_0, %c0_i32_1 : i32, i32, i32
  }
  func.func @transform_15(%arg0: i32) -> (i32, i32) {
    %c0_i32 = arith.constant 0 : i32
    %c0_i32_0 = arith.constant 0 : i32
    %c0_i32_1 = arith.constant 0 : i32
    return %c0_i32, %c0_i32_0 : i32, i32
  }
  func.func @transform_16(%arg0: i32) -> (i32, i32) {
    %c0_i32 = arith.constant 0 : i32
    %c0_i32_0 = arith.constant 0 : i32
    %c0_i32_1 = arith.constant 0 : i32
    return %c0_i32, %c0_i32_0 : i32, i32
  }
  func.func @transform_17(%arg0: i32) -> (i32, i32) {
    %c0_i32 = arith.constant 0 : i32
    %c0_i32_0 = arith.constant 0 : i32
    %c0_i32_1 = arith.constant 0 : i32
    return %c0_i32, %c0_i32_0 : i32, i32
  }
  func.func @transform_18(%arg0: i32) -> (i32, i32) {
    %c0_i32 = arith.constant 0 : i32
    %c0_i32_0 = arith.constant 0 : i32
    %c0_i32_1 = arith.constant 0 : i32
    return %c0_i32, %c0_i32_0 : i32, i32
  }
  func.func @transform_19(%arg0: i32) -> (i32, i32) {
    %c0_i32 = arith.constant 0 : i32
    %c0_i32_0 = arith.constant 0 : i32
    %c0_i32_1 = arith.constant 0 : i32
    return %c0_i32, %c0_i32_0 : i32, i32
  }
  func.func @transform_20(%arg0: i32) -> (i32, i32) {
    %c0_i32 = arith.constant 0 : i32
    %c0_i32_0 = arith.constant 0 : i32
    %c0_i32_1 = arith.constant 0 : i32
    return %c0_i32, %c0_i32_0 : i32, i32
  }
  func.func @transform_21(%arg0: i32) -> (i32, i32) {
    %c0_i32 = arith.constant 0 : i32
    %c0_i32_0 = arith.constant 0 : i32
    %c0_i32_1 = arith.constant 0 : i32
    return %c0_i32, %c0_i32_0 : i32, i32
  }
  func.func @transform_22(%arg0: i32) -> (i32, i32) {
    %c0_i32 = arith.constant 0 : i32
    %c0_i32_0 = arith.constant 0 : i32
    %c0_i32_1 = arith.constant 0 : i32
    return %c0_i32, %c0_i32_0 : i32, i32
  }
  func.func @transform_23(%arg0: i32) -> (i32, i32) {
    %c0_i32 = arith.constant 0 : i32
    %c0_i32_0 = arith.constant 0 : i32
    %c0_i32_1 = arith.constant 0 : i32
    return %c0_i32, %c0_i32_0 : i32, i32
  }
  func.func @transform_24(%arg0: i32) -> (i32, i32, i32) {
    %c0_i32 = arith.constant 0 : i32
    %c0_i32_0 = arith.constant 0 : i32
    %c0_i32_1 = arith.constant 0 : i32
    return %arg0, %c0_i32, %c0_i32_0 : i32, i32, i32
  }
}

</mosaic_0001>

<bundles_post_ra>
// kernel: _lambda_.1
= control target key start
LH: loop header
LB: loop body
LE: loop exit
PB: predicated region body
PF: predicated region fallthrough
CT: control target
= control target key end

     0   :  { %s11016_s27 = smov 0   ;;  %s12320_s0 = inlined_call_operand.vmem [shape: f32[8,16,16], index: 0, kind: input, shape index: {}]   ;;  %s12321_s1 = inlined_call_operand.vmem [shape: f32[8,16,1], index: 1, kind: input, shape index: {}]   ;;  %s12322_s2 = inlined_call_operand.vmem [shape: f32[1,32], index: 2, kind: input, shape index: {}]   ;;  %s12323_s3 = inlined_call_operand.vmem [shape: f32[1,32], index: 3, kind: input, shape index: {}]   ;;  %s12324_s4 = inlined_call_operand.vmem [shape: f32[1,32], index: 4, kind: input, shape index: {}]   ;;  %s12325_s5 = inlined_call_operand.vmem [shape: f32[1,32], index: 5, kind: input, shape index: {}]   ;;  %s12326_s6 = inlined_call_operand.vmem [shape: f32[1,32,32], index: 6, kind: input, shape index: {}]   ;;  %s12327_s7 = inlined_call_operand.vmem [shape: f32[1,1,32], index: 7, kind: input, shape index: {}]   ;;  %s12328_s8 = inlined_call_operand.vmem [shape: f32[1,32,1], index: 8, kind: input, shape index: {}]   ;;  %s12329_s9 = inlined_call_operand.<no memory space> [shape: f32[1,1,1], index: 9, kind: input, shape index: {}]   ;;  %s12330_s10 = inlined_call_operand.vmem [shape: f32[32,32], index: 10, kind: input, shape index: {}]   ;;  %s12331_s11 = inlined_call_operand.vmem [shape: f32[1,32], index: 11, kind: input, shape index: {}]   ;;  %s12332_s12 = inlined_call_operand.vmem [shape: f32[1,32], index: 12, kind: input, shape index: {}]   ;;  %s12333_s13 = inlined_call_operand.vmem [shape: f32[1,32], index: 13, kind: input, shape index: {}]   ;;  %s12334_s14 = inlined_call_operand.vmem [shape: f32[8,32,32], index: 14, kind: input, shape index: {}]   ;;  %s12335_s15 = inlined_call_operand.vmem [shape: f32[1,32], index: 15, kind: input, shape index: {}]   ;;  %s12336_s16 = inlined_call_operand.vmem [shape: f32[1,32], index: 16, kind: input, shape index: {}]   ;;  %s12337_s17 = inlined_call_operand.vmem [shape: f32[1,32], index: 17, kind: input, shape index: {}]   ;;  %s12338_s18 = inlined_call_operand.vmem [shape: f32[32,16], index: 18, kind: input, shape index: {}]   ;;  %s12339_s19 = inlined_call_operand.vmem [shape: f32[1,16], index: 19, kind: input, shape index: {}]   ;;  %s12340_s20 = inlined_call_operand.vmem [shape: f32[1,16], index: 20, kind: input, shape index: {}]   ;;  %s12341_s21 = inlined_call_operand.vmem [shape: f32[1,16], index: 21, kind: input, shape index: {}]   ;;  %s12342_s22 = inlined_call_operand.vmem [shape: f32[16,2], index: 22, kind: input, shape index: {}]   ;;  %s12343_s23 = inlined_call_operand.vmem [shape: f32[1,2], index: 23, kind: input, shape index: {}]   ;;  %s12344_s24 = inlined_call_operand.vmem [shape: f32[2,4,2], index: 24, kind: output, shape index: {}]  }
   0x1   :  { %12365 = sst [smem:[#allocation4_spill]] %s12320_s0  ;;  %v29_v0 = vstv %s12329_s9 }
   0x2   :  { %12366 = sst [smem:[#allocation5_spill]] %s12321_s1  ;;  %30 = vst [vmem:[#allocation2] sm:$0x1] %v29_v0 }
   0x3   :  { %12367 = sst [smem:[#allocation6_spill]] %s12322_s2 }
   0x4   :  { %12368 = sst [smem:[#allocation7_spill]] %s12323_s3 }
   0x5   :  { %12369 = sst [smem:[#allocation8_spill]] %s12324_s4 }
   0x6   :  { %12370 = sst [smem:[#allocation9_spill]] %s12325_s5 }
   0x7   :  { %12371 = sst [smem:[#allocation10_spill]] %s12326_s6 }
   0x8   :  { %12372 = sst [smem:[#allocation11_spill]] %s12327_s7 }
   0x9   :  { %12373 = sst [smem:[#allocation12_spill]] %s12328_s8 }
   0xa   :  { %12374 = sst [smem:[#allocation13_spill]] %s12330_s10 }
   0xb   :  { %12375 = sst [smem:[#allocation14_spill]] %s12344_s24 }
   0xc LB: > { %12376 = sst [smem:[#allocation3_spill]] %s10881_s27  ;;  %s11022_s28 = sadd.s32 4294967295, %s10881_s27   ;;  %s10881_s27 = sphi %s11016_s27, %s36_s27  }
   0xd   : > { %p8872_p0 = scmp.ge.s32.totalorder %s10881_s27, 1  ;;  %p678_p1 = scmp.lt.s32.totalorder %s10881_s27, 3 }
   0xf   : > { %p679_p2 = pnand %p8872_p0, %p678_p1 }
  0x10   : > { %s8873_s6 = sshll.u32 (!%p679_p2), %s11022_s28, 2  ;;  %vm838_vm0 = vcmask (!%p679_p2), 130048   ;;  %s12377_s0 = sld [smem:[#allocation4_spill]] (!%p679_p2)  ;;  %vm947_vm3 = vcmask (!%p679_p2), 1040384   ;;  %vm940_vm4 = vcmask (!%p679_p2), 7168   ;;  %vm1028_vm5 = vcmask (!%p679_p2), 261120  }
  0x11   : > { %682 = sbr.rel (%p679_p2) target bundleno = 23449 (0x5b99), region = 116  ;;  %p751_p3 = scmp.lt.s32.totalorder (!%p679_p2), %s8873_s6, 7 }
  0x12   : > { %s12378_s25 = sld [smem:[#allocation5_spill]] (!%p679_p2)  ;;  %s12379_s5 = sld [smem:[#allocation6_spill]] (!%p679_p2) }
  0x13   : > { %s12382_s29 = sld [smem:[#allocation8_spill]] (!%p679_p2)  ;;  %s12384_s26 = sld [smem:[#allocation12_spill]] (!%p679_p2) }
  0x14   : > { %s12386_s10 = sld [smem:[#allocation13_spill]] (!%p679_p2)  ;;  %p764_p4 = scmp.lt.s32.totalorder (!%p679_p2), %s11022_s28, 1 }
  0x18   : > { %s12406_s6 = smov (!%p751_p3, %s8873_s6), 7  ;;  %v768_v16 = vld [vmem:[%s12379_s5] sm:$0x1]  ;;  %s12408_s28 = smov (!%p764_p4, %s11022_s28), 1 }
  0x19   : > { %s9054_s9 = sshll.u32 %s12406_s6, 4  ;;  %9435 = vmatprep.subr.msk.mxu1 %vm947_vm3, %v768_v16  ;;  %v8886_v52 = vld [vmem:[%s12382_s29] ss:$0 sm:$0xff]  ;;  %v778_v62 = vld [vmem:[%s12384_s26 + $0x8] sm:$0xff] }
  0x1a   : > { %s11030_s7 = scalar_lea.vmem %s12377_s0, %s9054_s9  ;;  %s11039_s8 = scalar_lea.vmem %s12378_s25, %s9054_s9  ;;  %9436 = vmatpush3.msk.msra.mxu1 %vm947_vm3, %v768_v16  ;;  %v777_v61 = vld [vmem:[%s12384_s26] sm:$0xff] }
  0x1b   : > { %v834_v1 = vld [vmem:[%s11030_s7] sm:$0xff]  ;;  %v835_v2 = vld [vmem:[%s11030_s7 + $0x8] sm:$0xff]  ;;  %s12380_s9 = sld [smem:[#allocation7_spill]]  ;;  %s12381_s0 = sld [smem:[#allocation10_spill]]  ;;  %v11101_v63 = vpack.c.bf16 %v778_v62, %v777_v61 }
  0x1c   : > { %v839_v3 = vsel %vm838_vm0, %v834_v1, 0.0  ;;  %v842_v4 = vsel %vm838_vm0, %v835_v2, 0.0  ;;  %v836_v5 = vld [vmem:[%s11039_s8] sm:$0xff]  ;;  %v837_v6 = vld [vmem:[%s11039_s8 + $0x8] sm:$0xff]  ;;  %s12383_s25 = sld [smem:[#allocation9_spill]] }
  0x1d   : > { %840 = vadd.xlane.f32.xlu0 %v839_v3  ;;  %v10212_v7 = vpack.c.bf16 %v837_v6, %v836_v5  ;;  %v780_v3 = vld [vmem:[%s12384_s26 + $0x18] sm:$0xff]  ;;  %v12359_v5 = vmov 0.0|0.0   ;;  %v8893_v16 = vld [vmem:[#allocation2] ss:$0 sm:$0xff] }
  0x1f   : > { %10213 = vmatprep.subr.bf16.mxu0 %v10212_v7 }
  0x20   : > { %10215 = vmatpush3.bf16.msra.mxu0 %v10212_v7 }
  0x21   : > { %843 = vadd.xlane.f32.xlu0 %v842_v4  ;;  %v8882_v19 = vld [vmem:[%s12380_s9] ss:$0 sm:$0xff]  ;;  %v773_v39 = vld [vmem:[%s12381_s0 + $0x8] sm:$0xff]  ;;  %v774_v40 = vld [vmem:[%s12381_s0 + $0x10] sm:$0xff] }
  0x22   : > { %v772_v38 = vld [vmem:[%s12381_s0] sm:$0xff]  ;;  %v775_v42 = vld [vmem:[%s12381_s0 + $0x18] sm:$0xff]  ;;  %s12385_s0 = sld [smem:[#allocation11_spill]] }
  0x23   : > { %v11076_v41 = vpack.c.bf16 %v773_v39, %v772_v38  ;;  %v11081_v43 = vpack.c.bf16 %v775_v42, %v774_v40  ;;  %v8887_v56 = vld [vmem:[%s12383_s25] ss:$0 sm:$0xff] }
  0x25   : > { %10221 = vmatprep.subr.bf16.mxu0 %v11076_v41 }
  0x28   : > { %v8890_v6 = vld [vmem:[%s12385_s0] ss:$0 sm:$0xff] }
  0xaa   : > { %v841_v8 = vpop.xlane.xlu0 %840 }
  0xab   : > { %10746 = vrcp.f32 %v841_v8  ;;  %vm845_vm1 = vcmp.gt.f32.partialorder %v841_v8, 0.0 }
  0xae   : > { %v844_v9 = vpop.xlane.xlu0 %843 }
  0xaf   : > { %10748 = vrcp.f32 %v844_v9  ;;  %vm846_vm2 = vcmp.gt.f32.partialorder %v844_v9, 0.0 }
  0xb5   : > { %v10747_v10 = vpop.eup %10746 }
  0xb6   : > { %v849_v11 = vsel %vm845_vm1, %v10747_v10, 0.0 }
  0xb7   : > { %v11043_v12 = vmul.f32 %v849_v11, %v834_v1 }
  0xb9   : > { %v10749_v13 = vpop.eup %10748  ;;  %9432 = vmatprep.mubr.msk.f32.mxu0 %vm838_vm0, %v11043_v12 }
  0xba   : > { %v850_v14 = vsel %vm846_vm2, %v10749_v13, 0.0 }
  0xbb   : > { %v11047_v15 = vmul.f32 %v850_v14, %v835_v2  ;;  %v779_v2 = vld [vmem:[%s12384_s26 + $0x10] sm:$0xff] }
  0xbc   : > { %v11113_v4 = vpack.c.bf16 %v780_v3, %v779_v2 }
  0xbd   : > { %9433 = vmatmul.mubr.msk.f32.vlgmr.msra.gmra.mrb[0].mxu0 %vm838_vm0, %v11047_v15 }
  0xbe   : > { %10223 = vmatpush3.bf16.msra.mxu0 %v11076_v41 }
  0xbf   : > { %10225 = vmatprep.subr.bf16.mxu0 %v11081_v43 }
  0xc2   : > { %10227 = vmatpush3.bf16.msra.mxu0 %v11081_v43 }
  0xc3   : > { %10229 = vmatprep.subr.bf16.mxu0 %v11101_v63 }
 0x190   : > { %v9434_v17 = vpop.f32.mrb[0].mxu0 }
 0x191   : > { %v925_v18 = vpop.f32.mrb[1].mxu0 }
 0x192   : > { %9437 = vmatprep.mubr.msk.f32.mxu1 %vm940_vm4, %v925_v18 }
 0x193   : > { %9438 = vmatmul.mubr.msk.f32.vlgmr.msra.gmra.mrb[0].mxu1 %vm940_vm4, %v9434_v17 }
 0x194   : > { %9444 = vmatprep.mubr.msk.f32.mxu1 %vm838_vm0, %v11043_v12 }
 0x266   : > { %v9439_v20 = vpop.f32.mrb[0].mxu1 }
 0x267   : > { %v1017_v21 = vpop.f32.mrb[1].mxu1  ;;  %v1023_v22 = vadd.f32 %v9439_v20, %v8882_v19 }
 0x268   : > { %v1018_v23 = vadd.f32 %v8882_v19, %v1017_v21 }
 0x269   : > { %v1027_v25 = vmax.f32 %v1023_v22, 0.0 }
 0x26a   : > { %v1026_v24 = vmax.f32 %v1018_v23, 0.0 }
 0x26b   : > { %v1032_v27 = vsel %vm1028_vm5, %v1027_v25, 0.0 }
 0x26c   : > { %v1029_v26 = vsel %vm1028_vm5, %v1026_v24, 0.0 }
 0x26d   : > { %1030 = vadd.xlane.f32.xlu1 %v1029_v26 }
 0x271   : > { %1033 = vadd.xlane.f32.xlu1 %v1032_v27  ;;  %v1335_v27 = vlaneseq }
 0x2fa   : > { %v1031_v28 = vpop.xlane.xlu1 %1030 }
 0x2fb   : > { %v1036_v29 = vmul.f32 0.03125, %v1031_v28  ;;  %v11125_v28 = vshrl.u32 %v1335_v27, 7 }
 0x2fd   : > { %v1038_v30 = vsub.f32 %v1026_v24, %v1036_v29  ;;  %v11128_v29 = vadd.s32 8, %v11125_v28  ;;  %vm1366_vm8 = vcmp.eq.s32.totalorder %v11125_v28, 0  ;;  %vm1388_vm9 = vcmp.eq.s32.totalorder %v11125_v28, 1 }
 0x2fe   : > { %v1034_v31 = vpop.xlane.xlu1 %1033  ;;  %vm1410_vm12 = vcmp.eq.s32.totalorder %v11125_v28, 2  ;;  %vm1432_vm15 = vcmp.eq.s32.totalorder %v11125_v28, 3 }
 0x2ff   : > { %v1037_v32 = vmul.f32 0.03125, %v1034_v31  ;;  %v1040_v33 = vmul.f32 %v1038_v30, %v1038_v30 }
 0x301   : > { %v1039_v34 = vsub.f32 %v1027_v25, %v1037_v32  ;;  %v1042_v35 = vsel %vm1028_vm5, %v1040_v33, 0.0  ;;  %v11131_v33 = vsub.s32 15, %v11128_v29 }
 0x302   : > { %1043 = vadd.xlane.f32.xlu0 %v1042_v35 }
 0x303   : > { %v1041_v36 = vmul.f32 %v1039_v34, %v1039_v34 }
 0x305   : > { %v1045_v37 = vsel %vm1028_vm5, %v1041_v36, 0.0  ;;  %v11134_v36 = vsub.s32 15, %v11125_v28 }
 0x306   : > { %1046 = vadd.xlane.f32.xlu1 %v1045_v37 }
 0x38f   : > { %v1044_v44 = vpop.xlane.xlu0 %1043 }
 0x390   : > { %v1048_v45 = vmul.f32 0.03125, %v1044_v44 }
 0x392   : > { %v1050_v46 = vadd.f32 1e-05, %v1048_v45 }
 0x393   : > { %v1047_v47 = vpop.xlane.xlu1 %1046 }
 0x394   : > { %10750 = vrsqrt.f32 %v1050_v46  ;;  %v1049_v48 = vmul.f32 0.03125, %v1047_v47 }
 0x396   : > { %v1051_v49 = vadd.f32 1e-05, %v1049_v48 }
 0x398   : > { %10752 = vrsqrt.f32 %v1051_v49 }
 0x39e   : > { %v10751_v50 = vpop.eup %10750 }
 0x39f   : > { %v1054_v51 = vmul.f32 %v10751_v50, %v1038_v30 }
 0x3a1   : > { %v1062_v55 = vmul.f32 %v8886_v52, %v1054_v51 }
 0x3a2   : > { %v10753_v53 = vpop.eup %10752 }
 0x3a3   : > { %v1055_v54 = vmul.f32 %v10753_v53, %v1039_v34  ;;  %v1070_v58 = vadd.f32 %v8887_v56, %v1062_v55 }
 0x3a5   : > { %v1063_v57 = vmul.f32 %v8886_v52, %v1055_v54 }
 0x3a7   : > { %v1071_v59 = vadd.f32 %v8887_v56, %v1063_v57 }
 0x3a9   : > { %v10216_v60 = vpack.c.bf16 %v1071_v59, %v1070_v58 }
 0x3ab   : > { %10217 = vmatprep.subr.bf16.mxu1 %v10216_v60 }
 0x3ac   : > { %10219 = vmatpush3.bf16.msra.mxu1 %v10216_v60 }
 0x3ad   : > { %10239 = vmatprep.subr.bf16.mxu1 %v12359_v5 }
 0x3af   : > { %9445 = vmatmul.mubr.msk.f32.vlgmr.msra.gmra.mrb[2].mxu1 %vm838_vm0, %v11047_v15 }
 0x482   : > { %v9446_v0 = vpop.f32.mrb[2].mxu1 }
 0x483   : > { %v1138_v1 = vpop.f32.mrb[3].mxu1 }
 0x484   : > { %9455 = vmatprep.mubr.msk.f32.mxu0 %vm1028_vm5, %v1138_v1 }
 0x485   : > { %9456 = vmatmul.mubr.msk.f32.vlgmr.msra.gmra.mrb[2].mxu0 %vm1028_vm5, %v9446_v0 }
 0x486   : > { %10231 = vmatpush3.bf16.msra.mxu0 %v11101_v63 }
 0x487   : > { %10233 = vmatprep.subr.bf16.mxu0 %v11113_v4 }
 0x48a   : > { %10235 = vmatpush3.bf16.msra.mxu0 %v11113_v4 }
 0x48b   : > { %10236 = vmatprep.subr.bf16.mxu0 %v12359_v5 }
 0x558   : > { %v9457_v7 = vpop.f32.mrb[2].mxu0 }
 0x559   : > { %v1231_v8 = vadd.f32 %v9457_v7, %v8890_v6  ;;  %v1225_v9 = vpop.f32.mrb[3].mxu0 }
 0x55a   : > { %v1226_v10 = vadd.f32 %v8890_v6, %v1225_v9 }
 0x55b   : > { %v1235_v11 = vmax.f32 %v1231_v8, 0.0 }
 0x55c   : > { %v1234_v13 = vmax.f32 %v1226_v10, 0.0 }
 0x55e   : > { %v10240_v14 = vpack.c.bf16 %v1235_v11, %v1234_v13  ;;  %9466 = vmatprep.mubr.msk.f32.mxu0 %vm1028_vm5, %v1234_v13 }
 0x55f   : > { %9467 = vmatmul.mubr.msk.f32.vlgmr.msra.gmra.mrb[4].mxu0 %vm1028_vm5, %v1235_v11 }
 0x560   : > { %10241 = vmatpush3.bf16.msra.mxu1 %v10240_v14 }
 0x632   : > { %v9468_v17 = vpop.f32.mrb[4].mxu0 }
 0x633   : > { %v1320_v18 = vadd.f32 %v9468_v17, %v8893_v16  ;;  %v1314_v19 = vpop.f32.mrb[5].mxu0 }
 0x634   : > { %v1315_v20 = vadd.f32 %v8893_v16, %v1314_v19 }
 0x635   : > { %v8897_v21 = vmul.f32 -1.442695, %v1320_v18 }
 0x636   : > { %v8896_v22 = vmul.f32 -1.442695, %v1315_v20 }
 0x637   : > { %10754 = vpow2.f32 %v8897_v21 }
 0x638   : > { %10756 = vpow2.f32 %v8896_v22 }
 0x641   : > { %v10755_v23 = vpop.eup %10754 }
 0x642   : > { %v10757_v24 = vpop.eup %10756  ;;  %v1330_v25 = vadd.f32 1.0, %v10755_v23 }
 0x643   : > { %v1329_v26 = vadd.f32 1.0, %v10757_v24 }
 0x644   : > { %10758 = vrcp.f32 %v1330_v25 }
 0x645   : > { %10760 = vrcp.f32 %v1329_v26 }
 0x64e   : > { %v10759_v30 = vpop.eup %10758 }
 0x64f   : > { %v10761_v31 = vpop.eup %10760  ;;  %v1339_v32 = vmax.f32 %v10759_v30, 1e-30 }
 0x650   : > { %v10237_v34 = vpack.c.bf16 %v10759_v30, %v10761_v31  ;;  %v1338_v35 = vmax.f32 %v10761_v31, 1e-30 }
 0x651   : > { %v1343_v37 = vand.u32 4294967280, %v1339_v32 }
 0x652   : > { %10238 = vmatpush3.bf16.msra.mxu0 %v10237_v34  ;;  %v1342_v38 = vand.u32 4294967280, %v1338_v35 }
 0x653   : > { %v1347_v39 = vor.u32 %v11131_v33, %v1343_v37  ;;  %10242 = vmatprep.subr.bf16.mxu0 %v12359_v5 }
 0x654   : > { %v1346_v40 = vor.u32 %v11134_v36, %v1342_v38 }
 0x655   : > { %v1351_v42 = vsel %vm940_vm4, %v1347_v39, -inf }
 0x656   : > { %v1350_v44 = vsel %vm940_vm4, %v1346_v40, -inf }
 0x657   : > { %v1352_v45 = vmax.f32 %v1350_v44, %v1351_v42 }
 0x659   : > { %1353 = vmax.xlane.f32.xlu0 %v1352_v45 }
 0x6e6   : > { %v1354_v46 = vpop.xlane.xlu0 %1353 }
 0x6e7   : > { %v1355_v47 = vrot.slane %v1354_v46, 4 }
 0x6e9   : > { %v1356_v48 = vmax.f32 %v1354_v46, %v1355_v47 }
 0x6eb   : > { %v1357_v49 = vrot.slane %v1356_v48, 2 }
 0x6ed   : > { %v1358_v50 = vmax.f32 %v1356_v48, %v1357_v49 }
 0x6ef   : > { %v1359_v51 = vrot.slane %v1358_v50, 1 }
 0x6f1   : > { %v1360_v52 = vmax.f32 %v1358_v50, %v1359_v51 }
 0x6f3   : > { %10667 = vpush %v1360_v52 }
 0x724   : > { %s10668_s30 = spop %10667 }
 0x725   : > { %v1362_v53 = vstv %s10668_s30 }
 0x726   : > { %v1364_v54 = vand.u32 15, %v1362_v53 }
 0x728   : > { %v1365_v55 = vsub.s32 15, %v1364_v54 }
 0x72a   : > { %vm1368_vm6 = vcmp.eq.s32.totalorder %v11125_v28, %v1365_v55  ;;  %vm1369_vm7 = vcmp.eq.s32.totalorder %v11128_v29, %v1365_v55  ;;  %v1367_v10 = vsel %vm1366_vm8, %v1365_v55, 0 }
 0x72b   : > { %v1370_v56 = vsel %vm1368_vm6, -inf, %v1346_v40  ;;  %v1371_v57 = vsel %vm1369_vm7, -inf, %v1347_v39  ;;  %vm1454_vm6 = vcmp.eq.s32.totalorder %v11125_v28, 4 }
 0x72c   : > { %v1372_v58 = vsel %vm940_vm4, %v1370_v56, -inf  ;;  %v1373_v59 = vsel %vm940_vm4, %v1371_v57, -inf }
 0x72d   : > { %v1374_v60 = vmax.f32 %v1372_v58, %v1373_v59 }
 0x72f   : > { %1375 = vmax.xlane.f32.xlu1 %v1374_v60 }
 0x7bc   : > { %v1376_v61 = vpop.xlane.xlu1 %1375 }
 0x7bd   : > { %v1377_v62 = vrot.slane %v1376_v61, 4 }
 0x7bf   : > { %v1378_v0 = vmax.f32 %v1376_v61, %v1377_v62 }
 0x7c1   : > { %v1379_v1 = vrot.slane %v1378_v0, 2 }
 0x7c3   : > { %v1380_v2 = vmax.f32 %v1378_v0, %v1379_v1 }
 0x7c5   : > { %v1381_v3 = vrot.slane %v1380_v2, 1 }
 0x7c7   : > { %v1382_v6 = vmax.f32 %v1380_v2, %v1381_v3 }
 0x7c9   : > { %10669 = vpush %v1382_v6 }
 0x7fa   : > { %s10670_s3 = spop %10669 }
 0x7fb   : > { %v1384_v7 = vstv %s10670_s3 }
 0x7fc   : > { %v1386_v8 = vand.u32 15, %v1384_v7 }
 0x7fe   : > { %v1387_v9 = vsub.s32 15, %v1386_v8 }
 0x800   : > { %v1389_v11 = vsel %vm1388_vm9, %v1387_v9, %v1367_v10  ;;  %vm1390_vm10 = vcmp.eq.s32.totalorder %v11125_v28, %v1387_v9  ;;  %vm1391_vm11 = vcmp.eq.s32.totalorder %v11128_v29, %v1387_v9 }
 0x801   : > { %v1392_v13 = vsel %vm1390_vm10, -inf, %v1370_v56  ;;  %v1393_v14 = vsel %vm1391_vm11, -inf, %v1371_v57  ;;  %vm12363_vm11 = vcmp.eq.s32.totalorder %v11125_v28, 5 }
 0x802   : > { %v1394_v16 = vsel %vm940_vm4, %v1392_v13, -inf  ;;  %v1395_v17 = vsel %vm940_vm4, %v1393_v14, -inf }
 0x803   : > { %v1396_v18 = vmax.f32 %v1394_v16, %v1395_v17 }
 0x805   : > { %1397 = vmax.xlane.f32.xlu0 %v1396_v18 }
 0x892   : > { %v1398_v19 = vpop.xlane.xlu0 %1397 }
 0x893   : > { %v1399_v20 = vrot.slane %v1398_v19, 4 }
 0x895   : > { %v1400_v21 = vmax.f32 %v1398_v19, %v1399_v20 }
 0x897   : > { %v1401_v22 = vrot.slane %v1400_v21, 2 }
 0x899   : > { %v1402_v23 = vmax.f32 %v1400_v21, %v1401_v22 }
 0x89b   : > { %v1403_v24 = vrot.slane %v1402_v23, 1 }
 0x89d   : > { %v1404_v25 = vmax.f32 %v1402_v23, %v1403_v24 }
 0x89f   : > { %10671 = vpush %v1404_v25 }
 0x8d0   : > { %s10672_s4 = spop %10671 }
 0x8d1   : > { %v1406_v26 = vstv %s10672_s4 }
 0x8d2   : > { %v1408_v30 = vand.u32 15, %v1406_v26 }
 0x8d4   : > { %v1409_v31 = vsub.s32 15, %v1408_v30 }
 0x8d6   : > { %v1411_v32 = vsel %vm1410_vm12, %v1409_v31, %v1389_v11  ;;  %vm1412_vm13 = vcmp.eq.s32.totalorder %v11125_v28, %v1409_v31  ;;  %vm1413_vm14 = vcmp.eq.s32.totalorder %v11128_v29, %v1409_v31 }
 0x8d7   : > { %v1414_v34 = vsel %vm1412_vm13, -inf, %v1392_v13  ;;  %v1415_v35 = vsel %vm1413_vm14, -inf, %v1393_v14 }
 0x8d8   : > { %v1416_v37 = vsel %vm940_vm4, %v1414_v34, -inf  ;;  %v1417_v38 = vsel %vm940_vm4, %v1415_v35, -inf }
 0x8d9   : > { %v1418_v39 = vmax.f32 %v1416_v37, %v1417_v38 }
 0x8db   : > { %1419 = vmax.xlane.f32.xlu1 %v1418_v39 }
 0x968   : > { %v1420_v40 = vpop.xlane.xlu1 %1419 }
 0x969   : > { %v1421_v42 = vrot.slane %v1420_v40, 4 }
 0x96b   : > { %v1422_v44 = vmax.f32 %v1420_v40, %v1421_v42 }
 0x96d   : > { %v1423_v45 = vrot.slane %v1422_v44, 2 }
 0x96f   : > { %v1424_v46 = vmax.f32 %v1422_v44, %v1423_v45 }
 0x971   : > { %v1425_v47 = vrot.slane %v1424_v46, 1 }
 0x973   : > { %v1426_v48 = vmax.f32 %v1424_v46, %v1425_v47 }
 0x975   : > { %10673 = vpush %v1426_v48 }
 0x9a6   : > { %s10674_s1 = spop %10673 }
 0x9a7   : > { %v1428_v49 = vstv %s10674_s1 }
 0x9a8   : > { %v1430_v50 = vand.u32 15, %v1428_v49 }
 0x9aa   : > { %v1431_v51 = vsub.s32 15, %v1430_v50 }
 0x9ac   : > { %v1433_v52 = vsel %vm1432_vm15, %v1431_v51, %v1411_v32  ;;  %vm1434_vm1 = vcmp.eq.s32.totalorder %v11125_v28, %v1431_v51  ;;  %vm1435_vm2 = vcmp.eq.s32.totalorder %v11128_v29, %v1431_v51 }
 0x9ad   : > { %v1436_v53 = vsel %vm1434_vm1, -inf, %v1414_v34  ;;  %v1437_v54 = vsel %vm1435_vm2, -inf, %v1415_v35  ;;  %vm12353_vm1 = vcmp.eq.s32.totalorder %v11125_v28, 6 }
 0x9ae   : > { %v1438_v55 = vsel %vm940_vm4, %v1436_v53, -inf  ;;  %v1439_v56 = vsel %vm940_vm4, %v1437_v54, -inf }
 0x9af   : > { %v1440_v57 = vmax.f32 %v1438_v55, %v1439_v56 }
 0x9b1   : > { %1441 = vmax.xlane.f32.xlu0 %v1440_v57 }
 0xa3e   : > { %v1442_v58 = vpop.xlane.xlu0 %1441 }
 0xa3f   : > { %v1443_v59 = vrot.slane %v1442_v58, 4 }
 0xa41   : > { %v1444_v60 = vmax.f32 %v1442_v58, %v1443_v59 }
 0xa43   : > { %v1445_v61 = vrot.slane %v1444_v60, 2 }
 0xa45   : > { %v1446_v62 = vmax.f32 %v1444_v60, %v1445_v61 }
 0xa47   : > { %v1447_v0 = vrot.slane %v1446_v62, 1 }
 0xa49   : > { %v1448_v1 = vmax.f32 %v1446_v62, %v1447_v0 }
 0xa4b   : > { %10675 = vpush %v1448_v1  ;;  %v11196_v1 = vand.u32 127, %v1335_v27  ;;  %v12357_v27 = vmov 1.0|1.0  }
 0xa7c   : > { %s10676_s6 = spop %10675 }
 0xa7d   : > { %v1450_v2 = vstv %s10676_s6 }
 0xa7e   : > { %v1452_v3 = vand.u32 15, %v1450_v2 }
 0xa80   : > { %v1453_v6 = vsub.s32 15, %v1452_v3 }
 0xa82   : > { %v1455_v7 = vsel %vm1454_vm6, %v1453_v6, %v1433_v52  ;;  %vm1456_vm7 = vcmp.eq.s32.totalorder %v11125_v28, %v1453_v6  ;;  %vm1457_vm10 = vcmp.eq.s32.totalorder %v11128_v29, %v1453_v6 }
 0xa83   : > { %v1458_v8 = vsel %vm1456_vm7, -inf, %v1436_v53  ;;  %v1459_v9 = vsel %vm1457_vm10, -inf, %v1437_v54  ;;  %vm10884_vm10 = vmmov 0   ;;  %v12361_v54 = vmov 0.0  }
 0xa84   : > { %v1460_v10 = vsel %vm940_vm4, %v1458_v8, -inf  ;;  %v1461_v11 = vsel %vm940_vm4, %v1459_v9, -inf  ;;  %9473 = vmatprep.mubr.msk.f32.mxu0 %vm10884_vm10, %v12361_v54  ;;  %9480 = vmatprep.mubr.msk.f32.mxu1 %vm10884_vm10, %v12361_v54 }
 0xa85   : > { %v1462_v13 = vmax.f32 %v1460_v10, %v1461_v11 }
 0xa87   : > { %1463 = vmax.xlane.f32.xlu1 %v1462_v13 }
 0xb14   : > { %v1464_v14 = vpop.xlane.xlu1 %1463 }
 0xb15   : > { %v1465_v16 = vrot.slane %v1464_v14, 4 }
 0xb17   : > { %v1466_v17 = vmax.f32 %v1464_v14, %v1465_v16 }
 0xb19   : > { %v1467_v18 = vrot.slane %v1466_v17, 2 }
 0xb1b   : > { %v1468_v19 = vmax.f32 %v1466_v17, %v1467_v18  ;;  %v10887_v18 = vmov 0  }
 0xb1c   : > { %10744 = vset.pattern.permute.xlu0 %v10887_v18  ;;  %10745 = vset.pattern.permute.xlu1 %v10887_v18 }
 0xb1d   : > { %v1469_v20 = vrot.slane %v1468_v19, 1 }
 0xb1f   : > { %v1470_v21 = vmax.f32 %v1468_v19, %v1469_v20 }
 0xb21   : > { %10677 = vpush %v1470_v21 }
 0xb52   : > { %s10678_s2 = spop %10677 }
 0xb53   : > { %v1472_v22 = vstv %s10678_s2 }
 0xb54   : > { %v1474_v23 = vand.u32 15, %v1472_v22 }
 0xb56   : > { %v1475_v24 = vsub.s32 15, %v1474_v23 }
 0xb58   : > { %v1477_v25 = vsel %vm12363_vm11, %v1475_v24, %v1455_v7  ;;  %vm1478_vm13 = vcmp.eq.s32.totalorder %v11125_v28, %v1475_v24  ;;  %vm1479_vm14 = vcmp.eq.s32.totalorder %v11128_v29, %v1475_v24 }
 0xb59   : > { %v1480_v26 = vsel %vm1478_vm13, -inf, %v1458_v8  ;;  %v1481_v30 = vsel %vm1479_vm14, -inf, %v1459_v9  ;;  %vm12364_vm13 = vcmp.eq.s32.totalorder %v11125_v28, 7  ;;  %vm1677_vm14 = vcmp.ne.f32.partialorder %v11047_v15, 0.0 }
 0xb5a   : > { %v1482_v31 = vsel %vm940_vm4, %v1480_v26, -inf  ;;  %v1483_v32 = vsel %vm940_vm4, %v1481_v30, -inf }
 0xb5b   : > { %v1484_v34 = vmax.f32 %v1482_v31, %v1483_v32 }
 0xb5d   : > { %1485 = vmax.xlane.f32.xlu0 %v1484_v34  ;;  %v782_v34 = vld [vmem:[%s12386_s10] sm:$0xff] }
 0xbea   : > { %v1486_v35 = vpop.xlane.xlu0 %1485 }
 0xbeb   : > { %v1487_v37 = vrot.slane %v1486_v35, 4 }
 0xbed   : > { %v1488_v38 = vmax.f32 %v1486_v35, %v1487_v37  ;;  %v783_v35 = vld [vmem:[%s12386_s10 + $0x8] sm:$0xff]  ;;  %v784_v37 = vld [vmem:[%s12386_s10 + $0x10] sm:$0xff] }
 0xbef   : > { %v1489_v39 = vrot.slane %v1488_v38, 2 }
 0xbf1   : > { %v1490_v40 = vmax.f32 %v1488_v38, %v1489_v39  ;;  %v11243_v38 = vpack.c.bf16 %v783_v35, %v782_v34  ;;  %v785_v39 = vld [vmem:[%s12386_s10 + $0x18] sm:$0xff]  ;;  %v803_v35 = vld [vmem:[%s12334_s14 + $0x70] sm:$0xff] }
 0xbf3   : > { %v1491_v42 = vrot.slane %v1490_v40, 1 }
 0xbf5   : > { %v1492_v44 = vmax.f32 %v1490_v40, %v1491_v42  ;;  %v11249_v40 = vpack.c.bf16 %v785_v39, %v784_v37  ;;  %v804_v37 = vld [vmem:[%s12334_s14 + $0x78] sm:$0xff] }
 0xbf7   : > { %10679 = vpush %v1492_v44 }
 0xc28   : > { %s10680_s30 = spop %10679 }
 0xc29   : > { %v1494_v45 = vstv %s10680_s30 }
 0xc2a   : > { %v1496_v46 = vand.u32 15, %v1494_v45 }
 0xc2c   : > { %v1497_v47 = vsub.s32 15, %v1496_v46 }
 0xc2e   : > { %v1499_v48 = vsel %vm12353_vm1, %v1497_v47, %v1477_v25  ;;  %vm1500_vm2 = vcmp.eq.s32.totalorder %v11125_v28, %v1497_v47  ;;  %vm1501_vm7 = vcmp.eq.s32.totalorder %v11128_v29, %v1497_v47 }
 0xc2f   : > { %v1502_v49 = vsel %vm1500_vm2, -inf, %v1480_v26  ;;  %v1503_v50 = vsel %vm1501_vm7, -inf, %v1481_v30  ;;  %vm1676_vm7 = vcmp.ne.f32.partialorder %v11043_v12, 0.0  ;;  %v8902_v12 = vsel %vm1677_vm14, 1.0, %v12361_v54 }
 0xc30   : > { %v1504_v51 = vsel %vm940_vm4, %v1502_v49, -inf  ;;  %v1505_v52 = vsel %vm940_vm4, %v1503_v50, -inf  ;;  %vm10243_vm1 = vmpackc.low %vm1677_vm14, %vm1676_vm7  ;;  %v8901_v7 = vsel %vm1676_vm7, 1.0, %v12361_v54  ;;  %v8912_v49 = vld [vmem:[%s12331_s11] ss:$0 sm:$0xff] }
 0xc31   : > { %v1506_v53 = vmax.f32 %v1504_v51, %v1505_v52 }
 0xc33   : > { %1507 = vmax.xlane.f32.xlu1 %v1506_v53 }
 0xcc0   : > { %v1508_v55 = vpop.xlane.xlu1 %1507 }
 0xcc1   : > { %v1509_v56 = vrot.slane %v1508_v55, 4 }
 0xcc3   : > { %v1510_v57 = vmax.f32 %v1508_v55, %v1509_v56 }
 0xcc5   : > { %v1511_v58 = vrot.slane %v1510_v57, 2 }
 0xcc7   : > { %v1512_v59 = vmax.f32 %v1510_v57, %v1511_v58 }
 0xcc9   : > { %v1513_v60 = vrot.slane %v1512_v59, 1 }
 0xccb   : > { %v1514_v61 = vmax.f32 %v1512_v59, %v1513_v60 }
 0xccd   : > { %10681 = vpush %v1514_v61  ;;  %v789_v61 = vld [vmem:[%s12334_s14] sm:$0xff] }
 0xcfe   : > { %s10682_s3 = spop %10681 }
 0xcff   : > { %v1516_v62 = vstv %s10682_s3 }
 0xd00   : > { %v1518_v0 = vand.u32 15, %v1516_v62  ;;  %v790_v62 = vld [vmem:[%s12334_s14 + $0x8] sm:$0xff] }
 0xd02   : > { %v1519_v2 = vsub.s32 15, %v1518_v0  ;;  %v11271_v0 = vpack.c.bf16 %v790_v62, %v789_v61  ;;  %v814_v61 = vld [vmem:[%s12334_s14 + $0xc8] sm:$0xff] }
 0xd04   : > { %v1521_v3 = vsel %vm12364_vm13, %v1519_v2, %v1499_v48  ;;  %v797_v2 = vld [vmem:[%s12334_s14 + $0x40] sm:$0xff] }
 0xd05   : > { %vm1524_vm2 = vcmp.eq.s32.totalorder %v11196_v1, %v1521_v3  ;;  %v798_v3 = vld [vmem:[%s12334_s14 + $0x48] sm:$0xff] }
 0xd06   : > { %v8898_v6 = vsel %vm1524_vm2, 1.0, %v12361_v54 }
 0xd07   : > { %9474 = vmatmul.mubr.msk.f32.vlgmr.msra.gmra.mrb[6].mxu0 %vm838_vm0, %v8898_v6  ;;  %9481 = vmatmul.mubr.msk.f32.vlgmr.msra.gmra.mrb[4].mxu1 %vm838_vm0, %v8898_v6 }
 0xd08   : > { %10244 = vmatpush3.bf16.msk.msra.mxu0 %vm10243_vm1, %v12357_v27  ;;  %9490 = vmatprep.subr.msk.mxu1 %vm838_vm0, %v8898_v6  ;;  %vm1909_vm1 = vcmask 64512  }
 0xd09   : > { %9491 = vmatpush3.xpose.msk.msra.mxu1 %vm838_vm0, %v8898_v6  ;;  %9492 = vmatprep.mubr.msk.f32.mxu1 %vm838_vm0, %v8901_v7  ;;  %v791_v7 = vld [vmem:[%s12334_s14 + $0x10] sm:$0xff] }
 0xd0a   : > { %9487 = vmatprep.mubr.msk.f32.mxu0 %vm10884_vm10, %v12361_v54  ;;  %10245 = vmatprep.subr.bf16.mxu0 %v12359_v5 }
 0xd0b   : > { %9488 = vmatmul.mubr.msk.f32.vlgmr.msra.gmra.mrb[8].mxu0 %vm838_vm0, %v8898_v6  ;;  %9502 = vmatprep.subr.mxu1 %v12361_v54  ;;  %v11280_v6 = vpack.c.bf16 %v798_v3, %v797_v2  ;;  %v815_v3 = vld [vmem:[%s12334_s14 + $0xd0] sm:$0xff] }
 0xd0c   : > { %9493 = vmatmul.mubr.msk.f32.vlgmr.msra.gmra.mrb[6].mxu1 %vm838_vm0, %v8902_v12  ;;  %9499 = vmatprep.mubr.msk.f32.mxu0 %vm10884_vm10, %v12361_v54  ;;  %v792_v12 = vld [vmem:[%s12334_s14 + $0x18] sm:$0xff] }
 0xd0d   : > { %9504 = vmatprep.mubr.msk.f32.mxu1 %vm10884_vm10, %v12361_v54 }
 0xdda   : > { %v1596_v8 = vpop.f32.mrb[6].mxu0  ;;  %v1666_v9 = vpop.f32.mrb[4].mxu1 }
 0xddb   : > { %v9475_v10 = vpop.f32.mrb[7].mxu0  ;;  %v9482_v11 = vpop.f32.mrb[5].mxu1 }
 0xddc   : > { %v800_v10 = vld [vmem:[%s12334_s14 + $0x58] sm:$0xff] }
 0xdde   : > { %v1748_v13 = vpop.f32.mrb[8].mxu0 }
 0xddf   : > { %v9494_v14 = vpop.f32.mrb[6].mxu1  ;;  %v9489_v16 = vpop.f32.mrb[9].mxu0 }
 0xde0   : > { %v1824_v17 = vpop.f32.mrb[7].mxu1 }
 0xde1   : > { %v10246_v15 = vpack.c.bf16 %v9494_v14, %v1824_v17 }
 0xde3   : > { %10247 = vmatpush3.bf16.msra.mxu0 %v10246_v15  ;;  %v8914_v15 = vld [vmem:[%s12332_s12] ss:$0 sm:$0xff] }
 0xde4   : > { %10248 = vmatprep.subr.bf16.mxu0 %v12359_v5 }
 0xde6   : > { %9500 = vmatmul.mubr.msk.f32.vlgmr.msra.gmra.mrb[10].mxu0 %vm838_vm0, %v1748_v13 }
 0xde7   : > { %9515 = vmatprep.mubr.msk.f32.mxu0 %vm10884_vm10, %v12361_v54  ;;  %10250 = vmatpush3.bf16.msra.mxu0 %v11243_v38 }
 0xde8   : > { %10251 = vmatprep.subr.bf16.mxu0 %v12359_v5 }
 0xdeb   : > { %10253 = vmatpush3.bf16.msra.mxu0 %v11249_v40 }
 0xdec   : > { %10254 = vmatprep.subr.bf16.mxu0 %v12359_v5 }
 0xeb9   : > { %v1902_v19 = vpop.f32.mrb[10].mxu0 }
 0xeba   : > { %vm1906_vm14 = vcmp.ne.f32.partialorder %v1902_v19, 0.0  ;;  %v9501_v20 = vpop.f32.mrb[11].mxu0  ;;  %v793_v19 = vld [vmem:[%s12334_s14 + $0x20] sm:$0xff] }
 0xebb   : > { %v8910_v21 = vsel %vm1906_vm14, 1.0, %v12361_v54  ;;  %v794_v20 = vld [vmem:[%s12334_s14 + $0x28] sm:$0xff]  ;;  %vm2697_vm14 = vcmask 253952  }
 0xebc   : > { %v1910_v22 = vsel %vm1909_vm1, %v8910_v21, 0.0 }
 0xebd   : > { %1911 = vadd.xlane.f32.xlu0 %v1910_v22 }
 0xed3   : > { %1672 = vperm.xlu0 %10744, %v1596_v8   ;;  %v11290_v8 = vpack.c.bf16 %v792_v12, %v791_v7  ;;  %v816_v7 = vld [vmem:[%s12334_s14 + $0xd8] sm:$0xff] }
 0xed4   : > { %v11430_v12 = vpack.c.bf16 %v816_v7, %v815_v3  ;;  %v11501_v3 = vld [vmem:[%s12337_s17] sm:$0x1] }
 0xf4a   : > { %v1912_v23 = vpop.xlane.xlu0 %1911 }
 0xf4b   : > { %10762 = vrcp.f32 %v1912_v23  ;;  %vm1913_vm2 = vcmp.gt.f32.partialorder %v1912_v23, 0.0  ;;  %v801_v23 = vld [vmem:[%s12334_s14 + $0x60] sm:$0xff] }
 0xf52   : > { %v1673_v24 = vpop.permute.xlu0 %1672 }
 0xf53   : > { %v1675_v25 = vmul.f32 %v1673_v24, %v1666_v9  ;;  %v799_v9 = vld [vmem:[%s12334_s14 + $0x50] sm:$0xff]  ;;  %v802_v24 = vld [vmem:[%s12334_s14 + $0x68] sm:$0xff] }
 0xf54   : > { %v11300_v11 = vpack.c.bf16 %v800_v10, %v799_v9  ;;  %v817_v9 = vld [vmem:[%s12334_s14 + $0xe0] sm:$0xff]  ;;  %v818_v10 = vld [vmem:[%s12334_s14 + $0xe8] sm:$0xff] }
 0xf55   : > { %v10763_v26 = vpop.eup %10762  ;;  %9503 = vmatpush3.msra.mxu1 %v1675_v25  ;;  %v11323_v25 = vpack.c.bf16 %v794_v20, %v793_v19 }
 0xf56   : > { %v1915_v30 = vsel %vm1913_vm2, %v10763_v26, 0.0  ;;  %10266 = vmatprep.subr.bf16.mxu1 %v12359_v5  ;;  %vm12356_vm2 = vcmask 122880  }
 0xf57   : > { %v1916_v31 = vmul.f32 %v8910_v21, %v1915_v30  ;;  %v8915_v21 = vld [vmem:[%s12333_s13] ss:$0 sm:$0xff]  ;;  %v795_v30 = vld [vmem:[%s12334_s14 + $0x30] sm:$0xff] }
 0xf59   : > { %v1917_v32 = vsel %vm1909_vm1, %v1916_v31, 0.0 }
 0xf5a   : > { %1918 = vadd.xlane.f32.xlu1 %v1917_v32  ;;  %v11333_v32 = vpack.c.bf16 %v802_v24, %v801_v23 }
 0xfe7   : > { %v1919_v42 = vpop.xlane.xlu1 %1918 }
 0xfe8   : > { %10764 = vrcp.f32 %v1919_v42  ;;  %vm1920_vm7 = vcmp.gt.f32.partialorder %v1919_v42, 0.0  ;;  %v11352_v42 = vpack.c.bf16 %v804_v37, %v803_v35 }
 0xff2   : > { %v10765_v44 = vpop.eup %10764 }
 0xff3   : > { %v1922_v45 = vsel %vm1920_vm7, %v10765_v44, 0.0  ;;  %v805_v44 = vld [vmem:[%s12334_s14 + $0x80] sm:$0xff] }
 0xff4   : > { %v1923_v46 = vmul.f32 %v1922_v45, %v1916_v31  ;;  %v796_v31 = vld [vmem:[%s12334_s14 + $0x38] sm:$0xff]  ;;  %v806_v45 = vld [vmem:[%s12334_s14 + $0x88] sm:$0xff] }
 0xff5   : > { %v11345_v39 = vpack.c.bf16 %v796_v31, %v795_v30 }
 0xff6   : > { %9505 = vmatmul.mubr.msk.f32.vlgmr.msra.gmra.mrb[8].mxu1 %vm1909_vm1, %v1923_v46 }
 0xff7   : > { %9548 = vmatprep.mubr.msk.f32.mxu1 %vm10884_vm10, %v12361_v54  ;;  %10268 = vmatpush3.bf16.msra.mxu1 %v11280_v6 }
 0xff8   : > { %10269 = vmatprep.subr.bf16.mxu1 %v12359_v5 }
 0xffb   : > { %10271 = vmatpush3.bf16.msra.mxu1 %v11300_v11 }
 0xffc   : > { %10272 = vmatprep.subr.bf16.mxu1 %v12359_v5 }
0x10c9   : > { %v1993_v47 = vpop.f32.mrb[8].mxu1 }
0x10ca   : > { %v9506_v48 = vpop.f32.mrb[9].mxu1  ;;  %9516 = vmatmul.mubr.msk.f32.vlgmr.msra.gmra.mrb[12].mxu0 %vm1028_vm5, %v1993_v47  ;;  %v11367_v47 = vpack.c.bf16 %v806_v45, %v805_v44 }
0x10cb   : > { %9526 = vmatprep.mubr.msk.f32.mxu0 %vm10884_vm10, %v12361_v54  ;;  %10256 = vmatpush3.bf16.msra.mxu0 %v11271_v0 }
0x10cc   : > { %10257 = vmatprep.subr.bf16.mxu0 %v12359_v5 }
0x10cf   : > { %10259 = vmatpush3.bf16.msra.mxu0 %v11290_v8 }
0x10d0   : > { %10260 = vmatprep.subr.bf16.mxu0 %v12359_v5 }
0x119d   : > { %v2072_v50 = vpop.f32.mrb[12].mxu0 }
0x119e   : > { %v2073_v51 = vadd.f32 %v8912_v49, %v2072_v50  ;;  %v9517_v52 = vpop.f32.mrb[13].mxu0  ;;  %v807_v49 = vld [vmem:[%s12334_s14 + $0x90] sm:$0xff]  ;;  %v808_v50 = vld [vmem:[%s12334_s14 + $0x98] sm:$0xff] }
0x119f   : > { %v809_v52 = vld [vmem:[%s12334_s14 + $0xa0] sm:$0xff] }
0x11a0   : > { %v2076_v53 = vmax.f32 %v2073_v51, 0.0  ;;  %v11382_v51 = vpack.c.bf16 %v808_v50, %v807_v49  ;;  %v826_v50 = vld [vmem:[%s12338_s18 + $0x10] sm:$0xff] }
0x11a2   : > { %v2077_v55 = vsel %vm1028_vm5, %v2076_v53, 0.0 }
0x11a3   : > { %2078 = vadd.xlane.f32.xlu1 %v2077_v55 }
0x1230   : > { %v2079_v56 = vpop.xlane.xlu1 %2078 }
0x1231   : > { %v2080_v57 = vmul.f32 0.03125, %v2079_v56 }
0x1233   : > { %v2081_v58 = vsub.f32 %v2076_v53, %v2080_v57  ;;  %v810_v53 = vld [vmem:[%s12334_s14 + $0xa8] sm:$0xff]  ;;  %v811_v57 = vld [vmem:[%s12334_s14 + $0xb0] sm:$0xff] }
0x1234   : > { %v11394_v55 = vpack.c.bf16 %v810_v53, %v809_v52  ;;  %v827_v52 = vld [vmem:[%s12338_s18 + $0x18] sm:$0xff] }
0x1235   : > { %v2082_v59 = vmul.f32 %v2081_v58, %v2081_v58  ;;  %v11489_v53 = vpack.c.bf16 %v827_v52, %v826_v50 }
0x1237   : > { %v2083_v60 = vsel %vm1028_vm5, %v2082_v59, 0.0 }
0x1238   : > { %2084 = vadd.xlane.f32.xlu1 %v2083_v60  ;;  %v813_v60 = vld [vmem:[%s12334_s14 + $0xc0] sm:$0xff] }
0x1239   : > { %v11418_v62 = vpack.c.bf16 %v814_v61, %v813_v60  ;;  %v11496_v61 = vld [vmem:[%s12336_s16] sm:$0x1] }
0x12c5   : > { %v2085_v13 = vpop.xlane.xlu1 %2084 }
0x12c6   : > { %v2086_v14 = vmul.f32 0.03125, %v2085_v13  ;;  %v11442_v13 = vpack.c.bf16 %v818_v10, %v817_v9  ;;  %v11511_v10 = vld [vmem:[%s12339_s19] sm:$0x1] }
0x12c8   : > { %v2087_v16 = vadd.f32 1e-05, %v2086_v14 }
0x12ca   : > { %10766 = vrsqrt.f32 %v2087_v16  ;;  %v819_v16 = vld [vmem:[%s12334_s14 + $0xf0] sm:$0xff] }
0x12d4   : > { %v10767_v17 = vpop.eup %10766 }
0x12d5   : > { %v2089_v18 = vmul.f32 %v10767_v17, %v2081_v58  ;;  %v812_v58 = vld [vmem:[%s12334_s14 + $0xb8] sm:$0xff] }
0x12d6   : > { %v11406_v59 = vpack.c.bf16 %v812_v58, %v811_v57  ;;  %v820_v17 = vld [vmem:[%s12334_s14 + $0xf8] sm:$0xff] }
0x12d7   : > { %v2096_v22 = vmul.f32 %v8914_v15, %v2089_v18  ;;  %v11454_v15 = vpack.c.bf16 %v820_v17, %v819_v16 }
0x12d9   : > { %v11325_v26 = vadd.f32 %v8915_v21, %v2096_v22  ;;  %v11468_v21 = vld [vmem:[%s12335_s15] sm:$0x1] }
0x12db   : > { %9527 = vmatmul.mubr.msk.f32.vlgmr.msra.gmra.mrb[14].mxu0 %vm1028_vm5, %v11325_v26  ;;  %v2252_v34 = vrot.slane %v11325_v26, 2  ;;  %v2178_v46 = vrot.slane %v11325_v26, 1  ;;  %v2326_v48 = vrot.slane %v11325_v26, 3  ;;  %v2400_v56 = vrot.slane %v11325_v26, 4 }
0x12dc   : > { %10262 = vmatpush3.bf16.msra.mxu0 %v11323_v25  ;;  %9537 = vmatprep.mubr.msk.f32.mxu0 %vm10884_vm10, %v12361_v54  ;;  %v2474_v2 = vrot.slane %v11325_v26, 5  ;;  %v2548_v14 = vrot.slane %v11325_v26, 6  ;;  %v2622_v18 = vrot.slane %v11325_v26, 7 }
0x12dd   : > { %9549 = vmatmul.mubr.msk.f32.vlgmr.msra.gmra.mrb[10].mxu1 %vm1028_vm5, %v2252_v34  ;;  %10263 = vmatprep.subr.bf16.mxu0 %v12359_v5 }
0x12de   : > { %10274 = vmatpush3.bf16.msra.mxu1 %v11333_v32  ;;  %9559 = vmatprep.mubr.msk.f32.mxu1 %vm10884_vm10, %v12361_v54 }
0x12df   : > { %10275 = vmatprep.subr.bf16.mxu1 %v12359_v5 }
0x12e0   : > { %10265 = vmatpush3.bf16.msra.mxu0 %v11345_v39 }
0x12e1   : > { %10302 = vmatprep.subr.bf16.mxu0 %v12359_v5 }
0x12e2   : > { %10277 = vmatpush3.bf16.msra.mxu1 %v11352_v42 }
0x12e3   : > { %9538 = vmatmul.mubr.msk.f32.vlgmr.msra.gmra.mrb[14].mxu0 %vm1028_vm5, %v2178_v46  ;;  %10278 = vmatprep.subr.bf16.mxu1 %v12359_v5  ;;  %v824_v46 = vld [vmem:[%s12338_s18] sm:$0xff] }
0x12e4   : > { %9614 = vmatprep.mubr.msk.f32.mxu0 %vm10884_vm10, %v12361_v54 }
0x12e5   : > { %9560 = vmatmul.mubr.msk.f32.vlgmr.msra.gmra.mrb[10].mxu1 %vm1028_vm5, %v2326_v48  ;;  %v825_v48 = vld [vmem:[%s12338_s18 + $0x8] sm:$0xff] }
0x12e6   : > { %10280 = vmatpush3.bf16.msra.mxu1 %v11367_v47  ;;  %9570 = vmatprep.mubr.msk.f32.mxu1 %vm10884_vm10, %v12361_v54  ;;  %v11479_v49 = vpack.c.bf16 %v825_v48, %v824_v46  ;;  %v8928_v46 = vld [vmem:[%s11039_s8 + $0x10] sm:$0xff]  ;;  %v8929_v48 = vld [vmem:[%s11039_s8 + $0x18] sm:$0xff] }
0x12e7   : > { %10281 = vmatprep.subr.bf16.mxu1 %v12359_v5  ;;  %v10311_v50 = vpack.c.bf16 %v8929_v48, %v8928_v46  ;;  %v11570_v46 = vld [vmem:[%s12380_s9] ss:$0 sm:$0xff] }
0x12e8   : > { %10304 = vmatpush3.bf16.msra.mxu0 %v11479_v49 }
0x12e9   : > { %10305 = vmatprep.subr.bf16.mxu0 %v12359_v5 }
0x12ea   : > { %10283 = vmatpush3.bf16.msra.mxu1 %v11382_v51 }
0x12eb   : > { %10284 = vmatprep.subr.bf16.mxu1 %v12359_v5 }
0x12ec   : > { %10307 = vmatpush3.bf16.msra.mxu0 %v11489_v53 }
0x12ed   : > { %9571 = vmatmul.mubr.msk.f32.vlgmr.msra.gmra.mrb[10].mxu1 %vm1028_vm5, %v2400_v56  ;;  %10308 = vmatprep.subr.bf16.mxu0 %v12359_v5 }
0x12ee   : > { %10286 = vmatpush3.bf16.msra.mxu1 %v11394_v55  ;;  %9581 = vmatprep.mubr.msk.f32.mxu1 %vm10884_vm10, %v12361_v54 }
0x12ef   : > { %10287 = vmatprep.subr.bf16.mxu1 %v12359_v5 }
0x12f2   : > { %10289 = vmatpush3.bf16.msra.mxu1 %v11406_v59 }
0x12f3   : > { %10290 = vmatprep.subr.bf16.mxu1 %v12359_v5 }
0x12f5   : > { %9582 = vmatmul.mubr.msk.f32.vlgmr.msra.gmra.mrb[10].mxu1 %vm1028_vm5, %v2474_v2 }
0x12f6   : > { %10292 = vmatpush3.bf16.msra.mxu1 %v11418_v62  ;;  %9592 = vmatprep.mubr.msk.f32.mxu1 %vm10884_vm10, %v12361_v54 }
0x12f7   : > { %10293 = vmatprep.subr.bf16.mxu1 %v12359_v5 }
0x12fa   : > { %10295 = vmatpush3.bf16.msra.mxu1 %v11430_v12 }
0x12fb   : > { %10296 = vmatprep.subr.bf16.mxu1 %v12359_v5 }
0x12fd   : > { %9593 = vmatmul.mubr.msk.f32.vlgmr.msra.gmra.mrb[10].mxu1 %vm1028_vm5, %v2548_v14 }
0x12fe   : > { %10298 = vmatpush3.bf16.msra.mxu1 %v11442_v13  ;;  %9603 = vmatprep.mubr.msk.f32.mxu1 %vm10884_vm10, %v12361_v54 }
0x12ff   : > { %10299 = vmatprep.subr.bf16.mxu1 %v12359_v5 }
0x1302   : > { %10301 = vmatpush3.bf16.msra.mxu1 %v11454_v15 }
0x1303   : > { %9698 = vmatprep.subr.mxu1 %v12361_v54 }
0x1305   : > { %9604 = vmatmul.mubr.msk.f32.vlgmr.msra.gmra.mrb[10].mxu1 %vm1028_vm5, %v2622_v18 }
0x1306   : > { %9700 = vmatprep.mubr.msk.f32.mxu1 %vm10884_vm10, %v12361_v54 }
0x13b6   : > { %v2247_v19 = vpop.f32.mrb[14].mxu0 }
0x13b7   : > { %v9539_v20 = vpop.f32.mrb[15].mxu0  ;;  %v10608_v22 = vadd.f32 %v2247_v19, %v11468_v21 }
0x13d8   : > { %v2691_v23 = vpop.f32.mrb[10].mxu1 }
0x13d9   : > { %v10609_v24 = vadd.f32 %v10608_v22, %v2691_v23  ;;  %v9605_v30 = vpop.f32.mrb[11].mxu1 }
0x13da   : > { %v8926_v30 = vld [vmem:[%s11030_s7 + $0x10] sm:$0xff] }
0x13db   : > { %v2696_v26 = vmax.f32 %v10609_v24, 0.0 }
0x13dd   : > { %v2698_v31 = vsel %vm2697_vm14, %v2696_v26, 0.0 }
0x13de   : > { %2699 = vadd.xlane.f32.xlu1 %v2698_v31  ;;  %v2883_v31 = vsel %vm838_vm0, %v8926_v30, 0.0 }
0x146b   : > { %v2700_v34 = vpop.xlane.xlu1 %2699 }
0x146c   : > { %v2701_v35 = vmul.f32 0.03125, %v2700_v34  ;;  %v8927_v34 = vld [vmem:[%s11030_s7 + $0x18] sm:$0xff] }
0x146e   : > { %v2702_v37 = vsub.f32 %v2696_v26, %v2701_v35  ;;  %v2886_v35 = vsel %vm838_vm0, %v8927_v34, 0.0 }
0x1470   : > { %v2703_v44 = vmul.f32 %v2702_v37, %v2702_v37 }
0x1472   : > { %v2704_v45 = vsel %vm2697_vm14, %v2703_v44, 0.0  ;;  %v832_v44 = vld [vmem:[%s12342_s22 + $0x8] sm:$0xff] }
0x1473   : > { %2705 = vadd.xlane.f32.xlu1 %v2704_v45 }
0x1500   : > { %v2706_v56 = vpop.xlane.xlu1 %2705 }
0x1501   : > { %v2707_v57 = vmul.f32 0.03125, %v2706_v56 }
0x1503   : > { %v2708_v58 = vadd.f32 1e-05, %v2707_v57 }
0x1505   : > { %10768 = vrsqrt.f32 %v2708_v58 }
0x150f   : > { %v10769_v60 = vpop.eup %10768 }
0x1510   : > { %v2710_v2 = vmul.f32 %v10769_v60, %v2702_v37  ;;  %v831_v37 = vld [vmem:[%s12342_s22] sm:$0xff] }
0x1511   : > { %v11526_v45 = vpack.c.bf16 %v832_v44, %v831_v37 }
0x1512   : > { %v2711_v7 = vmul.f32 %v2710_v2, %v11496_v61 }
0x1514   : > { %v2712_v9 = vadd.f32 %v2711_v7, %v11501_v3  ;;  %v11534_v7 = vld [vmem:[%s12340_s20] sm:$0x1] }
0x1516   : > { %9615 = vmatmul.mubr.msk.f32.vlgmr.msra.gmra.mrb[16].mxu0 %vm1028_vm5, %v2712_v9 }
0x1517   : > { %9621 = vmatprep.mubr.msk.f32.mxu0 %vm10884_vm10, %v12361_v54  ;;  %10310 = vmatpush3.bf16.msra.mxu0 %v11526_v45 }
0x1518   : > { %10312 = vmatprep.subr.bf16.mxu0 %v10311_v50 }
0x15e9   : > { %v2782_v14 = vpop.f32.mrb[16].mxu0 }
0x15ea   : > { %v2783_v16 = vadd.f32 %v2782_v14, %v11511_v10  ;;  %v9616_v17 = vpop.f32.mrb[17].mxu0 }
0x15ec   : > { %v2786_v18 = vmax.f32 %v2783_v16, 0.0  ;;  %v11539_v16 = vld [vmem:[%s12341_s21] sm:$0x1] }
0x15ee   : > { %v2788_v19 = vsel %vm12356_vm2, %v2786_v18, 0.0 }
0x15ef   : > { %2789 = vadd.xlane.f32.xlu1 %v2788_v19 }
0x167c   : > { %v2790_v20 = vpop.xlane.xlu1 %2789 }
0x167d   : > { %v2792_v22 = vmul.f32 0.0625, %v2790_v20 }
0x167f   : > { %v2793_v23 = vsub.f32 %v2786_v18, %v2792_v22 }
0x1681   : > { %v2794_v24 = vmul.f32 %v2793_v23, %v2793_v23 }
0x1683   : > { %v2795_v26 = vsel %vm12356_vm2, %v2794_v24, 0.0 }
0x1684   : > { %2796 = vadd.xlane.f32.xlu1 %v2795_v26  ;;  %v11553_v26 = vld [vmem:[%s12379_s5] sm:$0x1] }
0x1688   : > { %2884 = vadd.xlane.f32.xlu1 %v2883_v31 }
0x168c   : > { %2887 = vadd.xlane.f32.xlu1 %v2886_v35 }
0x1711   : > { %v2797_v52 = vpop.xlane.xlu1 %2796 }
0x1712   : > { %v2798_v56 = vmul.f32 0.0625, %v2797_v52 }
0x1714   : > { %v2799_v57 = vadd.f32 1e-05, %v2798_v56 }
0x1715   : > { %v2885_v58 = vpop.xlane.xlu1 %2884 }
0x1716   : > { %10770 = vrsqrt.f32 %v2799_v57  ;;  %vm2889_vm7 = vcmp.gt.f32.partialorder %v2885_v58, 0.0 }
0x1717   : > { %10772 = vrcp.f32 %v2885_v58 }
0x1719   : > { %v2888_v60 = vpop.xlane.xlu1 %2887 }
0x171a   : > { %10774 = vrcp.f32 %v2888_v60  ;;  %vm2890_vm2 = vcmp.gt.f32.partialorder %v2888_v60, 0.0 }
0x1720   : > { %v10771_v2 = vpop.eup %10770 }
0x1721   : > { %v10773_v9 = vpop.eup %10772  ;;  %v2801_v14 = vmul.f32 %v10771_v2, %v2793_v23 }
0x1722   : > { %v2893_v17 = vsel %vm2889_vm7, %v10773_v9, 0.0 }
0x1723   : > { %v2802_v18 = vmul.f32 %v2801_v14, %v11534_v7  ;;  %v11543_v22 = vmul.f32 %v8926_v30, %v2893_v17 }
0x1724   : > { %v10775_v19 = vpop.eup %10774 }
0x1725   : > { %v2803_v20 = vadd.f32 %v2802_v18, %v11539_v16  ;;  %v2894_v24 = vsel %vm2890_vm2, %v10775_v19, 0.0 }
0x1726   : > { %v11548_v23 = vmul.f32 %v8927_v34, %v2894_v24 }
0x1727   : > { %9622 = vmatmul.mubr.msk.f32.vlgmr.msra.gmra.mrb[18].mxu0 %vm838_vm0, %v2803_v20 }
0x1728   : > { %10314 = vmatpush3.bf16.msra.mxu0 %v10311_v50  ;;  %9628 = vmatprep.mubr.msk.f32.mxu0 %vm838_vm0, %v11543_v22 }
0x1729   : > { %9631 = vmatprep.subr.msk.mxu0 %vm947_vm3, %v11553_v26 }
0x172b   : > { %9629 = vmatmul.mubr.msk.f32.vlgmr.msra.gmra.mrb[20].mxu0 %vm838_vm0, %v11548_v23 }
0x172c   : > { %9632 = vmatpush3.msk.msra.mxu0 %vm947_vm3, %v11553_v26 }
0x17fa   : > { %v11561_v30 = vpop.f32.mrb[18].mxu0 }
0x17fb   : > { %v9623_v31 = vpop.f32.mrb[19].mxu0 }
0x17fe   : > { %v9630_v35 = vpop.f32.mrb[20].mxu0 }
0x17ff   : > { %v2969_v34 = vpop.f32.mrb[21].mxu0 }
0x1800   : > { %9633 = vmatprep.mubr.msk.f32.mxu0 %vm940_vm4, %v2969_v34 }
0x1801   : > { %9634 = vmatmul.mubr.msk.f32.vlgmr.msra.gmra.mrb[22].mxu0 %vm940_vm4, %v9630_v35 }
0x1802   : > { %9640 = vmatprep.mubr.msk.f32.mxu0 %vm838_vm0, %v11543_v22 }
0x18d4   : > { %v9635_v37 = vpop.f32.mrb[22].mxu0 }
0x18d5   : > { %v3050_v44 = vpop.f32.mrb[23].mxu0  ;;  %v3056_v48 = vadd.f32 %v11570_v46, %v9635_v37 }
0x18d6   : > { %v3051_v50 = vadd.f32 %v11570_v46, %v3050_v44 }
0x18d7   : > { %v3060_v56 = vmax.f32 %v3056_v48, 0.0 }
0x18d8   : > { %v3059_v52 = vmax.f32 %v3051_v50, 0.0 }
0x18d9   : > { %v3064_v58 = vsel %vm1028_vm5, %v3060_v56, 0.0 }
0x18da   : > { %v3061_v57 = vsel %vm1028_vm5, %v3059_v52, 0.0 }
0x18db   : > { %3062 = vadd.xlane.f32.xlu1 %v3061_v57 }
0x18df   : > { %3065 = vadd.xlane.f32.xlu1 %v3064_v58 }
0x1968   : > { %v3063_v60 = vpop.xlane.xlu1 %3062 }
0x1969   : > { %v3067_v2 = vmul.f32 0.03125, %v3063_v60 }
0x196b   : > { %v3069_v9 = vsub.f32 %v3059_v52, %v3067_v2 }
0x196c   : > { %v3066_v14 = vpop.xlane.xlu1 %3065 }
0x196d   : > { %v3068_v17 = vmul.f32 0.03125, %v3066_v14  ;;  %v3071_v18 = vmul.f32 %v3069_v9, %v3069_v9 }
0x196f   : > { %v3070_v19 = vsub.f32 %v3060_v56, %v3068_v17  ;;  %v3073_v20 = vsel %vm1028_vm5, %v3071_v18, 0.0  ;;  %v11581_v56 = vld [vmem:[%s12382_s29] ss:$0 sm:$0xff] }
0x1970   : > { %3074 = vadd.xlane.f32.xlu1 %v3073_v20  ;;  %v11588_v17 = vld [vmem:[%s12383_s25] ss:$0 sm:$0xff] }
0x1971   : > { %v3072_v24 = vmul.f32 %v3070_v19, %v3070_v19 }
0x1973   : > { %v3076_v31 = vsel %vm1028_vm5, %v3072_v24, 0.0 }
0x1974   : > { %3077 = vadd.xlane.f32.xlu0 %v3076_v31 }
0x19fd   : > { %v3075_v35 = vpop.xlane.xlu1 %3074 }
0x19fe   : > { %v3079_v34 = vmul.f32 0.03125, %v3075_v35  ;;  %v11608_v35 = vld [vmem:[%s12385_s0] ss:$0 sm:$0xff] }
0x1a00   : > { %v3081_v37 = vadd.f32 1e-05, %v3079_v34 }
0x1a01   : > { %v3078_v44 = vpop.xlane.xlu0 %3077 }
0x1a02   : > { %10776 = vrsqrt.f32 %v3081_v37  ;;  %v3080_v48 = vmul.f32 0.03125, %v3078_v44 }
0x1a04   : > { %v3082_v50 = vadd.f32 1e-05, %v3080_v48 }
0x1a06   : > { %10778 = vrsqrt.f32 %v3082_v50 }
0x1a0c   : > { %v10777_v52 = vpop.eup %10776 }
0x1a0d   : > { %v3085_v57 = vmul.f32 %v10777_v52, %v3069_v9 }
0x1a0f   : > { %v3087_v2 = vmul.f32 %v11581_v56, %v3085_v57 }
0x1a10   : > { %v10779_v58 = vpop.eup %10778 }
0x1a11   : > { %v3086_v60 = vmul.f32 %v10779_v58, %v3070_v19  ;;  %v3089_v18 = vadd.f32 %v11588_v17, %v3087_v2  ;;  %v11618_v58 = vld [vmem:[#allocation2] ss:$0 sm:$0xff] }
0x1a13   : > { %v3088_v14 = vmul.f32 %v11581_v56, %v3086_v60 }
0x1a15   : > { %v3090_v9 = vadd.f32 %v11588_v17, %v3088_v14 }
0x1a17   : > { %v10315_v20 = vpack.c.bf16 %v3090_v9, %v3089_v18 }
0x1a19   : > { %10316 = vmatprep.subr.bf16.mxu0 %v10315_v20 }
0x1a1a   : > { %10318 = vmatpush3.bf16.msra.mxu0 %v10315_v20 }
0x1a1b   : > { %10320 = vmatprep.subr.bf16.mxu0 %v11076_v41 }
0x1a1d   : > { %9641 = vmatmul.mubr.msk.f32.vlgmr.msra.gmra.mrb[24].mxu0 %vm838_vm0, %v11548_v23 }
0x1a1e   : > { %10322 = vmatpush3.bf16.msra.mxu0 %v11076_v41 }
0x1a1f   : > { %10324 = vmatprep.subr.bf16.mxu0 %v11081_v43 }
0x1a22   : > { %10326 = vmatpush3.bf16.msra.mxu0 %v11081_v43 }
0x1a23   : > { %10328 = vmatprep.subr.bf16.mxu0 %v11101_v63 }
0x1af0   : > { %v9642_v19 = vpop.f32.mrb[24].mxu0 }
0x1af1   : > { %v3157_v24 = vpop.f32.mrb[25].mxu0 }
0x1af2   : > { %9651 = vmatprep.mubr.msk.f32.mxu0 %vm1028_vm5, %v3157_v24 }
0x1af3   : > { %9652 = vmatmul.mubr.msk.f32.vlgmr.msra.gmra.mrb[26].mxu0 %vm1028_vm5, %v9642_v19 }
0x1af4   : > { %10330 = vmatpush3.bf16.msra.mxu0 %v11101_v63 }
0x1af5   : > { %10332 = vmatprep.subr.bf16.mxu0 %v11113_v4 }
0x1af8   : > { %10334 = vmatpush3.bf16.msra.mxu0 %v11113_v4 }
0x1af9   : > { %10335 = vmatprep.subr.bf16.mxu0 %v12359_v5 }
0x1bc6   : > { %v9653_v31 = vpop.f32.mrb[26].mxu0 }
0x1bc7   : > { %v3244_v34 = vadd.f32 %v11608_v35, %v9653_v31  ;;  %v3238_v37 = vpop.f32.mrb[27].mxu0 }
0x1bc8   : > { %v3239_v44 = vadd.f32 %v11608_v35, %v3238_v37 }
0x1bc9   : > { %v3248_v48 = vmax.f32 %v3244_v34, 0.0 }
0x1bca   : > { %v3247_v50 = vmax.f32 %v3239_v44, 0.0 }
0x1bcc   : > { %v11612_v52 = vpack.c.bf16 %v3248_v48, %v3247_v50  ;;  %9662 = vmatprep.mubr.msk.f32.mxu0 %vm1028_vm5, %v3247_v50 }
0x1bcd   : > { %9663 = vmatmul.mubr.msk.f32.vlgmr.msra.gmra.mrb[28].mxu0 %vm1028_vm5, %v3248_v48 }
0x1bce   : > { %9669 = vmatprep.mubr.msk.f32.mxu0 %vm10884_vm10, %v12361_v54 }
0x1ca0   : > { %v9664_v57 = vpop.f32.mrb[28].mxu0 }
0x1ca1   : > { %v3327_v60 = vadd.f32 %v11618_v58, %v9664_v57  ;;  %v3321_v2 = vpop.f32.mrb[29].mxu0 }
0x1ca2   : > { %v3322_v14 = vadd.f32 %v11618_v58, %v3321_v2 }
0x1ca3   : > { %v8942_v18 = vmul.f32 -1.442695, %v3327_v60 }
0x1ca4   : > { %v8941_v9 = vmul.f32 -1.442695, %v3322_v14 }
0x1ca5   : > { %10780 = vpow2.f32 %v8942_v18 }
0x1ca6   : > { %10782 = vpow2.f32 %v8941_v9 }
0x1caf   : > { %v10781_v20 = vpop.eup %10780 }
0x1cb0   : > { %v10783_v19 = vpop.eup %10782  ;;  %v3337_v24 = vadd.f32 1.0, %v10781_v20 }
0x1cb1   : > { %v3336_v31 = vadd.f32 1.0, %v10783_v19 }
0x1cb2   : > { %10784 = vrcp.f32 %v3337_v24 }
0x1cb3   : > { %10786 = vrcp.f32 %v3336_v31 }
0x1cbc   : > { %v10785_v34 = vpop.eup %10784 }
0x1cbd   : > { %v10787_v37 = vpop.eup %10786  ;;  %v3343_v44 = vmax.f32 %v10785_v34, 1e-30 }
0x1cbe   : > { %v10336_v48 = vpack.c.bf16 %v10785_v34, %v10787_v37  ;;  %v3342_v50 = vmax.f32 %v10787_v37, 1e-30 }
0x1cbf   : > { %v3347_v27 = vand.u32 4294967280, %v3343_v44 }
0x1cc0   : > { %10337 = vmatpush3.bf16.msra.mxu0 %v10336_v48  ;;  %v3346_v57 = vand.u32 4294967280, %v3342_v50 }
0x1cc1   : > { %v3349_v2 = vor.u32 %v3347_v27, %v11131_v33  ;;  %10338 = vmatprep.subr.bf16.mxu0 %v12359_v5 }
0x1cc2   : > { %v3348_v60 = vor.u32 %v3346_v57, %v11134_v36 }
0x1cc3   : > { %v3353_v14 = vsel %vm940_vm4, %v3349_v2, -inf }
0x1cc4   : > { %v3352_v18 = vsel %vm940_vm4, %v3348_v60, -inf }
0x1cc5   : > { %v3354_v9 = vmax.f32 %v3352_v18, %v3353_v14 }
0x1cc7   : > { %3355 = vmax.xlane.f32.xlu1 %v3354_v9 }
0x1d54   : > { %v3356_v20 = vpop.xlane.xlu1 %3355 }
0x1d55   : > { %v3357_v19 = vrot.slane %v3356_v20, 4 }
0x1d57   : > { %v3358_v24 = vmax.f32 %v3356_v20, %v3357_v19 }
0x1d59   : > { %v3359_v31 = vrot.slane %v3358_v24, 2 }
0x1d5b   : > { %v3360_v34 = vmax.f32 %v3358_v24, %v3359_v31 }
0x1d5d   : > { %v3361_v37 = vrot.slane %v3360_v34, 1 }
0x1d5f   : > { %v3362_v44 = vmax.f32 %v3360_v34, %v3361_v37 }
0x1d61   : > { %10683 = vpush %v3362_v44 }
0x1d92   : > { %s10684_s10 = spop %10683 }
0x1d93   : > { %v3364_v27 = vstv %s10684_s10 }
0x1d94   : > { %v3366_v48 = vand.u32 15, %v3364_v27 }
0x1d96   : > { %v3367_v50 = vsub.s32 15, %v3366_v48 }
0x1d98   : > { %vm3369_vm2 = vcmp.eq.s32.totalorder %v11125_v28, %v3367_v50  ;;  %vm3370_vm7 = vcmp.eq.s32.totalorder %v11128_v29, %v3367_v50 }
0x1d99   : > { %v3371_v57 = vsel %vm3369_vm2, -inf, %v3348_v60  ;;  %v3372_v5 = vsel %vm3370_vm7, -inf, %v3349_v2  ;;  %v3368_v2 = vsel %vm1366_vm8, %v3367_v50, 0 }
0x1d9a   : > { %v3373_v14 = vsel %vm940_vm4, %v3371_v57, -inf  ;;  %v3374_v18 = vsel %vm940_vm4, %v3372_v5, -inf }
0x1d9b   : > { %v3375_v9 = vmax.f32 %v3373_v14, %v3374_v18 }
0x1d9d   : > { %3376 = vmax.xlane.f32.xlu1 %v3375_v9 }
0x1e2a   : > { %v3377_v20 = vpop.xlane.xlu1 %3376 }
0x1e2b   : > { %v3378_v19 = vrot.slane %v3377_v20, 4 }
0x1e2d   : > { %v3379_v24 = vmax.f32 %v3377_v20, %v3378_v19 }
0x1e2f   : > { %v3380_v31 = vrot.slane %v3379_v24, 2 }
0x1e31   : > { %v3381_v34 = vmax.f32 %v3379_v24, %v3380_v31 }
0x1e33   : > { %v3382_v37 = vrot.slane %v3381_v34, 1 }
0x1e35   : > { %v3383_v44 = vmax.f32 %v3381_v34, %v3382_v37 }
0x1e37   : > { %10685 = vpush %v3383_v44 }
0x1e68   : > { %s10686_s24 = spop %10685 }
0x1e69   : > { %v3385_v27 = vstv %s10686_s24 }
0x1e6a   : > { %v3387_v48 = vand.u32 15, %v3385_v27 }
0x1e6c   : > { %v3388_v54 = vsub.s32 15, %v3387_v48 }
0x1e6e   : > { %v3389_v60 = vsel %vm1388_vm9, %v3388_v54, %v3368_v2  ;;  %vm3390_vm2 = vcmp.eq.s32.totalorder %v11125_v28, %v3388_v54  ;;  %vm3391_vm7 = vcmp.eq.s32.totalorder %v11128_v29, %v3388_v54 }
0x1e6f   : > { %v3392_v14 = vsel %vm3390_vm2, -inf, %v3371_v57  ;;  %v3393_v18 = vsel %vm3391_vm7, -inf, %v3372_v5 }
0x1e70   : > { %v3394_v9 = vsel %vm940_vm4, %v3392_v14, -inf  ;;  %v3395_v20 = vsel %vm940_vm4, %v3393_v18, -inf }
0x1e71   : > { %v3396_v19 = vmax.f32 %v3394_v9, %v3395_v20 }
0x1e73   : > { %3397 = vmax.xlane.f32.xlu1 %v3396_v19 }
0x1f00   : > { %v3398_v24 = vpop.xlane.xlu1 %3397 }
0x1f01   : > { %v3399_v31 = vrot.slane %v3398_v24, 4 }
0x1f03   : > { %v3400_v34 = vmax.f32 %v3398_v24, %v3399_v31 }
0x1f05   : > { %v3401_v37 = vrot.slane %v3400_v34, 2 }
0x1f07   : > { %v3402_v50 = vmax.f32 %v3400_v34, %v3401_v37 }
0x1f09   : > { %v3403_v44 = vrot.slane %v3402_v50, 1 }
0x1f0b   : > { %v3404_v27 = vmax.f32 %v3402_v50, %v3403_v44 }
0x1f0d   : > { %10687 = vpush %v3404_v27 }
0x1f3e   : > { %s10688_s27 = spop %10687 }
0x1f3f   : > { %v3406_v48 = vstv %s10688_s27 }
0x1f40   : > { %v3408_v2 = vand.u32 15, %v3406_v48 }
0x1f42   : > { %v3409_v54 = vsub.s32 15, %v3408_v2 }
0x1f44   : > { %v3410_v5 = vsel %vm1410_vm12, %v3409_v54, %v3389_v60  ;;  %vm3411_vm2 = vcmp.eq.s32.totalorder %v11125_v28, %v3409_v54  ;;  %vm3412_vm7 = vcmp.eq.s32.totalorder %v11128_v29, %v3409_v54 }
0x1f45   : > { %v3413_v57 = vsel %vm3411_vm2, -inf, %v3392_v14  ;;  %v3414_v9 = vsel %vm3412_vm7, -inf, %v3393_v18 }
0x1f46   : > { %v3415_v20 = vsel %vm940_vm4, %v3413_v57, -inf  ;;  %v3416_v19 = vsel %vm940_vm4, %v3414_v9, -inf }
0x1f47   : > { %v3417_v24 = vmax.f32 %v3415_v20, %v3416_v19 }
0x1f49   : > { %3418 = vmax.xlane.f32.xlu1 %v3417_v24 }
0x1fd6   : > { %v3419_v31 = vpop.xlane.xlu1 %3418 }
0x1fd7   : > { %v3420_v34 = vrot.slane %v3419_v31, 4 }
0x1fd9   : > { %v3421_v37 = vmax.f32 %v3419_v31, %v3420_v34 }
0x1fdb   : > { %v3422_v50 = vrot.slane %v3421_v37, 2 }
0x1fdd   : > { %v3423_v44 = vmax.f32 %v3421_v37, %v3422_v50 }
0x1fdf   : > { %v3424_v27 = vrot.slane %v3423_v44, 1 }
0x1fe1   : > { %v3425_v48 = vmax.f32 %v3423_v44, %v3424_v27 }
0x1fe3   : > { %10689 = vpush %v3425_v48 }
0x2014   : > { %s10690_s26 = spop %10689 }
0x2015   : > { %v3427_v60 = vstv %s10690_s26 }
0x2016   : > { %v3429_v2 = vand.u32 15, %v3427_v60 }
0x2018   : > { %v3430_v54 = vsub.s32 15, %v3429_v2 }
0x201a   : > { %v3431_v14 = vsel %vm1432_vm15, %v3430_v54, %v3410_v5  ;;  %vm3432_vm2 = vcmp.eq.s32.totalorder %v11125_v28, %v3430_v54  ;;  %vm3433_vm7 = vcmp.eq.s32.totalorder %v11128_v29, %v3430_v54 }
0x201b   : > { %v3434_v18 = vsel %vm3432_vm2, -inf, %v3413_v57  ;;  %v3435_v20 = vsel %vm3433_vm7, -inf, %v3414_v9 }
0x201c   : > { %v3436_v19 = vsel %vm940_vm4, %v3434_v18, -inf  ;;  %v3437_v24 = vsel %vm940_vm4, %v3435_v20, -inf }
0x201d   : > { %v3438_v31 = vmax.f32 %v3436_v19, %v3437_v24 }
0x201f   : > { %3439 = vmax.xlane.f32.xlu1 %v3438_v31 }
0x20ac   : > { %v3440_v34 = vpop.xlane.xlu1 %3439 }
0x20ad   : > { %v3441_v37 = vrot.slane %v3440_v34, 4 }
0x20af   : > { %v3442_v50 = vmax.f32 %v3440_v34, %v3441_v37 }
0x20b1   : > { %v3443_v44 = vrot.slane %v3442_v50, 2 }
0x20b3   : > { %v3444_v27 = vmax.f32 %v3442_v50, %v3443_v44 }
0x20b5   : > { %v3445_v48 = vrot.slane %v3444_v27, 1 }
0x20b7   : > { %v3446_v60 = vmax.f32 %v3444_v27, %v3445_v48 }
0x20b9   : > { %10691 = vpush %v3446_v60 }
0x20ea   : > { %s10692_s4 = spop %10691 }
0x20eb   : > { %v3448_v5 = vstv %s10692_s4 }
0x20ec   : > { %v3450_v2 = vand.u32 15, %v3448_v5 }
0x20ee   : > { %v3451_v54 = vsub.s32 15, %v3450_v2 }
0x20f0   : > { %v3452_v57 = vsel %vm1454_vm6, %v3451_v54, %v3431_v14  ;;  %vm3453_vm2 = vcmp.eq.s32.totalorder %v11125_v28, %v3451_v54  ;;  %vm3454_vm7 = vcmp.eq.s32.totalorder %v11128_v29, %v3451_v54 }
0x20f1   : > { %v3455_v9 = vsel %vm3453_vm2, -inf, %v3434_v18  ;;  %v3456_v19 = vsel %vm3454_vm7, -inf, %v3435_v20 }
0x20f2   : > { %v3457_v24 = vsel %vm940_vm4, %v3455_v9, -inf  ;;  %v3458_v31 = vsel %vm940_vm4, %v3456_v19, -inf }
0x20f3   : > { %v3459_v34 = vmax.f32 %v3457_v24, %v3458_v31 }
0x20f5   : > { %3460 = vmax.xlane.f32.xlu1 %v3459_v34 }
0x2182   : > { %v3461_v37 = vpop.xlane.xlu1 %3460 }
0x2183   : > { %v3462_v50 = vrot.slane %v3461_v37, 4 }
0x2185   : > { %v3463_v44 = vmax.f32 %v3461_v37, %v3462_v50 }
0x2187   : > { %v3464_v27 = vrot.slane %v3463_v44, 2 }
0x2189   : > { %v3465_v48 = vmax.f32 %v3463_v44, %v3464_v27 }
0x218b   : > { %v3466_v60 = vrot.slane %v3465_v48, 1 }
0x218d   : > { %v3467_v5 = vmax.f32 %v3465_v48, %v3466_v60 }
0x218f   : > { %10693 = vpush %v3467_v5 }
0x21c0   : > { %s10694_s1 = spop %10693 }
0x21c1   : > { %v3469_v14 = vstv %s10694_s1 }
0x21c2   : > { %v3471_v2 = vand.u32 15, %v3469_v14 }
0x21c4   : > { %v3472_v54 = vsub.s32 15, %v3471_v2 }
0x21c6   : > { %v3473_v18 = vsel %vm12363_vm11, %v3472_v54, %v3452_v57  ;;  %vm3474_vm2 = vcmp.eq.s32.totalorder %v11125_v28, %v3472_v54  ;;  %vm3475_vm7 = vcmp.eq.s32.totalorder %v11128_v29, %v3472_v54 }
0x21c7   : > { %v3476_v20 = vsel %vm3474_vm2, -inf, %v3455_v9  ;;  %v3477_v24 = vsel %vm3475_vm7, -inf, %v3456_v19  ;;  %vm12387_vm2 = vcmp.eq.s32.totalorder %v11125_v28, 6 }
0x21c8   : > { %v3478_v31 = vsel %vm940_vm4, %v3476_v20, -inf  ;;  %v3479_v34 = vsel %vm940_vm4, %v3477_v24, -inf }
0x21c9   : > { %v3480_v37 = vmax.f32 %v3478_v31, %v3479_v34 }
0x21cb   : > { %3481 = vmax.xlane.f32.xlu1 %v3480_v37 }
0x2258   : > { %v3482_v50 = vpop.xlane.xlu1 %3481 }
0x2259   : > { %v3483_v44 = vrot.slane %v3482_v50, 4 }
0x225b   : > { %v3484_v27 = vmax.f32 %v3482_v50, %v3483_v44 }
0x225d   : > { %v3485_v48 = vrot.slane %v3484_v27, 2 }
0x225f   : > { %v3486_v60 = vmax.f32 %v3484_v27, %v3485_v48 }
0x2261   : > { %v3487_v5 = vrot.slane %v3486_v60, 1 }
0x2263   : > { %v3488_v14 = vmax.f32 %v3486_v60, %v3487_v5 }
0x2265   : > { %10695 = vpush %v3488_v14 }
0x2296   : > { %s10696_s6 = spop %10695 }
0x2297   : > { %v3490_v57 = vstv %s10696_s6 }
0x2298   : > { %v3492_v2 = vand.u32 15, %v3490_v57 }
0x229a   : > { %v3493_v54 = vsub.s32 15, %v3492_v2 }
0x229c   : > { %v3494_v9 = vsel %vm12387_vm2, %v3493_v54, %v3473_v18  ;;  %vm3495_vm7 = vcmp.eq.s32.totalorder %v11125_v28, %v3493_v54  ;;  %vm3496_vm11 = vcmp.eq.s32.totalorder %v11128_v29, %v3493_v54  ;;  %vm3669_vm2 = vcmp.ne.f32.partialorder %v11548_v23, 0.0 }
0x229d   : > { %v3497_v19 = vsel %vm3495_vm7, -inf, %v3476_v20  ;;  %v3498_v31 = vsel %vm3496_vm11, -inf, %v3477_v24  ;;  %v12388_v24 = vmov 0.0   ;;  %vm3668_vm7 = vcmp.ne.f32.partialorder %v11543_v22, 0.0 }
0x229e   : > { %v3499_v34 = vsel %vm940_vm4, %v3497_v19, -inf  ;;  %v3500_v37 = vsel %vm940_vm4, %v3498_v31, -inf  ;;  %v12389_v31 = vmov 0.0|0.0   ;;  %v8947_v22 = vsel %vm3669_vm2, 1.0, %v12388_v24 }
0x229f   : > { %v3501_v50 = vmax.f32 %v3499_v34, %v3500_v37 }
0x22a1   : > { %3502 = vmax.xlane.f32.xlu1 %v3501_v50 }
0x232e   : > { %v3503_v44 = vpop.xlane.xlu1 %3502 }
0x232f   : > { %v3504_v27 = vrot.slane %v3503_v44, 4 }
0x2331   : > { %v3505_v48 = vmax.f32 %v3503_v44, %v3504_v27 }
0x2333   : > { %v3506_v60 = vrot.slane %v3505_v48, 2 }
0x2335   : > { %v3507_v5 = vmax.f32 %v3505_v48, %v3506_v60 }
0x2337   : > { %v3508_v14 = vrot.slane %v3507_v5, 1 }
0x2339   : > { %v3509_v57 = vmax.f32 %v3507_v5, %v3508_v14 }
0x233b   : > { %10697 = vpush %v3509_v57 }
0x236c   : > { %s10698_s2 = spop %10697 }
0x236d   : > { %v3511_v18 = vstv %s10698_s2 }
0x236e   : > { %v3513_v2 = vand.u32 15, %v3511_v18 }
0x2370   : > { %v3514_v54 = vsub.s32 15, %v3513_v2 }
0x2372   : > { %v3515_v20 = vsel %vm12364_vm13, %v3514_v54, %v3494_v9  ;;  %vm10342_vm13 = vmpackc.low %vm3669_vm2, %vm3668_vm7  ;;  %v12390_v9 = vmov 1.0|1.0  }
0x2373   : > { %vm3516_vm11 = vcmp.eq.s32.totalorder %v11196_v1, %v3515_v20 }
0x2374   : > { %v8943_v19 = vsel %vm3516_vm11, 1.0, %v12388_v24 }
0x2375   : > { %9670 = vmatmul.mubr.msk.f32.vlgmr.msra.gmra.mrb[30].mxu0 %vm838_vm0, %v8943_v19 }
0x2376   : > { %10340 = vmatpush3.bf16.msra.mxu0 %v11612_v52  ;;  %9676 = vmatprep.mubr.msk.f32.mxu0 %vm10884_vm10, %v12388_v24  ;;  %v8946_v52 = vsel %vm3668_vm7, 1.0, %v12388_v24  ;;  %vm12391_vm7 = vcmask 122880  }
0x2377   : > { %10341 = vmatprep.subr.bf16.mxu0 %v12389_v31 }
0x2379   : > { %9677 = vmatmul.mubr.msk.f32.vlgmr.msra.gmra.mrb[32].mxu0 %vm838_vm0, %v8943_v19 }
0x237a   : > { %10343 = vmatpush3.bf16.msk.msra.mxu0 %vm10342_vm13, %v12390_v9  ;;  %9683 = vmatprep.mubr.msk.f32.mxu0 %vm10884_vm10, %v12388_v24 }
0x237b   : > { %9686 = vmatprep.subr.msk.mxu0 %vm838_vm0, %v8943_v19 }
0x237d   : > { %9684 = vmatmul.mubr.msk.f32.vlgmr.msra.gmra.mrb[34].mxu0 %vm838_vm0, %v8943_v19 }
0x237e   : > { %9688 = vmatprep.mubr.msk.f32.mxu0 %vm838_vm0, %v8946_v52 }
0x2383   : > { %9687 = vmatpush3.xpose.msk.msra.mxu0 %vm838_vm0, %v8943_v19 }
0x2384   : > { %10344 = vmatprep.subr.bf16.mxu0 %v12389_v31 }
0x2386   : > { %9689 = vmatmul.mubr.msk.f32.vlgmr.msra.gmra.mrb[36].mxu0 %vm838_vm0, %v8947_v22 }
0x2387   : > { %9695 = vmatprep.mubr.msk.f32.mxu0 %vm10884_vm10, %v12388_v24 }
0x2448   : > { %v3588_v23 = vpop.f32.mrb[30].mxu0 }
0x2449   : > { %v9671_v34 = vpop.f32.mrb[31].mxu0 }
0x244c   : > { %v3658_v37 = vpop.f32.mrb[32].mxu0 }
0x244d   : > { %v9678_v50 = vpop.f32.mrb[33].mxu0 }
0x2450   : > { %v3740_v44 = vpop.f32.mrb[34].mxu0 }
0x2451   : > { %v9685_v27 = vpop.f32.mrb[35].mxu0 }
0x2459   : > { %v9690_v48 = vpop.f32.mrb[36].mxu0 }
0x245a   : > { %v3816_v60 = vpop.f32.mrb[37].mxu0 }
0x245b   : > { %v10345_v5 = vpack.c.bf16 %v9690_v48, %v3816_v60 }
0x245d   : > { %10346 = vmatpush3.bf16.msra.mxu0 %v10345_v5 }
0x245e   : > { %10347 = vmatprep.subr.bf16.mxu0 %v12389_v31 }
0x2460   : > { %9696 = vmatmul.mubr.msk.f32.vlgmr.msra.gmra.mrb[38].mxu0 %vm838_vm0, %v3740_v44 }
0x2461   : > { %10349 = vmatpush3.bf16.msra.mxu0 %v11243_v38  ;;  %9711 = vmatprep.mubr.msk.f32.mxu0 %vm10884_vm10, %v12388_v24 }
0x2462   : > { %10350 = vmatprep.subr.bf16.mxu0 %v12389_v31 }
0x2465   : > { %10352 = vmatpush3.bf16.msra.mxu0 %v11249_v40 }
0x2466   : > { %10401 = vmatprep.subr.bf16.mxu0 %v12389_v31 }
0x2533   : > { %v3894_v14 = vpop.f32.mrb[38].mxu0 }
0x2534   : > { %vm3898_vm13 = vcmp.ne.f32.partialorder %v3894_v14, 0.0  ;;  %v9697_v57 = vpop.f32.mrb[39].mxu0  ;;  %v11723_v14 = vld [vmem:[%s12331_s11] ss:$0 sm:$0xff] }
0x2535   : > { %v8955_v18 = vsel %vm3898_vm13, 1.0, %v12388_v24  ;;  %vm12392_vm13 = vmmov %vm12391_vm7 }
0x2536   : > { %v3901_v2 = vsel %vm1909_vm1, %v8955_v18, 0.0 }
0x2537   : > { %3902 = vadd.xlane.f32.xlu0 %v3901_v2 }
0x254d   : > { %3664 = vperm.xlu0 %10744, %v3588_v23  }
0x25c4   : > { %v3903_v54 = vpop.xlane.xlu0 %3902 }
0x25c5   : > { %10788 = vrcp.f32 %v3903_v54  ;;  %vm3904_vm11 = vcmp.gt.f32.partialorder %v3903_v54, 0.0 }
0x25cc   : > { %v3665_v20 = vpop.permute.xlu0 %3664 }
0x25cd   : > { %v3667_v19 = vmul.f32 %v3665_v20, %v3658_v37 }
0x25cf   : > { %v10789_v52 = vpop.eup %10788  ;;  %9699 = vmatpush3.msra.mxu1 %v3667_v19 }
0x25d0   : > { %v3906_v22 = vsel %vm3904_vm11, %v10789_v52, 0.0  ;;  %10353 = vmatprep.subr.bf16.mxu1 %v12389_v31 }
0x25d1   : > { %v3907_v34 = vmul.f32 %v8955_v18, %v3906_v22 }
0x25d3   : > { %v3908_v50 = vsel %vm1909_vm1, %v3907_v34, 0.0 }
0x25d4   : > { %3909 = vadd.xlane.f32.xlu1 %v3908_v50 }
0x2661   : > { %v3910_v44 = vpop.xlane.xlu1 %3909 }
0x2662   : > { %10790 = vrcp.f32 %v3910_v44  ;;  %vm3911_vm2 = vcmp.gt.f32.partialorder %v3910_v44, 0.0 }
0x266c   : > { %v10791_v27 = vpop.eup %10790 }
0x266d   : > { %v3913_v48 = vsel %vm3911_vm2, %v10791_v27, 0.0 }
0x266e   : > { %v3914_v23 = vmul.f32 %v3913_v48, %v3907_v34 }
0x2670   : > { %9701 = vmatmul.mubr.msk.f32.vlgmr.msra.gmra.mrb[12].mxu1 %vm1909_vm1, %v3914_v23 }
0x2671   : > { %10355 = vmatpush3.bf16.msra.mxu1 %v11271_v0  ;;  %9722 = vmatprep.mubr.msk.f32.mxu1 %vm10884_vm10, %v12388_v24 }
0x2672   : > { %10356 = vmatprep.subr.bf16.mxu1 %v12389_v31 }
0x2675   : > { %10358 = vmatpush3.bf16.msra.mxu1 %v11290_v8 }
0x2676   : > { %10359 = vmatprep.subr.bf16.mxu1 %v12389_v31 }
0x2743   : > { %v3984_v37 = vpop.f32.mrb[12].mxu1 }
0x2744   : > { %v9702_v60 = vpop.f32.mrb[13].mxu1  ;;  %9712 = vmatmul.mubr.msk.f32.vlgmr.msra.gmra.mrb[40].mxu0 %vm1028_vm5, %v3984_v37  ;;  %v11731_v37 = vld [vmem:[%s12332_s12] ss:$0 sm:$0xff] }
0x2745   : > { %10403 = vmatpush3.bf16.msra.mxu0 %v11479_v49  ;;  %9810 = vmatprep.mubr.msk.f32.mxu0 %vm10884_vm10, %v12388_v24 }
0x2746   : > { %10404 = vmatprep.subr.bf16.mxu0 %v12389_v31 }
0x2749   : > { %10406 = vmatpush3.bf16.msra.mxu0 %v11489_v53 }
0x274a   : > { %10407 = vmatprep.subr.bf16.mxu0 %v12389_v31 }
0x2817   : > { %v4057_v5 = vpop.f32.mrb[40].mxu0 }
0x2818   : > { %v4058_v57 = vadd.f32 %v11723_v14, %v4057_v5  ;;  %v9713_v18 = vpop.f32.mrb[41].mxu0  ;;  %v11737_v5 = vld [vmem:[%s12333_s13] ss:$0 sm:$0xff] }
0x281a   : > { %v4061_v2 = vmax.f32 %v4058_v57, 0.0 }
0x281c   : > { %v4062_v54 = vsel %vm1028_vm5, %v4061_v2, 0.0 }
0x281d   : > { %4063 = vadd.xlane.f32.xlu1 %v4062_v54 }
0x28aa   : > { %v4064_v20 = vpop.xlane.xlu1 %4063 }
0x28ab   : > { %v4065_v19 = vmul.f32 0.03125, %v4064_v20 }
0x28ad   : > { %v4066_v52 = vsub.f32 %v4061_v2, %v4065_v19 }
0x28af   : > { %v4067_v22 = vmul.f32 %v4066_v52, %v4066_v52 }
0x28b1   : > { %v4068_v34 = vsel %vm1028_vm5, %v4067_v22, 0.0 }
0x28b2   : > { %4069 = vadd.xlane.f32.xlu1 %v4068_v34 }
0x293f   : > { %v4070_v50 = vpop.xlane.xlu1 %4069 }
0x2940   : > { %v4071_v44 = vmul.f32 0.03125, %v4070_v50 }
0x2942   : > { %v4072_v27 = vadd.f32 1e-05, %v4071_v44 }
0x2944   : > { %10792 = vrsqrt.f32 %v4072_v27 }
0x294e   : > { %v10793_v48 = vpop.eup %10792 }
0x294f   : > { %v4074_v23 = vmul.f32 %v10793_v48, %v4066_v52 }
0x2951   : > { %v4075_v60 = vmul.f32 %v11731_v37, %v4074_v23 }
0x2953   : > { %v4076_v57 = vadd.f32 %v11737_v5, %v4075_v60 }
0x2955   : > { %9723 = vmatmul.mubr.msk.f32.vlgmr.msra.gmra.mrb[14].mxu1 %vm1028_vm5, %v4076_v57  ;;  %v4151_v18 = vrot.slane %v4076_v57, 1  ;;  %v4225_v2 = vrot.slane %v4076_v57, 2  ;;  %v4299_v54 = vrot.slane %v4076_v57, 3  ;;  %v4373_v20 = vrot.slane %v4076_v57, 4 }
0x2956   : > { %10361 = vmatpush3.bf16.msra.mxu1 %v11323_v25  ;;  %9733 = vmatprep.mubr.msk.f32.mxu1 %vm10884_vm10, %v12388_v24  ;;  %v4447_v19 = vrot.slane %v4076_v57, 5  ;;  %v4521_v52 = vrot.slane %v4076_v57, 6  ;;  %v4595_v22 = vrot.slane %v4076_v57, 7 }
0x2957   : > { %10362 = vmatprep.subr.bf16.mxu1 %v12389_v31 }
0x295a   : > { %10364 = vmatpush3.bf16.msra.mxu1 %v11345_v39 }
0x295b   : > { %10365 = vmatprep.subr.bf16.mxu1 %v12389_v31 }
0x295d   : > { %9734 = vmatmul.mubr.msk.f32.vlgmr.msra.gmra.mrb[14].mxu1 %vm1028_vm5, %v4151_v18 }
0x295e   : > { %10367 = vmatpush3.bf16.msra.mxu1 %v11280_v6  ;;  %9744 = vmatprep.mubr.msk.f32.mxu1 %vm10884_vm10, %v12388_v24 }
0x295f   : > { %10368 = vmatprep.subr.bf16.mxu1 %v12389_v31 }
0x2962   : > { %10370 = vmatpush3.bf16.msra.mxu1 %v11300_v11 }
0x2963   : > { %10371 = vmatprep.subr.bf16.mxu1 %v12389_v31 }
0x2965   : > { %9745 = vmatmul.mubr.msk.f32.vlgmr.msra.gmra.mrb[14].mxu1 %vm1028_vm5, %v4225_v2 }
0x2966   : > { %10373 = vmatpush3.bf16.msra.mxu1 %v11333_v32  ;;  %9755 = vmatprep.mubr.msk.f32.mxu1 %vm10884_vm10, %v12388_v24 }
0x2967   : > { %10374 = vmatprep.subr.bf16.mxu1 %v12389_v31 }
0x296a   : > { %10376 = vmatpush3.bf16.msra.mxu1 %v11352_v42 }
0x296b   : > { %10377 = vmatprep.subr.bf16.mxu1 %v12389_v31 }
0x296d   : > { %9756 = vmatmul.mubr.msk.f32.vlgmr.msra.gmra.mrb[14].mxu1 %vm1028_vm5, %v4299_v54 }
0x296e   : > { %10379 = vmatpush3.bf16.msra.mxu1 %v11367_v47  ;;  %9766 = vmatprep.mubr.msk.f32.mxu1 %vm10884_vm10, %v12388_v24 }
0x296f   : > { %10380 = vmatprep.subr.bf16.mxu1 %v12389_v31 }
0x2972   : > { %10382 = vmatpush3.bf16.msra.mxu1 %v11382_v51 }
0x2973   : > { %10383 = vmatprep.subr.bf16.mxu1 %v12389_v31 }
0x2975   : > { %9767 = vmatmul.mubr.msk.f32.vlgmr.msra.gmra.mrb[14].mxu1 %vm1028_vm5, %v4373_v20 }
0x2976   : > { %10385 = vmatpush3.bf16.msra.mxu1 %v11394_v55  ;;  %9777 = vmatprep.mubr.msk.f32.mxu1 %vm10884_vm10, %v12388_v24 }
0x2977   : > { %10386 = vmatprep.subr.bf16.mxu1 %v12389_v31 }
0x297a   : > { %10388 = vmatpush3.bf16.msra.mxu1 %v11406_v59 }
0x297b   : > { %10389 = vmatprep.subr.bf16.mxu1 %v12389_v31 }
0x297d   : > { %9778 = vmatmul.mubr.msk.f32.vlgmr.msra.gmra.mrb[14].mxu1 %vm1028_vm5, %v4447_v19 }
0x297e   : > { %10391 = vmatpush3.bf16.msra.mxu1 %v11418_v62  ;;  %9788 = vmatprep.mubr.msk.f32.mxu1 %vm10884_vm10, %v12388_v24 }
0x297f   : > { %10392 = vmatprep.subr.bf16.mxu1 %v12389_v31 }
0x2982   : > { %10394 = vmatpush3.bf16.msra.mxu1 %v11430_v12 }
0x2983   : > { %10395 = vmatprep.subr.bf16.mxu1 %v12389_v31 }
0x2985   : > { %9789 = vmatmul.mubr.msk.f32.vlgmr.msra.gmra.mrb[14].mxu1 %vm1028_vm5, %v4521_v52 }
0x2986   : > { %10397 = vmatpush3.bf16.msra.mxu1 %v11442_v13  ;;  %9799 = vmatprep.mubr.msk.f32.mxu1 %vm10884_vm10, %v12388_v24 }
0x2987   : > { %10398 = vmatprep.subr.bf16.mxu1 %v12389_v31 }
0x298a   : > { %10400 = vmatpush3.bf16.msra.mxu1 %v11454_v15 }
0x298b   : > { %9894 = vmatprep.subr.mxu1 %v12388_v24 }
0x298d   : > { %9800 = vmatmul.mubr.msk.f32.vlgmr.msra.gmra.mrb[14].mxu1 %vm1028_vm5, %v4595_v22 }
0x298e   : > { %9896 = vmatprep.mubr.msk.f32.mxu1 %vm10884_vm10, %v12388_v24 }
0x2a60   : > { %v4664_v34 = vpop.f32.mrb[14].mxu1 }
0x2a61   : > { %v10610_v50 = vadd.f32 %v4664_v34, %v11468_v21  ;;  %v9801_v44 = vpop.f32.mrb[15].mxu1 }
0x2a63   : > { %v4669_v27 = vmax.f32 %v10610_v50, 0.0 }
0x2a65   : > { %v4670_v48 = vsel %vm2697_vm14, %v4669_v27, 0.0 }
0x2a66   : > { %4671 = vadd.xlane.f32.xlu1 %v4670_v48 }
0x2af3   : > { %v4672_v23 = vpop.xlane.xlu1 %4671 }
0x2af4   : > { %v4673_v60 = vmul.f32 0.03125, %v4672_v23 }
0x2af6   : > { %v4674_v18 = vsub.f32 %v4669_v27, %v4673_v60 }
0x2af8   : > { %v4675_v2 = vmul.f32 %v4674_v18, %v4674_v18 }
0x2afa   : > { %v4676_v57 = vsel %vm2697_vm14, %v4675_v2, 0.0 }
0x2afb   : > { %4677 = vadd.xlane.f32.xlu1 %v4676_v57 }
0x2b88   : > { %v4678_v54 = vpop.xlane.xlu1 %4677 }
0x2b89   : > { %v4679_v20 = vmul.f32 0.03125, %v4678_v54  ;;  %v8969_v54 = vld [vmem:[%s11030_s7 + $0x28] sm:$0xff] }
0x2b8b   : > { %v4680_v19 = vadd.f32 1e-05, %v4679_v20 }
0x2b8d   : > { %10794 = vrsqrt.f32 %v4680_v19  ;;  %v8970_v19 = vld [vmem:[%s11039_s8 + $0x20] sm:$0xff] }
0x2b97   : > { %v10795_v52 = vpop.eup %10794 }
0x2b98   : > { %v4682_v22 = vmul.f32 %v10795_v52, %v4674_v18  ;;  %v8971_v52 = vld [vmem:[%s11039_s8 + $0x28] sm:$0xff] }
0x2b9a   : > { %v4683_v21 = vmul.f32 %v4682_v22, %v11496_v61  ;;  %v8968_v61 = vld [vmem:[%s11030_s7 + $0x20] sm:$0xff]  ;;  %v10410_v22 = vpack.c.bf16 %v8971_v52, %v8970_v19 }
0x2b9c   : > { %v4684_v34 = vadd.f32 %v4683_v21, %v11501_v3  ;;  %v4853_v3 = vsel %vm838_vm0, %v8968_v61, 0.0 }
0x2b9d   : > { %4854 = vadd.xlane.f32.xlu0 %v4853_v3 }
0x2b9e   : > { %9811 = vmatmul.mubr.msk.f32.vlgmr.msra.gmra.mrb[42].mxu0 %vm1028_vm5, %v4684_v34 }
0x2b9f   : > { %10409 = vmatpush3.bf16.msra.mxu0 %v11526_v45  ;;  %9817 = vmatprep.mubr.msk.f32.mxu0 %vm10884_vm10, %v12388_v24 }
0x2ba0   : > { %10411 = vmatprep.subr.bf16.mxu0 %v10410_v22 }
0x2c2a   : > { %v4855_v34 = vpop.xlane.xlu0 %4854 }
0x2c2b   : > { %10796 = vrcp.f32 %v4855_v34  ;;  %vm4859_vm11 = vcmp.gt.f32.partialorder %v4855_v34, 0.0 }
0x2c71   : > { %v4754_v50 = vpop.f32.mrb[42].mxu0 }
0x2c72   : > { %v4755_v44 = vadd.f32 %v4754_v50, %v11511_v10  ;;  %v9812_v27 = vpop.f32.mrb[43].mxu0  ;;  %v4856_v10 = vsel %vm838_vm0, %v8969_v54, 0.0 }
0x2c74   : > { %v4758_v48 = vmax.f32 %v4755_v44, 0.0 }
0x2c76   : > { %v4759_v23 = vsel %vm12391_vm7, %v4758_v48, 0.0 }
0x2c77   : > { %4760 = vadd.xlane.f32.xlu1 %v4759_v23 }
0x2d04   : > { %v4761_v60 = vpop.xlane.xlu1 %4760 }
0x2d05   : > { %v4762_v18 = vmul.f32 0.0625, %v4761_v60 }
0x2d07   : > { %v4763_v2 = vsub.f32 %v4758_v48, %v4762_v18  ;;  %v10797_v48 = vpop.eup %10796 }
0x2d08   : > { %v4863_v18 = vsel %vm4859_vm11, %v10797_v48, 0.0 }
0x2d09   : > { %v4764_v57 = vmul.f32 %v4763_v2, %v4763_v2 }
0x2d0b   : > { %v4765_v20 = vsel %vm12392_vm13, %v4764_v57, 0.0 }
0x2d0c   : > { %4766 = vadd.xlane.f32.xlu1 %v4765_v20 }
0x2d10   : > { %4857 = vadd.xlane.f32.xlu1 %v4856_v10  ;;  %v11812_v10 = vmul.f32 %v8968_v61, %v4863_v18 }
0x2d99   : > { %v4767_v21 = vpop.xlane.xlu1 %4766 }
0x2d9a   : > { %v4768_v50 = vmul.f32 0.0625, %v4767_v21 }
0x2d9c   : > { %v4769_v44 = vadd.f32 1e-05, %v4768_v50 }
0x2d9d   : > { %v4858_v27 = vpop.xlane.xlu1 %4857 }
0x2d9e   : > { %10798 = vrsqrt.f32 %v4769_v44  ;;  %vm4860_vm2 = vcmp.gt.f32.partialorder %v4858_v27, 0.0 }
0x2d9f   : > { %10800 = vrcp.f32 %v4858_v27 }
0x2da8   : > { %v10799_v23 = vpop.eup %10798 }
0x2da9   : > { %v4771_v3 = vmul.f32 %v10799_v23, %v4763_v2  ;;  %v10801_v60 = vpop.eup %10800 }
0x2daa   : > { %v4864_v19 = vsel %vm4860_vm2, %v10801_v60, 0.0 }
0x2dab   : > { %v4772_v57 = vmul.f32 %v4771_v3, %v11534_v7  ;;  %v11817_v52 = vmul.f32 %v8969_v54, %v4864_v19  ;;  %v11828_v7 = vld [vmem:[%s12343_s23] sm:$0x1] }
0x2dac   : > { %v2874_v54 = vadd.f32 %v11561_v30, %v11828_v7 }
0x2dad   : > { %v4773_v20 = vadd.f32 %v4772_v57, %v11539_v16 }
0x2daf   : > { %9818 = vmatmul.mubr.msk.f32.vlgmr.msra.gmra.mrb[44].mxu0 %vm838_vm0, %v4773_v20 }
0x2db0   : > { %10413 = vmatpush3.bf16.msra.mxu0 %v10410_v22  ;;  %9824 = vmatprep.mubr.msk.f32.mxu0 %vm838_vm0, %v11812_v10 }
0x2db1   : > { %9827 = vmatprep.subr.msk.mxu0 %vm947_vm3, %v11553_v26 }
0x2db3   : > { %9825 = vmatmul.mubr.msk.f32.vlgmr.msra.gmra.mrb[46].mxu0 %vm838_vm0, %v11817_v52 }
0x2db4   : > { %9828 = vmatpush3.msk.msra.mxu0 %vm947_vm3, %v11553_v26 }
0x2e82   : > { %v4843_v16 = vpop.f32.mrb[44].mxu0 }
0x2e83   : > { %v4844_v61 = vadd.f32 %v4843_v16, %v11828_v7  ;;  %v9819_v2 = vpop.f32.mrb[45].mxu0 }
0x2e85   : > { %v8788_v22 = vrot.slane %v4844_v61, 7 }
0x2e86   : > { %v9826_v21 = vpop.f32.mrb[46].mxu0 }
0x2e87   : > { %v11834_v34 = vsel %vm947_vm3, %v2874_v54, %v8788_v22  ;;  %v4939_v50 = vpop.f32.mrb[47].mxu0 }
0x2e88   : > { %9829 = vmatprep.mubr.msk.f32.mxu0 %vm940_vm4, %v4939_v50 }
0x2e89   : > { %9830 = vmatmul.mubr.msk.f32.vlgmr.msra.gmra.mrb[48].mxu0 %vm940_vm4, %v9826_v21 }
0x2e8a   : > { %9836 = vmatprep.mubr.msk.f32.mxu0 %vm838_vm0, %v11812_v10 }
0x2f5c   : > { %v9831_v26 = vpop.f32.mrb[48].mxu0 }
0x2f5d   : > { %v5020_v44 = vpop.f32.mrb[49].mxu0  ;;  %v5026_v27 = vadd.f32 %v11570_v46, %v9831_v26 }
0x2f5e   : > { %v5021_v48 = vadd.f32 %v11570_v46, %v5020_v44 }
0x2f5f   : > { %v5030_v23 = vmax.f32 %v5026_v27, 0.0 }
0x2f60   : > { %v5029_v30 = vmax.f32 %v5021_v48, 0.0 }
0x2f61   : > { %v5034_v60 = vsel %vm1028_vm5, %v5030_v23, 0.0 }
0x2f62   : > { %v5031_v3 = vsel %vm1028_vm5, %v5029_v30, 0.0 }
0x2f63   : > { %5032 = vadd.xlane.f32.xlu1 %v5031_v3 }
0x2f67   : > { %5035 = vadd.xlane.f32.xlu1 %v5034_v60 }
0x2ff0   : > { %v5033_v18 = vpop.xlane.xlu1 %5032 }
0x2ff1   : > { %v5037_v57 = vmul.f32 0.03125, %v5033_v18 }
0x2ff3   : > { %v5039_v20 = vsub.f32 %v5029_v30, %v5037_v57 }
0x2ff4   : > { %v5036_v19 = vpop.xlane.xlu1 %5035 }
0x2ff5   : > { %v5038_v16 = vmul.f32 0.03125, %v5036_v19  ;;  %v5041_v61 = vmul.f32 %v5039_v20, %v5039_v20 }
0x2ff7   : > { %v5040_v2 = vsub.f32 %v5030_v23, %v5038_v16  ;;  %v5043_v54 = vsel %vm1028_vm5, %v5041_v61, 0.0 }
0x2ff8   : > { %5044 = vadd.xlane.f32.xlu1 %v5043_v54 }
0x2ff9   : > { %v5042_v22 = vmul.f32 %v5040_v2, %v5040_v2 }
0x2ffb   : > { %v5046_v46 = vsel %vm1028_vm5, %v5042_v22, 0.0 }
0x2ffc   : > { %5047 = vadd.xlane.f32.xlu1 %v5046_v46 }
0x3085   : > { %v5045_v21 = vpop.xlane.xlu1 %5044 }
0x3086   : > { %v5049_v50 = vmul.f32 0.03125, %v5045_v21 }
0x3088   : > { %v5051_v26 = vadd.f32 1e-05, %v5049_v50 }
0x3089   : > { %v5048_v44 = vpop.xlane.xlu1 %5047 }
0x308a   : > { %10802 = vrsqrt.f32 %v5051_v26  ;;  %v5050_v27 = vmul.f32 0.03125, %v5048_v44 }
0x308c   : > { %v5052_v48 = vadd.f32 1e-05, %v5050_v27 }
0x308e   : > { %10804 = vrsqrt.f32 %v5052_v48 }
0x3094   : > { %v10803_v30 = vpop.eup %10802 }
0x3095   : > { %v5055_v3 = vmul.f32 %v10803_v30, %v5039_v20 }
0x3097   : > { %v5057_v23 = vmul.f32 %v11581_v56, %v5055_v3 }
0x3098   : > { %v10805_v60 = vpop.eup %10804 }
0x3099   : > { %v5056_v18 = vmul.f32 %v10805_v60, %v5040_v2  ;;  %v5059_v19 = vadd.f32 %v11588_v17, %v5057_v23 }
0x309b   : > { %v5058_v57 = vmul.f32 %v11581_v56, %v5056_v18 }
0x309d   : > { %v5060_v16 = vadd.f32 %v11588_v17, %v5058_v57 }
0x309f   : > { %v10414_v61 = vpack.c.bf16 %v5060_v16, %v5059_v19 }
0x30a1   : > { %10415 = vmatprep.subr.bf16.mxu0 %v10414_v61 }
0x30a2   : > { %10417 = vmatpush3.bf16.msra.mxu0 %v10414_v61 }
0x30a3   : > { %10419 = vmatprep.subr.bf16.mxu0 %v11076_v41 }
0x30a5   : > { %9837 = vmatmul.mubr.msk.f32.vlgmr.msra.gmra.mrb[50].mxu0 %vm838_vm0, %v11817_v52 }
0x30a6   : > { %10421 = vmatpush3.bf16.msra.mxu0 %v11076_v41 }
0x30a7   : > { %10423 = vmatprep.subr.bf16.mxu0 %v11081_v43 }
0x30aa   : > { %10425 = vmatpush3.bf16.msra.mxu0 %v11081_v43 }
0x30ab   : > { %10427 = vmatprep.subr.bf16.mxu0 %v11101_v63 }
0x3178   : > { %v9838_v56 = vpop.f32.mrb[50].mxu0 }
0x3179   : > { %v5127_v20 = vpop.f32.mrb[51].mxu0 }
0x317a   : > { %9847 = vmatprep.mubr.msk.f32.mxu0 %vm1028_vm5, %v5127_v20 }
0x317b   : > { %9848 = vmatmul.mubr.msk.f32.vlgmr.msra.gmra.mrb[52].mxu0 %vm1028_vm5, %v9838_v56 }
0x317c   : > { %10429 = vmatpush3.bf16.msra.mxu0 %v11101_v63 }
0x317d   : > { %10431 = vmatprep.subr.bf16.mxu0 %v11113_v4 }
0x3180   : > { %10433 = vmatpush3.bf16.msra.mxu0 %v11113_v4 }
0x3181   : > { %10434 = vmatprep.subr.bf16.mxu0 %v12389_v31 }
0x324e   : > { %v9849_v17 = vpop.f32.mrb[52].mxu0 }
0x324f   : > { %v5214_v2 = vadd.f32 %v11608_v35, %v9849_v17  ;;  %v5208_v54 = vpop.f32.mrb[53].mxu0 }
0x3250   : > { %v5209_v22 = vadd.f32 %v11608_v35, %v5208_v54 }
0x3251   : > { %v5218_v46 = vmax.f32 %v5214_v2, 0.0 }
0x3252   : > { %v5217_v21 = vmax.f32 %v5209_v22, 0.0 }
0x3254   : > { %v11865_v50 = vpack.c.bf16 %v5218_v46, %v5217_v21  ;;  %9858 = vmatprep.mubr.msk.f32.mxu0 %vm1028_vm5, %v5217_v21 }
0x3255   : > { %9859 = vmatmul.mubr.msk.f32.vlgmr.msra.gmra.mrb[54].mxu0 %vm1028_vm5, %v5218_v46 }
0x3256   : > { %9865 = vmatprep.mubr.msk.f32.mxu0 %vm10884_vm10, %v12388_v24 }
0x3328   : > { %v9860_v26 = vpop.f32.mrb[54].mxu0 }
0x3329   : > { %v5297_v44 = vadd.f32 %v11618_v58, %v9860_v26  ;;  %v5291_v27 = vpop.f32.mrb[55].mxu0 }
0x332a   : > { %v5292_v48 = vadd.f32 %v11618_v58, %v5291_v27 }
0x332b   : > { %v8984_v30 = vmul.f32 -1.442695, %v5297_v44 }
0x332c   : > { %v8983_v3 = vmul.f32 -1.442695, %v5292_v48 }
0x332d   : > { %10806 = vpow2.f32 %v8984_v30 }
0x332e   : > { %10808 = vpow2.f32 %v8983_v3 }
0x3337   : > { %v10807_v35 = vpop.eup %10806 }
0x3338   : > { %v10809_v60 = vpop.eup %10808  ;;  %v5307_v18 = vadd.f32 1.0, %v10807_v35 }
0x3339   : > { %v5306_v23 = vadd.f32 1.0, %v10809_v60 }
0x333a   : > { %10810 = vrcp.f32 %v5307_v18 }
0x333b   : > { %10812 = vrcp.f32 %v5306_v23 }
0x3344   : > { %v10811_v57 = vpop.eup %10810 }
0x3345   : > { %v10813_v19 = vpop.eup %10812  ;;  %v5313_v16 = vmax.f32 %v10811_v57, 1e-30 }
0x3346   : > { %v10435_v61 = vpack.c.bf16 %v10811_v57, %v10813_v19  ;;  %v5312_v56 = vmax.f32 %v10813_v19, 1e-30 }
0x3347   : > { %v5317_v20 = vand.u32 4294967280, %v5313_v16 }
0x3348   : > { %10436 = vmatpush3.bf16.msra.mxu0 %v10435_v61  ;;  %v5316_v17 = vand.u32 4294967280, %v5312_v56 }
0x3349   : > { %v5319_v58 = vor.u32 %v5317_v20, %v11131_v33  ;;  %10437 = vmatprep.subr.bf16.mxu0 %v12389_v31 }
0x334a   : > { %v5318_v2 = vor.u32 %v5316_v17, %v11134_v36 }
0x334b   : > { %v5323_v54 = vsel %vm940_vm4, %v5319_v58, -inf }
0x334c   : > { %v5322_v22 = vsel %vm940_vm4, %v5318_v2, -inf }
0x334d   : > { %v5324_v46 = vmax.f32 %v5322_v22, %v5323_v54 }
0x334f   : > { %5325 = vmax.xlane.f32.xlu1 %v5324_v46 }
0x33dc   : > { %v5326_v21 = vpop.xlane.xlu1 %5325 }
0x33dd   : > { %v5327_v26 = vrot.slane %v5326_v21, 4 }
0x33df   : > { %v5328_v44 = vmax.f32 %v5326_v21, %v5327_v26 }
0x33e1   : > { %v5329_v27 = vrot.slane %v5328_v44, 2 }
0x33e3   : > { %v5330_v48 = vmax.f32 %v5328_v44, %v5329_v27 }
0x33e5   : > { %v5331_v30 = vrot.slane %v5330_v48, 1 }
0x33e7   : > { %v5332_v3 = vmax.f32 %v5330_v48, %v5331_v30 }
0x33e9   : > { %10699 = vpush %v5332_v3 }
0x341a   : > { %s10700_s6 = spop %10699 }
0x341b   : > { %v5334_v35 = vstv %s10700_s6 }
0x341c   : > { %v5336_v60 = vand.u32 15, %v5334_v35 }
0x341e   : > { %v5337_v18 = vsub.s32 15, %v5336_v60 }
0x3420   : > { %vm5339_vm7 = vcmp.eq.s32.totalorder %v11125_v28, %v5337_v18  ;;  %vm5340_vm13 = vcmp.eq.s32.totalorder %v11128_v29, %v5337_v18 }
0x3421   : > { %v5341_v23 = vsel %vm5339_vm7, -inf, %v5318_v2  ;;  %v5342_v57 = vsel %vm5340_vm13, -inf, %v5319_v58  ;;  %v5338_v58 = vsel %vm1366_vm8, %v5337_v18, 0 }
0x3422   : > { %v5343_v19 = vsel %vm940_vm4, %v5341_v23, -inf  ;;  %v5344_v16 = vsel %vm940_vm4, %v5342_v57, -inf }
0x3423   : > { %v5345_v61 = vmax.f32 %v5343_v19, %v5344_v16 }
0x3425   : > { %5346 = vmax.xlane.f32.xlu1 %v5345_v61 }
0x34b2   : > { %v5347_v56 = vpop.xlane.xlu1 %5346 }
0x34b3   : > { %v5348_v20 = vrot.slane %v5347_v56, 4 }
0x34b5   : > { %v5349_v17 = vmax.f32 %v5347_v56, %v5348_v20 }
0x34b7   : > { %v5350_v54 = vrot.slane %v5349_v17, 2 }
0x34b9   : > { %v5351_v22 = vmax.f32 %v5349_v17, %v5350_v54 }
0x34bb   : > { %v5352_v46 = vrot.slane %v5351_v22, 1 }
0x34bd   : > { %v5353_v21 = vmax.f32 %v5351_v22, %v5352_v46 }
0x34bf   : > { %10701 = vpush %v5353_v21 }
0x34f0   : > { %s10702_s2 = spop %10701 }
0x34f1   : > { %v5355_v26 = vstv %s10702_s2 }
0x34f2   : > { %v5357_v44 = vand.u32 15, %v5355_v26 }
0x34f4   : > { %v5358_v27 = vsub.s32 15, %v5357_v44 }
0x34f6   : > { %v5359_v2 = vsel %vm1388_vm9, %v5358_v27, %v5338_v58  ;;  %vm5360_vm11 = vcmp.eq.s32.totalorder %v11125_v28, %v5358_v27  ;;  %vm5361_vm2 = vcmp.eq.s32.totalorder %v11128_v29, %v5358_v27 }
0x34f7   : > { %v5362_v48 = vsel %vm5360_vm11, -inf, %v5341_v23  ;;  %v5363_v30 = vsel %vm5361_vm2, -inf, %v5342_v57 }
0x34f8   : > { %v5364_v3 = vsel %vm940_vm4, %v5362_v48, -inf  ;;  %v5365_v35 = vsel %vm940_vm4, %v5363_v30, -inf }
0x34f9   : > { %v5366_v60 = vmax.f32 %v5364_v3, %v5365_v35 }
0x34fb   : > { %5367 = vmax.xlane.f32.xlu0 %v5366_v60 }
0x3588   : > { %v5368_v19 = vpop.xlane.xlu0 %5367 }
0x3589   : > { %v5369_v16 = vrot.slane %v5368_v19, 4 }
0x358b   : > { %v5370_v61 = vmax.f32 %v5368_v19, %v5369_v16 }
0x358d   : > { %v5371_v56 = vrot.slane %v5370_v61, 2 }
0x358f   : > { %v5372_v18 = vmax.f32 %v5370_v61, %v5371_v56 }
0x3591   : > { %v5373_v20 = vrot.slane %v5372_v18, 1 }
0x3593   : > { %v5374_v17 = vmax.f32 %v5372_v18, %v5373_v20 }
0x3595   : > { %10703 = vpush %v5374_v17 }
0x35c6   : > { %s10704_s30 = spop %10703 }
0x35c7   : > { %v5376_v54 = vstv %s10704_s30 }
0x35c8   : > { %v5378_v22 = vand.u32 15, %v5376_v54 }
0x35ca   : > { %v5379_v46 = vsub.s32 15, %v5378_v22 }
0x35cc   : > { %v5380_v23 = vsel %vm1410_vm12, %v5379_v46, %v5359_v2  ;;  %vm5381_vm7 = vcmp.eq.s32.totalorder %v11125_v28, %v5379_v46  ;;  %vm5382_vm13 = vcmp.eq.s32.totalorder %v11128_v29, %v5379_v46 }
0x35cd   : > { %v5383_v57 = vsel %vm5381_vm7, -inf, %v5362_v48  ;;  %v5384_v21 = vsel %vm5382_vm13, -inf, %v5363_v30 }
0x35ce   : > { %v5385_v26 = vsel %vm940_vm4, %v5383_v57, -inf  ;;  %v5386_v44 = vsel %vm940_vm4, %v5384_v21, -inf }
0x35cf   : > { %v5387_v27 = vmax.f32 %v5385_v26, %v5386_v44 }
0x35d1   : > { %5388 = vmax.xlane.f32.xlu1 %v5387_v27 }
0x365e   : > { %v5389_v58 = vpop.xlane.xlu1 %5388 }
0x365f   : > { %v5390_v3 = vrot.slane %v5389_v58, 4 }
0x3661   : > { %v5391_v35 = vmax.f32 %v5389_v58, %v5390_v3 }
0x3663   : > { %v5392_v60 = vrot.slane %v5391_v35, 2 }
0x3665   : > { %v5393_v19 = vmax.f32 %v5391_v35, %v5392_v60 }
0x3667   : > { %v5394_v16 = vrot.slane %v5393_v19, 1 }
0x3669   : > { %v5395_v61 = vmax.f32 %v5393_v19, %v5394_v16 }
0x366b   : > { %10705 = vpush %v5395_v61 }
0x369c   : > { %s10706_s3 = spop %10705 }
0x369d   : > { %v5397_v2 = vstv %s10706_s3 }
0x369e   : > { %v5399_v56 = vand.u32 15, %v5397_v2 }
0x36a0   : > { %v5400_v18 = vsub.s32 15, %v5399_v56 }
0x36a2   : > { %v5401_v48 = vsel %vm1432_vm15, %v5400_v18, %v5380_v23  ;;  %vm5402_vm11 = vcmp.eq.s32.totalorder %v11125_v28, %v5400_v18  ;;  %vm5403_vm2 = vcmp.eq.s32.totalorder %v11128_v29, %v5400_v18 }
0x36a3   : > { %v5404_v30 = vsel %vm5402_vm11, -inf, %v5383_v57  ;;  %v5405_v20 = vsel %vm5403_vm2, -inf, %v5384_v21  ;;  %vm12393_vm11 = vcmp.eq.s32.totalorder %v11125_v28, 5 }
0x36a4   : > { %v5406_v17 = vsel %vm940_vm4, %v5404_v30, -inf  ;;  %v5407_v54 = vsel %vm940_vm4, %v5405_v20, -inf }
0x36a5   : > { %v5408_v22 = vmax.f32 %v5406_v17, %v5407_v54 }
0x36a7   : > { %5409 = vmax.xlane.f32.xlu0 %v5408_v22 }
0x3734   : > { %v5410_v46 = vpop.xlane.xlu0 %5409 }
0x3735   : > { %v5411_v26 = vrot.slane %v5410_v46, 4 }
0x3737   : > { %v5412_v44 = vmax.f32 %v5410_v46, %v5411_v26 }
0x3739   : > { %v5413_v27 = vrot.slane %v5412_v44, 2 }
0x373b   : > { %v5414_v58 = vmax.f32 %v5412_v44, %v5413_v27 }
0x373d   : > { %v5415_v3 = vrot.slane %v5414_v58, 1 }
0x373f   : > { %v5416_v35 = vmax.f32 %v5414_v58, %v5415_v3 }
0x3741   : > { %10707 = vpush %v5416_v35 }
0x3772   : > { %s10708_s10 = spop %10707 }
0x3773   : > { %v5418_v23 = vstv %s10708_s10 }
0x3774   : > { %v5420_v60 = vand.u32 15, %v5418_v23 }
0x3776   : > { %v5421_v19 = vsub.s32 15, %v5420_v60 }
0x3778   : > { %v5422_v57 = vsel %vm1454_vm6, %v5421_v19, %v5401_v48  ;;  %vm5423_vm7 = vcmp.eq.s32.totalorder %v11125_v28, %v5421_v19  ;;  %vm5424_vm13 = vcmp.eq.s32.totalorder %v11128_v29, %v5421_v19 }
0x3779   : > { %v5425_v21 = vsel %vm5423_vm7, -inf, %v5404_v30  ;;  %v5426_v16 = vsel %vm5424_vm13, -inf, %v5405_v20  ;;  %vm12394_vm13 = vcmp.eq.s32.totalorder %v11125_v28, 6 }
0x377a   : > { %v5427_v61 = vsel %vm940_vm4, %v5425_v21, -inf  ;;  %v5428_v2 = vsel %vm940_vm4, %v5426_v16, -inf }
0x377b   : > { %v5429_v56 = vmax.f32 %v5427_v61, %v5428_v2 }
0x377d   : > { %5430 = vmax.xlane.f32.xlu1 %v5429_v56 }
0x380a   : > { %v5431_v18 = vpop.xlane.xlu1 %5430 }
0x380b   : > { %v5432_v17 = vrot.slane %v5431_v18, 4 }
0x380d   : > { %v5433_v54 = vmax.f32 %v5431_v18, %v5432_v17 }
0x380f   : > { %v5434_v22 = vrot.slane %v5433_v54, 2 }
0x3811   : > { %v5435_v46 = vmax.f32 %v5433_v54, %v5434_v22 }
0x3813   : > { %v5436_v26 = vrot.slane %v5435_v46, 1 }
0x3815   : > { %v5437_v44 = vmax.f32 %v5435_v46, %v5436_v26 }
0x3817   : > { %10709 = vpush %v5437_v44 }
0x3848   : > { %s10710_s24 = spop %10709 }
0x3849   : > { %v5439_v48 = vstv %s10710_s24 }
0x384a   : > { %v5441_v27 = vand.u32 15, %v5439_v48 }
0x384c   : > { %v5442_v58 = vsub.s32 15, %v5441_v27 }
0x384e   : > { %v5443_v30 = vsel %vm12393_vm11, %v5442_v58, %v5422_v57  ;;  %vm5444_vm2 = vcmp.eq.s32.totalorder %v11125_v28, %v5442_v58  ;;  %vm5445_vm7 = vcmp.eq.s32.totalorder %v11128_v29, %v5442_v58 }
0x384f   : > { %v5446_v20 = vsel %vm5444_vm2, -inf, %v5425_v21  ;;  %v5447_v3 = vsel %vm5445_vm7, -inf, %v5426_v16  ;;  %vm12395_vm7 = vcmp.eq.s32.totalorder %v11125_v28, 7 }
0x3850   : > { %v5448_v35 = vsel %vm940_vm4, %v5446_v20, -inf  ;;  %v5449_v23 = vsel %vm940_vm4, %v5447_v3, -inf }
0x3851   : > { %v5450_v60 = vmax.f32 %v5448_v35, %v5449_v23 }
0x3853   : > { %5451 = vmax.xlane.f32.xlu0 %v5450_v60 }
0x38e0   : > { %v5452_v19 = vpop.xlane.xlu0 %5451 }
0x38e1   : > { %v5453_v61 = vrot.slane %v5452_v19, 4 }
0x38e3   : > { %v5454_v2 = vmax.f32 %v5452_v19, %v5453_v61 }
0x38e5   : > { %v5455_v56 = vrot.slane %v5454_v2, 2 }
0x38e7   : > { %v5456_v18 = vmax.f32 %v5454_v2, %v5455_v56 }
0x38e9   : > { %v5457_v17 = vrot.slane %v5456_v18, 1 }
0x38eb   : > { %v5458_v54 = vmax.f32 %v5456_v18, %v5457_v17 }
0x38ed   : > { %10711 = vpush %v5458_v54 }
0x391e   : > { %s10712_s27 = spop %10711 }
0x391f   : > { %v5460_v57 = vstv %s10712_s27 }
0x3920   : > { %v5462_v22 = vand.u32 15, %v5460_v57 }
0x3922   : > { %v5463_v46 = vsub.s32 15, %v5462_v22 }
0x3924   : > { %v5464_v21 = vsel %vm12394_vm13, %v5463_v46, %v5443_v30  ;;  %vm5465_vm11 = vcmp.eq.s32.totalorder %v11125_v28, %v5463_v46  ;;  %vm5466_vm2 = vcmp.eq.s32.totalorder %v11128_v29, %v5463_v46 }
0x3925   : > { %v5467_v16 = vsel %vm5465_vm11, -inf, %v5446_v20  ;;  %v5468_v26 = vsel %vm5466_vm2, -inf, %v5447_v3  ;;  %vm5639_vm11 = vcmp.ne.f32.partialorder %v11817_v52, 0.0  ;;  %vm5638_vm2 = vcmp.ne.f32.partialorder %v11812_v10, 0.0 }
0x3926   : > { %v5469_v44 = vsel %vm940_vm4, %v5467_v16, -inf  ;;  %v5470_v48 = vsel %vm940_vm4, %v5468_v26, -inf  ;;  %v8989_v10 = vsel %vm5639_vm11, 1.0, %v12388_v24 }
0x3927   : > { %v5471_v27 = vmax.f32 %v5469_v44, %v5470_v48 }
0x3929   : > { %5472 = vmax.xlane.f32.xlu1 %v5471_v27 }
0x39b6   : > { %v5473_v58 = vpop.xlane.xlu1 %5472 }
0x39b7   : > { %v5474_v35 = vrot.slane %v5473_v58, 4 }
0x39b9   : > { %v5475_v23 = vmax.f32 %v5473_v58, %v5474_v35 }
0x39bb   : > { %v5476_v60 = vrot.slane %v5475_v23, 2 }
0x39bd   : > { %v5477_v19 = vmax.f32 %v5475_v23, %v5476_v60 }
0x39bf   : > { %v5478_v61 = vrot.slane %v5477_v19, 1 }
0x39c1   : > { %v5479_v2 = vmax.f32 %v5477_v19, %v5478_v61 }
0x39c3   : > { %10713 = vpush %v5479_v2 }
0x39f4   : > { %s10714_s26 = spop %10713 }
0x39f5   : > { %v5481_v30 = vstv %s10714_s26 }
0x39f6   : > { %v5483_v56 = vand.u32 15, %v5481_v30 }
0x39f8   : > { %v5484_v18 = vsub.s32 15, %v5483_v56 }
0x39fa   : > { %v5485_v20 = vsel %vm12395_vm7, %v5484_v18, %v5464_v21  ;;  %vm10441_vm7 = vmpackc.low %vm5639_vm11, %vm5638_vm2 }
0x39fb   : > { %vm5486_vm13 = vcmp.eq.s32.totalorder %v11196_v1, %v5485_v20 }
0x39fc   : > { %v8985_v3 = vsel %vm5486_vm13, 1.0, %v12388_v24 }
0x39fd   : > { %9866 = vmatmul.mubr.msk.f32.vlgmr.msra.gmra.mrb[56].mxu0 %vm838_vm0, %v8985_v3 }
0x39fe   : > { %10439 = vmatpush3.bf16.msra.mxu0 %v11865_v50  ;;  %9872 = vmatprep.mubr.msk.f32.mxu0 %vm10884_vm10, %v12388_v24  ;;  %v8988_v50 = vsel %vm5638_vm2, 1.0, %v12388_v24 }
0x39ff   : > { %10440 = vmatprep.subr.bf16.mxu0 %v12389_v31 }
0x3a01   : > { %9873 = vmatmul.mubr.msk.f32.vlgmr.msra.gmra.mrb[58].mxu0 %vm838_vm0, %v8985_v3 }
0x3a02   : > { %10442 = vmatpush3.bf16.msk.msra.mxu0 %vm10441_vm7, %v12390_v9  ;;  %9879 = vmatprep.mubr.msk.f32.mxu0 %vm10884_vm10, %v12388_v24  ;;  %vm12396_vm7 = vcmask 122880  }
0x3a03   : > { %9882 = vmatprep.subr.msk.mxu0 %vm838_vm0, %v8985_v3 }
0x3a05   : > { %9880 = vmatmul.mubr.msk.f32.vlgmr.msra.gmra.mrb[60].mxu0 %vm838_vm0, %v8985_v3 }
0x3a06   : > { %9884 = vmatprep.mubr.msk.f32.mxu0 %vm838_vm0, %v8988_v50 }
0x3a0b   : > { %9883 = vmatpush3.xpose.msk.msra.mxu0 %vm838_vm0, %v8985_v3 }
0x3a0c   : > { %10443 = vmatprep.subr.bf16.mxu0 %v12389_v31 }
0x3a0e   : > { %9885 = vmatmul.mubr.msk.f32.vlgmr.msra.gmra.mrb[62].mxu0 %vm838_vm0, %v8989_v10 }
0x3a0f   : > { %9891 = vmatprep.mubr.msk.f32.mxu0 %vm10884_vm10, %v12388_v24 }
0x3ad0   : > { %v5558_v52 = vpop.f32.mrb[56].mxu0 }
0x3ad1   : > { %v9867_v17 = vpop.f32.mrb[57].mxu0 }
0x3ad4   : > { %v5628_v54 = vpop.f32.mrb[58].mxu0 }
0x3ad5   : > { %v9874_v57 = vpop.f32.mrb[59].mxu0 }
0x3ad8   : > { %v5710_v22 = vpop.f32.mrb[60].mxu0 }
0x3ad9   : > { %v9881_v46 = vpop.f32.mrb[61].mxu0 }
0x3ae1   : > { %v9886_v21 = vpop.f32.mrb[62].mxu0 }
0x3ae2   : > { %v5786_v16 = vpop.f32.mrb[63].mxu0 }
0x3ae3   : > { %v10444_v26 = vpack.c.bf16 %v9886_v21, %v5786_v16 }
0x3ae5   : > { %10445 = vmatpush3.bf16.msra.mxu0 %v10444_v26 }
0x3ae6   : > { %10446 = vmatprep.subr.bf16.mxu0 %v12389_v31 }
0x3ae8   : > { %9892 = vmatmul.mubr.msk.f32.vlgmr.msra.gmra.mrb[64].mxu0 %vm838_vm0, %v5710_v22 }
0x3ae9   : > { %10448 = vmatpush3.bf16.msra.mxu0 %v11243_v38  ;;  %9907 = vmatprep.mubr.msk.f32.mxu0 %vm10884_vm10, %v12388_v24 }
0x3aea   : > { %10449 = vmatprep.subr.bf16.mxu0 %v12389_v31 }
0x3aed   : > { %10451 = vmatpush3.bf16.msra.mxu0 %v11249_v40 }
0x3aee   : > { %10500 = vmatprep.subr.bf16.mxu0 %v12389_v31 }
0x3bbb   : > { %v5864_v44 = vpop.f32.mrb[64].mxu0 }
0x3bbc   : > { %vm5868_vm13 = vcmp.ne.f32.partialorder %v5864_v44, 0.0  ;;  %v9893_v48 = vpop.f32.mrb[65].mxu0 }
0x3bbd   : > { %v8997_v27 = vsel %vm5868_vm13, 1.0, %v12388_v24  ;;  %vm12397_vm13 = vmmov %vm12396_vm7 }
0x3bbe   : > { %v5871_v58 = vsel %vm1909_vm1, %v8997_v27, 0.0 }
0x3bbf   : > { %5872 = vadd.xlane.f32.xlu0 %v5871_v58 }
0x3bd5   : > { %5634 = vperm.xlu0 %10744, %v5558_v52  }
0x3c4c   : > { %v5873_v35 = vpop.xlane.xlu0 %5872 }
0x3c4d   : > { %10814 = vrcp.f32 %v5873_v35  ;;  %vm5874_vm11 = vcmp.gt.f32.partialorder %v5873_v35, 0.0 }
0x3c54   : > { %v5635_v23 = vpop.permute.xlu0 %5634 }
0x3c55   : > { %v5637_v60 = vmul.f32 %v5635_v23, %v5628_v54 }
0x3c57   : > { %v10815_v19 = vpop.eup %10814  ;;  %9895 = vmatpush3.msra.mxu1 %v5637_v60 }
0x3c58   : > { %v5876_v61 = vsel %vm5874_vm11, %v10815_v19, 0.0  ;;  %10452 = vmatprep.subr.bf16.mxu1 %v12389_v31 }
0x3c59   : > { %v5877_v2 = vmul.f32 %v8997_v27, %v5876_v61 }
0x3c5b   : > { %v5878_v30 = vsel %vm1909_vm1, %v5877_v2, 0.0 }
0x3c5c   : > { %5879 = vadd.xlane.f32.xlu1 %v5878_v30 }
0x3ce9   : > { %v5880_v56 = vpop.xlane.xlu1 %5879 }
0x3cea   : > { %10816 = vrcp.f32 %v5880_v56  ;;  %vm5881_vm2 = vcmp.gt.f32.partialorder %v5880_v56, 0.0 }
0x3cf4   : > { %v10817_v18 = vpop.eup %10816 }
0x3cf5   : > { %v5883_v20 = vsel %vm5881_vm2, %v10817_v18, 0.0 }
0x3cf6   : > { %v5884_v3 = vmul.f32 %v5883_v20, %v5877_v2  ;;  %v12031_v20 = vld [vmem:[%s12335_s15] sm:$0x1] }
0x3cf8   : > { %9897 = vmatmul.mubr.msk.f32.vlgmr.msra.gmra.mrb[16].mxu1 %vm1909_vm1, %v5884_v3 }
0x3cf9   : > { %10454 = vmatpush3.bf16.msra.mxu1 %v11271_v0  ;;  %9918 = vmatprep.mubr.msk.f32.mxu1 %vm10884_vm10, %v12388_v24 }
0x3cfa   : > { %10455 = vmatprep.subr.bf16.mxu1 %v12389_v31 }
0x3cfd   : > { %10457 = vmatpush3.bf16.msra.mxu1 %v11290_v8 }
0x3cfe   : > { %10458 = vmatprep.subr.bf16.mxu1 %v12389_v31 }
0x3dcb   : > { %v5954_v50 = vpop.f32.mrb[16].mxu1 }
0x3dcc   : > { %v9898_v10 = vpop.f32.mrb[17].mxu1  ;;  %9908 = vmatmul.mubr.msk.f32.vlgmr.msra.gmra.mrb[66].mxu0 %vm1028_vm5, %v5954_v50 }
0x3dcd   : > { %10502 = vmatpush3.bf16.msra.mxu0 %v11479_v49  ;;  %10006 = vmatprep.mubr.msk.f32.mxu0 %vm10884_vm10, %v12388_v24 }
0x3dce   : > { %10503 = vmatprep.subr.bf16.mxu0 %v12389_v31 }
0x3dd1   : > { %10505 = vmatpush3.bf16.msra.mxu0 %v11489_v53 }
0x3dd2   : > { %10506 = vmatprep.subr.bf16.mxu0 %v12389_v31 }
0x3e9f   : > { %v6027_v52 = vpop.f32.mrb[66].mxu0 }
0x3ea0   : > { %v6028_v17 = vadd.f32 %v11723_v14, %v6027_v52  ;;  %v9909_v54 = vpop.f32.mrb[67].mxu0 }
0x3ea2   : > { %v6031_v57 = vmax.f32 %v6028_v17, 0.0 }
0x3ea4   : > { %v6032_v22 = vsel %vm1028_vm5, %v6031_v57, 0.0 }
0x3ea5   : > { %6033 = vadd.xlane.f32.xlu1 %v6032_v22 }
0x3f32   : > { %v6034_v46 = vpop.xlane.xlu1 %6033 }
0x3f33   : > { %v6035_v21 = vmul.f32 0.03125, %v6034_v46 }
0x3f35   : > { %v6036_v16 = vsub.f32 %v6031_v57, %v6035_v21 }
0x3f37   : > { %v6037_v26 = vmul.f32 %v6036_v16, %v6036_v16 }
0x3f39   : > { %v6038_v44 = vsel %vm1028_vm5, %v6037_v26, 0.0 }
0x3f3a   : > { %6039 = vadd.xlane.f32.xlu1 %v6038_v44 }
0x3fc7   : > { %v6040_v48 = vpop.xlane.xlu1 %6039 }
0x3fc8   : > { %v6041_v27 = vmul.f32 0.03125, %v6040_v48 }
0x3fca   : > { %v6042_v58 = vadd.f32 1e-05, %v6041_v27  ;;  %v12039_v27 = vld [vmem:[%s12336_s16] sm:$0x1] }
0x3fcc   : > { %10818 = vrsqrt.f32 %v6042_v58 }
0x3fd6   : > { %v10819_v35 = vpop.eup %10818 }
0x3fd7   : > { %v6044_v23 = vmul.f32 %v10819_v35, %v6036_v16  ;;  %v12045_v35 = vld [vmem:[%s12337_s17] sm:$0x1] }
0x3fd9   : > { %v6045_v14 = vmul.f32 %v11731_v37, %v6044_v23 }
0x3fdb   : > { %v6046_v60 = vadd.f32 %v11737_v5, %v6045_v14 }
0x3fdd   : > { %9919 = vmatmul.mubr.msk.f32.vlgmr.msra.gmra.mrb[18].mxu1 %vm1028_vm5, %v6046_v60  ;;  %v6121_v19 = vrot.slane %v6046_v60, 1  ;;  %v6195_v37 = vrot.slane %v6046_v60, 2  ;;  %v6269_v5 = vrot.slane %v6046_v60, 3  ;;  %v6343_v61 = vrot.slane %v6046_v60, 4 }
0x3fde   : > { %10460 = vmatpush3.bf16.msra.mxu1 %v11323_v25  ;;  %9929 = vmatprep.mubr.msk.f32.mxu1 %vm10884_vm10, %v12388_v24  ;;  %v6417_v2 = vrot.slane %v6046_v60, 5  ;;  %v6491_v30 = vrot.slane %v6046_v60, 6  ;;  %v6565_v56 = vrot.slane %v6046_v60, 7  ;;  %v12055_v60 = vld [vmem:[%s12339_s19] sm:$0x1] }
0x3fdf   : > { %10461 = vmatprep.subr.bf16.mxu1 %v12389_v31 }
0x3fe2   : > { %10463 = vmatpush3.bf16.msra.mxu1 %v11345_v39 }
0x3fe3   : > { %10464 = vmatprep.subr.bf16.mxu1 %v12389_v31 }
0x3fe5   : > { %9930 = vmatmul.mubr.msk.f32.vlgmr.msra.gmra.mrb[18].mxu1 %vm1028_vm5, %v6121_v19 }
0x3fe6   : > { %10466 = vmatpush3.bf16.msra.mxu1 %v11280_v6  ;;  %9940 = vmatprep.mubr.msk.f32.mxu1 %vm10884_vm10, %v12388_v24 }
0x3fe7   : > { %10467 = vmatprep.subr.bf16.mxu1 %v12389_v31 }
0x3fea   : > { %10469 = vmatpush3.bf16.msra.mxu1 %v11300_v11 }
0x3feb   : > { %10470 = vmatprep.subr.bf16.mxu1 %v12389_v31 }
0x3fed   : > { %9941 = vmatmul.mubr.msk.f32.vlgmr.msra.gmra.mrb[18].mxu1 %vm1028_vm5, %v6195_v37 }
0x3fee   : > { %10472 = vmatpush3.bf16.msra.mxu1 %v11333_v32  ;;  %9951 = vmatprep.mubr.msk.f32.mxu1 %vm10884_vm10, %v12388_v24 }
0x3fef   : > { %10473 = vmatprep.subr.bf16.mxu1 %v12389_v31 }
0x3ff2   : > { %10475 = vmatpush3.bf16.msra.mxu1 %v11352_v42 }
0x3ff3   : > { %10476 = vmatprep.subr.bf16.mxu1 %v12389_v31 }
0x3ff5   : > { %9952 = vmatmul.mubr.msk.f32.vlgmr.msra.gmra.mrb[18].mxu1 %vm1028_vm5, %v6269_v5 }
0x3ff6   : > { %10478 = vmatpush3.bf16.msra.mxu1 %v11367_v47  ;;  %9962 = vmatprep.mubr.msk.f32.mxu1 %vm10884_vm10, %v12388_v24 }
0x3ff7   : > { %10479 = vmatprep.subr.bf16.mxu1 %v12389_v31 }
0x3ffa   : > { %10481 = vmatpush3.bf16.msra.mxu1 %v11382_v51 }
0x3ffb   : > { %10482 = vmatprep.subr.bf16.mxu1 %v12389_v31 }
0x3ffd   : > { %9963 = vmatmul.mubr.msk.f32.vlgmr.msra.gmra.mrb[18].mxu1 %vm1028_vm5, %v6343_v61 }
0x3ffe   : > { %10484 = vmatpush3.bf16.msra.mxu1 %v11394_v55  ;;  %9973 = vmatprep.mubr.msk.f32.mxu1 %vm10884_vm10, %v12388_v24 }
0x3fff   : > { %10485 = vmatprep.subr.bf16.mxu1 %v12389_v31 }
0x4002   : > { %10487 = vmatpush3.bf16.msra.mxu1 %v11406_v59 }
0x4003   : > { %10488 = vmatprep.subr.bf16.mxu1 %v12389_v31 }
0x4005   : > { %9974 = vmatmul.mubr.msk.f32.vlgmr.msra.gmra.mrb[18].mxu1 %vm1028_vm5, %v6417_v2  ;;  %v9010_v2 = vld [vmem:[%s11030_s7 + $0x30] sm:$0xff] }
0x4006   : > { %10490 = vmatpush3.bf16.msra.mxu1 %v11418_v62  ;;  %9984 = vmatprep.mubr.msk.f32.mxu1 %vm10884_vm10, %v12388_v24 }
0x4007   : > { %10491 = vmatprep.subr.bf16.mxu1 %v12389_v31 }
0x400a   : > { %10493 = vmatpush3.bf16.msra.mxu1 %v11430_v12 }
0x400b   : > { %10494 = vmatprep.subr.bf16.mxu1 %v12389_v31 }
0x400d   : > { %9985 = vmatmul.mubr.msk.f32.vlgmr.msra.gmra.mrb[18].mxu1 %vm1028_vm5, %v6491_v30  ;;  %v6823_v30 = vsel %vm838_vm0, %v9010_v2, 0.0 }
0x400e   : > { %10496 = vmatpush3.bf16.msra.mxu1 %v11442_v13  ;;  %9995 = vmatprep.mubr.msk.f32.mxu1 %vm10884_vm10, %v12388_v24 }
0x400f   : > { %10497 = vmatprep.subr.bf16.mxu1 %v12389_v31  ;;  %6824 = vadd.xlane.f32.xlu0 %v6823_v30 }
0x4012   : > { %10499 = vmatpush3.bf16.msra.mxu1 %v11454_v15 }
0x4013   : > { %10090 = vmatprep.subr.mxu1 %v12388_v24 }
0x4015   : > { %9996 = vmatmul.mubr.msk.f32.vlgmr.msra.gmra.mrb[18].mxu1 %vm1028_vm5, %v6565_v56 }
0x4016   : > { %10092 = vmatprep.mubr.msk.f32.mxu1 %vm10884_vm10, %v12388_v24 }
0x40e8   : > { %v6634_v18 = vpop.f32.mrb[18].mxu1 }
0x40e9   : > { %v10611_v3 = vadd.f32 %v12031_v20, %v6634_v18  ;;  %v9997_v50 = vpop.f32.mrb[19].mxu1 }
0x40eb   : > { %v6639_v10 = vmax.f32 %v10611_v3, 0.0 }
0x40ed   : > { %v6640_v52 = vsel %vm2697_vm14, %v6639_v10, 0.0 }
0x40ee   : > { %6641 = vadd.xlane.f32.xlu1 %v6640_v52 }
0x417b   : > { %v6642_v17 = vpop.xlane.xlu1 %6641 }
0x417c   : > { %v6643_v54 = vmul.f32 0.03125, %v6642_v17 }
0x417e   : > { %v6644_v57 = vsub.f32 %v6639_v10, %v6643_v54  ;;  %v9011_v10 = vld [vmem:[%s11030_s7 + $0x38] sm:$0xff]  ;;  %v9012_v54 = vld [vmem:[%s11039_s8 + $0x30] sm:$0xff] }
0x417f   : > { %v6826_v17 = vsel %vm838_vm0, %v9011_v10, 0.0 }
0x4180   : > { %v6645_v22 = vmul.f32 %v6644_v57, %v6644_v57 }
0x4182   : > { %v6646_v46 = vsel %vm2697_vm14, %v6645_v22, 0.0 }
0x4183   : > { %6647 = vadd.xlane.f32.xlu1 %v6646_v46 }
0x4210   : > { %v6648_v21 = vpop.xlane.xlu1 %6647 }
0x4211   : > { %v6649_v16 = vmul.f32 0.03125, %v6648_v21  ;;  %v6825_v21 = vpop.xlane.xlu0 %6824 }
0x4212   : > { %vm6829_vm11 = vcmp.gt.f32.partialorder %v6825_v21, 0.0 }
0x4213   : > { %v6650_v26 = vadd.f32 1e-05, %v6649_v16 }
0x4215   : > { %10820 = vrsqrt.f32 %v6650_v26 }
0x4216   : > { %10822 = vrcp.f32 %v6825_v21 }
0x421f   : > { %v10821_v44 = vpop.eup %10820 }
0x4220   : > { %v6652_v48 = vmul.f32 %v10821_v44, %v6644_v57  ;;  %v9013_v57 = vld [vmem:[%s11039_s8 + $0x38] sm:$0xff] }
0x4221   : > { %v10509_v22 = vpack.c.bf16 %v9013_v57, %v9012_v54 }
0x4222   : > { %v6653_v58 = vmul.f32 %v12039_v27, %v6652_v48  ;;  %v10823_v48 = vpop.eup %10822 }
0x4224   : > { %v6654_v23 = vadd.f32 %v12045_v35, %v6653_v58 }
0x4226   : > { %10007 = vmatmul.mubr.msk.f32.vlgmr.msra.gmra.mrb[68].mxu0 %vm1028_vm5, %v6654_v23 }
0x4227   : > { %10508 = vmatpush3.bf16.msra.mxu0 %v11526_v45  ;;  %10013 = vmatprep.mubr.msk.f32.mxu0 %vm10884_vm10, %v12388_v24 }
0x4228   : > { %10510 = vmatprep.subr.bf16.mxu0 %v10509_v22 }
0x42f9   : > { %v6724_v14 = vpop.f32.mrb[68].mxu0 }
0x42fa   : > { %v6725_v19 = vadd.f32 %v12055_v60, %v6724_v14  ;;  %v10008_v37 = vpop.f32.mrb[69].mxu0 }
0x42fb   : > { %v12069_v37 = vld [vmem:[%s12340_s20] sm:$0x1] }
0x42fc   : > { %v6728_v5 = vmax.f32 %v6725_v19, 0.0  ;;  %v6833_v19 = vsel %vm6829_vm11, %v10823_v48, 0.0 }
0x42fe   : > { %v6729_v61 = vsel %vm12396_vm7, %v6728_v5, 0.0  ;;  %vm8797_vm7 = vcmask 1041408  }
0x42ff   : > { %6730 = vadd.xlane.f32.xlu1 %v6729_v61  ;;  %v12075_v61 = vld [vmem:[%s12341_s21] sm:$0x1] }
0x438c   : > { %v6731_v56 = vpop.xlane.xlu1 %6730 }
0x438d   : > { %v6732_v18 = vmul.f32 0.0625, %v6731_v56  ;;  %v12078_v56 = vmul.f32 %v9010_v2, %v6833_v19 }
0x438f   : > { %v6733_v3 = vsub.f32 %v6728_v5, %v6732_v18 }
0x4391   : > { %v6734_v50 = vmul.f32 %v6733_v3, %v6733_v3 }
0x4393   : > { %v6735_v52 = vsel %vm12397_vm13, %v6734_v50, 0.0  ;;  %v10865_v50 = vld [vmem:[%s12379_s5] sm:$0x1] }
0x4394   : > { %6736 = vadd.xlane.f32.xlu1 %v6735_v52 }
0x4398   : > { %6827 = vadd.xlane.f32.xlu1 %v6826_v17 }
0x4421   : > { %v6737_v46 = vpop.xlane.xlu1 %6736 }
0x4422   : > { %v6738_v16 = vmul.f32 0.0625, %v6737_v46 }
0x4424   : > { %v6739_v26 = vadd.f32 1e-05, %v6738_v16 }
0x4425   : > { %v6828_v44 = vpop.xlane.xlu1 %6827 }
0x4426   : > { %10824 = vrsqrt.f32 %v6739_v26  ;;  %vm6830_vm2 = vcmp.gt.f32.partialorder %v6828_v44, 0.0 }
0x4427   : > { %10826 = vrcp.f32 %v6828_v44 }
0x4430   : > { %v10825_v58 = vpop.eup %10824 }
0x4431   : > { %v6741_v23 = vmul.f32 %v10825_v58, %v6733_v3  ;;  %v10827_v14 = vpop.eup %10826 }
0x4432   : > { %v6834_v18 = vsel %vm6830_vm2, %v10827_v14, 0.0 }
0x4433   : > { %v6742_v5 = vmul.f32 %v12069_v37, %v6741_v23  ;;  %v12083_v3 = vmul.f32 %v9011_v10, %v6834_v18 }
0x4435   : > { %v6743_v30 = vadd.f32 %v12075_v61, %v6742_v5 }
0x4437   : > { %10014 = vmatmul.mubr.msk.f32.vlgmr.msra.gmra.mrb[70].mxu0 %vm838_vm0, %v6743_v30 }
0x4438   : > { %10512 = vmatpush3.bf16.msra.mxu0 %v10509_v22  ;;  %10020 = vmatprep.mubr.msk.f32.mxu0 %vm838_vm0, %v12078_v56 }
0x4439   : > { %10023 = vmatprep.subr.msk.mxu0 %vm947_vm3, %v10865_v50 }
0x443b   : > { %10021 = vmatmul.mubr.msk.f32.vlgmr.msra.gmra.mrb[72].mxu0 %vm838_vm0, %v12083_v3 }
0x443c   : > { %10024 = vmatpush3.msk.msra.mxu0 %vm947_vm3, %v10865_v50 }
0x450a   : > { %v6813_v2 = vpop.f32.mrb[70].mxu0 }
0x450b   : > { %v6814_v52 = vadd.f32 %v6813_v2, %v11828_v7  ;;  %v10015_v17 = vpop.f32.mrb[71].mxu0  ;;  %v10866_v7 = vld [vmem:[%s12380_s9] ss:$0 sm:$0xff] }
0x450d   : > { %v8791_v54 = vrot.slane %v6814_v52, 6 }
0x450e   : > { %v10022_v57 = vpop.f32.mrb[72].mxu0 }
0x450f   : > { %v12094_v10 = vsel %vm8797_vm7, %v11834_v34, %v8791_v54  ;;  %v6909_v22 = vpop.f32.mrb[73].mxu0 }
0x4510   : > { %10025 = vmatprep.mubr.msk.f32.mxu0 %vm940_vm4, %v6909_v22 }
0x4511   : > { %10026 = vmatmul.mubr.msk.f32.vlgmr.msra.gmra.mrb[74].mxu0 %vm940_vm4, %v10022_v57 }
0x4512   : > { %10032 = vmatprep.mubr.msk.f32.mxu0 %vm838_vm0, %v12078_v56 }
0x45e4   : > { %v10027_v46 = vpop.f32.mrb[74].mxu0 }
0x45e5   : > { %v6990_v21 = vpop.f32.mrb[75].mxu0  ;;  %v6996_v16 = vadd.f32 %v10866_v7, %v10027_v46 }
0x45e6   : > { %v6991_v26 = vadd.f32 %v10866_v7, %v6990_v21 }
0x45e7   : > { %v7000_v48 = vmax.f32 %v6996_v16, 0.0 }
0x45e8   : > { %v6999_v44 = vmax.f32 %v6991_v26, 0.0 }
0x45e9   : > { %v7004_v58 = vsel %vm1028_vm5, %v7000_v48, 0.0 }
0x45ea   : > { %v7001_v34 = vsel %vm1028_vm5, %v6999_v44, 0.0 }
0x45eb   : > { %7002 = vadd.xlane.f32.xlu1 %v7001_v34 }
0x45ef   : > { %7005 = vadd.xlane.f32.xlu1 %v7004_v58 }
0x4678   : > { %v7003_v23 = vpop.xlane.xlu1 %7002 }
0x4679   : > { %v7007_v14 = vmul.f32 0.03125, %v7003_v23 }
0x467b   : > { %v7009_v19 = vsub.f32 %v6999_v44, %v7007_v14  ;;  %v10868_v14 = vld [vmem:[%s12383_s25] ss:$0 sm:$0xff] }
0x467c   : > { %v7006_v5 = vpop.xlane.xlu1 %7005 }
0x467d   : > { %v7008_v30 = vmul.f32 0.03125, %v7006_v5  ;;  %v7011_v18 = vmul.f32 %v7009_v19, %v7009_v19 }
0x467f   : > { %v7010_v50 = vsub.f32 %v7000_v48, %v7008_v30  ;;  %v7013_v2 = vsel %vm1028_vm5, %v7011_v18, 0.0  ;;  %v10867_v48 = vld [vmem:[%s12382_s29] ss:$0 sm:$0xff] }
0x4680   : > { %7014 = vadd.xlane.f32.xlu1 %v7013_v2 }
0x4681   : > { %v7012_v52 = vmul.f32 %v7010_v50, %v7010_v50 }
0x4683   : > { %v7016_v17 = vsel %vm1028_vm5, %v7012_v52, 0.0 }
0x4684   : > { %7017 = vadd.xlane.f32.xlu1 %v7016_v17 }
0x470d   : > { %v7015_v54 = vpop.xlane.xlu1 %7014 }
0x470e   : > { %v7019_v57 = vmul.f32 0.03125, %v7015_v54 }
0x4710   : > { %v7021_v22 = vadd.f32 1e-05, %v7019_v57 }
0x4711   : > { %v7018_v46 = vpop.xlane.xlu1 %7017 }
0x4712   : > { %10828 = vrsqrt.f32 %v7021_v22  ;;  %v7020_v21 = vmul.f32 0.03125, %v7018_v46 }
0x4714   : > { %v7022_v7 = vadd.f32 1e-05, %v7020_v21 }
0x4716   : > { %10830 = vrsqrt.f32 %v7022_v7 }
0x471c   : > { %v10829_v16 = vpop.eup %10828 }
0x471d   : > { %v7025_v26 = vmul.f32 %v10829_v16, %v7009_v19 }
0x471f   : > { %v7027_v58 = vmul.f32 %v10867_v48, %v7025_v26 }
0x4720   : > { %v10831_v44 = vpop.eup %10830 }
0x4721   : > { %v7026_v34 = vmul.f32 %v10831_v44, %v7010_v50  ;;  %v7029_v5 = vadd.f32 %v10868_v14, %v7027_v58 }
0x4723   : > { %v7028_v23 = vmul.f32 %v10867_v48, %v7026_v34 }
0x4725   : > { %v7030_v30 = vadd.f32 %v10868_v14, %v7028_v23 }
0x4727   : > { %v10513_v18 = vpack.c.bf16 %v7030_v30, %v7029_v5 }
0x4729   : > { %10514 = vmatprep.subr.bf16.mxu0 %v10513_v18 }
0x472a   : > { %10516 = vmatpush3.bf16.msra.mxu0 %v10513_v18 }
0x472b   : > { %10518 = vmatprep.subr.bf16.mxu0 %v11076_v41 }
0x472d   : > { %10033 = vmatmul.mubr.msk.f32.vlgmr.msra.gmra.mrb[76].mxu0 %vm838_vm0, %v12083_v3 }
0x472e   : > { %10520 = vmatpush3.bf16.msra.mxu0 %v11076_v41 }
0x472f   : > { %10522 = vmatprep.subr.bf16.mxu0 %v11081_v43 }
0x4732   : > { %10524 = vmatpush3.bf16.msra.mxu0 %v11081_v43  ;;  %v10869_v43 = vld [vmem:[%s12385_s0] ss:$0 sm:$0xff] }
0x4733   : > { %10526 = vmatprep.subr.bf16.mxu0 %v11101_v63 }
0x4800   : > { %v10034_v19 = vpop.f32.mrb[76].mxu0 }
0x4801   : > { %v7097_v50 = vpop.f32.mrb[77].mxu0 }
0x4802   : > { %10043 = vmatprep.mubr.msk.f32.mxu0 %vm1028_vm5, %v7097_v50 }
0x4803   : > { %10044 = vmatmul.mubr.msk.f32.vlgmr.msra.gmra.mrb[78].mxu0 %vm1028_vm5, %v10034_v19 }
0x4804   : > { %10528 = vmatpush3.bf16.msra.mxu0 %v11101_v63 }
0x4805   : > { %10530 = vmatprep.subr.bf16.mxu0 %v11113_v4 }
0x4808   : > { %10532 = vmatpush3.bf16.msra.mxu0 %v11113_v4  ;;  %v10870_v4 = vld [vmem:[#allocation2] ss:$0 sm:$0xff] }
0x4809   : > { %10533 = vmatprep.subr.bf16.mxu0 %v12389_v31 }
0x48d6   : > { %v10045_v41 = vpop.f32.mrb[78].mxu0 }
0x48d7   : > { %v7184_v2 = vadd.f32 %v10869_v43, %v10045_v41  ;;  %v7178_v52 = vpop.f32.mrb[79].mxu0 }
0x48d8   : > { %v7179_v17 = vadd.f32 %v10869_v43, %v7178_v52 }
0x48d9   : > { %v7188_v54 = vmax.f32 %v7184_v2, 0.0 }
0x48da   : > { %v7187_v57 = vmax.f32 %v7179_v17, 0.0 }
0x48dc   : > { %v12129_v22 = vpack.c.bf16 %v7188_v54, %v7187_v57  ;;  %10054 = vmatprep.mubr.msk.f32.mxu0 %vm1028_vm5, %v7187_v57 }
0x48dd   : > { %10055 = vmatmul.mubr.msk.f32.vlgmr.msra.gmra.mrb[80].mxu0 %vm1028_vm5, %v7188_v54 }
0x48de   : > { %10061 = vmatprep.mubr.msk.f32.mxu0 %vm10884_vm10, %v12388_v24 }
0x49b0   : > { %v10056_v63 = vpop.f32.mrb[80].mxu0 }
0x49b1   : > { %v7267_v46 = vadd.f32 %v10870_v4, %v10056_v63  ;;  %v7261_v21 = vpop.f32.mrb[81].mxu0 }
0x49b2   : > { %v7262_v7 = vadd.f32 %v10870_v4, %v7261_v21 }
0x49b3   : > { %v9026_v16 = vmul.f32 -1.442695, %v7267_v46 }
0x49b4   : > { %v9025_v26 = vmul.f32 -1.442695, %v7262_v7 }
0x49b5   : > { %10832 = vpow2.f32 %v9026_v16 }
0x49b6   : > { %10834 = vpow2.f32 %v9025_v26 }
0x49bf   : > { %v10833_v44 = vpop.eup %10832 }
0x49c0   : > { %v10835_v34 = vpop.eup %10834  ;;  %v7277_v48 = vadd.f32 1.0, %v10833_v44 }
0x49c1   : > { %v7276_v58 = vadd.f32 1.0, %v10835_v34 }
0x49c2   : > { %10836 = vrcp.f32 %v7277_v48 }
0x49c3   : > { %10838 = vrcp.f32 %v7276_v58 }
0x49cc   : > { %v10837_v23 = vpop.eup %10836 }
0x49cd   : > { %v10839_v14 = vpop.eup %10838  ;;  %v7283_v5 = vmax.f32 %v10837_v23, 1e-30 }
0x49ce   : > { %v10534_v30 = vpack.c.bf16 %v10837_v23, %v10839_v14  ;;  %v7282_v18 = vmax.f32 %v10839_v14, 1e-30 }
0x49cf   : > { %v7287_v19 = vand.u32 4294967280, %v7283_v5 }
0x49d0   : > { %10535 = vmatpush3.bf16.msra.mxu0 %v10534_v30  ;;  %v7286_v50 = vand.u32 4294967280, %v7282_v18 }
0x49d1   : > { %v7289_v41 = vor.u32 %v7287_v19, %v11131_v33  ;;  %10536 = vmatprep.subr.bf16.mxu0 %v12389_v31 }
0x49d2   : > { %v7288_v43 = vor.u32 %v7286_v50, %v11134_v36 }
0x49d3   : > { %v7293_v2 = vsel %vm940_vm4, %v7289_v41, -inf }
0x49d4   : > { %v7292_v52 = vsel %vm940_vm4, %v7288_v43, -inf }
0x49d5   : > { %v7294_v17 = vmax.f32 %v7292_v52, %v7293_v2 }
0x49d7   : > { %7295 = vmax.xlane.f32.xlu1 %v7294_v17 }
0x4a64   : > { %v7296_v54 = vpop.xlane.xlu1 %7295 }
0x4a65   : > { %v7297_v57 = vrot.slane %v7296_v54, 4 }
0x4a67   : > { %v7298_v63 = vmax.f32 %v7296_v54, %v7297_v57 }
0x4a69   : > { %v7299_v4 = vrot.slane %v7298_v63, 2 }
0x4a6b   : > { %v7300_v46 = vmax.f32 %v7298_v63, %v7299_v4 }
0x4a6d   : > { %v7301_v21 = vrot.slane %v7300_v46, 1 }
0x4a6f   : > { %v7302_v7 = vmax.f32 %v7300_v46, %v7301_v21 }
0x4a71   : > { %10715 = vpush %v7302_v7 }
0x4aa2   : > { %s10716_s8 = spop %10715 }
0x4aa3   : > { %v7304_v33 = vstv %s10716_s8 }
0x4aa4   : > { %v7306_v16 = vand.u32 15, %v7304_v33 }
0x4aa6   : > { %v7307_v26 = vsub.s32 15, %v7306_v16 }
0x4aa8   : > { %vm7309_vm3 = vcmp.eq.s32.totalorder %v11125_v28, %v7307_v26  ;;  %vm7310_vm13 = vcmp.eq.s32.totalorder %v11128_v29, %v7307_v26 }
0x4aa9   : > { %v7311_v36 = vsel %vm7309_vm3, -inf, %v7288_v43  ;;  %v7312_v44 = vsel %vm7310_vm13, -inf, %v7289_v41  ;;  %v7308_v41 = vsel %vm1366_vm8, %v7307_v26, 0 }
0x4aaa   : > { %v7313_v34 = vsel %vm940_vm4, %v7311_v36, -inf  ;;  %v7314_v48 = vsel %vm940_vm4, %v7312_v44, -inf }
0x4aab   : > { %v7315_v58 = vmax.f32 %v7313_v34, %v7314_v48 }
0x4aad   : > { %7316 = vmax.xlane.f32.xlu1 %v7315_v58 }
0x4b3a   : > { %v7317_v23 = vpop.xlane.xlu1 %7316 }
0x4b3b   : > { %v7318_v14 = vrot.slane %v7317_v23, 4 }
0x4b3d   : > { %v7319_v5 = vmax.f32 %v7317_v23, %v7318_v14 }
0x4b3f   : > { %v7320_v30 = vrot.slane %v7319_v5, 2 }
0x4b41   : > { %v7321_v18 = vmax.f32 %v7319_v5, %v7320_v30 }
0x4b43   : > { %v7322_v19 = vrot.slane %v7321_v18, 1 }
0x4b45   : > { %v7323_v50 = vmax.f32 %v7321_v18, %v7322_v19 }
0x4b47   : > { %10717 = vpush %v7323_v50 }
0x4b78   : > { %s10718_s26 = spop %10717 }
0x4b79   : > { %v7325_v2 = vstv %s10718_s26 }
0x4b7a   : > { %v7327_v52 = vand.u32 15, %v7325_v2 }
0x4b7c   : > { %v7328_v17 = vsub.s32 15, %v7327_v52 }
0x4b7e   : > { %v7329_v43 = vsel %vm1388_vm9, %v7328_v17, %v7308_v41  ;;  %vm7330_vm11 = vcmp.eq.s32.totalorder %v11125_v28, %v7328_v17  ;;  %vm7331_vm2 = vcmp.eq.s32.totalorder %v11128_v29, %v7328_v17 }
0x4b7f   : > { %v7332_v54 = vsel %vm7330_vm11, -inf, %v7311_v36  ;;  %v7333_v57 = vsel %vm7331_vm2, -inf, %v7312_v44  ;;  %vm12399_vm2 = vcmp.eq.s32.totalorder %v11125_v28, 6 }
0x4b80   : > { %v7334_v63 = vsel %vm940_vm4, %v7332_v54, -inf  ;;  %v7335_v4 = vsel %vm940_vm4, %v7333_v57, -inf }
0x4b81   : > { %v7336_v46 = vmax.f32 %v7334_v63, %v7335_v4 }
0x4b83   : > { %7337 = vmax.xlane.f32.xlu1 %v7336_v46 }
0x4c10   : > { %v7338_v21 = vpop.xlane.xlu1 %7337 }
0x4c11   : > { %v7339_v7 = vrot.slane %v7338_v21, 4 }
0x4c13   : > { %v7340_v33 = vmax.f32 %v7338_v21, %v7339_v7 }
0x4c15   : > { %v7341_v16 = vrot.slane %v7340_v33, 2 }
0x4c17   : > { %v7342_v26 = vmax.f32 %v7340_v33, %v7341_v16 }
0x4c19   : > { %v7343_v34 = vrot.slane %v7342_v26, 1 }
0x4c1b   : > { %v7344_v48 = vmax.f32 %v7342_v26, %v7343_v34 }
0x4c1d   : > { %10719 = vpush %v7344_v48 }
0x4c4e   : > { %s10720_s4 = spop %10719 }
0x4c4f   : > { %v7346_v58 = vstv %s10720_s4  ;;  %s8879_s4 = sshll.u32 %s12408_s28, 2 }
0x4c50   : > { %v7348_v23 = vand.u32 15, %v7346_v58 }
0x4c52   : > { %v7349_v14 = vsub.s32 15, %v7348_v23 }
0x4c54   : > { %v7350_v36 = vsel %vm1410_vm12, %v7349_v14, %v7329_v43  ;;  %vm7351_vm8 = vcmp.eq.s32.totalorder %v11125_v28, %v7349_v14  ;;  %vm7352_vm9 = vcmp.eq.s32.totalorder %v11128_v29, %v7349_v14 }
0x4c55   : > { %v7353_v44 = vsel %vm7351_vm8, -inf, %v7332_v54  ;;  %v7354_v5 = vsel %vm7352_vm9, -inf, %v7333_v57 }
0x4c56   : > { %v7355_v30 = vsel %vm940_vm4, %v7353_v44, -inf  ;;  %v7356_v18 = vsel %vm940_vm4, %v7354_v5, -inf }
0x4c57   : > { %v7357_v19 = vmax.f32 %v7355_v30, %v7356_v18 }
0x4c59   : > { %7358 = vmax.xlane.f32.xlu0 %v7357_v19 }
0x4ce6   : > { %v7359_v50 = vpop.xlane.xlu0 %7358 }
0x4ce7   : > { %v7360_v2 = vrot.slane %v7359_v50, 4 }
0x4ce9   : > { %v7361_v52 = vmax.f32 %v7359_v50, %v7360_v2 }
0x4ceb   : > { %v7362_v17 = vrot.slane %v7361_v52, 2 }
0x4ced   : > { %v7363_v41 = vmax.f32 %v7361_v52, %v7362_v17 }
0x4cef   : > { %v7364_v63 = vrot.slane %v7363_v41, 1 }
0x4cf1   : > { %v7365_v4 = vmax.f32 %v7363_v41, %v7364_v63 }
0x4cf3   : > { %10721 = vpush %v7365_v4 }
0x4d24   : > { %s10722_s1 = spop %10721 }
0x4d25   : > { %v7367_v43 = vstv %s10722_s1 }
0x4d26   : > { %v7369_v46 = vand.u32 15, %v7367_v43 }
0x4d28   : > { %v7370_v21 = vsub.s32 15, %v7369_v46 }
0x4d2a   : > { %v7371_v54 = vsel %vm1432_vm15, %v7370_v21, %v7350_v36  ;;  %vm7372_vm12 = vcmp.eq.s32.totalorder %v11125_v28, %v7370_v21  ;;  %vm7373_vm7 = vcmp.eq.s32.totalorder %v11128_v29, %v7370_v21 }
0x4d2b   : > { %v7374_v57 = vsel %vm7372_vm12, -inf, %v7353_v44  ;;  %v7375_v7 = vsel %vm7373_vm7, -inf, %v7354_v5  ;;  %vm12400_vm12 = vcmp.eq.s32.totalorder %v11125_v28, 7 }
0x4d2c   : > { %v7376_v33 = vsel %vm940_vm4, %v7374_v57, -inf  ;;  %v7377_v16 = vsel %vm940_vm4, %v7375_v7, -inf }
0x4d2d   : > { %v7378_v26 = vmax.f32 %v7376_v33, %v7377_v16 }
0x4d2f   : > { %7379 = vmax.xlane.f32.xlu1 %v7378_v26 }
0x4dbc   : > { %v7380_v34 = vpop.xlane.xlu1 %7379 }
0x4dbd   : > { %v7381_v48 = vrot.slane %v7380_v34, 4 }
0x4dbf   : > { %v7382_v58 = vmax.f32 %v7380_v34, %v7381_v48 }
0x4dc1   : > { %v7383_v23 = vrot.slane %v7382_v58, 2 }
0x4dc3   : > { %v7384_v14 = vmax.f32 %v7382_v58, %v7383_v23 }
0x4dc5   : > { %v7385_v30 = vrot.slane %v7384_v14, 1 }
0x4dc7   : > { %v7386_v18 = vmax.f32 %v7384_v14, %v7385_v30 }
0x4dc9   : > { %10723 = vpush %v7386_v18 }
0x4dfa   : > { %s10724_s6 = spop %10723 }
0x4dfb   : > { %v7388_v36 = vstv %s10724_s6 }
0x4dfc   : > { %v7390_v19 = vand.u32 15, %v7388_v36 }
0x4dfe   : > { %v7391_v50 = vsub.s32 15, %v7390_v19 }
0x4e00   : > { %v7392_v44 = vsel %vm1454_vm6, %v7391_v50, %v7371_v54  ;;  %vm7393_vm15 = vcmp.eq.s32.totalorder %v11125_v28, %v7391_v50  ;;  %vm7394_vm3 = vcmp.eq.s32.totalorder %v11128_v29, %v7391_v50  ;;  %vm12398_vm6 = vcmp.eq.s32.totalorder %v11125_v28, 5 }
0x4e01   : > { %v7395_v5 = vsel %vm7393_vm15, -inf, %v7374_v57  ;;  %v7396_v2 = vsel %vm7394_vm3, -inf, %v7375_v7  ;;  %vm7608_vm15 = vcmp.ne.f32.partialorder %v12078_v56, 0.0 }
0x4e02   : > { %v7397_v52 = vsel %vm940_vm4, %v7395_v5, -inf  ;;  %v7398_v17 = vsel %vm940_vm4, %v7396_v2, -inf }
0x4e03   : > { %v7399_v41 = vmax.f32 %v7397_v52, %v7398_v17 }
0x4e05   : > { %7400 = vmax.xlane.f32.xlu0 %v7399_v41 }
0x4e92   : > { %v7401_v63 = vpop.xlane.xlu0 %7400 }
0x4e93   : > { %v7402_v4 = vrot.slane %v7401_v63, 4 }
0x4e95   : > { %v7403_v43 = vmax.f32 %v7401_v63, %v7402_v4 }
0x4e97   : > { %v7404_v46 = vrot.slane %v7403_v43, 2 }
0x4e99   : > { %v7405_v21 = vmax.f32 %v7403_v43, %v7404_v46 }
0x4e9b   : > { %v7406_v33 = vrot.slane %v7405_v21, 1 }
0x4e9d   : > { %v7407_v16 = vmax.f32 %v7405_v21, %v7406_v33 }
0x4e9f   : > { %10725 = vpush %v7407_v16 }
0x4ed0   : > { %s10726_s2 = spop %10725 }
0x4ed1   : > { %v7409_v54 = vstv %s10726_s2 }
0x4ed2   : > { %v7411_v26 = vand.u32 15, %v7409_v54 }
0x4ed4   : > { %v7412_v34 = vsub.s32 15, %v7411_v26 }
0x4ed6   : > { %v7413_v57 = vsel %vm12398_vm6, %v7412_v34, %v7392_v44  ;;  %vm7414_vm13 = vcmp.eq.s32.totalorder %v11125_v28, %v7412_v34  ;;  %vm7415_vm11 = vcmp.eq.s32.totalorder %v11128_v29, %v7412_v34 }
0x4ed7   : > { %v7416_v7 = vsel %vm7414_vm13, -inf, %v7395_v5  ;;  %v7417_v48 = vsel %vm7415_vm11, -inf, %v7396_v2 }
0x4ed8   : > { %v7418_v58 = vsel %vm940_vm4, %v7416_v7, -inf  ;;  %v7419_v23 = vsel %vm940_vm4, %v7417_v48, -inf }
0x4ed9   : > { %v7420_v14 = vmax.f32 %v7418_v58, %v7419_v23 }
0x4edb   : > { %7421 = vmax.xlane.f32.xlu1 %v7420_v14 }
0x4f68   : > { %v7422_v30 = vpop.xlane.xlu1 %7421 }
0x4f69   : > { %v7423_v18 = vrot.slane %v7422_v30, 4 }
0x4f6b   : > { %v7424_v36 = vmax.f32 %v7422_v30, %v7423_v18 }
0x4f6d   : > { %v7425_v19 = vrot.slane %v7424_v36, 2 }
0x4f6f   : > { %v7426_v50 = vmax.f32 %v7424_v36, %v7425_v19 }
0x4f71   : > { %v7427_v52 = vrot.slane %v7426_v50, 1 }
0x4f73   : > { %v7428_v17 = vmax.f32 %v7426_v50, %v7427_v52 }
0x4f75   : > { %10727 = vpush %v7428_v17 }
0x4fa6   : > { %s10728_s30 = spop %10727 }
0x4fa7   : > { %v7430_v44 = vstv %s10728_s30 }
0x4fa8   : > { %v7432_v41 = vand.u32 15, %v7430_v44 }
0x4faa   : > { %v7433_v63 = vsub.s32 15, %v7432_v41 }
0x4fac   : > { %v7434_v5 = vsel %vm12399_vm2, %v7433_v63, %v7413_v57  ;;  %vm7435_vm8 = vcmp.eq.s32.totalorder %v11125_v28, %v7433_v63  ;;  %vm7436_vm9 = vcmp.eq.s32.totalorder %v11128_v29, %v7433_v63  ;;  %v9030_v28 = vsel %vm7608_vm15, 1.0, %v12388_v24 }
0x4fad   : > { %v7437_v2 = vsel %vm7435_vm8, -inf, %v7416_v7  ;;  %v7438_v4 = vsel %vm7436_vm9, -inf, %v7417_v48 }
0x4fae   : > { %v7439_v43 = vsel %vm940_vm4, %v7437_v2, -inf  ;;  %v7440_v46 = vsel %vm940_vm4, %v7438_v4, -inf  ;;  %vm7609_vm4 = vcmp.ne.f32.partialorder %v12083_v3, 0.0 }
0x4faf   : > { %v7441_v21 = vmax.f32 %v7439_v43, %v7440_v46  ;;  %vm10540_vm3 = vmpackc.low %vm7609_vm4, %vm7608_vm15 }
0x4fb1   : > { %7442 = vmax.xlane.f32.xlu0 %v7441_v21 }
0x503e   : > { %v7443_v33 = vpop.xlane.xlu0 %7442 }
0x503f   : > { %v7444_v16 = vrot.slane %v7443_v33, 4 }
0x5041   : > { %v7445_v54 = vmax.f32 %v7443_v33, %v7444_v16 }
0x5043   : > { %v7446_v26 = vrot.slane %v7445_v54, 2 }
0x5045   : > { %v7447_v34 = vmax.f32 %v7445_v54, %v7446_v26 }
0x5047   : > { %v7448_v58 = vrot.slane %v7447_v34, 1 }
0x5049   : > { %v7449_v23 = vmax.f32 %v7447_v34, %v7448_v58 }
0x504b   : > { %10729 = vpush %v7449_v23 }
0x507c   : > { %s10730_s3 = spop %10729 }
0x507d   : > { %v7451_v57 = vstv %s10730_s3  ;;  %s12403_s3 = sld [smem:[#allocation14_spill]] }
0x507e   : > { %v7453_v14 = vand.u32 15, %v7451_v57 }
0x5080   : > { %v7454_v29 = vsub.s32 15, %v7453_v14 }
0x5082   : > { %v7455_v7 = vsel %vm12400_vm12, %v7454_v29, %v7434_v5 }
0x5083   : > { %vm7456_vm7 = vcmp.eq.s32.totalorder %v11196_v1, %v7455_v7  ;;  %v9031_v1 = vsel %vm7609_vm4, 1.0, %v12388_v24  ;;  %s767_s10 = scalar_lea.vmem %s12403_s3, %s8879_s4 }
0x5084   : > { %v9027_v48 = vsel %vm7456_vm7, 1.0, %v12388_v24 }
0x5085   : > { %10062 = vmatmul.mubr.msk.f32.vlgmr.msra.gmra.mrb[82].mxu0 %vm838_vm0, %v9027_v48 }
0x5086   : > { %10538 = vmatpush3.bf16.msra.mxu0 %v12129_v22  ;;  %10068 = vmatprep.mubr.msk.f32.mxu0 %vm10884_vm10, %v12388_v24 }
0x5087   : > { %10539 = vmatprep.subr.bf16.mxu0 %v12389_v31 }
0x5089   : > { %10069 = vmatmul.mubr.msk.f32.vlgmr.msra.gmra.mrb[84].mxu0 %vm838_vm0, %v9027_v48 }
0x508a   : > { %10541 = vmatpush3.bf16.msk.msra.mxu0 %vm10540_vm3, %v12390_v9  ;;  %10075 = vmatprep.mubr.msk.f32.mxu0 %vm10884_vm10, %v12388_v24 }
0x508b   : > { %10078 = vmatprep.subr.msk.mxu0 %vm838_vm0, %v9027_v48 }
0x508d   : > { %10076 = vmatmul.mubr.msk.f32.vlgmr.msra.gmra.mrb[86].mxu0 %vm838_vm0, %v9027_v48 }
0x508e   : > { %10080 = vmatprep.mubr.msk.f32.mxu0 %vm838_vm0, %v9030_v28 }
0x5093   : > { %10079 = vmatpush3.xpose.msk.msra.mxu0 %vm838_vm0, %v9027_v48 }
0x5094   : > { %10542 = vmatprep.subr.bf16.mxu0 %v12389_v31 }
0x5096   : > { %10081 = vmatmul.mubr.msk.f32.vlgmr.msra.gmra.mrb[88].mxu0 %vm838_vm0, %v9031_v1 }
0x5097   : > { %10087 = vmatprep.mubr.msk.f32.mxu0 %vm10884_vm10, %v12388_v24 }
0x5158   : > { %v7528_v9 = vpop.f32.mrb[82].mxu0 }
0x5159   : > { %v10063_v56 = vpop.f32.mrb[83].mxu0 }
0x515c   : > { %v7598_v3 = vpop.f32.mrb[84].mxu0 }
0x515d   : > { %v10070_v22 = vpop.f32.mrb[85].mxu0 }
0x5160   : > { %v7680_v30 = vpop.f32.mrb[86].mxu0 }
0x5161   : > { %v10077_v18 = vpop.f32.mrb[87].mxu0 }
0x5169   : > { %v10082_v36 = vpop.f32.mrb[88].mxu0 }
0x516a   : > { %v7756_v19 = vpop.f32.mrb[89].mxu0 }
0x516b   : > { %v10543_v50 = vpack.c.bf16 %v10082_v36, %v7756_v19 }
0x516d   : > { %10544 = vmatpush3.bf16.msra.mxu0 %v10543_v50 }
0x516e   : > { %10545 = vmatprep.subr.bf16.mxu0 %v12389_v31 }
0x5170   : > { %10088 = vmatmul.mubr.msk.f32.vlgmr.msra.gmra.mrb[90].mxu0 %vm838_vm0, %v7680_v30  ;;  %v10873_v30 = vld [vmem:[%s12333_s13] ss:$0 sm:$0xff] }
0x5171   : > { %10547 = vmatpush3.bf16.msra.mxu0 %v11243_v38  ;;  %10103 = vmatprep.mubr.msk.f32.mxu0 %vm10884_vm10, %v12388_v24 }
0x5172   : > { %10548 = vmatprep.subr.bf16.mxu0 %v12389_v31 }
0x5175   : > { %10550 = vmatpush3.bf16.msra.mxu0 %v11249_v40 }
0x5176   : > { %10599 = vmatprep.subr.bf16.mxu0 %v12389_v31 }
0x5243   : > { %v7834_v52 = vpop.f32.mrb[90].mxu0 }
0x5244   : > { %vm7838_vm6 = vcmp.ne.f32.partialorder %v7834_v52, 0.0  ;;  %v10089_v17 = vpop.f32.mrb[91].mxu0 }
0x5245   : > { %v9039_v44 = vsel %vm7838_vm6, 1.0, %v12388_v24 }
0x5246   : > { %v7841_v41 = vsel %vm1909_vm1, %v9039_v44, 0.0 }
0x5247   : > { %7842 = vadd.xlane.f32.xlu1 %v7841_v41 }
0x5258   : > { %7604 = vperm.xlu1 %10745, %v7528_v9  }
0x52d4   : > { %v7843_v63 = vpop.xlane.xlu1 %7842 }
0x52d5   : > { %10840 = vrcp.f32 %v7843_v63  ;;  %vm7844_vm13 = vcmp.gt.f32.partialorder %v7843_v63, 0.0 }
0x52d8   : > { %v7605_v38 = vpop.permute.xlu1 %7604 }
0x52d9   : > { %v7607_v5 = vmul.f32 %v7605_v38, %v7598_v3  ;;  %v10872_v3 = vld [vmem:[%s12332_s12] ss:$0 sm:$0xff] }
0x52db   : > { %10091 = vmatpush3.msra.mxu1 %v7607_v5 }
0x52dc   : > { %10551 = vmatprep.subr.bf16.mxu1 %v12389_v31 }
0x52df   : > { %v10841_v2 = vpop.eup %10840 }
0x52e0   : > { %v7846_v40 = vsel %vm7844_vm13, %v10841_v2, 0.0 }
0x52e1   : > { %v7847_v4 = vmul.f32 %v9039_v44, %v7846_v40 }
0x52e3   : > { %v7848_v43 = vsel %vm1909_vm1, %v7847_v4, 0.0 }
0x52e4   : > { %7849 = vadd.xlane.f32.xlu0 %v7848_v43 }
0x5371   : > { %v7850_v46 = vpop.xlane.xlu0 %7849 }
0x5372   : > { %10842 = vrcp.f32 %v7850_v46  ;;  %vm7851_vm11 = vcmp.gt.f32.partialorder %v7850_v46, 0.0 }
0x537c   : > { %v10843_v21 = vpop.eup %10842 }
0x537d   : > { %v7853_v33 = vsel %vm7851_vm11, %v10843_v21, 0.0 }
0x537e   : > { %v7854_v16 = vmul.f32 %v7853_v33, %v7847_v4 }
0x5380   : > { %10093 = vmatmul.mubr.msk.f32.vlgmr.msra.gmra.mrb[20].mxu1 %vm1909_vm1, %v7854_v16  ;;  %vm12401_vm1 = vcmask 122880  }
0x5381   : > { %10553 = vmatpush3.bf16.msra.mxu1 %v11271_v0  ;;  %10114 = vmatprep.mubr.msk.f32.mxu1 %vm10884_vm10, %v12388_v24 }
0x5382   : > { %10554 = vmatprep.subr.bf16.mxu1 %v12389_v31 }
0x5385   : > { %10556 = vmatpush3.bf16.msra.mxu1 %v11290_v8  ;;  %v10871_v8 = vld [vmem:[%s12331_s11] ss:$0 sm:$0xff] }
0x5386   : > { %10557 = vmatprep.subr.bf16.mxu1 %v12389_v31 }
0x5453   : > { %v7924_v54 = vpop.f32.mrb[20].mxu1 }
0x5454   : > { %v10094_v26 = vpop.f32.mrb[21].mxu1  ;;  %10104 = vmatmul.mubr.msk.f32.vlgmr.msra.gmra.mrb[92].mxu0 %vm1028_vm5, %v7924_v54 }
0x5455   : > { %10601 = vmatpush3.bf16.msra.mxu0 %v11479_v49  ;;  %10202 = vmatprep.mubr.msk.f32.mxu0 %vm10884_vm10, %v12388_v24 }
0x5456   : > { %10602 = vmatprep.subr.bf16.mxu0 %v12389_v31 }
0x5459   : > { %10604 = vmatpush3.bf16.msra.mxu0 %v11489_v53 }
0x545a   : > { %10605 = vmatprep.subr.bf16.mxu0 %v12389_v31 }
0x5527   : > { %v7997_v0 = vpop.f32.mrb[92].mxu0 }
0x5528   : > { %v7998_v34 = vadd.f32 %v10871_v8, %v7997_v0  ;;  %v10105_v58 = vpop.f32.mrb[93].mxu0  ;;  %v10874_v8 = vld [vmem:[%s12343_s23] sm:$0x1] }
0x552a   : > { %v8001_v23 = vmax.f32 %v7998_v34, 0.0 }
0x552c   : > { %v8002_v57 = vsel %vm1028_vm5, %v8001_v23, 0.0 }
0x552d   : > { %8003 = vadd.xlane.f32.xlu0 %v8002_v57 }
0x55ba   : > { %v8004_v49 = vpop.xlane.xlu0 %8003 }
0x55bb   : > { %v8005_v14 = vmul.f32 0.03125, %v8004_v49 }
0x55bd   : > { %v8006_v29 = vsub.f32 %v8001_v23, %v8005_v14 }
0x55bf   : > { %v8007_v7 = vmul.f32 %v8006_v29, %v8006_v29 }
0x55c1   : > { %v8008_v48 = vsel %vm1028_vm5, %v8007_v7, 0.0 }
0x55c2   : > { %8009 = vadd.xlane.f32.xlu0 %v8008_v48 }
0x564f   : > { %v8010_v53 = vpop.xlane.xlu0 %8009 }
0x5650   : > { %v8011_v28 = vmul.f32 0.03125, %v8010_v53 }
0x5652   : > { %v8012_v1 = vadd.f32 1e-05, %v8011_v28 }
0x5654   : > { %10844 = vrsqrt.f32 %v8012_v1 }
0x565e   : > { %v10845_v9 = vpop.eup %10844 }
0x565f   : > { %v8014_v56 = vmul.f32 %v10845_v9, %v8006_v29 }
0x5661   : > { %v8015_v22 = vmul.f32 %v10872_v3, %v8014_v56 }
0x5663   : > { %v8016_v18 = vadd.f32 %v10873_v30, %v8015_v22 }
0x5665   : > { %10115 = vmatmul.mubr.msk.f32.vlgmr.msra.gmra.mrb[22].mxu1 %vm1028_vm5, %v8016_v18  ;;  %v8091_v36 = vrot.slane %v8016_v18, 1 }
0x5666   : > { %10559 = vmatpush3.bf16.msra.mxu1 %v11323_v25  ;;  %10125 = vmatprep.mubr.msk.f32.mxu1 %vm10884_vm10, %v12388_v24  ;;  %v8165_v25 = vrot.slane %v8016_v18, 2 }
0x5667   : > { %10560 = vmatprep.subr.bf16.mxu1 %v12389_v31 }
0x566a   : > { %10562 = vmatpush3.bf16.msra.mxu1 %v11345_v39  ;;  %v8461_v39 = vrot.slane %v8016_v18, 6 }
0x566b   : > { %10563 = vmatprep.subr.bf16.mxu1 %v12389_v31 }
0x566d   : > { %10126 = vmatmul.mubr.msk.f32.vlgmr.msra.gmra.mrb[22].mxu1 %vm1028_vm5, %v8091_v36 }
0x566e   : > { %10565 = vmatpush3.bf16.msra.mxu1 %v11280_v6  ;;  %10136 = vmatprep.mubr.msk.f32.mxu1 %vm10884_vm10, %v12388_v24  ;;  %v8239_v6 = vrot.slane %v8016_v18, 3 }
0x566f   : > { %10566 = vmatprep.subr.bf16.mxu1 %v12389_v31 }
0x5672   : > { %10568 = vmatpush3.bf16.msra.mxu1 %v11300_v11  ;;  %v8313_v11 = vrot.slane %v8016_v18, 4 }
0x5673   : > { %10569 = vmatprep.subr.bf16.mxu1 %v12389_v31 }
0x5675   : > { %10137 = vmatmul.mubr.msk.f32.vlgmr.msra.gmra.mrb[22].mxu1 %vm1028_vm5, %v8165_v25 }
0x5676   : > { %10571 = vmatpush3.bf16.msra.mxu1 %v11333_v32  ;;  %10147 = vmatprep.mubr.msk.f32.mxu1 %vm10884_vm10, %v12388_v24  ;;  %v8387_v32 = vrot.slane %v8016_v18, 5 }
0x5677   : > { %10572 = vmatprep.subr.bf16.mxu1 %v12389_v31 }
0x567a   : > { %10574 = vmatpush3.bf16.msra.mxu1 %v11352_v42  ;;  %v8535_v42 = vrot.slane %v8016_v18, 7 }
0x567b   : > { %10575 = vmatprep.subr.bf16.mxu1 %v12389_v31 }
0x567d   : > { %10148 = vmatmul.mubr.msk.f32.vlgmr.msra.gmra.mrb[22].mxu1 %vm1028_vm5, %v8239_v6 }
0x567e   : > { %10577 = vmatpush3.bf16.msra.mxu1 %v11367_v47  ;;  %10158 = vmatprep.mubr.msk.f32.mxu1 %vm10884_vm10, %v12388_v24 }
0x567f   : > { %10578 = vmatprep.subr.bf16.mxu1 %v12389_v31 }
0x5682   : > { %10580 = vmatpush3.bf16.msra.mxu1 %v11382_v51 }
0x5683   : > { %10581 = vmatprep.subr.bf16.mxu1 %v12389_v31 }
0x5685   : > { %10159 = vmatmul.mubr.msk.f32.vlgmr.msra.gmra.mrb[22].mxu1 %vm1028_vm5, %v8313_v11 }
0x5686   : > { %10583 = vmatpush3.bf16.msra.mxu1 %v11394_v55  ;;  %10169 = vmatprep.mubr.msk.f32.mxu1 %vm10884_vm10, %v12388_v24 }
0x5687   : > { %10584 = vmatprep.subr.bf16.mxu1 %v12389_v31 }
0x568a   : > { %10586 = vmatpush3.bf16.msra.mxu1 %v11406_v59 }
0x568b   : > { %10587 = vmatprep.subr.bf16.mxu1 %v12389_v31 }
0x568d   : > { %10170 = vmatmul.mubr.msk.f32.vlgmr.msra.gmra.mrb[22].mxu1 %vm1028_vm5, %v8387_v32 }
0x568e   : > { %10589 = vmatpush3.bf16.msra.mxu1 %v11418_v62  ;;  %10180 = vmatprep.mubr.msk.f32.mxu1 %vm10884_vm10, %v12388_v24 }
0x568f   : > { %10590 = vmatprep.subr.bf16.mxu1 %v12389_v31 }
0x5692   : > { %10592 = vmatpush3.bf16.msra.mxu1 %v11430_v12 }
0x5693   : > { %10593 = vmatprep.subr.bf16.mxu1 %v12389_v31 }
0x5695   : > { %10181 = vmatmul.mubr.msk.f32.vlgmr.msra.gmra.mrb[22].mxu1 %vm1028_vm5, %v8461_v39 }
0x5696   : > { %10595 = vmatpush3.bf16.msra.mxu1 %v11442_v13  ;;  %10191 = vmatprep.mubr.msk.f32.mxu1 %vm10884_vm10, %v12388_v24 }
0x5697   : > { %10596 = vmatprep.subr.bf16.mxu1 %v12389_v31 }
0x569a   : > { %10598 = vmatpush3.bf16.msra.mxu1 %v11454_v15 }
0x569d   : > { %10192 = vmatmul.mubr.msk.f32.vlgmr.msra.gmra.mrb[22].mxu1 %vm1028_vm5, %v8535_v42 }
0x5770   : > { %v8604_v47 = vpop.f32.mrb[22].mxu1 }
0x5771   : > { %v10612_v51 = vadd.f32 %v12031_v20, %v8604_v47  ;;  %v10193_v55 = vpop.f32.mrb[23].mxu1 }
0x5773   : > { %v8609_v59 = vmax.f32 %v10612_v51, 0.0 }
0x5775   : > { %v8610_v62 = vsel %vm2697_vm14, %v8609_v59, 0.0 }
0x5776   : > { %8611 = vadd.xlane.f32.xlu0 %v8610_v62 }
0x5803   : > { %v8612_v12 = vpop.xlane.xlu0 %8611 }
0x5804   : > { %v8613_v13 = vmul.f32 0.03125, %v8612_v12 }
0x5806   : > { %v8614_v19 = vsub.f32 %v8609_v59, %v8613_v13 }
0x5808   : > { %v8615_v50 = vmul.f32 %v8614_v19, %v8614_v19 }
0x580a   : > { %v8616_v52 = vsel %vm2697_vm14, %v8615_v50, 0.0  ;;  %vm8801_vm14 = vcmask 11264  }
0x580b   : > { %8617 = vadd.xlane.f32.xlu0 %v8616_v52 }
0x5898   : > { %v8618_v31 = vpop.xlane.xlu0 %8617 }
0x5899   : > { %v8619_v15 = vmul.f32 0.03125, %v8618_v31 }
0x589b   : > { %v8620_v17 = vadd.f32 1e-05, %v8619_v15 }
0x589d   : > { %10846 = vrsqrt.f32 %v8620_v17 }
0x58a7   : > { %v10847_v44 = vpop.eup %10846 }
0x58a8   : > { %v8622_v41 = vmul.f32 %v10847_v44, %v8614_v19 }
0x58aa   : > { %v8623_v20 = vmul.f32 %v12039_v27, %v8622_v41 }
0x58ac   : > { %v8624_v63 = vadd.f32 %v12045_v35, %v8623_v20 }
0x58ae   : > { %10203 = vmatmul.mubr.msk.f32.vlgmr.msra.gmra.mrb[94].mxu0 %vm1028_vm5, %v8624_v63  ;;  %vm12402_vm5 = vmmov %vm12401_vm1 }
0x58af   : > { %10607 = vmatpush3.bf16.msra.mxu0 %v11526_v45  ;;  %10209 = vmatprep.mubr.msk.f32.mxu0 %vm10884_vm10, %v12388_v24  ;;  %vm8799_vm10 = vcmask 1042432  }
0x5981   : > { %v8694_v38 = vpop.f32.mrb[94].mxu0 }
0x5982   : > { %v8695_v5 = vadd.f32 %v12055_v60, %v8694_v38  ;;  %v10204_v2 = vpop.f32.mrb[95].mxu0 }
0x5984   : > { %v8698_v40 = vmax.f32 %v8695_v5, 0.0 }
0x5986   : > { %v8699_v4 = vsel %vm12401_vm1, %v8698_v40, 0.0 }
0x5987   : > { %8700 = vadd.xlane.f32.xlu0 %v8699_v4 }
0x5a14   : > { %v8701_v43 = vpop.xlane.xlu0 %8700 }
0x5a15   : > { %v8702_v27 = vmul.f32 0.0625, %v8701_v43 }
0x5a17   : > { %v8703_v35 = vsub.f32 %v8698_v40, %v8702_v27 }
0x5a19   : > { %v8704_v46 = vmul.f32 %v8703_v35, %v8703_v35 }
0x5a1b   : > { %v8705_v21 = vsel %vm12402_vm5, %v8704_v46, 0.0 }
0x5a1c   : > { %8706 = vadd.xlane.f32.xlu1 %v8705_v21 }
0x5aa9   : > { %v8707_v45 = vpop.xlane.xlu1 %8706 }
0x5aaa   : > { %v8708_v33 = vmul.f32 0.0625, %v8707_v45 }
0x5aac   : > { %v8709_v24 = vadd.f32 1e-05, %v8708_v33 }
0x5aae   : > { %10848 = vrsqrt.f32 %v8709_v24 }
0x5ab8   : > { %v10849_v16 = vpop.eup %10848 }
0x5ab9   : > { %v8711_v60 = vmul.f32 %v10849_v16, %v8703_v35 }
0x5abb   : > { %v8712_v54 = vmul.f32 %v12069_v37, %v8711_v60 }
0x5abd   : > { %v8713_v26 = vadd.f32 %v12075_v61, %v8712_v54 }
0x5abf   : > { %10210 = vmatmul.mubr.msk.f32.vlgmr.msra.gmra.mrb[96].mxu0 %vm838_vm0, %v8713_v26 }
0x5b92   : > { %v8783_v0 = vpop.f32.mrb[96].mxu0 }
0x5b93   : > { %v8784_v34 = vadd.f32 %v10874_v8, %v8783_v0  ;;  %v10211_v58 = vpop.f32.mrb[97].mxu0 }
0x5b95   : > { %v8794_v37 = vrot.slane %v8784_v34, 5 }
0x5b97   : > { %v8800_v61 = vsel %vm8799_vm10, %v12094_v10, %v8794_v37 }
0x5b98   : > { %8802 = vst.msk [vmem:[%s767_s10] sm:$0xf] %vm8801_vm14, %v8800_v61 }
0x5b99 PF: > { %s12404_s24 = sld [smem:[#allocation3_spill]] }
0x5b9f   : > { %s36_s27 = sadd.s32 1, %s12404_s24  }
0x5ba0   : > { %p33_p5 = scmp.ge.s32.totalorder %s36_s27, 4  }
0x5ba2   :  { %35 = sbr.rel (!%p33_p5) target bundleno = 12 (0xc), region = 155 }

</bundles_post_ra>
